<compile_context>
chip_gen: v6e
topology: v6e:2x2x1
jax: 0.10.0
libtpu: 0.0.40
codegen_flags: <defaults>
</compile_context>

<pallas_src>
import functools

import jax
import jax.numpy as jnp
from jax.experimental import pallas as pl
from jax.experimental.pallas import tpu as pltpu

F32 = jnp.float32
BF16 = jnp.bfloat16


# --------------------------------------------------------------------------
# Generic wrapper: grid over batch, weights replicated, one block per element
# --------------------------------------------------------------------------
def _call_batched(kernel, out_struct, batched, replicated, scratch_shapes=()):
    B = batched[0].shape[0]

    def b_spec(a):
        nd = a.ndim
        return pl.BlockSpec((1,) + tuple(a.shape[1:]),
                            lambda b, nd=nd: (b,) + (0,) * (nd - 1))

    def r_spec(a):
        nd = a.ndim
        return pl.BlockSpec(tuple(a.shape), lambda b, nd=nd: (0,) * nd)

    out_nd = len(out_struct.shape)
    out_spec = pl.BlockSpec((1,) + tuple(out_struct.shape[1:]),
                            lambda b, nd=out_nd: (b,) + (0,) * (nd - 1))

    return pl.pallas_call(
        kernel,
        out_shape=out_struct,
        grid=(B,),
        in_specs=[b_spec(a) for a in batched] + [r_spec(a) for a in replicated],
        out_specs=out_spec,
        scratch_shapes=list(scratch_shapes),
        compiler_params=pltpu.CompilerParams(
            dimension_semantics=("parallel",)),
    )(*batched, *replicated)


# --------------------------------------------------------------------------
# Kernel 1: all three conv blocks fused (depthwise+pointwise+BN -> one matmul each)
# --------------------------------------------------------------------------
def conv_stack_kernel(x_ref, w1, b1, w2, b2, w3, b3, o_ref, xp1, xp2, xp3):
    """x_ref: (1, T, C_in) channels-last; wN: (K*C_inN, C_outN) bf16 fused weight;
    bN: (1, C_outN) f32 fused bias; o_ref: (1, T//4, H); xpN: padded-input scratch."""

    def block(x, w_ref, b_ref, xp_scr, K, pool):
        T, C = x.shape
        pad = K // 2
        # zero-padded copy along time via scratch (avoids in-kernel jnp.pad)
        xp_scr[...] = jnp.zeros_like(xp_scr)
        xp_scr[pad:pad + T, :] = x
        xp = xp_scr[...]
        # im2col: (T, K*C) -- lane-axis concat of the K shifted views
        cols = jnp.concatenate([xp[k:k + T, :] for k in range(K)], axis=-1)
        y = jnp.dot(cols.astype(BF16), w_ref[...],
                    preferred_element_type=F32) + b_ref[...]
        y = jnp.maximum(y, 0.0)                         # BN folded in; ReLU
        if pool:                                        # MaxPool1d(2), floor on odd T
            Te = 2 * (T // 2)
            y = jnp.max(y[:Te].reshape(Te // 2, 2, y.shape[1]), axis=1)
        return y

    y = block(x_ref[0], w1, b1, xp1, 5, True)
    y = block(y, w2, b2, xp2, 3, True)
    y = block(y, w3, b3, xp3, 3, False)
    o_ref[0] = y


# --------------------------------------------------------------------------
# Kernel 2: one bidirectional LSTM layer (both directions fused, eval mode)
# --------------------------------------------------------------------------
def lstm_layer_kernel(x_ref, wihT_ref, b_ref, whh_ref, o_ref, *, hidden):
    """x_ref: (1, S, C_in); wihT_ref: (C_in, 8H) = [Wih_f^T | Wih_b^T] bf16;
    b_ref: (1, 8H) = [b_ih+b_hh fwd | bwd] f32; whh_ref: (2H, 8H) block-diagonal
    [Whh_f^T, Whh_b^T] bf16; o_ref: (1, S, 2H). PyTorch gate order [i, f, g, o]."""
    H = hidden
    x = x_ref[0]                                        # (S, C_in) f32
    S = x.shape[0]
    # input projection for both directions at once: (S, 8H)
    gx = jnp.dot(x.astype(BF16), wihT_ref[...],
                 preferred_element_type=F32) + b_ref[...]
    whh = whh_ref[...]                                  # (2H, 8H) bf16

    def cell(gates, c_prev):
        i = jax.nn.sigmoid(gates[:, 0 * H:1 * H])
        f = jax.nn.sigmoid(gates[:, 1 * H:2 * H])
        g = jnp.tanh(gates[:, 2 * H:3 * H])
        o = jax.nn.sigmoid(gates[:, 3 * H:4 * H])
        c = f * c_prev + i * g
        return o * jnp.tanh(c), c

    h_cat = jnp.zeros((1, 2 * H), F32)                  # [h_fwd | h_bwd]
    c_f = jnp.zeros((1, H), F32)
    c_b = jnp.zeros((1, H), F32)
    acc_f = jnp.zeros((S, H), F32)
    acc_b = jnp.zeros((S, H), F32)
    row = jax.lax.broadcasted_iota(jnp.int32, (S, 1), 0)

    for t in range(S):                                  # static unroll (S is small)
        # one block-diagonal recurrent matmul for both directions: (1,2H)@(2H,8H)
        rec = jnp.dot(h_cat.astype(BF16), whh, preferred_element_type=F32)
        gates_f = gx[t:t + 1, 0:4 * H] + rec[:, 0:4 * H]
        gates_b = gx[S - 1 - t:S - t, 4 * H:8 * H] + rec[:, 4 * H:8 * H]
        h_f, c_f = cell(gates_f, c_f)
        h_b, c_b = cell(gates_b, c_b)
        acc_f = jnp.where(row == t, h_f, acc_f)             # fwd output at time t
        acc_b = jnp.where(row == (S - 1 - t), h_b, acc_b)   # bwd output at time S-1-t
        h_cat = jnp.concatenate([h_f, h_b], axis=-1)
    o_ref[0] = jnp.concatenate([acc_f, acc_b], axis=-1)     # single slab store


# --------------------------------------------------------------------------
# Kernel 3: residual Linear + multi-head self-attention + mean-pool + fc1/fc2/fc3
# --------------------------------------------------------------------------
def tail_kernel(x_ref, wr, br, wq, bq, wk, bk, wv, bv, wo, bo,
                w1, b1, w2, b2, w3, b3, o_ref, *, num_heads):
    x = x_ref[0]                                        # (S, E) f32
    S, E = x.shape
    hd = E // num_heads
    scale = float(hd) ** -0.5

    def mm(a, w_ref, b_ref):
        return jnp.dot(a.astype(BF16), w_ref[...],
                       preferred_element_type=F32) + b_ref[...]

    res = x + mm(x, wr, br)                             # lstm_out + residual(lstm_out)

    q = mm(res, wq, bq)
    k = mm(res, wk, bk)
    v = mm(res, wv, bv)
    parts = []
    for h in range(num_heads):                          # static unroll over heads
        sl = slice(h * hd, (h + 1) * hd)
        s = jnp.einsum('qd,kd->qk', q[:, sl].astype(BF16), k[:, sl].astype(BF16),
                       preferred_element_type=F32) * scale
        p = jax.nn.softmax(s, axis=-1)                  # f32 softmax
        parts.append(jnp.dot(p.astype(BF16), v[:, sl].astype(BF16),
                             preferred_element_type=F32))
    ctx = jnp.concatenate(parts, axis=-1)               # (S, E)
    attn = mm(ctx, wo, bo)

    pooled = jnp.mean(attn, axis=0, keepdims=True)      # (1, E) mean over sequence
    h1 = jnp.maximum(mm(pooled, w1, b1), 0.0)           # fc1 + ReLU (dropout = id)
    h2 = jnp.maximum(mm(h1, w2, b2), 0.0)               # fc2 + ReLU (dropout = id)
    o_ref[0] = mm(h2, w3, b3)                           # fc3 logits


# --------------------------------------------------------------------------
# Forward
# --------------------------------------------------------------------------
def forward(x, params, *, input_dim, hidden_dim, num_heads):
    # PyTorch layout guard: accept (B, C, T) or (B, T, C)
    if x.ndim == 3 and x.shape[1] != input_dim and x.shape[2] == input_dim:
        x = jnp.transpose(x, (0, 2, 1))
    x = jnp.transpose(x, (0, 2, 1)).astype(F32)          # channels-last (B, T, C)
    B, T, C_in = x.shape
    H = hidden_dim
    T1 = T // 2                                          # after conv1 maxpool
    S = T1 // 2                                          # after conv2 maxpool

    c = params['conv']
    h = _call_batched(
        conv_stack_kernel,
        jax.ShapeDtypeStruct((B, S, H), F32),
        [x],
        [c['w1'], c['b1'], c['w2'], c['b2'], c['w3'], c['b3']],
        scratch_shapes=[pltpu.VMEM((T + 4, C_in), F32),
                        pltpu.VMEM((T1 + 2, 64), F32),
                        pltpu.VMEM((S + 2, 128), F32)])

    for layer in params['lstm']:
        h = _call_batched(
            functools.partial(lstm_layer_kernel, hidden=H),
            jax.ShapeDtypeStruct((B, S, 2 * H), F32),
            [h],
            [layer['wihT'], layer['b'], layer['whh']])

    t = params['tail']
    num_classes = t['b3'].shape[1]
    logits = _call_batched(
        functools.partial(tail_kernel, num_heads=num_heads),
        jax.ShapeDtypeStruct((B, 1, num_classes), F32),
        [h],
        [t['wr'], t['br'], t['wq'], t['bq'], t['wk'], t['bk'], t['wv'], t['bv'],
         t['wo'], t['bo'], t['w1'], t['b1'], t['w2'], t['b2'], t['w3'], t['b3']])
    return logits[:, 0, :]


# --------------------------------------------------------------------------
# Deterministic synthetic parameters with host-side folding (not a checkpoint load)
# --------------------------------------------------------------------------
def init_params(key, input_dim, hidden_dim, num_classes, num_heads=4, num_layers=2):
    ks = iter(jax.random.split(key, 64))

    def nrm(shape, scale=0.1):
        return (scale * jax.random.normal(next(ks), shape)).astype(F32)

    def conv_block_params(c_in, c_out, k):
        eps = 1e-5
        dw_w = nrm((k, c_in), 0.3)                 # depthwise weight, tap-major
        dw_b = nrm((c_in,), 0.05)
        pw_w = nrm((c_in, c_out), 0.2)             # pointwise weight (transposed)
        pw_b = nrm((c_out,), 0.05)
        gamma = 1.0 + nrm((c_out,), 0.05)
        beta = nrm((c_out,), 0.05)
        run_mean = jnp.zeros((c_out,), F32)
        run_var = jnp.ones((c_out,), F32)
        scale = gamma / jnp.sqrt(run_var + eps)
        shift = beta - run_mean * scale
        # fold depthwise -> pointwise -> batchnorm into one (K*C_in, C_out) matmul
        w_fused = (dw_w[:, :, None] * pw_w[None, :, :]).reshape(k * c_in, c_out)
        w_fused = w_fused * scale[None, :]
        b_fused = (dw_b @ pw_w + pw_b) * scale + shift
        return w_fused.astype(BF16), b_fused.reshape(1, c_out).astype(F32)

    H = hidden_dim
    E = 2 * H
    w1, b1 = conv_block_params(input_dim, 64, 5)
    w2, b2 = conv_block_params(64, 128, 3)
    w3, b3 = conv_block_params(128, H, 3)
    params = dict(
        conv=dict(w1=w1, b1=b1, w2=w2, b2=b2, w3=w3, b3=b3),
        lstm=[],
        tail=dict(
            wr=nrm((E, E)).astype(BF16), br=jnp.zeros((1, E), F32),
            wq=nrm((E, E)).astype(BF16), bq=jnp.zeros((1, E), F32),
            wk=nrm((E, E)).astype(BF16), bk=jnp.zeros((1, E), F32),
            wv=nrm((E, E)).astype(BF16), bv=jnp.zeros((1, E), F32),
            wo=nrm((E, E)).astype(BF16), bo=jnp.zeros((1, E), F32),
            w1=nrm((E, H)).astype(BF16), b1=jnp.zeros((1, H), F32),
            w2=nrm((H, H // 2)).astype(BF16), b2=jnp.zeros((1, H // 2), F32),
            w3=nrm((H // 2, num_classes)).astype(BF16),
            b3=jnp.zeros((1, num_classes), F32),
        ),
    )
    for layer in range(num_layers):
        in_size = H if layer == 0 else 2 * H
        wih_f = nrm((in_size, 4 * H))
        wih_b = nrm((in_size, 4 * H))
        whh_f = nrm((H, 4 * H))
        whh_b = nrm((H, 4 * H))
        b_f = nrm((1, 4 * H), 0.05)                # b_ih + b_hh folded
        b_b = nrm((1, 4 * H), 0.05)
        wihT = jnp.concatenate([wih_f, wih_b], axis=1)            # (in, 8H)
        whh_blk = jnp.zeros((2 * H, 8 * H), F32)                  # block-diagonal
        whh_blk = whh_blk.at[:H, :4 * H].set(whh_f)
        whh_blk = whh_blk.at[H:, 4 * H:].set(whh_b)
        b = jnp.concatenate([b_f, b_b], axis=1)                   # (1, 8H)
        params['lstm'].append(dict(wihT=wihT.astype(BF16),
                                   whh=whh_blk.astype(BF16),
                                   b=b.astype(F32)))
    return params


# --------------------------------------------------------------------------
if __name__ == "__main__":
    B, input_dim, T = 2, 16, 32
    hidden_dim, num_classes, num_heads, num_layers = 32, 10, 4, 2

    key = jax.random.PRNGKey(0)
    kx, kp = jax.random.split(key)
    # PyTorch-style NCL input: (batch, input_dim, time)
    x = jax.random.normal(kx, (B, input_dim, T), dtype=F32)
    params = init_params(kp, input_dim, hidden_dim, num_classes,
                         num_heads=num_heads, num_layers=num_layers)

    fwd = jax.jit(functools.partial(forward, input_dim=input_dim,
                                    hidden_dim=hidden_dim, num_heads=num_heads))
    out = jax.block_until_ready(fwd(x, params))
    assert out.shape == (B, num_classes), out.shape
    assert bool(jnp.all(jnp.isfinite(out)))
    print("KERNEL_OK")
</pallas_src>

<mosaic_0001>
module attributes {stable_mosaic.version = 11 : i64} {
  func.func @conv_stack_kernel(%arg0: i32, %arg1: memref<1x32x16xf32, #tpu.memory_space<vmem>>, %arg2: memref<80x64xbf16, #tpu.memory_space<vmem>>, %arg3: memref<1x64xf32, #tpu.memory_space<vmem>>, %arg4: memref<192x128xbf16, #tpu.memory_space<vmem>>, %arg5: memref<1x128xf32, #tpu.memory_space<vmem>>, %arg6: memref<384x32xbf16, #tpu.memory_space<vmem>>, %arg7: memref<1x32xf32, #tpu.memory_space<vmem>>, %arg8: memref<1x8x32xf32, #tpu.memory_space<vmem>>, %arg9: memref<36x16xf32, #tpu.memory_space<vmem>>, %arg10: memref<18x64xf32, #tpu.memory_space<vmem>>, %arg11: memref<10x128xf32, #tpu.memory_space<vmem>>) attributes {dimension_semantics = [#tpu.dimension_semantics<parallel>], iteration_bounds = array<i64: 2>, scalar_prefetch = 0 : i64, scratch_operands = 3 : i64, tpu.core_type = #tpu.core_type<tc>, window_params = [{transform_indices = @transform_0, window_bounds = array<i64: 1, 32, 16>}, {pipeline_mode = #tpu.pipeline_mode<synchronous>, transform_indices = @transform_1, window_bounds = array<i64: 80, 64>}, {pipeline_mode = #tpu.pipeline_mode<synchronous>, transform_indices = @transform_2, window_bounds = array<i64: 1, 64>}, {pipeline_mode = #tpu.pipeline_mode<synchronous>, transform_indices = @transform_3, window_bounds = array<i64: 192, 128>}, {pipeline_mode = #tpu.pipeline_mode<synchronous>, transform_indices = @transform_4, window_bounds = array<i64: 1, 128>}, {pipeline_mode = #tpu.pipeline_mode<synchronous>, transform_indices = @transform_5, window_bounds = array<i64: 384, 32>}, {pipeline_mode = #tpu.pipeline_mode<synchronous>, transform_indices = @transform_6, window_bounds = array<i64: 1, 32>}, {transform_indices = @transform_7, window_bounds = array<i64: 1, 8, 32>}]} {
    %c0 = arith.constant 0 : index
    %c0_0 = arith.constant 0 : index
    %c0_1 = arith.constant 0 : index
    %0 = vector.load %arg1[%c0, %c0_0, %c0_1] : memref<1x32x16xf32, #tpu.memory_space<vmem>>, vector<1x32x16xf32>
    %1 = vector.shape_cast %0 : vector<1x32x16xf32> to vector<32x16xf32>
    %cst = arith.constant 0.000000e+00 : f32
    %2 = vector.broadcast %cst : f32 to vector<36x16xf32>
    %c0_2 = arith.constant 0 : index
    %c0_3 = arith.constant 0 : index
    %3 = vector.load %arg9[%c0_2, %c0_3] : memref<36x16xf32, #tpu.memory_space<vmem>>, vector<36x16xf32>
    tpu.vector_store %arg9[%c0_2, %c0_3], %2 {strides = array<i32>} : memref<36x16xf32, #tpu.memory_space<vmem>>, vector<36x16xf32>,
    %c2 = arith.constant 2 : index
    %c0_4 = arith.constant 0 : index
    %4 = vector.load %arg9[%c2, %c0_4] : memref<36x16xf32, #tpu.memory_space<vmem>>, vector<32x16xf32>
    tpu.vector_store %arg9[%c2, %c0_4], %1 {strides = array<i32>} : memref<36x16xf32, #tpu.memory_space<vmem>>, vector<32x16xf32>,
    %c0_5 = arith.constant 0 : index
    %c0_6 = arith.constant 0 : index
    %5 = vector.load %arg9[%c0_5, %c0_6] : memref<36x16xf32, #tpu.memory_space<vmem>>, vector<36x16xf32>
    %6 = vector.extract_strided_slice %5 {offsets = [0, 0], sizes = [32, 16], strides = [1, 1]} : vector<36x16xf32> to vector<32x16xf32>
    %7 = vector.extract_strided_slice %5 {offsets = [1, 0], sizes = [32, 16], strides = [1, 1]} : vector<36x16xf32> to vector<32x16xf32>
    %8 = vector.extract_strided_slice %5 {offsets = [2, 0], sizes = [32, 16], strides = [1, 1]} : vector<36x16xf32> to vector<32x16xf32>
    %9 = vector.extract_strided_slice %5 {offsets = [3, 0], sizes = [32, 16], strides = [1, 1]} : vector<36x16xf32> to vector<32x16xf32>
    %10 = vector.extract_strided_slice %5 {offsets = [4, 0], sizes = [32, 16], strides = [1, 1]} : vector<36x16xf32> to vector<32x16xf32>
    %11 = tpu.concatenate %6, %7, %8, %9, %10 in 1 : vector<32x16xf32>, vector<32x16xf32>, vector<32x16xf32>, vector<32x16xf32>, vector<32x16xf32> -> vector<32x80xf32>
    %12 = arith.truncf %11 : vector<32x80xf32> to vector<32x80xbf16>
    %c0_7 = arith.constant 0 : index
    %c0_8 = arith.constant 0 : index
    %13 = vector.load %arg2[%c0_7, %c0_8] : memref<80x64xbf16, #tpu.memory_space<vmem>>, vector<80x64xbf16>
    %cst_9 = arith.constant dense<0.000000e+00> : vector<32x64xf32>
    %14 = tpu.matmul %12, %13, %cst_9 {dimension_numbers = #tpu.dot_dimension_numbers<[1], [0], [0], [1], [0, 0, 1, 1], [], []>} : vector<32x80xbf16>, vector<80x64xbf16>, vector<32x64xf32> -> vector<32x64xf32>
    %c0_10 = arith.constant 0 : index
    %c0_11 = arith.constant 0 : index
    %15 = vector.load %arg3[%c0_10, %c0_11] : memref<1x64xf32, #tpu.memory_space<vmem>>, vector<1x64xf32>
    %16 = vector.broadcast %15 : vector<1x64xf32> to vector<32x64xf32>
    %17 = arith.addf %14, %16 : vector<32x64xf32>
    %cst_12 = arith.constant 0.000000e+00 : f32
    %18 = vector.broadcast %cst_12 : f32 to vector<32x64xf32>
    %19 = arith.maximumf %17, %18 : vector<32x64xf32>
    %20 = vector.shape_cast %19 : vector<32x64xf32> to vector<16x2x64xf32>
    %cst_13 = arith.constant dense<0xFF800000> : vector<16x64xf32>
    %21 = vector.multi_reduction <maximumf>, %20, %cst_13 [1] : vector<16x2x64xf32> to vector<16x64xf32>
    %cst_14 = arith.constant 0.000000e+00 : f32
    %22 = vector.broadcast %cst_14 : f32 to vector<18x64xf32>
    %c0_15 = arith.constant 0 : index
    %c0_16 = arith.constant 0 : index
    %23 = vector.load %arg10[%c0_15, %c0_16] : memref<18x64xf32, #tpu.memory_space<vmem>>, vector<18x64xf32>
    tpu.vector_store %arg10[%c0_15, %c0_16], %22 {strides = array<i32>} : memref<18x64xf32, #tpu.memory_space<vmem>>, vector<18x64xf32>,
    %c1 = arith.constant 1 : index
    %c0_17 = arith.constant 0 : index
    %24 = vector.load %arg10[%c1, %c0_17] : memref<18x64xf32, #tpu.memory_space<vmem>>, vector<16x64xf32>
    tpu.vector_store %arg10[%c1, %c0_17], %21 {strides = array<i32>} : memref<18x64xf32, #tpu.memory_space<vmem>>, vector<16x64xf32>,
    %c0_18 = arith.constant 0 : index
    %c0_19 = arith.constant 0 : index
    %25 = vector.load %arg10[%c0_18, %c0_19] : memref<18x64xf32, #tpu.memory_space<vmem>>, vector<18x64xf32>
    %26 = vector.extract_strided_slice %25 {offsets = [0, 0], sizes = [16, 64], strides = [1, 1]} : vector<18x64xf32> to vector<16x64xf32>
    %27 = vector.extract_strided_slice %25 {offsets = [1, 0], sizes = [16, 64], strides = [1, 1]} : vector<18x64xf32> to vector<16x64xf32>
    %28 = vector.extract_strided_slice %25 {offsets = [2, 0], sizes = [16, 64], strides = [1, 1]} : vector<18x64xf32> to vector<16x64xf32>
    %29 = tpu.concatenate %26, %27, %28 in 1 : vector<16x64xf32>, vector<16x64xf32>, vector<16x64xf32> -> vector<16x192xf32>
    %30 = arith.truncf %29 : vector<16x192xf32> to vector<16x192xbf16>
    %c0_20 = arith.constant 0 : index
    %c0_21 = arith.constant 0 : index
    %31 = vector.load %arg4[%c0_20, %c0_21] : memref<192x128xbf16, #tpu.memory_space<vmem>>, vector<192x128xbf16>
    %cst_22 = arith.constant dense<0.000000e+00> : vector<16x128xf32>
    %32 = tpu.matmul %30, %31, %cst_22 {dimension_numbers = #tpu.dot_dimension_numbers<[1], [0], [0], [1], [0, 0, 1, 1], [], []>} : vector<16x192xbf16>, vector<192x128xbf16>, vector<16x128xf32> -> vector<16x128xf32>
    %c0_23 = arith.constant 0 : index
    %c0_24 = arith.constant 0 : index
    %33 = vector.load %arg5[%c0_23, %c0_24] : memref<1x128xf32, #tpu.memory_space<vmem>>, vector<1x128xf32>
    %34 = vector.broadcast %33 : vector<1x128xf32> to vector<16x128xf32>
    %35 = arith.addf %32, %34 : vector<16x128xf32>
    %cst_25 = arith.constant 0.000000e+00 : f32
    %36 = vector.broadcast %cst_25 : f32 to vector<16x128xf32>
    %37 = arith.maximumf %35, %36 : vector<16x128xf32>
    %38 = vector.shape_cast %37 : vector<16x128xf32> to vector<8x2x128xf32>
    %cst_26 = arith.constant dense<0xFF800000> : vector<8x128xf32>
    %39 = vector.multi_reduction <maximumf>, %38, %cst_26 [1] : vector<8x2x128xf32> to vector<8x128xf32>
    %cst_27 = arith.constant 0.000000e+00 : f32
    %40 = vector.broadcast %cst_27 : f32 to vector<10x128xf32>
    %c0_28 = arith.constant 0 : index
    %c0_29 = arith.constant 0 : index
    %41 = vector.load %arg11[%c0_28, %c0_29] : memref<10x128xf32, #tpu.memory_space<vmem>>, vector<10x128xf32>
    tpu.vector_store %arg11[%c0_28, %c0_29], %40 {strides = array<i32>} : memref<10x128xf32, #tpu.memory_space<vmem>>, vector<10x128xf32>,
    %c1_30 = arith.constant 1 : index
    %c0_31 = arith.constant 0 : index
    %42 = vector.load %arg11[%c1_30, %c0_31] : memref<10x128xf32, #tpu.memory_space<vmem>>, vector<8x128xf32>
    tpu.vector_store %arg11[%c1_30, %c0_31], %39 {strides = array<i32>} : memref<10x128xf32, #tpu.memory_space<vmem>>, vector<8x128xf32>,
    %c0_32 = arith.constant 0 : index
    %c0_33 = arith.constant 0 : index
    %43 = vector.load %arg11[%c0_32, %c0_33] : memref<10x128xf32, #tpu.memory_space<vmem>>, vector<10x128xf32>
    %44 = vector.extract_strided_slice %43 {offsets = [0, 0], sizes = [8, 128], strides = [1, 1]} : vector<10x128xf32> to vector<8x128xf32>
    %45 = vector.extract_strided_slice %43 {offsets = [1, 0], sizes = [8, 128], strides = [1, 1]} : vector<10x128xf32> to vector<8x128xf32>
    %46 = vector.extract_strided_slice %43 {offsets = [2, 0], sizes = [8, 128], strides = [1, 1]} : vector<10x128xf32> to vector<8x128xf32>
    %47 = tpu.concatenate %44, %45, %46 in 1 : vector<8x128xf32>, vector<8x128xf32>, vector<8x128xf32> -> vector<8x384xf32>
    %48 = arith.truncf %47 : vector<8x384xf32> to vector<8x384xbf16>
    %c0_34 = arith.constant 0 : index
    %c0_35 = arith.constant 0 : index
    %49 = vector.load %arg6[%c0_34, %c0_35] : memref<384x32xbf16, #tpu.memory_space<vmem>>, vector<384x32xbf16>
    %cst_36 = arith.constant dense<0.000000e+00> : vector<8x32xf32>
    %50 = tpu.matmul %48, %49, %cst_36 {dimension_numbers = #tpu.dot_dimension_numbers<[1], [0], [0], [1], [0, 0, 1, 1], [], []>} : vector<8x384xbf16>, vector<384x32xbf16>, vector<8x32xf32> -> vector<8x32xf32>
    %c0_37 = arith.constant 0 : index
    %c0_38 = arith.constant 0 : index
    %51 = vector.load %arg7[%c0_37, %c0_38] : memref<1x32xf32, #tpu.memory_space<vmem>>, vector<1x32xf32>
    %52 = vector.broadcast %51 : vector<1x32xf32> to vector<8x32xf32>
    %53 = arith.addf %50, %52 : vector<8x32xf32>
    %cst_39 = arith.constant 0.000000e+00 : f32
    %54 = vector.broadcast %cst_39 : f32 to vector<8x32xf32>
    %55 = arith.maximumf %53, %54 : vector<8x32xf32>
    %c0_40 = arith.constant 0 : index
    %c0_41 = arith.constant 0 : index
    %c0_42 = arith.constant 0 : index
    %56 = vector.load %arg8[%c0_40, %c0_41, %c0_42] : memref<1x8x32xf32, #tpu.memory_space<vmem>>, vector<1x8x32xf32>
    %57 = vector.shape_cast %56 : vector<1x8x32xf32> to vector<8x32xf32>
    %58 = vector.shape_cast %55 : vector<8x32xf32> to vector<1x8x32xf32>
    tpu.vector_store %arg8[%c0_40, %c0_41, %c0_42], %58 {strides = array<i32>} : memref<1x8x32xf32, #tpu.memory_space<vmem>>, vector<1x8x32xf32>,
    return
  }
  func.func @transform_0(%arg0: i32) -> (i32, i32, i32) {
    %c0_i32 = arith.constant 0 : i32
    %c0_i32_0 = arith.constant 0 : i32
    %c0_i32_1 = arith.constant 0 : i32
    return %arg0, %c0_i32, %c0_i32_0 : i32, i32, i32
  }
  func.func @transform_1(%arg0: i32) -> (i32, i32) {
    %c0_i32 = arith.constant 0 : i32
    %c0_i32_0 = arith.constant 0 : i32
    %c0_i32_1 = arith.constant 0 : i32
    return %c0_i32, %c0_i32_0 : i32, i32
  }
  func.func @transform_2(%arg0: i32) -> (i32, i32) {
    %c0_i32 = arith.constant 0 : i32
    %c0_i32_0 = arith.constant 0 : i32
    %c0_i32_1 = arith.constant 0 : i32
    return %c0_i32, %c0_i32_0 : i32, i32
  }
  func.func @transform_3(%arg0: i32) -> (i32, i32) {
    %c0_i32 = arith.constant 0 : i32
    %c0_i32_0 = arith.constant 0 : i32
    %c0_i32_1 = arith.constant 0 : i32
    return %c0_i32, %c0_i32_0 : i32, i32
  }
  func.func @transform_4(%arg0: i32) -> (i32, i32) {
    %c0_i32 = arith.constant 0 : i32
    %c0_i32_0 = arith.constant 0 : i32
    %c0_i32_1 = arith.constant 0 : i32
    return %c0_i32, %c0_i32_0 : i32, i32
  }
  func.func @transform_5(%arg0: i32) -> (i32, i32) {
    %c0_i32 = arith.constant 0 : i32
    %c0_i32_0 = arith.constant 0 : i32
    %c0_i32_1 = arith.constant 0 : i32
    return %c0_i32, %c0_i32_0 : i32, i32
  }
  func.func @transform_6(%arg0: i32) -> (i32, i32) {
    %c0_i32 = arith.constant 0 : i32
    %c0_i32_0 = arith.constant 0 : i32
    %c0_i32_1 = arith.constant 0 : i32
    return %c0_i32, %c0_i32_0 : i32, i32
  }
  func.func @transform_7(%arg0: i32) -> (i32, i32, i32) {
    %c0_i32 = arith.constant 0 : i32
    %c0_i32_0 = arith.constant 0 : i32
    %c0_i32_1 = arith.constant 0 : i32
    return %arg0, %c0_i32, %c0_i32_0 : i32, i32, i32
  }
}

module attributes {stable_mosaic.version = 11 : i64} {
  func.func @lstm_layer_kernel(%arg0: i32, %arg1: memref<1x8x32xf32, #tpu.memory_space<vmem>>, %arg2: memref<32x256xbf16, #tpu.memory_space<vmem>>, %arg3: memref<1x256xf32, #tpu.memory_space<vmem>>, %arg4: memref<64x256xbf16, #tpu.memory_space<vmem>>, %arg5: memref<1x8x64xf32, #tpu.memory_space<vmem>>) attributes {dimension_semantics = [#tpu.dimension_semantics<parallel>], iteration_bounds = array<i64: 2>, scalar_prefetch = 0 : i64, scratch_operands = 0 : i64, tpu.core_type = #tpu.core_type<tc>, window_params = [{transform_indices = @transform_0, window_bounds = array<i64: 1, 8, 32>}, {pipeline_mode = #tpu.pipeline_mode<synchronous>, transform_indices = @transform_1, window_bounds = array<i64: 32, 256>}, {pipeline_mode = #tpu.pipeline_mode<synchronous>, transform_indices = @transform_2, window_bounds = array<i64: 1, 256>}, {pipeline_mode = #tpu.pipeline_mode<synchronous>, transform_indices = @transform_3, window_bounds = array<i64: 64, 256>}, {transform_indices = @transform_4, window_bounds = array<i64: 1, 8, 64>}]} {
    %c0 = arith.constant 0 : index
    %c0_0 = arith.constant 0 : index
    %c0_1 = arith.constant 0 : index
    %0 = vector.load %arg1[%c0, %c0_0, %c0_1] : memref<1x8x32xf32, #tpu.memory_space<vmem>>, vector<1x8x32xf32>
    %1 = vector.shape_cast %0 : vector<1x8x32xf32> to vector<8x32xf32>
    %2 = arith.truncf %1 : vector<8x32xf32> to vector<8x32xbf16>
    %c0_2 = arith.constant 0 : index
    %c0_3 = arith.constant 0 : index
    %3 = vector.load %arg2[%c0_2, %c0_3] : memref<32x256xbf16, #tpu.memory_space<vmem>>, vector<32x256xbf16>
    %cst = arith.constant dense<0.000000e+00> : vector<8x256xf32>
    %4 = tpu.matmul %2, %3, %cst {dimension_numbers = #tpu.dot_dimension_numbers<[1], [0], [0], [1], [0, 0, 1, 1], [], []>} : vector<8x32xbf16>, vector<32x256xbf16>, vector<8x256xf32> -> vector<8x256xf32>
    %c0_4 = arith.constant 0 : index
    %c0_5 = arith.constant 0 : index
    %5 = vector.load %arg3[%c0_4, %c0_5] : memref<1x256xf32, #tpu.memory_space<vmem>>, vector<1x256xf32>
    %6 = vector.broadcast %5 : vector<1x256xf32> to vector<8x256xf32>
    %7 = arith.addf %4, %6 : vector<8x256xf32>
    %c0_6 = arith.constant 0 : index
    %c0_7 = arith.constant 0 : index
    %8 = vector.load %arg4[%c0_6, %c0_7] : memref<64x256xbf16, #tpu.memory_space<vmem>>, vector<64x256xbf16>
    %cst_8 = arith.constant 0.000000e+00 : f32
    %9 = vector.broadcast %cst_8 : f32 to vector<1x64xf32>
    %cst_9 = arith.constant 0.000000e+00 : f32
    %10 = vector.broadcast %cst_9 : f32 to vector<1x32xf32>
    %cst_10 = arith.constant 0.000000e+00 : f32
    %11 = vector.broadcast %cst_10 : f32 to vector<1x32xf32>
    %cst_11 = arith.constant 0.000000e+00 : f32
    %12 = vector.broadcast %cst_11 : f32 to vector<8x32xf32>
    %cst_12 = arith.constant 0.000000e+00 : f32
    %13 = vector.broadcast %cst_12 : f32 to vector<8x32xf32>
    %14 = tpu.iota {dimensions = array<i32: 0>} : vector<8x1xi32>
    %15 = arith.truncf %9 : vector<1x64xf32> to vector<1x64xbf16>
    %cst_13 = arith.constant dense<0.000000e+00> : vector<1x256xf32>
    %16 = tpu.matmul %15, %8, %cst_13 {dimension_numbers = #tpu.dot_dimension_numbers<[1], [0], [0], [1], [0, 0, 1, 1], [], []>} : vector<1x64xbf16>, vector<64x256xbf16>, vector<1x256xf32> -> vector<1x256xf32>
    %17 = vector.extract_strided_slice %7 {offsets = [0, 0], sizes = [1, 128], strides = [1, 1]} : vector<8x256xf32> to vector<1x128xf32>
    %18 = vector.extract_strided_slice %16 {offsets = [0, 0], sizes = [1, 128], strides = [1, 1]} : vector<1x256xf32> to vector<1x128xf32>
    %19 = arith.addf %17, %18 : vector<1x128xf32>
    %20 = vector.extract_strided_slice %7 {offsets = [7, 128], sizes = [1, 128], strides = [1, 1]} : vector<8x256xf32> to vector<1x128xf32>
    %21 = vector.extract_strided_slice %16 {offsets = [0, 128], sizes = [1, 128], strides = [1, 1]} : vector<1x256xf32> to vector<1x128xf32>
    %22 = arith.addf %20, %21 : vector<1x128xf32>
    %23 = vector.extract_strided_slice %19 {offsets = [0, 0], sizes = [1, 32], strides = [1, 1]} : vector<1x128xf32> to vector<1x32xf32>
    %24 = arith.negf %23 : vector<1x32xf32>
    %25 = math.exp %24 : vector<1x32xf32>
    %cst_14 = arith.constant 1.000000e+00 : f32
    %26 = vector.broadcast %cst_14 : f32 to vector<1x32xf32>
    %27 = arith.addf %26, %25 : vector<1x32xf32>
    %28 = arith.divf %26, %27 : vector<1x32xf32>
    %29 = vector.extract_strided_slice %19 {offsets = [0, 32], sizes = [1, 32], strides = [1, 1]} : vector<1x128xf32> to vector<1x32xf32>
    %30 = arith.negf %29 : vector<1x32xf32>
    %31 = math.exp %30 : vector<1x32xf32>
    %cst_15 = arith.constant 1.000000e+00 : f32
    %32 = vector.broadcast %cst_15 : f32 to vector<1x32xf32>
    %33 = arith.addf %32, %31 : vector<1x32xf32>
    %34 = arith.divf %32, %33 : vector<1x32xf32>
    %35 = vector.extract_strided_slice %19 {offsets = [0, 64], sizes = [1, 32], strides = [1, 1]} : vector<1x128xf32> to vector<1x32xf32>
    %36 = math.tanh %35 : vector<1x32xf32>
    %37 = vector.extract_strided_slice %19 {offsets = [0, 96], sizes = [1, 32], strides = [1, 1]} : vector<1x128xf32> to vector<1x32xf32>
    %38 = arith.negf %37 : vector<1x32xf32>
    %39 = math.exp %38 : vector<1x32xf32>
    %cst_16 = arith.constant 1.000000e+00 : f32
    %40 = vector.broadcast %cst_16 : f32 to vector<1x32xf32>
    %41 = arith.addf %40, %39 : vector<1x32xf32>
    %42 = arith.divf %40, %41 : vector<1x32xf32>
    %43 = arith.mulf %34, %10 : vector<1x32xf32>
    %44 = arith.mulf %28, %36 : vector<1x32xf32>
    %45 = arith.addf %43, %44 : vector<1x32xf32>
    %46 = math.tanh %45 : vector<1x32xf32>
    %47 = arith.mulf %42, %46 : vector<1x32xf32>
    %48 = vector.extract_strided_slice %22 {offsets = [0, 0], sizes = [1, 32], strides = [1, 1]} : vector<1x128xf32> to vector<1x32xf32>
    %49 = arith.negf %48 : vector<1x32xf32>
    %50 = math.exp %49 : vector<1x32xf32>
    %cst_17 = arith.constant 1.000000e+00 : f32
    %51 = vector.broadcast %cst_17 : f32 to vector<1x32xf32>
    %52 = arith.addf %51, %50 : vector<1x32xf32>
    %53 = arith.divf %51, %52 : vector<1x32xf32>
    %54 = vector.extract_strided_slice %22 {offsets = [0, 32], sizes = [1, 32], strides = [1, 1]} : vector<1x128xf32> to vector<1x32xf32>
    %55 = arith.negf %54 : vector<1x32xf32>
    %56 = math.exp %55 : vector<1x32xf32>
    %cst_18 = arith.constant 1.000000e+00 : f32
    %57 = vector.broadcast %cst_18 : f32 to vector<1x32xf32>
    %58 = arith.addf %57, %56 : vector<1x32xf32>
    %59 = arith.divf %57, %58 : vector<1x32xf32>
    %60 = vector.extract_strided_slice %22 {offsets = [0, 64], sizes = [1, 32], strides = [1, 1]} : vector<1x128xf32> to vector<1x32xf32>
    %61 = math.tanh %60 : vector<1x32xf32>
    %62 = vector.extract_strided_slice %22 {offsets = [0, 96], sizes = [1, 32], strides = [1, 1]} : vector<1x128xf32> to vector<1x32xf32>
    %63 = arith.negf %62 : vector<1x32xf32>
    %64 = math.exp %63 : vector<1x32xf32>
    %cst_19 = arith.constant 1.000000e+00 : f32
    %65 = vector.broadcast %cst_19 : f32 to vector<1x32xf32>
    %66 = arith.addf %65, %64 : vector<1x32xf32>
    %67 = arith.divf %65, %66 : vector<1x32xf32>
    %68 = arith.mulf %59, %11 : vector<1x32xf32>
    %69 = arith.mulf %53, %61 : vector<1x32xf32>
    %70 = arith.addf %68, %69 : vector<1x32xf32>
    %71 = math.tanh %70 : vector<1x32xf32>
    %72 = arith.mulf %67, %71 : vector<1x32xf32>
    %c0_i32 = arith.constant 0 : i32
    %73 = vector.broadcast %c0_i32 : i32 to vector<8x1xi32>
    %74 = arith.cmpi eq, %14, %73 : vector<8x1xi32>
    %75 = vector.shape_cast %74 : vector<8x1xi1> to vector<8x1xi1>
    %76 = vector.broadcast %75 : vector<8x1xi1> to vector<8x32xi1>
    %77 = vector.shape_cast %47 : vector<1x32xf32> to vector<1x32xf32>
    %78 = vector.broadcast %77 : vector<1x32xf32> to vector<8x32xf32>
    %79 = arith.select %76, %78, %12 : vector<8x32xi1>, vector<8x32xf32>
    %c7_i32 = arith.constant 7 : i32
    %80 = vector.broadcast %c7_i32 : i32 to vector<8x1xi32>
    %81 = arith.cmpi eq, %14, %80 : vector<8x1xi32>
    %82 = vector.shape_cast %81 : vector<8x1xi1> to vector<8x1xi1>
    %83 = vector.broadcast %82 : vector<8x1xi1> to vector<8x32xi1>
    %84 = vector.shape_cast %72 : vector<1x32xf32> to vector<1x32xf32>
    %85 = vector.broadcast %84 : vector<1x32xf32> to vector<8x32xf32>
    %86 = arith.select %83, %85, %13 : vector<8x32xi1>, vector<8x32xf32>
    %87 = tpu.concatenate %47, %72 in 1 : vector<1x32xf32>, vector<1x32xf32> -> vector<1x64xf32>
    %88 = arith.truncf %87 : vector<1x64xf32> to vector<1x64xbf16>
    %cst_20 = arith.constant dense<0.000000e+00> : vector<1x256xf32>
    %89 = tpu.matmul %88, %8, %cst_20 {dimension_numbers = #tpu.dot_dimension_numbers<[1], [0], [0], [1], [0, 0, 1, 1], [], []>} : vector<1x64xbf16>, vector<64x256xbf16>, vector<1x256xf32> -> vector<1x256xf32>
    %90 = vector.extract_strided_slice %7 {offsets = [1, 0], sizes = [1, 128], strides = [1, 1]} : vector<8x256xf32> to vector<1x128xf32>
    %91 = vector.extract_strided_slice %89 {offsets = [0, 0], sizes = [1, 128], strides = [1, 1]} : vector<1x256xf32> to vector<1x128xf32>
    %92 = arith.addf %90, %91 : vector<1x128xf32>
    %93 = vector.extract_strided_slice %7 {offsets = [6, 128], sizes = [1, 128], strides = [1, 1]} : vector<8x256xf32> to vector<1x128xf32>
    %94 = vector.extract_strided_slice %89 {offsets = [0, 128], sizes = [1, 128], strides = [1, 1]} : vector<1x256xf32> to vector<1x128xf32>
    %95 = arith.addf %93, %94 : vector<1x128xf32>
    %96 = vector.extract_strided_slice %92 {offsets = [0, 0], sizes = [1, 32], strides = [1, 1]} : vector<1x128xf32> to vector<1x32xf32>
    %97 = arith.negf %96 : vector<1x32xf32>
    %98 = math.exp %97 : vector<1x32xf32>
    %cst_21 = arith.constant 1.000000e+00 : f32
    %99 = vector.broadcast %cst_21 : f32 to vector<1x32xf32>
    %100 = arith.addf %99, %98 : vector<1x32xf32>
    %101 = arith.divf %99, %100 : vector<1x32xf32>
    %102 = vector.extract_strided_slice %92 {offsets = [0, 32], sizes = [1, 32], strides = [1, 1]} : vector<1x128xf32> to vector<1x32xf32>
    %103 = arith.negf %102 : vector<1x32xf32>
    %104 = math.exp %103 : vector<1x32xf32>
    %cst_22 = arith.constant 1.000000e+00 : f32
    %105 = vector.broadcast %cst_22 : f32 to vector<1x32xf32>
    %106 = arith.addf %105, %104 : vector<1x32xf32>
    %107 = arith.divf %105, %106 : vector<1x32xf32>
    %108 = vector.extract_strided_slice %92 {offsets = [0, 64], sizes = [1, 32], strides = [1, 1]} : vector<1x128xf32> to vector<1x32xf32>
    %109 = math.tanh %108 : vector<1x32xf32>
    %110 = vector.extract_strided_slice %92 {offsets = [0, 96], sizes = [1, 32], strides = [1, 1]} : vector<1x128xf32> to vector<1x32xf32>
    %111 = arith.negf %110 : vector<1x32xf32>
    %112 = math.exp %111 : vector<1x32xf32>
    %cst_23 = arith.constant 1.000000e+00 : f32
    %113 = vector.broadcast %cst_23 : f32 to vector<1x32xf32>
    %114 = arith.addf %113, %112 : vector<1x32xf32>
    %115 = arith.divf %113, %114 : vector<1x32xf32>
    %116 = arith.mulf %107, %45 : vector<1x32xf32>
    %117 = arith.mulf %101, %109 : vector<1x32xf32>
    %118 = arith.addf %116, %117 : vector<1x32xf32>
    %119 = math.tanh %118 : vector<1x32xf32>
    %120 = arith.mulf %115, %119 : vector<1x32xf32>
    %121 = vector.extract_strided_slice %95 {offsets = [0, 0], sizes = [1, 32], strides = [1, 1]} : vector<1x128xf32> to vector<1x32xf32>
    %122 = arith.negf %121 : vector<1x32xf32>
    %123 = math.exp %122 : vector<1x32xf32>
    %cst_24 = arith.constant 1.000000e+00 : f32
    %124 = vector.broadcast %cst_24 : f32 to vector<1x32xf32>
    %125 = arith.addf %124, %123 : vector<1x32xf32>
    %126 = arith.divf %124, %125 : vector<1x32xf32>
    %127 = vector.extract_strided_slice %95 {offsets = [0, 32], sizes = [1, 32], strides = [1, 1]} : vector<1x128xf32> to vector<1x32xf32>
    %128 = arith.negf %127 : vector<1x32xf32>
    %129 = math.exp %128 : vector<1x32xf32>
    %cst_25 = arith.constant 1.000000e+00 : f32
    %130 = vector.broadcast %cst_25 : f32 to vector<1x32xf32>
    %131 = arith.addf %130, %129 : vector<1x32xf32>
    %132 = arith.divf %130, %131 : vector<1x32xf32>
    %133 = vector.extract_strided_slice %95 {offsets = [0, 64], sizes = [1, 32], strides = [1, 1]} : vector<1x128xf32> to vector<1x32xf32>
    %134 = math.tanh %133 : vector<1x32xf32>
    %135 = vector.extract_strided_slice %95 {offsets = [0, 96], sizes = [1, 32], strides = [1, 1]} : vector<1x128xf32> to vector<1x32xf32>
    %136 = arith.negf %135 : vector<1x32xf32>
    %137 = math.exp %136 : vector<1x32xf32>
    %cst_26 = arith.constant 1.000000e+00 : f32
    %138 = vector.broadcast %cst_26 : f32 to vector<1x32xf32>
    %139 = arith.addf %138, %137 : vector<1x32xf32>
    %140 = arith.divf %138, %139 : vector<1x32xf32>
    %141 = arith.mulf %132, %70 : vector<1x32xf32>
    %142 = arith.mulf %126, %134 : vector<1x32xf32>
    %143 = arith.addf %141, %142 : vector<1x32xf32>
    %144 = math.tanh %143 : vector<1x32xf32>
    %145 = arith.mulf %140, %144 : vector<1x32xf32>
    %c1_i32 = arith.constant 1 : i32
    %146 = vector.broadcast %c1_i32 : i32 to vector<8x1xi32>
    %147 = arith.cmpi eq, %14, %146 : vector<8x1xi32>
    %148 = vector.shape_cast %147 : vector<8x1xi1> to vector<8x1xi1>
    %149 = vector.broadcast %148 : vector<8x1xi1> to vector<8x32xi1>
    %150 = vector.shape_cast %120 : vector<1x32xf32> to vector<1x32xf32>
    %151 = vector.broadcast %150 : vector<1x32xf32> to vector<8x32xf32>
    %152 = arith.select %149, %151, %79 : vector<8x32xi1>, vector<8x32xf32>
    %c6_i32 = arith.constant 6 : i32
    %153 = vector.broadcast %c6_i32 : i32 to vector<8x1xi32>
    %154 = arith.cmpi eq, %14, %153 : vector<8x1xi32>
    %155 = vector.shape_cast %154 : vector<8x1xi1> to vector<8x1xi1>
    %156 = vector.broadcast %155 : vector<8x1xi1> to vector<8x32xi1>
    %157 = vector.shape_cast %145 : vector<1x32xf32> to vector<1x32xf32>
    %158 = vector.broadcast %157 : vector<1x32xf32> to vector<8x32xf32>
    %159 = arith.select %156, %158, %86 : vector<8x32xi1>, vector<8x32xf32>
    %160 = tpu.concatenate %120, %145 in 1 : vector<1x32xf32>, vector<1x32xf32> -> vector<1x64xf32>
    %161 = arith.truncf %160 : vector<1x64xf32> to vector<1x64xbf16>
    %cst_27 = arith.constant dense<0.000000e+00> : vector<1x256xf32>
    %162 = tpu.matmul %161, %8, %cst_27 {dimension_numbers = #tpu.dot_dimension_numbers<[1], [0], [0], [1], [0, 0, 1, 1], [], []>} : vector<1x64xbf16>, vector<64x256xbf16>, vector<1x256xf32> -> vector<1x256xf32>
    %163 = vector.extract_strided_slice %7 {offsets = [2, 0], sizes = [1, 128], strides = [1, 1]} : vector<8x256xf32> to vector<1x128xf32>
    %164 = vector.extract_strided_slice %162 {offsets = [0, 0], sizes = [1, 128], strides = [1, 1]} : vector<1x256xf32> to vector<1x128xf32>
    %165 = arith.addf %163, %164 : vector<1x128xf32>
    %166 = vector.extract_strided_slice %7 {offsets = [5, 128], sizes = [1, 128], strides = [1, 1]} : vector<8x256xf32> to vector<1x128xf32>
    %167 = vector.extract_strided_slice %162 {offsets = [0, 128], sizes = [1, 128], strides = [1, 1]} : vector<1x256xf32> to vector<1x128xf32>
    %168 = arith.addf %166, %167 : vector<1x128xf32>
    %169 = vector.extract_strided_slice %165 {offsets = [0, 0], sizes = [1, 32], strides = [1, 1]} : vector<1x128xf32> to vector<1x32xf32>
    %170 = arith.negf %169 : vector<1x32xf32>
    %171 = math.exp %170 : vector<1x32xf32>
    %cst_28 = arith.constant 1.000000e+00 : f32
    %172 = vector.broadcast %cst_28 : f32 to vector<1x32xf32>
    %173 = arith.addf %172, %171 : vector<1x32xf32>
    %174 = arith.divf %172, %173 : vector<1x32xf32>
    %175 = vector.extract_strided_slice %165 {offsets = [0, 32], sizes = [1, 32], strides = [1, 1]} : vector<1x128xf32> to vector<1x32xf32>
    %176 = arith.negf %175 : vector<1x32xf32>
    %177 = math.exp %176 : vector<1x32xf32>
    %cst_29 = arith.constant 1.000000e+00 : f32
    %178 = vector.broadcast %cst_29 : f32 to vector<1x32xf32>
    %179 = arith.addf %178, %177 : vector<1x32xf32>
    %180 = arith.divf %178, %179 : vector<1x32xf32>
    %181 = vector.extract_strided_slice %165 {offsets = [0, 64], sizes = [1, 32], strides = [1, 1]} : vector<1x128xf32> to vector<1x32xf32>
    %182 = math.tanh %181 : vector<1x32xf32>
    %183 = vector.extract_strided_slice %165 {offsets = [0, 96], sizes = [1, 32], strides = [1, 1]} : vector<1x128xf32> to vector<1x32xf32>
    %184 = arith.negf %183 : vector<1x32xf32>
    %185 = math.exp %184 : vector<1x32xf32>
    %cst_30 = arith.constant 1.000000e+00 : f32
    %186 = vector.broadcast %cst_30 : f32 to vector<1x32xf32>
    %187 = arith.addf %186, %185 : vector<1x32xf32>
    %188 = arith.divf %186, %187 : vector<1x32xf32>
    %189 = arith.mulf %180, %118 : vector<1x32xf32>
    %190 = arith.mulf %174, %182 : vector<1x32xf32>
    %191 = arith.addf %189, %190 : vector<1x32xf32>
    %192 = math.tanh %191 : vector<1x32xf32>
    %193 = arith.mulf %188, %192 : vector<1x32xf32>
    %194 = vector.extract_strided_slice %168 {offsets = [0, 0], sizes = [1, 32], strides = [1, 1]} : vector<1x128xf32> to vector<1x32xf32>
    %195 = arith.negf %194 : vector<1x32xf32>
    %196 = math.exp %195 : vector<1x32xf32>
    %cst_31 = arith.constant 1.000000e+00 : f32
    %197 = vector.broadcast %cst_31 : f32 to vector<1x32xf32>
    %198 = arith.addf %197, %196 : vector<1x32xf32>
    %199 = arith.divf %197, %198 : vector<1x32xf32>
    %200 = vector.extract_strided_slice %168 {offsets = [0, 32], sizes = [1, 32], strides = [1, 1]} : vector<1x128xf32> to vector<1x32xf32>
    %201 = arith.negf %200 : vector<1x32xf32>
    %202 = math.exp %201 : vector<1x32xf32>
    %cst_32 = arith.constant 1.000000e+00 : f32
    %203 = vector.broadcast %cst_32 : f32 to vector<1x32xf32>
    %204 = arith.addf %203, %202 : vector<1x32xf32>
    %205 = arith.divf %203, %204 : vector<1x32xf32>
    %206 = vector.extract_strided_slice %168 {offsets = [0, 64], sizes = [1, 32], strides = [1, 1]} : vector<1x128xf32> to vector<1x32xf32>
    %207 = math.tanh %206 : vector<1x32xf32>
    %208 = vector.extract_strided_slice %168 {offsets = [0, 96], sizes = [1, 32], strides = [1, 1]} : vector<1x128xf32> to vector<1x32xf32>
    %209 = arith.negf %208 : vector<1x32xf32>
    %210 = math.exp %209 : vector<1x32xf32>
    %cst_33 = arith.constant 1.000000e+00 : f32
    %211 = vector.broadcast %cst_33 : f32 to vector<1x32xf32>
    %212 = arith.addf %211, %210 : vector<1x32xf32>
    %213 = arith.divf %211, %212 : vector<1x32xf32>
    %214 = arith.mulf %205, %143 : vector<1x32xf32>
    %215 = arith.mulf %199, %207 : vector<1x32xf32>
    %216 = arith.addf %214, %215 : vector<1x32xf32>
    %217 = math.tanh %216 : vector<1x32xf32>
    %218 = arith.mulf %213, %217 : vector<1x32xf32>
    %c2_i32 = arith.constant 2 : i32
    %219 = vector.broadcast %c2_i32 : i32 to vector<8x1xi32>
    %220 = arith.cmpi eq, %14, %219 : vector<8x1xi32>
    %221 = vector.shape_cast %220 : vector<8x1xi1> to vector<8x1xi1>
    %222 = vector.broadcast %221 : vector<8x1xi1> to vector<8x32xi1>
    %223 = vector.shape_cast %193 : vector<1x32xf32> to vector<1x32xf32>
    %224 = vector.broadcast %223 : vector<1x32xf32> to vector<8x32xf32>
    %225 = arith.select %222, %224, %152 : vector<8x32xi1>, vector<8x32xf32>
    %c5_i32 = arith.constant 5 : i32
    %226 = vector.broadcast %c5_i32 : i32 to vector<8x1xi32>
    %227 = arith.cmpi eq, %14, %226 : vector<8x1xi32>
    %228 = vector.shape_cast %227 : vector<8x1xi1> to vector<8x1xi1>
    %229 = vector.broadcast %228 : vector<8x1xi1> to vector<8x32xi1>
    %230 = vector.shape_cast %218 : vector<1x32xf32> to vector<1x32xf32>
    %231 = vector.broadcast %230 : vector<1x32xf32> to vector<8x32xf32>
    %232 = arith.select %229, %231, %159 : vector<8x32xi1>, vector<8x32xf32>
    %233 = tpu.concatenate %193, %218 in 1 : vector<1x32xf32>, vector<1x32xf32> -> vector<1x64xf32>
    %234 = arith.truncf %233 : vector<1x64xf32> to vector<1x64xbf16>
    %cst_34 = arith.constant dense<0.000000e+00> : vector<1x256xf32>
    %235 = tpu.matmul %234, %8, %cst_34 {dimension_numbers = #tpu.dot_dimension_numbers<[1], [0], [0], [1], [0, 0, 1, 1], [], []>} : vector<1x64xbf16>, vector<64x256xbf16>, vector<1x256xf32> -> vector<1x256xf32>
    %236 = vector.extract_strided_slice %7 {offsets = [3, 0], sizes = [1, 128], strides = [1, 1]} : vector<8x256xf32> to vector<1x128xf32>
    %237 = vector.extract_strided_slice %235 {offsets = [0, 0], sizes = [1, 128], strides = [1, 1]} : vector<1x256xf32> to vector<1x128xf32>
    %238 = arith.addf %236, %237 : vector<1x128xf32>
    %239 = vector.extract_strided_slice %7 {offsets = [4, 128], sizes = [1, 128], strides = [1, 1]} : vector<8x256xf32> to vector<1x128xf32>
    %240 = vector.extract_strided_slice %235 {offsets = [0, 128], sizes = [1, 128], strides = [1, 1]} : vector<1x256xf32> to vector<1x128xf32>
    %241 = arith.addf %239, %240 : vector<1x128xf32>
    %242 = vector.extract_strided_slice %238 {offsets = [0, 0], sizes = [1, 32], strides = [1, 1]} : vector<1x128xf32> to vector<1x32xf32>
    %243 = arith.negf %242 : vector<1x32xf32>
    %244 = math.exp %243 : vector<1x32xf32>
    %cst_35 = arith.constant 1.000000e+00 : f32
    %245 = vector.broadcast %cst_35 : f32 to vector<1x32xf32>
    %246 = arith.addf %245, %244 : vector<1x32xf32>
    %247 = arith.divf %245, %246 : vector<1x32xf32>
    %248 = vector.extract_strided_slice %238 {offsets = [0, 32], sizes = [1, 32], strides = [1, 1]} : vector<1x128xf32> to vector<1x32xf32>
    %249 = arith.negf %248 : vector<1x32xf32>
    %250 = math.exp %249 : vector<1x32xf32>
    %cst_36 = arith.constant 1.000000e+00 : f32
    %251 = vector.broadcast %cst_36 : f32 to vector<1x32xf32>
    %252 = arith.addf %251, %250 : vector<1x32xf32>
    %253 = arith.divf %251, %252 : vector<1x32xf32>
    %254 = vector.extract_strided_slice %238 {offsets = [0, 64], sizes = [1, 32], strides = [1, 1]} : vector<1x128xf32> to vector<1x32xf32>
    %255 = math.tanh %254 : vector<1x32xf32>
    %256 = vector.extract_strided_slice %238 {offsets = [0, 96], sizes = [1, 32], strides = [1, 1]} : vector<1x128xf32> to vector<1x32xf32>
    %257 = arith.negf %256 : vector<1x32xf32>
    %258 = math.exp %257 : vector<1x32xf32>
    %cst_37 = arith.constant 1.000000e+00 : f32
    %259 = vector.broadcast %cst_37 : f32 to vector<1x32xf32>
    %260 = arith.addf %259, %258 : vector<1x32xf32>
    %261 = arith.divf %259, %260 : vector<1x32xf32>
    %262 = arith.mulf %253, %191 : vector<1x32xf32>
    %263 = arith.mulf %247, %255 : vector<1x32xf32>
    %264 = arith.addf %262, %263 : vector<1x32xf32>
    %265 = math.tanh %264 : vector<1x32xf32>
    %266 = arith.mulf %261, %265 : vector<1x32xf32>
    %267 = vector.extract_strided_slice %241 {offsets = [0, 0], sizes = [1, 32], strides = [1, 1]} : vector<1x128xf32> to vector<1x32xf32>
    %268 = arith.negf %267 : vector<1x32xf32>
    %269 = math.exp %268 : vector<1x32xf32>
    %cst_38 = arith.constant 1.000000e+00 : f32
    %270 = vector.broadcast %cst_38 : f32 to vector<1x32xf32>
    %271 = arith.addf %270, %269 : vector<1x32xf32>
    %272 = arith.divf %270, %271 : vector<1x32xf32>
    %273 = vector.extract_strided_slice %241 {offsets = [0, 32], sizes = [1, 32], strides = [1, 1]} : vector<1x128xf32> to vector<1x32xf32>
    %274 = arith.negf %273 : vector<1x32xf32>
    %275 = math.exp %274 : vector<1x32xf32>
    %cst_39 = arith.constant 1.000000e+00 : f32
    %276 = vector.broadcast %cst_39 : f32 to vector<1x32xf32>
    %277 = arith.addf %276, %275 : vector<1x32xf32>
    %278 = arith.divf %276, %277 : vector<1x32xf32>
    %279 = vector.extract_strided_slice %241 {offsets = [0, 64], sizes = [1, 32], strides = [1, 1]} : vector<1x128xf32> to vector<1x32xf32>
    %280 = math.tanh %279 : vector<1x32xf32>
    %281 = vector.extract_strided_slice %241 {offsets = [0, 96], sizes = [1, 32], strides = [1, 1]} : vector<1x128xf32> to vector<1x32xf32>
    %282 = arith.negf %281 : vector<1x32xf32>
    %283 = math.exp %282 : vector<1x32xf32>
    %cst_40 = arith.constant 1.000000e+00 : f32
    %284 = vector.broadcast %cst_40 : f32 to vector<1x32xf32>
    %285 = arith.addf %284, %283 : vector<1x32xf32>
    %286 = arith.divf %284, %285 : vector<1x32xf32>
    %287 = arith.mulf %278, %216 : vector<1x32xf32>
    %288 = arith.mulf %272, %280 : vector<1x32xf32>
    %289 = arith.addf %287, %288 : vector<1x32xf32>
    %290 = math.tanh %289 : vector<1x32xf32>
    %291 = arith.mulf %286, %290 : vector<1x32xf32>
    %c3_i32 = arith.constant 3 : i32
    %292 = vector.broadcast %c3_i32 : i32 to vector<8x1xi32>
    %293 = arith.cmpi eq, %14, %292 : vector<8x1xi32>
    %294 = vector.shape_cast %293 : vector<8x1xi1> to vector<8x1xi1>
    %295 = vector.broadcast %294 : vector<8x1xi1> to vector<8x32xi1>
    %296 = vector.shape_cast %266 : vector<1x32xf32> to vector<1x32xf32>
    %297 = vector.broadcast %296 : vector<1x32xf32> to vector<8x32xf32>
    %298 = arith.select %295, %297, %225 : vector<8x32xi1>, vector<8x32xf32>
    %c4_i32 = arith.constant 4 : i32
    %299 = vector.broadcast %c4_i32 : i32 to vector<8x1xi32>
    %300 = arith.cmpi eq, %14, %299 : vector<8x1xi32>
    %301 = vector.shape_cast %300 : vector<8x1xi1> to vector<8x1xi1>
    %302 = vector.broadcast %301 : vector<8x1xi1> to vector<8x32xi1>
    %303 = vector.shape_cast %291 : vector<1x32xf32> to vector<1x32xf32>
    %304 = vector.broadcast %303 : vector<1x32xf32> to vector<8x32xf32>
    %305 = arith.select %302, %304, %232 : vector<8x32xi1>, vector<8x32xf32>
    %306 = tpu.concatenate %266, %291 in 1 : vector<1x32xf32>, vector<1x32xf32> -> vector<1x64xf32>
    %307 = arith.truncf %306 : vector<1x64xf32> to vector<1x64xbf16>
    %cst_41 = arith.constant dense<0.000000e+00> : vector<1x256xf32>
    %308 = tpu.matmul %307, %8, %cst_41 {dimension_numbers = #tpu.dot_dimension_numbers<[1], [0], [0], [1], [0, 0, 1, 1], [], []>} : vector<1x64xbf16>, vector<64x256xbf16>, vector<1x256xf32> -> vector<1x256xf32>
    %309 = vector.extract_strided_slice %7 {offsets = [4, 0], sizes = [1, 128], strides = [1, 1]} : vector<8x256xf32> to vector<1x128xf32>
    %310 = vector.extract_strided_slice %308 {offsets = [0, 0], sizes = [1, 128], strides = [1, 1]} : vector<1x256xf32> to vector<1x128xf32>
    %311 = arith.addf %309, %310 : vector<1x128xf32>
    %312 = vector.extract_strided_slice %7 {offsets = [3, 128], sizes = [1, 128], strides = [1, 1]} : vector<8x256xf32> to vector<1x128xf32>
    %313 = vector.extract_strided_slice %308 {offsets = [0, 128], sizes = [1, 128], strides = [1, 1]} : vector<1x256xf32> to vector<1x128xf32>
    %314 = arith.addf %312, %313 : vector<1x128xf32>
    %315 = vector.extract_strided_slice %311 {offsets = [0, 0], sizes = [1, 32], strides = [1, 1]} : vector<1x128xf32> to vector<1x32xf32>
    %316 = arith.negf %315 : vector<1x32xf32>
    %317 = math.exp %316 : vector<1x32xf32>
    %cst_42 = arith.constant 1.000000e+00 : f32
    %318 = vector.broadcast %cst_42 : f32 to vector<1x32xf32>
    %319 = arith.addf %318, %317 : vector<1x32xf32>
    %320 = arith.divf %318, %319 : vector<1x32xf32>
    %321 = vector.extract_strided_slice %311 {offsets = [0, 32], sizes = [1, 32], strides = [1, 1]} : vector<1x128xf32> to vector<1x32xf32>
    %322 = arith.negf %321 : vector<1x32xf32>
    %323 = math.exp %322 : vector<1x32xf32>
    %cst_43 = arith.constant 1.000000e+00 : f32
    %324 = vector.broadcast %cst_43 : f32 to vector<1x32xf32>
    %325 = arith.addf %324, %323 : vector<1x32xf32>
    %326 = arith.divf %324, %325 : vector<1x32xf32>
    %327 = vector.extract_strided_slice %311 {offsets = [0, 64], sizes = [1, 32], strides = [1, 1]} : vector<1x128xf32> to vector<1x32xf32>
    %328 = math.tanh %327 : vector<1x32xf32>
    %329 = vector.extract_strided_slice %311 {offsets = [0, 96], sizes = [1, 32], strides = [1, 1]} : vector<1x128xf32> to vector<1x32xf32>
    %330 = arith.negf %329 : vector<1x32xf32>
    %331 = math.exp %330 : vector<1x32xf32>
    %cst_44 = arith.constant 1.000000e+00 : f32
    %332 = vector.broadcast %cst_44 : f32 to vector<1x32xf32>
    %333 = arith.addf %332, %331 : vector<1x32xf32>
    %334 = arith.divf %332, %333 : vector<1x32xf32>
    %335 = arith.mulf %326, %264 : vector<1x32xf32>
    %336 = arith.mulf %320, %328 : vector<1x32xf32>
    %337 = arith.addf %335, %336 : vector<1x32xf32>
    %338 = math.tanh %337 : vector<1x32xf32>
    %339 = arith.mulf %334, %338 : vector<1x32xf32>
    %340 = vector.extract_strided_slice %314 {offsets = [0, 0], sizes = [1, 32], strides = [1, 1]} : vector<1x128xf32> to vector<1x32xf32>
    %341 = arith.negf %340 : vector<1x32xf32>
    %342 = math.exp %341 : vector<1x32xf32>
    %cst_45 = arith.constant 1.000000e+00 : f32
    %343 = vector.broadcast %cst_45 : f32 to vector<1x32xf32>
    %344 = arith.addf %343, %342 : vector<1x32xf32>
    %345 = arith.divf %343, %344 : vector<1x32xf32>
    %346 = vector.extract_strided_slice %314 {offsets = [0, 32], sizes = [1, 32], strides = [1, 1]} : vector<1x128xf32> to vector<1x32xf32>
    %347 = arith.negf %346 : vector<1x32xf32>
    %348 = math.exp %347 : vector<1x32xf32>
    %cst_46 = arith.constant 1.000000e+00 : f32
    %349 = vector.broadcast %cst_46 : f32 to vector<1x32xf32>
    %350 = arith.addf %349, %348 : vector<1x32xf32>
    %351 = arith.divf %349, %350 : vector<1x32xf32>
    %352 = vector.extract_strided_slice %314 {offsets = [0, 64], sizes = [1, 32], strides = [1, 1]} : vector<1x128xf32> to vector<1x32xf32>
    %353 = math.tanh %352 : vector<1x32xf32>
    %354 = vector.extract_strided_slice %314 {offsets = [0, 96], sizes = [1, 32], strides = [1, 1]} : vector<1x128xf32> to vector<1x32xf32>
    %355 = arith.negf %354 : vector<1x32xf32>
    %356 = math.exp %355 : vector<1x32xf32>
    %cst_47 = arith.constant 1.000000e+00 : f32
    %357 = vector.broadcast %cst_47 : f32 to vector<1x32xf32>
    %358 = arith.addf %357, %356 : vector<1x32xf32>
    %359 = arith.divf %357, %358 : vector<1x32xf32>
    %360 = arith.mulf %351, %289 : vector<1x32xf32>
    %361 = arith.mulf %345, %353 : vector<1x32xf32>
    %362 = arith.addf %360, %361 : vector<1x32xf32>
    %363 = math.tanh %362 : vector<1x32xf32>
    %364 = arith.mulf %359, %363 : vector<1x32xf32>
    %c4_i32_48 = arith.constant 4 : i32
    %365 = vector.broadcast %c4_i32_48 : i32 to vector<8x1xi32>
    %366 = arith.cmpi eq, %14, %365 : vector<8x1xi32>
    %367 = vector.shape_cast %366 : vector<8x1xi1> to vector<8x1xi1>
    %368 = vector.broadcast %367 : vector<8x1xi1> to vector<8x32xi1>
    %369 = vector.shape_cast %339 : vector<1x32xf32> to vector<1x32xf32>
    %370 = vector.broadcast %369 : vector<1x32xf32> to vector<8x32xf32>
    %371 = arith.select %368, %370, %298 : vector<8x32xi1>, vector<8x32xf32>
    %c3_i32_49 = arith.constant 3 : i32
    %372 = vector.broadcast %c3_i32_49 : i32 to vector<8x1xi32>
    %373 = arith.cmpi eq, %14, %372 : vector<8x1xi32>
    %374 = vector.shape_cast %373 : vector<8x1xi1> to vector<8x1xi1>
    %375 = vector.broadcast %374 : vector<8x1xi1> to vector<8x32xi1>
    %376 = vector.shape_cast %364 : vector<1x32xf32> to vector<1x32xf32>
    %377 = vector.broadcast %376 : vector<1x32xf32> to vector<8x32xf32>
    %378 = arith.select %375, %377, %305 : vector<8x32xi1>, vector<8x32xf32>
    %379 = tpu.concatenate %339, %364 in 1 : vector<1x32xf32>, vector<1x32xf32> -> vector<1x64xf32>
    %380 = arith.truncf %379 : vector<1x64xf32> to vector<1x64xbf16>
    %cst_50 = arith.constant dense<0.000000e+00> : vector<1x256xf32>
    %381 = tpu.matmul %380, %8, %cst_50 {dimension_numbers = #tpu.dot_dimension_numbers<[1], [0], [0], [1], [0, 0, 1, 1], [], []>} : vector<1x64xbf16>, vector<64x256xbf16>, vector<1x256xf32> -> vector<1x256xf32>
    %382 = vector.extract_strided_slice %7 {offsets = [5, 0], sizes = [1, 128], strides = [1, 1]} : vector<8x256xf32> to vector<1x128xf32>
    %383 = vector.extract_strided_slice %381 {offsets = [0, 0], sizes = [1, 128], strides = [1, 1]} : vector<1x256xf32> to vector<1x128xf32>
    %384 = arith.addf %382, %383 : vector<1x128xf32>
    %385 = vector.extract_strided_slice %7 {offsets = [2, 128], sizes = [1, 128], strides = [1, 1]} : vector<8x256xf32> to vector<1x128xf32>
    %386 = vector.extract_strided_slice %381 {offsets = [0, 128], sizes = [1, 128], strides = [1, 1]} : vector<1x256xf32> to vector<1x128xf32>
    %387 = arith.addf %385, %386 : vector<1x128xf32>
    %388 = vector.extract_strided_slice %384 {offsets = [0, 0], sizes = [1, 32], strides = [1, 1]} : vector<1x128xf32> to vector<1x32xf32>
    %389 = arith.negf %388 : vector<1x32xf32>
    %390 = math.exp %389 : vector<1x32xf32>
    %cst_51 = arith.constant 1.000000e+00 : f32
    %391 = vector.broadcast %cst_51 : f32 to vector<1x32xf32>
    %392 = arith.addf %391, %390 : vector<1x32xf32>
    %393 = arith.divf %391, %392 : vector<1x32xf32>
    %394 = vector.extract_strided_slice %384 {offsets = [0, 32], sizes = [1, 32], strides = [1, 1]} : vector<1x128xf32> to vector<1x32xf32>
    %395 = arith.negf %394 : vector<1x32xf32>
    %396 = math.exp %395 : vector<1x32xf32>
    %cst_52 = arith.constant 1.000000e+00 : f32
    %397 = vector.broadcast %cst_52 : f32 to vector<1x32xf32>
    %398 = arith.addf %397, %396 : vector<1x32xf32>
    %399 = arith.divf %397, %398 : vector<1x32xf32>
    %400 = vector.extract_strided_slice %384 {offsets = [0, 64], sizes = [1, 32], strides = [1, 1]} : vector<1x128xf32> to vector<1x32xf32>
    %401 = math.tanh %400 : vector<1x32xf32>
    %402 = vector.extract_strided_slice %384 {offsets = [0, 96], sizes = [1, 32], strides = [1, 1]} : vector<1x128xf32> to vector<1x32xf32>
    %403 = arith.negf %402 : vector<1x32xf32>
    %404 = math.exp %403 : vector<1x32xf32>
    %cst_53 = arith.constant 1.000000e+00 : f32
    %405 = vector.broadcast %cst_53 : f32 to vector<1x32xf32>
    %406 = arith.addf %405, %404 : vector<1x32xf32>
    %407 = arith.divf %405, %406 : vector<1x32xf32>
    %408 = arith.mulf %399, %337 : vector<1x32xf32>
    %409 = arith.mulf %393, %401 : vector<1x32xf32>
    %410 = arith.addf %408, %409 : vector<1x32xf32>
    %411 = math.tanh %410 : vector<1x32xf32>
    %412 = arith.mulf %407, %411 : vector<1x32xf32>
    %413 = vector.extract_strided_slice %387 {offsets = [0, 0], sizes = [1, 32], strides = [1, 1]} : vector<1x128xf32> to vector<1x32xf32>
    %414 = arith.negf %413 : vector<1x32xf32>
    %415 = math.exp %414 : vector<1x32xf32>
    %cst_54 = arith.constant 1.000000e+00 : f32
    %416 = vector.broadcast %cst_54 : f32 to vector<1x32xf32>
    %417 = arith.addf %416, %415 : vector<1x32xf32>
    %418 = arith.divf %416, %417 : vector<1x32xf32>
    %419 = vector.extract_strided_slice %387 {offsets = [0, 32], sizes = [1, 32], strides = [1, 1]} : vector<1x128xf32> to vector<1x32xf32>
    %420 = arith.negf %419 : vector<1x32xf32>
    %421 = math.exp %420 : vector<1x32xf32>
    %cst_55 = arith.constant 1.000000e+00 : f32
    %422 = vector.broadcast %cst_55 : f32 to vector<1x32xf32>
    %423 = arith.addf %422, %421 : vector<1x32xf32>
    %424 = arith.divf %422, %423 : vector<1x32xf32>
    %425 = vector.extract_strided_slice %387 {offsets = [0, 64], sizes = [1, 32], strides = [1, 1]} : vector<1x128xf32> to vector<1x32xf32>
    %426 = math.tanh %425 : vector<1x32xf32>
    %427 = vector.extract_strided_slice %387 {offsets = [0, 96], sizes = [1, 32], strides = [1, 1]} : vector<1x128xf32> to vector<1x32xf32>
    %428 = arith.negf %427 : vector<1x32xf32>
    %429 = math.exp %428 : vector<1x32xf32>
    %cst_56 = arith.constant 1.000000e+00 : f32
    %430 = vector.broadcast %cst_56 : f32 to vector<1x32xf32>
    %431 = arith.addf %430, %429 : vector<1x32xf32>
    %432 = arith.divf %430, %431 : vector<1x32xf32>
    %433 = arith.mulf %424, %362 : vector<1x32xf32>
    %434 = arith.mulf %418, %426 : vector<1x32xf32>
    %435 = arith.addf %433, %434 : vector<1x32xf32>
    %436 = math.tanh %435 : vector<1x32xf32>
    %437 = arith.mulf %432, %436 : vector<1x32xf32>
    %c5_i32_57 = arith.constant 5 : i32
    %438 = vector.broadcast %c5_i32_57 : i32 to vector<8x1xi32>
    %439 = arith.cmpi eq, %14, %438 : vector<8x1xi32>
    %440 = vector.shape_cast %439 : vector<8x1xi1> to vector<8x1xi1>
    %441 = vector.broadcast %440 : vector<8x1xi1> to vector<8x32xi1>
    %442 = vector.shape_cast %412 : vector<1x32xf32> to vector<1x32xf32>
    %443 = vector.broadcast %442 : vector<1x32xf32> to vector<8x32xf32>
    %444 = arith.select %441, %443, %371 : vector<8x32xi1>, vector<8x32xf32>
    %c2_i32_58 = arith.constant 2 : i32
    %445 = vector.broadcast %c2_i32_58 : i32 to vector<8x1xi32>
    %446 = arith.cmpi eq, %14, %445 : vector<8x1xi32>
    %447 = vector.shape_cast %446 : vector<8x1xi1> to vector<8x1xi1>
    %448 = vector.broadcast %447 : vector<8x1xi1> to vector<8x32xi1>
    %449 = vector.shape_cast %437 : vector<1x32xf32> to vector<1x32xf32>
    %450 = vector.broadcast %449 : vector<1x32xf32> to vector<8x32xf32>
    %451 = arith.select %448, %450, %378 : vector<8x32xi1>, vector<8x32xf32>
    %452 = tpu.concatenate %412, %437 in 1 : vector<1x32xf32>, vector<1x32xf32> -> vector<1x64xf32>
    %453 = arith.truncf %452 : vector<1x64xf32> to vector<1x64xbf16>
    %cst_59 = arith.constant dense<0.000000e+00> : vector<1x256xf32>
    %454 = tpu.matmul %453, %8, %cst_59 {dimension_numbers = #tpu.dot_dimension_numbers<[1], [0], [0], [1], [0, 0, 1, 1], [], []>} : vector<1x64xbf16>, vector<64x256xbf16>, vector<1x256xf32> -> vector<1x256xf32>
    %455 = vector.extract_strided_slice %7 {offsets = [6, 0], sizes = [1, 128], strides = [1, 1]} : vector<8x256xf32> to vector<1x128xf32>
    %456 = vector.extract_strided_slice %454 {offsets = [0, 0], sizes = [1, 128], strides = [1, 1]} : vector<1x256xf32> to vector<1x128xf32>
    %457 = arith.addf %455, %456 : vector<1x128xf32>
    %458 = vector.extract_strided_slice %7 {offsets = [1, 128], sizes = [1, 128], strides = [1, 1]} : vector<8x256xf32> to vector<1x128xf32>
    %459 = vector.extract_strided_slice %454 {offsets = [0, 128], sizes = [1, 128], strides = [1, 1]} : vector<1x256xf32> to vector<1x128xf32>
    %460 = arith.addf %458, %459 : vector<1x128xf32>
    %461 = vector.extract_strided_slice %457 {offsets = [0, 0], sizes = [1, 32], strides = [1, 1]} : vector<1x128xf32> to vector<1x32xf32>
    %462 = arith.negf %461 : vector<1x32xf32>
    %463 = math.exp %462 : vector<1x32xf32>
    %cst_60 = arith.constant 1.000000e+00 : f32
    %464 = vector.broadcast %cst_60 : f32 to vector<1x32xf32>
    %465 = arith.addf %464, %463 : vector<1x32xf32>
    %466 = arith.divf %464, %465 : vector<1x32xf32>
    %467 = vector.extract_strided_slice %457 {offsets = [0, 32], sizes = [1, 32], strides = [1, 1]} : vector<1x128xf32> to vector<1x32xf32>
    %468 = arith.negf %467 : vector<1x32xf32>
    %469 = math.exp %468 : vector<1x32xf32>
    %cst_61 = arith.constant 1.000000e+00 : f32
    %470 = vector.broadcast %cst_61 : f32 to vector<1x32xf32>
    %471 = arith.addf %470, %469 : vector<1x32xf32>
    %472 = arith.divf %470, %471 : vector<1x32xf32>
    %473 = vector.extract_strided_slice %457 {offsets = [0, 64], sizes = [1, 32], strides = [1, 1]} : vector<1x128xf32> to vector<1x32xf32>
    %474 = math.tanh %473 : vector<1x32xf32>
    %475 = vector.extract_strided_slice %457 {offsets = [0, 96], sizes = [1, 32], strides = [1, 1]} : vector<1x128xf32> to vector<1x32xf32>
    %476 = arith.negf %475 : vector<1x32xf32>
    %477 = math.exp %476 : vector<1x32xf32>
    %cst_62 = arith.constant 1.000000e+00 : f32
    %478 = vector.broadcast %cst_62 : f32 to vector<1x32xf32>
    %479 = arith.addf %478, %477 : vector<1x32xf32>
    %480 = arith.divf %478, %479 : vector<1x32xf32>
    %481 = arith.mulf %472, %410 : vector<1x32xf32>
    %482 = arith.mulf %466, %474 : vector<1x32xf32>
    %483 = arith.addf %481, %482 : vector<1x32xf32>
    %484 = math.tanh %483 : vector<1x32xf32>
    %485 = arith.mulf %480, %484 : vector<1x32xf32>
    %486 = vector.extract_strided_slice %460 {offsets = [0, 0], sizes = [1, 32], strides = [1, 1]} : vector<1x128xf32> to vector<1x32xf32>
    %487 = arith.negf %486 : vector<1x32xf32>
    %488 = math.exp %487 : vector<1x32xf32>
    %cst_63 = arith.constant 1.000000e+00 : f32
    %489 = vector.broadcast %cst_63 : f32 to vector<1x32xf32>
    %490 = arith.addf %489, %488 : vector<1x32xf32>
    %491 = arith.divf %489, %490 : vector<1x32xf32>
    %492 = vector.extract_strided_slice %460 {offsets = [0, 32], sizes = [1, 32], strides = [1, 1]} : vector<1x128xf32> to vector<1x32xf32>
    %493 = arith.negf %492 : vector<1x32xf32>
    %494 = math.exp %493 : vector<1x32xf32>
    %cst_64 = arith.constant 1.000000e+00 : f32
    %495 = vector.broadcast %cst_64 : f32 to vector<1x32xf32>
    %496 = arith.addf %495, %494 : vector<1x32xf32>
    %497 = arith.divf %495, %496 : vector<1x32xf32>
    %498 = vector.extract_strided_slice %460 {offsets = [0, 64], sizes = [1, 32], strides = [1, 1]} : vector<1x128xf32> to vector<1x32xf32>
    %499 = math.tanh %498 : vector<1x32xf32>
    %500 = vector.extract_strided_slice %460 {offsets = [0, 96], sizes = [1, 32], strides = [1, 1]} : vector<1x128xf32> to vector<1x32xf32>
    %501 = arith.negf %500 : vector<1x32xf32>
    %502 = math.exp %501 : vector<1x32xf32>
    %cst_65 = arith.constant 1.000000e+00 : f32
    %503 = vector.broadcast %cst_65 : f32 to vector<1x32xf32>
    %504 = arith.addf %503, %502 : vector<1x32xf32>
    %505 = arith.divf %503, %504 : vector<1x32xf32>
    %506 = arith.mulf %497, %435 : vector<1x32xf32>
    %507 = arith.mulf %491, %499 : vector<1x32xf32>
    %508 = arith.addf %506, %507 : vector<1x32xf32>
    %509 = math.tanh %508 : vector<1x32xf32>
    %510 = arith.mulf %505, %509 : vector<1x32xf32>
    %c6_i32_66 = arith.constant 6 : i32
    %511 = vector.broadcast %c6_i32_66 : i32 to vector<8x1xi32>
    %512 = arith.cmpi eq, %14, %511 : vector<8x1xi32>
    %513 = vector.shape_cast %512 : vector<8x1xi1> to vector<8x1xi1>
    %514 = vector.broadcast %513 : vector<8x1xi1> to vector<8x32xi1>
    %515 = vector.shape_cast %485 : vector<1x32xf32> to vector<1x32xf32>
    %516 = vector.broadcast %515 : vector<1x32xf32> to vector<8x32xf32>
    %517 = arith.select %514, %516, %444 : vector<8x32xi1>, vector<8x32xf32>
    %c1_i32_67 = arith.constant 1 : i32
    %518 = vector.broadcast %c1_i32_67 : i32 to vector<8x1xi32>
    %519 = arith.cmpi eq, %14, %518 : vector<8x1xi32>
    %520 = vector.shape_cast %519 : vector<8x1xi1> to vector<8x1xi1>
    %521 = vector.broadcast %520 : vector<8x1xi1> to vector<8x32xi1>
    %522 = vector.shape_cast %510 : vector<1x32xf32> to vector<1x32xf32>
    %523 = vector.broadcast %522 : vector<1x32xf32> to vector<8x32xf32>
    %524 = arith.select %521, %523, %451 : vector<8x32xi1>, vector<8x32xf32>
    %525 = tpu.concatenate %485, %510 in 1 : vector<1x32xf32>, vector<1x32xf32> -> vector<1x64xf32>
    %526 = arith.truncf %525 : vector<1x64xf32> to vector<1x64xbf16>
    %cst_68 = arith.constant dense<0.000000e+00> : vector<1x256xf32>
    %527 = tpu.matmul %526, %8, %cst_68 {dimension_numbers = #tpu.dot_dimension_numbers<[1], [0], [0], [1], [0, 0, 1, 1], [], []>} : vector<1x64xbf16>, vector<64x256xbf16>, vector<1x256xf32> -> vector<1x256xf32>
    %528 = vector.extract_strided_slice %7 {offsets = [7, 0], sizes = [1, 128], strides = [1, 1]} : vector<8x256xf32> to vector<1x128xf32>
    %529 = vector.extract_strided_slice %527 {offsets = [0, 0], sizes = [1, 128], strides = [1, 1]} : vector<1x256xf32> to vector<1x128xf32>
    %530 = arith.addf %528, %529 : vector<1x128xf32>
    %531 = vector.extract_strided_slice %7 {offsets = [0, 128], sizes = [1, 128], strides = [1, 1]} : vector<8x256xf32> to vector<1x128xf32>
    %532 = vector.extract_strided_slice %527 {offsets = [0, 128], sizes = [1, 128], strides = [1, 1]} : vector<1x256xf32> to vector<1x128xf32>
    %533 = arith.addf %531, %532 : vector<1x128xf32>
    %534 = vector.extract_strided_slice %530 {offsets = [0, 0], sizes = [1, 32], strides = [1, 1]} : vector<1x128xf32> to vector<1x32xf32>
    %535 = arith.negf %534 : vector<1x32xf32>
    %536 = math.exp %535 : vector<1x32xf32>
    %cst_69 = arith.constant 1.000000e+00 : f32
    %537 = vector.broadcast %cst_69 : f32 to vector<1x32xf32>
    %538 = arith.addf %537, %536 : vector<1x32xf32>
    %539 = arith.divf %537, %538 : vector<1x32xf32>
    %540 = vector.extract_strided_slice %530 {offsets = [0, 32], sizes = [1, 32], strides = [1, 1]} : vector<1x128xf32> to vector<1x32xf32>
    %541 = arith.negf %540 : vector<1x32xf32>
    %542 = math.exp %541 : vector<1x32xf32>
    %cst_70 = arith.constant 1.000000e+00 : f32
    %543 = vector.broadcast %cst_70 : f32 to vector<1x32xf32>
    %544 = arith.addf %543, %542 : vector<1x32xf32>
    %545 = arith.divf %543, %544 : vector<1x32xf32>
    %546 = vector.extract_strided_slice %530 {offsets = [0, 64], sizes = [1, 32], strides = [1, 1]} : vector<1x128xf32> to vector<1x32xf32>
    %547 = math.tanh %546 : vector<1x32xf32>
    %548 = vector.extract_strided_slice %530 {offsets = [0, 96], sizes = [1, 32], strides = [1, 1]} : vector<1x128xf32> to vector<1x32xf32>
    %549 = arith.negf %548 : vector<1x32xf32>
    %550 = math.exp %549 : vector<1x32xf32>
    %cst_71 = arith.constant 1.000000e+00 : f32
    %551 = vector.broadcast %cst_71 : f32 to vector<1x32xf32>
    %552 = arith.addf %551, %550 : vector<1x32xf32>
    %553 = arith.divf %551, %552 : vector<1x32xf32>
    %554 = arith.mulf %545, %483 : vector<1x32xf32>
    %555 = arith.mulf %539, %547 : vector<1x32xf32>
    %556 = arith.addf %554, %555 : vector<1x32xf32>
    %557 = math.tanh %556 : vector<1x32xf32>
    %558 = arith.mulf %553, %557 : vector<1x32xf32>
    %559 = vector.extract_strided_slice %533 {offsets = [0, 0], sizes = [1, 32], strides = [1, 1]} : vector<1x128xf32> to vector<1x32xf32>
    %560 = arith.negf %559 : vector<1x32xf32>
    %561 = math.exp %560 : vector<1x32xf32>
    %cst_72 = arith.constant 1.000000e+00 : f32
    %562 = vector.broadcast %cst_72 : f32 to vector<1x32xf32>
    %563 = arith.addf %562, %561 : vector<1x32xf32>
    %564 = arith.divf %562, %563 : vector<1x32xf32>
    %565 = vector.extract_strided_slice %533 {offsets = [0, 32], sizes = [1, 32], strides = [1, 1]} : vector<1x128xf32> to vector<1x32xf32>
    %566 = arith.negf %565 : vector<1x32xf32>
    %567 = math.exp %566 : vector<1x32xf32>
    %cst_73 = arith.constant 1.000000e+00 : f32
    %568 = vector.broadcast %cst_73 : f32 to vector<1x32xf32>
    %569 = arith.addf %568, %567 : vector<1x32xf32>
    %570 = arith.divf %568, %569 : vector<1x32xf32>
    %571 = vector.extract_strided_slice %533 {offsets = [0, 64], sizes = [1, 32], strides = [1, 1]} : vector<1x128xf32> to vector<1x32xf32>
    %572 = math.tanh %571 : vector<1x32xf32>
    %573 = vector.extract_strided_slice %533 {offsets = [0, 96], sizes = [1, 32], strides = [1, 1]} : vector<1x128xf32> to vector<1x32xf32>
    %574 = arith.negf %573 : vector<1x32xf32>
    %575 = math.exp %574 : vector<1x32xf32>
    %cst_74 = arith.constant 1.000000e+00 : f32
    %576 = vector.broadcast %cst_74 : f32 to vector<1x32xf32>
    %577 = arith.addf %576, %575 : vector<1x32xf32>
    %578 = arith.divf %576, %577 : vector<1x32xf32>
    %579 = arith.mulf %570, %508 : vector<1x32xf32>
    %580 = arith.mulf %564, %572 : vector<1x32xf32>
    %581 = arith.addf %579, %580 : vector<1x32xf32>
    %582 = math.tanh %581 : vector<1x32xf32>
    %583 = arith.mulf %578, %582 : vector<1x32xf32>
    %c7_i32_75 = arith.constant 7 : i32
    %584 = vector.broadcast %c7_i32_75 : i32 to vector<8x1xi32>
    %585 = arith.cmpi eq, %14, %584 : vector<8x1xi32>
    %586 = vector.shape_cast %585 : vector<8x1xi1> to vector<8x1xi1>
    %587 = vector.broadcast %586 : vector<8x1xi1> to vector<8x32xi1>
    %588 = vector.shape_cast %558 : vector<1x32xf32> to vector<1x32xf32>
    %589 = vector.broadcast %588 : vector<1x32xf32> to vector<8x32xf32>
    %590 = arith.select %587, %589, %517 : vector<8x32xi1>, vector<8x32xf32>
    %c0_i32_76 = arith.constant 0 : i32
    %591 = vector.broadcast %c0_i32_76 : i32 to vector<8x1xi32>
    %592 = arith.cmpi eq, %14, %591 : vector<8x1xi32>
    %593 = vector.shape_cast %592 : vector<8x1xi1> to vector<8x1xi1>
    %594 = vector.broadcast %593 : vector<8x1xi1> to vector<8x32xi1>
    %595 = vector.shape_cast %583 : vector<1x32xf32> to vector<1x32xf32>
    %596 = vector.broadcast %595 : vector<1x32xf32> to vector<8x32xf32>
    %597 = arith.select %594, %596, %524 : vector<8x32xi1>, vector<8x32xf32>
    %598 = tpu.concatenate %590, %597 in 1 : vector<8x32xf32>, vector<8x32xf32> -> vector<8x64xf32>
    %c0_77 = arith.constant 0 : index
    %c0_78 = arith.constant 0 : index
    %c0_79 = arith.constant 0 : index
    %599 = vector.load %arg5[%c0_77, %c0_78, %c0_79] : memref<1x8x64xf32, #tpu.memory_space<vmem>>, vector<1x8x64xf32>
    %600 = vector.shape_cast %599 : vector<1x8x64xf32> to vector<8x64xf32>
    %601 = vector.shape_cast %598 : vector<8x64xf32> to vector<1x8x64xf32>
    tpu.vector_store %arg5[%c0_77, %c0_78, %c0_79], %601 {strides = array<i32>} : memref<1x8x64xf32, #tpu.memory_space<vmem>>, vector<1x8x64xf32>,
    return
  }
  func.func @transform_0(%arg0: i32) -> (i32, i32, i32) {
    %c0_i32 = arith.constant 0 : i32
    %c0_i32_0 = arith.constant 0 : i32
    %c0_i32_1 = arith.constant 0 : i32
    return %arg0, %c0_i32, %c0_i32_0 : i32, i32, i32
  }
  func.func @transform_1(%arg0: i32) -> (i32, i32) {
    %c0_i32 = arith.constant 0 : i32
    %c0_i32_0 = arith.constant 0 : i32
    %c0_i32_1 = arith.constant 0 : i32
    return %c0_i32, %c0_i32_0 : i32, i32
  }
  func.func @transform_2(%arg0: i32) -> (i32, i32) {
    %c0_i32 = arith.constant 0 : i32
    %c0_i32_0 = arith.constant 0 : i32
    %c0_i32_1 = arith.constant 0 : i32
    return %c0_i32, %c0_i32_0 : i32, i32
  }
  func.func @transform_3(%arg0: i32) -> (i32, i32) {
    %c0_i32 = arith.constant 0 : i32
    %c0_i32_0 = arith.constant 0 : i32
    %c0_i32_1 = arith.constant 0 : i32
    return %c0_i32, %c0_i32_0 : i32, i32
  }
  func.func @transform_4(%arg0: i32) -> (i32, i32, i32) {
    %c0_i32 = arith.constant 0 : i32
    %c0_i32_0 = arith.constant 0 : i32
    %c0_i32_1 = arith.constant 0 : i32
    return %arg0, %c0_i32, %c0_i32_0 : i32, i32, i32
  }
}

module attributes {stable_mosaic.version = 11 : i64} {
  func.func @lstm_layer_kernel(%arg0: i32, %arg1: memref<1x8x64xf32, #tpu.memory_space<vmem>>, %arg2: memref<64x256xbf16, #tpu.memory_space<vmem>>, %arg3: memref<1x256xf32, #tpu.memory_space<vmem>>, %arg4: memref<64x256xbf16, #tpu.memory_space<vmem>>, %arg5: memref<1x8x64xf32, #tpu.memory_space<vmem>>) attributes {dimension_semantics = [#tpu.dimension_semantics<parallel>], iteration_bounds = array<i64: 2>, scalar_prefetch = 0 : i64, scratch_operands = 0 : i64, tpu.core_type = #tpu.core_type<tc>, window_params = [{transform_indices = @transform_0, window_bounds = array<i64: 1, 8, 64>}, {pipeline_mode = #tpu.pipeline_mode<synchronous>, transform_indices = @transform_1, window_bounds = array<i64: 64, 256>}, {pipeline_mode = #tpu.pipeline_mode<synchronous>, transform_indices = @transform_2, window_bounds = array<i64: 1, 256>}, {pipeline_mode = #tpu.pipeline_mode<synchronous>, transform_indices = @transform_3, window_bounds = array<i64: 64, 256>}, {transform_indices = @transform_4, window_bounds = array<i64: 1, 8, 64>}]} {
    %c0 = arith.constant 0 : index
    %c0_0 = arith.constant 0 : index
    %c0_1 = arith.constant 0 : index
    %0 = vector.load %arg1[%c0, %c0_0, %c0_1] : memref<1x8x64xf32, #tpu.memory_space<vmem>>, vector<1x8x64xf32>
    %1 = vector.shape_cast %0 : vector<1x8x64xf32> to vector<8x64xf32>
    %2 = arith.truncf %1 : vector<8x64xf32> to vector<8x64xbf16>
    %c0_2 = arith.constant 0 : index
    %c0_3 = arith.constant 0 : index
    %3 = vector.load %arg2[%c0_2, %c0_3] : memref<64x256xbf16, #tpu.memory_space<vmem>>, vector<64x256xbf16>
    %cst = arith.constant dense<0.000000e+00> : vector<8x256xf32>
    %4 = tpu.matmul %2, %3, %cst {dimension_numbers = #tpu.dot_dimension_numbers<[1], [0], [0], [1], [0, 0, 1, 1], [], []>} : vector<8x64xbf16>, vector<64x256xbf16>, vector<8x256xf32> -> vector<8x256xf32>
    %c0_4 = arith.constant 0 : index
    %c0_5 = arith.constant 0 : index
    %5 = vector.load %arg3[%c0_4, %c0_5] : memref<1x256xf32, #tpu.memory_space<vmem>>, vector<1x256xf32>
    %6 = vector.broadcast %5 : vector<1x256xf32> to vector<8x256xf32>
    %7 = arith.addf %4, %6 : vector<8x256xf32>
    %c0_6 = arith.constant 0 : index
    %c0_7 = arith.constant 0 : index
    %8 = vector.load %arg4[%c0_6, %c0_7] : memref<64x256xbf16, #tpu.memory_space<vmem>>, vector<64x256xbf16>
    %cst_8 = arith.constant 0.000000e+00 : f32
    %9 = vector.broadcast %cst_8 : f32 to vector<1x64xf32>
    %cst_9 = arith.constant 0.000000e+00 : f32
    %10 = vector.broadcast %cst_9 : f32 to vector<1x32xf32>
    %cst_10 = arith.constant 0.000000e+00 : f32
    %11 = vector.broadcast %cst_10 : f32 to vector<1x32xf32>
    %cst_11 = arith.constant 0.000000e+00 : f32
    %12 = vector.broadcast %cst_11 : f32 to vector<8x32xf32>
    %cst_12 = arith.constant 0.000000e+00 : f32
    %13 = vector.broadcast %cst_12 : f32 to vector<8x32xf32>
    %14 = tpu.iota {dimensions = array<i32: 0>} : vector<8x1xi32>
    %15 = arith.truncf %9 : vector<1x64xf32> to vector<1x64xbf16>
    %cst_13 = arith.constant dense<0.000000e+00> : vector<1x256xf32>
    %16 = tpu.matmul %15, %8, %cst_13 {dimension_numbers = #tpu.dot_dimension_numbers<[1], [0], [0], [1], [0, 0, 1, 1], [], []>} : vector<1x64xbf16>, vector<64x256xbf16>, vector<1x256xf32> -> vector<1x256xf32>
    %17 = vector.extract_strided_slice %7 {offsets = [0, 0], sizes = [1, 128], strides = [1, 1]} : vector<8x256xf32> to vector<1x128xf32>
    %18 = vector.extract_strided_slice %16 {offsets = [0, 0], sizes = [1, 128], strides = [1, 1]} : vector<1x256xf32> to vector<1x128xf32>
    %19 = arith.addf %17, %18 : vector<1x128xf32>
    %20 = vector.extract_strided_slice %7 {offsets = [7, 128], sizes = [1, 128], strides = [1, 1]} : vector<8x256xf32> to vector<1x128xf32>
    %21 = vector.extract_strided_slice %16 {offsets = [0, 128], sizes = [1, 128], strides = [1, 1]} : vector<1x256xf32> to vector<1x128xf32>
    %22 = arith.addf %20, %21 : vector<1x128xf32>
    %23 = vector.extract_strided_slice %19 {offsets = [0, 0], sizes = [1, 32], strides = [1, 1]} : vector<1x128xf32> to vector<1x32xf32>
    %24 = arith.negf %23 : vector<1x32xf32>
    %25 = math.exp %24 : vector<1x32xf32>
    %cst_14 = arith.constant 1.000000e+00 : f32
    %26 = vector.broadcast %cst_14 : f32 to vector<1x32xf32>
    %27 = arith.addf %26, %25 : vector<1x32xf32>
    %28 = arith.divf %26, %27 : vector<1x32xf32>
    %29 = vector.extract_strided_slice %19 {offsets = [0, 32], sizes = [1, 32], strides = [1, 1]} : vector<1x128xf32> to vector<1x32xf32>
    %30 = arith.negf %29 : vector<1x32xf32>
    %31 = math.exp %30 : vector<1x32xf32>
    %cst_15 = arith.constant 1.000000e+00 : f32
    %32 = vector.broadcast %cst_15 : f32 to vector<1x32xf32>
    %33 = arith.addf %32, %31 : vector<1x32xf32>
    %34 = arith.divf %32, %33 : vector<1x32xf32>
    %35 = vector.extract_strided_slice %19 {offsets = [0, 64], sizes = [1, 32], strides = [1, 1]} : vector<1x128xf32> to vector<1x32xf32>
    %36 = math.tanh %35 : vector<1x32xf32>
    %37 = vector.extract_strided_slice %19 {offsets = [0, 96], sizes = [1, 32], strides = [1, 1]} : vector<1x128xf32> to vector<1x32xf32>
    %38 = arith.negf %37 : vector<1x32xf32>
    %39 = math.exp %38 : vector<1x32xf32>
    %cst_16 = arith.constant 1.000000e+00 : f32
    %40 = vector.broadcast %cst_16 : f32 to vector<1x32xf32>
    %41 = arith.addf %40, %39 : vector<1x32xf32>
    %42 = arith.divf %40, %41 : vector<1x32xf32>
    %43 = arith.mulf %34, %10 : vector<1x32xf32>
    %44 = arith.mulf %28, %36 : vector<1x32xf32>
    %45 = arith.addf %43, %44 : vector<1x32xf32>
    %46 = math.tanh %45 : vector<1x32xf32>
    %47 = arith.mulf %42, %46 : vector<1x32xf32>
    %48 = vector.extract_strided_slice %22 {offsets = [0, 0], sizes = [1, 32], strides = [1, 1]} : vector<1x128xf32> to vector<1x32xf32>
    %49 = arith.negf %48 : vector<1x32xf32>
    %50 = math.exp %49 : vector<1x32xf32>
    %cst_17 = arith.constant 1.000000e+00 : f32
    %51 = vector.broadcast %cst_17 : f32 to vector<1x32xf32>
    %52 = arith.addf %51, %50 : vector<1x32xf32>
    %53 = arith.divf %51, %52 : vector<1x32xf32>
    %54 = vector.extract_strided_slice %22 {offsets = [0, 32], sizes = [1, 32], strides = [1, 1]} : vector<1x128xf32> to vector<1x32xf32>
    %55 = arith.negf %54 : vector<1x32xf32>
    %56 = math.exp %55 : vector<1x32xf32>
    %cst_18 = arith.constant 1.000000e+00 : f32
    %57 = vector.broadcast %cst_18 : f32 to vector<1x32xf32>
    %58 = arith.addf %57, %56 : vector<1x32xf32>
    %59 = arith.divf %57, %58 : vector<1x32xf32>
    %60 = vector.extract_strided_slice %22 {offsets = [0, 64], sizes = [1, 32], strides = [1, 1]} : vector<1x128xf32> to vector<1x32xf32>
    %61 = math.tanh %60 : vector<1x32xf32>
    %62 = vector.extract_strided_slice %22 {offsets = [0, 96], sizes = [1, 32], strides = [1, 1]} : vector<1x128xf32> to vector<1x32xf32>
    %63 = arith.negf %62 : vector<1x32xf32>
    %64 = math.exp %63 : vector<1x32xf32>
    %cst_19 = arith.constant 1.000000e+00 : f32
    %65 = vector.broadcast %cst_19 : f32 to vector<1x32xf32>
    %66 = arith.addf %65, %64 : vector<1x32xf32>
    %67 = arith.divf %65, %66 : vector<1x32xf32>
    %68 = arith.mulf %59, %11 : vector<1x32xf32>
    %69 = arith.mulf %53, %61 : vector<1x32xf32>
    %70 = arith.addf %68, %69 : vector<1x32xf32>
    %71 = math.tanh %70 : vector<1x32xf32>
    %72 = arith.mulf %67, %71 : vector<1x32xf32>
    %c0_i32 = arith.constant 0 : i32
    %73 = vector.broadcast %c0_i32 : i32 to vector<8x1xi32>
    %74 = arith.cmpi eq, %14, %73 : vector<8x1xi32>
    %75 = vector.shape_cast %74 : vector<8x1xi1> to vector<8x1xi1>
    %76 = vector.broadcast %75 : vector<8x1xi1> to vector<8x32xi1>
    %77 = vector.shape_cast %47 : vector<1x32xf32> to vector<1x32xf32>
    %78 = vector.broadcast %77 : vector<1x32xf32> to vector<8x32xf32>
    %79 = arith.select %76, %78, %12 : vector<8x32xi1>, vector<8x32xf32>
    %c7_i32 = arith.constant 7 : i32
    %80 = vector.broadcast %c7_i32 : i32 to vector<8x1xi32>
    %81 = arith.cmpi eq, %14, %80 : vector<8x1xi32>
    %82 = vector.shape_cast %81 : vector<8x1xi1> to vector<8x1xi1>
    %83 = vector.broadcast %82 : vector<8x1xi1> to vector<8x32xi1>
    %84 = vector.shape_cast %72 : vector<1x32xf32> to vector<1x32xf32>
    %85 = vector.broadcast %84 : vector<1x32xf32> to vector<8x32xf32>
    %86 = arith.select %83, %85, %13 : vector<8x32xi1>, vector<8x32xf32>
    %87 = tpu.concatenate %47, %72 in 1 : vector<1x32xf32>, vector<1x32xf32> -> vector<1x64xf32>
    %88 = arith.truncf %87 : vector<1x64xf32> to vector<1x64xbf16>
    %cst_20 = arith.constant dense<0.000000e+00> : vector<1x256xf32>
    %89 = tpu.matmul %88, %8, %cst_20 {dimension_numbers = #tpu.dot_dimension_numbers<[1], [0], [0], [1], [0, 0, 1, 1], [], []>} : vector<1x64xbf16>, vector<64x256xbf16>, vector<1x256xf32> -> vector<1x256xf32>
    %90 = vector.extract_strided_slice %7 {offsets = [1, 0], sizes = [1, 128], strides = [1, 1]} : vector<8x256xf32> to vector<1x128xf32>
    %91 = vector.extract_strided_slice %89 {offsets = [0, 0], sizes = [1, 128], strides = [1, 1]} : vector<1x256xf32> to vector<1x128xf32>
    %92 = arith.addf %90, %91 : vector<1x128xf32>
    %93 = vector.extract_strided_slice %7 {offsets = [6, 128], sizes = [1, 128], strides = [1, 1]} : vector<8x256xf32> to vector<1x128xf32>
    %94 = vector.extract_strided_slice %89 {offsets = [0, 128], sizes = [1, 128], strides = [1, 1]} : vector<1x256xf32> to vector<1x128xf32>
    %95 = arith.addf %93, %94 : vector<1x128xf32>
    %96 = vector.extract_strided_slice %92 {offsets = [0, 0], sizes = [1, 32], strides = [1, 1]} : vector<1x128xf32> to vector<1x32xf32>
    %97 = arith.negf %96 : vector<1x32xf32>
    %98 = math.exp %97 : vector<1x32xf32>
    %cst_21 = arith.constant 1.000000e+00 : f32
    %99 = vector.broadcast %cst_21 : f32 to vector<1x32xf32>
    %100 = arith.addf %99, %98 : vector<1x32xf32>
    %101 = arith.divf %99, %100 : vector<1x32xf32>
    %102 = vector.extract_strided_slice %92 {offsets = [0, 32], sizes = [1, 32], strides = [1, 1]} : vector<1x128xf32> to vector<1x32xf32>
    %103 = arith.negf %102 : vector<1x32xf32>
    %104 = math.exp %103 : vector<1x32xf32>
    %cst_22 = arith.constant 1.000000e+00 : f32
    %105 = vector.broadcast %cst_22 : f32 to vector<1x32xf32>
    %106 = arith.addf %105, %104 : vector<1x32xf32>
    %107 = arith.divf %105, %106 : vector<1x32xf32>
    %108 = vector.extract_strided_slice %92 {offsets = [0, 64], sizes = [1, 32], strides = [1, 1]} : vector<1x128xf32> to vector<1x32xf32>
    %109 = math.tanh %108 : vector<1x32xf32>
    %110 = vector.extract_strided_slice %92 {offsets = [0, 96], sizes = [1, 32], strides = [1, 1]} : vector<1x128xf32> to vector<1x32xf32>
    %111 = arith.negf %110 : vector<1x32xf32>
    %112 = math.exp %111 : vector<1x32xf32>
    %cst_23 = arith.constant 1.000000e+00 : f32
    %113 = vector.broadcast %cst_23 : f32 to vector<1x32xf32>
    %114 = arith.addf %113, %112 : vector<1x32xf32>
    %115 = arith.divf %113, %114 : vector<1x32xf32>
    %116 = arith.mulf %107, %45 : vector<1x32xf32>
    %117 = arith.mulf %101, %109 : vector<1x32xf32>
    %118 = arith.addf %116, %117 : vector<1x32xf32>
    %119 = math.tanh %118 : vector<1x32xf32>
    %120 = arith.mulf %115, %119 : vector<1x32xf32>
    %121 = vector.extract_strided_slice %95 {offsets = [0, 0], sizes = [1, 32], strides = [1, 1]} : vector<1x128xf32> to vector<1x32xf32>
    %122 = arith.negf %121 : vector<1x32xf32>
    %123 = math.exp %122 : vector<1x32xf32>
    %cst_24 = arith.constant 1.000000e+00 : f32
    %124 = vector.broadcast %cst_24 : f32 to vector<1x32xf32>
    %125 = arith.addf %124, %123 : vector<1x32xf32>
    %126 = arith.divf %124, %125 : vector<1x32xf32>
    %127 = vector.extract_strided_slice %95 {offsets = [0, 32], sizes = [1, 32], strides = [1, 1]} : vector<1x128xf32> to vector<1x32xf32>
    %128 = arith.negf %127 : vector<1x32xf32>
    %129 = math.exp %128 : vector<1x32xf32>
    %cst_25 = arith.constant 1.000000e+00 : f32
    %130 = vector.broadcast %cst_25 : f32 to vector<1x32xf32>
    %131 = arith.addf %130, %129 : vector<1x32xf32>
    %132 = arith.divf %130, %131 : vector<1x32xf32>
    %133 = vector.extract_strided_slice %95 {offsets = [0, 64], sizes = [1, 32], strides = [1, 1]} : vector<1x128xf32> to vector<1x32xf32>
    %134 = math.tanh %133 : vector<1x32xf32>
    %135 = vector.extract_strided_slice %95 {offsets = [0, 96], sizes = [1, 32], strides = [1, 1]} : vector<1x128xf32> to vector<1x32xf32>
    %136 = arith.negf %135 : vector<1x32xf32>
    %137 = math.exp %136 : vector<1x32xf32>
    %cst_26 = arith.constant 1.000000e+00 : f32
    %138 = vector.broadcast %cst_26 : f32 to vector<1x32xf32>
    %139 = arith.addf %138, %137 : vector<1x32xf32>
    %140 = arith.divf %138, %139 : vector<1x32xf32>
    %141 = arith.mulf %132, %70 : vector<1x32xf32>
    %142 = arith.mulf %126, %134 : vector<1x32xf32>
    %143 = arith.addf %141, %142 : vector<1x32xf32>
    %144 = math.tanh %143 : vector<1x32xf32>
    %145 = arith.mulf %140, %144 : vector<1x32xf32>
    %c1_i32 = arith.constant 1 : i32
    %146 = vector.broadcast %c1_i32 : i32 to vector<8x1xi32>
    %147 = arith.cmpi eq, %14, %146 : vector<8x1xi32>
    %148 = vector.shape_cast %147 : vector<8x1xi1> to vector<8x1xi1>
    %149 = vector.broadcast %148 : vector<8x1xi1> to vector<8x32xi1>
    %150 = vector.shape_cast %120 : vector<1x32xf32> to vector<1x32xf32>
    %151 = vector.broadcast %150 : vector<1x32xf32> to vector<8x32xf32>
    %152 = arith.select %149, %151, %79 : vector<8x32xi1>, vector<8x32xf32>
    %c6_i32 = arith.constant 6 : i32
    %153 = vector.broadcast %c6_i32 : i32 to vector<8x1xi32>
    %154 = arith.cmpi eq, %14, %153 : vector<8x1xi32>
    %155 = vector.shape_cast %154 : vector<8x1xi1> to vector<8x1xi1>
    %156 = vector.broadcast %155 : vector<8x1xi1> to vector<8x32xi1>
    %157 = vector.shape_cast %145 : vector<1x32xf32> to vector<1x32xf32>
    %158 = vector.broadcast %157 : vector<1x32xf32> to vector<8x32xf32>
    %159 = arith.select %156, %158, %86 : vector<8x32xi1>, vector<8x32xf32>
    %160 = tpu.concatenate %120, %145 in 1 : vector<1x32xf32>, vector<1x32xf32> -> vector<1x64xf32>
    %161 = arith.truncf %160 : vector<1x64xf32> to vector<1x64xbf16>
    %cst_27 = arith.constant dense<0.000000e+00> : vector<1x256xf32>
    %162 = tpu.matmul %161, %8, %cst_27 {dimension_numbers = #tpu.dot_dimension_numbers<[1], [0], [0], [1], [0, 0, 1, 1], [], []>} : vector<1x64xbf16>, vector<64x256xbf16>, vector<1x256xf32> -> vector<1x256xf32>
    %163 = vector.extract_strided_slice %7 {offsets = [2, 0], sizes = [1, 128], strides = [1, 1]} : vector<8x256xf32> to vector<1x128xf32>
    %164 = vector.extract_strided_slice %162 {offsets = [0, 0], sizes = [1, 128], strides = [1, 1]} : vector<1x256xf32> to vector<1x128xf32>
    %165 = arith.addf %163, %164 : vector<1x128xf32>
    %166 = vector.extract_strided_slice %7 {offsets = [5, 128], sizes = [1, 128], strides = [1, 1]} : vector<8x256xf32> to vector<1x128xf32>
    %167 = vector.extract_strided_slice %162 {offsets = [0, 128], sizes = [1, 128], strides = [1, 1]} : vector<1x256xf32> to vector<1x128xf32>
    %168 = arith.addf %166, %167 : vector<1x128xf32>
    %169 = vector.extract_strided_slice %165 {offsets = [0, 0], sizes = [1, 32], strides = [1, 1]} : vector<1x128xf32> to vector<1x32xf32>
    %170 = arith.negf %169 : vector<1x32xf32>
    %171 = math.exp %170 : vector<1x32xf32>
    %cst_28 = arith.constant 1.000000e+00 : f32
    %172 = vector.broadcast %cst_28 : f32 to vector<1x32xf32>
    %173 = arith.addf %172, %171 : vector<1x32xf32>
    %174 = arith.divf %172, %173 : vector<1x32xf32>
    %175 = vector.extract_strided_slice %165 {offsets = [0, 32], sizes = [1, 32], strides = [1, 1]} : vector<1x128xf32> to vector<1x32xf32>
    %176 = arith.negf %175 : vector<1x32xf32>
    %177 = math.exp %176 : vector<1x32xf32>
    %cst_29 = arith.constant 1.000000e+00 : f32
    %178 = vector.broadcast %cst_29 : f32 to vector<1x32xf32>
    %179 = arith.addf %178, %177 : vector<1x32xf32>
    %180 = arith.divf %178, %179 : vector<1x32xf32>
    %181 = vector.extract_strided_slice %165 {offsets = [0, 64], sizes = [1, 32], strides = [1, 1]} : vector<1x128xf32> to vector<1x32xf32>
    %182 = math.tanh %181 : vector<1x32xf32>
    %183 = vector.extract_strided_slice %165 {offsets = [0, 96], sizes = [1, 32], strides = [1, 1]} : vector<1x128xf32> to vector<1x32xf32>
    %184 = arith.negf %183 : vector<1x32xf32>
    %185 = math.exp %184 : vector<1x32xf32>
    %cst_30 = arith.constant 1.000000e+00 : f32
    %186 = vector.broadcast %cst_30 : f32 to vector<1x32xf32>
    %187 = arith.addf %186, %185 : vector<1x32xf32>
    %188 = arith.divf %186, %187 : vector<1x32xf32>
    %189 = arith.mulf %180, %118 : vector<1x32xf32>
    %190 = arith.mulf %174, %182 : vector<1x32xf32>
    %191 = arith.addf %189, %190 : vector<1x32xf32>
    %192 = math.tanh %191 : vector<1x32xf32>
    %193 = arith.mulf %188, %192 : vector<1x32xf32>
    %194 = vector.extract_strided_slice %168 {offsets = [0, 0], sizes = [1, 32], strides = [1, 1]} : vector<1x128xf32> to vector<1x32xf32>
    %195 = arith.negf %194 : vector<1x32xf32>
    %196 = math.exp %195 : vector<1x32xf32>
    %cst_31 = arith.constant 1.000000e+00 : f32
    %197 = vector.broadcast %cst_31 : f32 to vector<1x32xf32>
    %198 = arith.addf %197, %196 : vector<1x32xf32>
    %199 = arith.divf %197, %198 : vector<1x32xf32>
    %200 = vector.extract_strided_slice %168 {offsets = [0, 32], sizes = [1, 32], strides = [1, 1]} : vector<1x128xf32> to vector<1x32xf32>
    %201 = arith.negf %200 : vector<1x32xf32>
    %202 = math.exp %201 : vector<1x32xf32>
    %cst_32 = arith.constant 1.000000e+00 : f32
    %203 = vector.broadcast %cst_32 : f32 to vector<1x32xf32>
    %204 = arith.addf %203, %202 : vector<1x32xf32>
    %205 = arith.divf %203, %204 : vector<1x32xf32>
    %206 = vector.extract_strided_slice %168 {offsets = [0, 64], sizes = [1, 32], strides = [1, 1]} : vector<1x128xf32> to vector<1x32xf32>
    %207 = math.tanh %206 : vector<1x32xf32>
    %208 = vector.extract_strided_slice %168 {offsets = [0, 96], sizes = [1, 32], strides = [1, 1]} : vector<1x128xf32> to vector<1x32xf32>
    %209 = arith.negf %208 : vector<1x32xf32>
    %210 = math.exp %209 : vector<1x32xf32>
    %cst_33 = arith.constant 1.000000e+00 : f32
    %211 = vector.broadcast %cst_33 : f32 to vector<1x32xf32>
    %212 = arith.addf %211, %210 : vector<1x32xf32>
    %213 = arith.divf %211, %212 : vector<1x32xf32>
    %214 = arith.mulf %205, %143 : vector<1x32xf32>
    %215 = arith.mulf %199, %207 : vector<1x32xf32>
    %216 = arith.addf %214, %215 : vector<1x32xf32>
    %217 = math.tanh %216 : vector<1x32xf32>
    %218 = arith.mulf %213, %217 : vector<1x32xf32>
    %c2_i32 = arith.constant 2 : i32
    %219 = vector.broadcast %c2_i32 : i32 to vector<8x1xi32>
    %220 = arith.cmpi eq, %14, %219 : vector<8x1xi32>
    %221 = vector.shape_cast %220 : vector<8x1xi1> to vector<8x1xi1>
    %222 = vector.broadcast %221 : vector<8x1xi1> to vector<8x32xi1>
    %223 = vector.shape_cast %193 : vector<1x32xf32> to vector<1x32xf32>
    %224 = vector.broadcast %223 : vector<1x32xf32> to vector<8x32xf32>
    %225 = arith.select %222, %224, %152 : vector<8x32xi1>, vector<8x32xf32>
    %c5_i32 = arith.constant 5 : i32
    %226 = vector.broadcast %c5_i32 : i32 to vector<8x1xi32>
    %227 = arith.cmpi eq, %14, %226 : vector<8x1xi32>
    %228 = vector.shape_cast %227 : vector<8x1xi1> to vector<8x1xi1>
    %229 = vector.broadcast %228 : vector<8x1xi1> to vector<8x32xi1>
    %230 = vector.shape_cast %218 : vector<1x32xf32> to vector<1x32xf32>
    %231 = vector.broadcast %230 : vector<1x32xf32> to vector<8x32xf32>
    %232 = arith.select %229, %231, %159 : vector<8x32xi1>, vector<8x32xf32>
    %233 = tpu.concatenate %193, %218 in 1 : vector<1x32xf32>, vector<1x32xf32> -> vector<1x64xf32>
    %234 = arith.truncf %233 : vector<1x64xf32> to vector<1x64xbf16>
    %cst_34 = arith.constant dense<0.000000e+00> : vector<1x256xf32>
    %235 = tpu.matmul %234, %8, %cst_34 {dimension_numbers = #tpu.dot_dimension_numbers<[1], [0], [0], [1], [0, 0, 1, 1], [], []>} : vector<1x64xbf16>, vector<64x256xbf16>, vector<1x256xf32> -> vector<1x256xf32>
    %236 = vector.extract_strided_slice %7 {offsets = [3, 0], sizes = [1, 128], strides = [1, 1]} : vector<8x256xf32> to vector<1x128xf32>
    %237 = vector.extract_strided_slice %235 {offsets = [0, 0], sizes = [1, 128], strides = [1, 1]} : vector<1x256xf32> to vector<1x128xf32>
    %238 = arith.addf %236, %237 : vector<1x128xf32>
    %239 = vector.extract_strided_slice %7 {offsets = [4, 128], sizes = [1, 128], strides = [1, 1]} : vector<8x256xf32> to vector<1x128xf32>
    %240 = vector.extract_strided_slice %235 {offsets = [0, 128], sizes = [1, 128], strides = [1, 1]} : vector<1x256xf32> to vector<1x128xf32>
    %241 = arith.addf %239, %240 : vector<1x128xf32>
    %242 = vector.extract_strided_slice %238 {offsets = [0, 0], sizes = [1, 32], strides = [1, 1]} : vector<1x128xf32> to vector<1x32xf32>
    %243 = arith.negf %242 : vector<1x32xf32>
    %244 = math.exp %243 : vector<1x32xf32>
    %cst_35 = arith.constant 1.000000e+00 : f32
    %245 = vector.broadcast %cst_35 : f32 to vector<1x32xf32>
    %246 = arith.addf %245, %244 : vector<1x32xf32>
    %247 = arith.divf %245, %246 : vector<1x32xf32>
    %248 = vector.extract_strided_slice %238 {offsets = [0, 32], sizes = [1, 32], strides = [1, 1]} : vector<1x128xf32> to vector<1x32xf32>
    %249 = arith.negf %248 : vector<1x32xf32>
    %250 = math.exp %249 : vector<1x32xf32>
    %cst_36 = arith.constant 1.000000e+00 : f32
    %251 = vector.broadcast %cst_36 : f32 to vector<1x32xf32>
    %252 = arith.addf %251, %250 : vector<1x32xf32>
    %253 = arith.divf %251, %252 : vector<1x32xf32>
    %254 = vector.extract_strided_slice %238 {offsets = [0, 64], sizes = [1, 32], strides = [1, 1]} : vector<1x128xf32> to vector<1x32xf32>
    %255 = math.tanh %254 : vector<1x32xf32>
    %256 = vector.extract_strided_slice %238 {offsets = [0, 96], sizes = [1, 32], strides = [1, 1]} : vector<1x128xf32> to vector<1x32xf32>
    %257 = arith.negf %256 : vector<1x32xf32>
    %258 = math.exp %257 : vector<1x32xf32>
    %cst_37 = arith.constant 1.000000e+00 : f32
    %259 = vector.broadcast %cst_37 : f32 to vector<1x32xf32>
    %260 = arith.addf %259, %258 : vector<1x32xf32>
    %261 = arith.divf %259, %260 : vector<1x32xf32>
    %262 = arith.mulf %253, %191 : vector<1x32xf32>
    %263 = arith.mulf %247, %255 : vector<1x32xf32>
    %264 = arith.addf %262, %263 : vector<1x32xf32>
    %265 = math.tanh %264 : vector<1x32xf32>
    %266 = arith.mulf %261, %265 : vector<1x32xf32>
    %267 = vector.extract_strided_slice %241 {offsets = [0, 0], sizes = [1, 32], strides = [1, 1]} : vector<1x128xf32> to vector<1x32xf32>
    %268 = arith.negf %267 : vector<1x32xf32>
    %269 = math.exp %268 : vector<1x32xf32>
    %cst_38 = arith.constant 1.000000e+00 : f32
    %270 = vector.broadcast %cst_38 : f32 to vector<1x32xf32>
    %271 = arith.addf %270, %269 : vector<1x32xf32>
    %272 = arith.divf %270, %271 : vector<1x32xf32>
    %273 = vector.extract_strided_slice %241 {offsets = [0, 32], sizes = [1, 32], strides = [1, 1]} : vector<1x128xf32> to vector<1x32xf32>
    %274 = arith.negf %273 : vector<1x32xf32>
    %275 = math.exp %274 : vector<1x32xf32>
    %cst_39 = arith.constant 1.000000e+00 : f32
    %276 = vector.broadcast %cst_39 : f32 to vector<1x32xf32>
    %277 = arith.addf %276, %275 : vector<1x32xf32>
    %278 = arith.divf %276, %277 : vector<1x32xf32>
    %279 = vector.extract_strided_slice %241 {offsets = [0, 64], sizes = [1, 32], strides = [1, 1]} : vector<1x128xf32> to vector<1x32xf32>
    %280 = math.tanh %279 : vector<1x32xf32>
    %281 = vector.extract_strided_slice %241 {offsets = [0, 96], sizes = [1, 32], strides = [1, 1]} : vector<1x128xf32> to vector<1x32xf32>
    %282 = arith.negf %281 : vector<1x32xf32>
    %283 = math.exp %282 : vector<1x32xf32>
    %cst_40 = arith.constant 1.000000e+00 : f32
    %284 = vector.broadcast %cst_40 : f32 to vector<1x32xf32>
    %285 = arith.addf %284, %283 : vector<1x32xf32>
    %286 = arith.divf %284, %285 : vector<1x32xf32>
    %287 = arith.mulf %278, %216 : vector<1x32xf32>
    %288 = arith.mulf %272, %280 : vector<1x32xf32>
    %289 = arith.addf %287, %288 : vector<1x32xf32>
    %290 = math.tanh %289 : vector<1x32xf32>
    %291 = arith.mulf %286, %290 : vector<1x32xf32>
    %c3_i32 = arith.constant 3 : i32
    %292 = vector.broadcast %c3_i32 : i32 to vector<8x1xi32>
    %293 = arith.cmpi eq, %14, %292 : vector<8x1xi32>
    %294 = vector.shape_cast %293 : vector<8x1xi1> to vector<8x1xi1>
    %295 = vector.broadcast %294 : vector<8x1xi1> to vector<8x32xi1>
    %296 = vector.shape_cast %266 : vector<1x32xf32> to vector<1x32xf32>
    %297 = vector.broadcast %296 : vector<1x32xf32> to vector<8x32xf32>
    %298 = arith.select %295, %297, %225 : vector<8x32xi1>, vector<8x32xf32>
    %c4_i32 = arith.constant 4 : i32
    %299 = vector.broadcast %c4_i32 : i32 to vector<8x1xi32>
    %300 = arith.cmpi eq, %14, %299 : vector<8x1xi32>
    %301 = vector.shape_cast %300 : vector<8x1xi1> to vector<8x1xi1>
    %302 = vector.broadcast %301 : vector<8x1xi1> to vector<8x32xi1>
    %303 = vector.shape_cast %291 : vector<1x32xf32> to vector<1x32xf32>
    %304 = vector.broadcast %303 : vector<1x32xf32> to vector<8x32xf32>
    %305 = arith.select %302, %304, %232 : vector<8x32xi1>, vector<8x32xf32>
    %306 = tpu.concatenate %266, %291 in 1 : vector<1x32xf32>, vector<1x32xf32> -> vector<1x64xf32>
    %307 = arith.truncf %306 : vector<1x64xf32> to vector<1x64xbf16>
    %cst_41 = arith.constant dense<0.000000e+00> : vector<1x256xf32>
    %308 = tpu.matmul %307, %8, %cst_41 {dimension_numbers = #tpu.dot_dimension_numbers<[1], [0], [0], [1], [0, 0, 1, 1], [], []>} : vector<1x64xbf16>, vector<64x256xbf16>, vector<1x256xf32> -> vector<1x256xf32>
    %309 = vector.extract_strided_slice %7 {offsets = [4, 0], sizes = [1, 128], strides = [1, 1]} : vector<8x256xf32> to vector<1x128xf32>
    %310 = vector.extract_strided_slice %308 {offsets = [0, 0], sizes = [1, 128], strides = [1, 1]} : vector<1x256xf32> to vector<1x128xf32>
    %311 = arith.addf %309, %310 : vector<1x128xf32>
    %312 = vector.extract_strided_slice %7 {offsets = [3, 128], sizes = [1, 128], strides = [1, 1]} : vector<8x256xf32> to vector<1x128xf32>
    %313 = vector.extract_strided_slice %308 {offsets = [0, 128], sizes = [1, 128], strides = [1, 1]} : vector<1x256xf32> to vector<1x128xf32>
    %314 = arith.addf %312, %313 : vector<1x128xf32>
    %315 = vector.extract_strided_slice %311 {offsets = [0, 0], sizes = [1, 32], strides = [1, 1]} : vector<1x128xf32> to vector<1x32xf32>
    %316 = arith.negf %315 : vector<1x32xf32>
    %317 = math.exp %316 : vector<1x32xf32>
    %cst_42 = arith.constant 1.000000e+00 : f32
    %318 = vector.broadcast %cst_42 : f32 to vector<1x32xf32>
    %319 = arith.addf %318, %317 : vector<1x32xf32>
    %320 = arith.divf %318, %319 : vector<1x32xf32>
    %321 = vector.extract_strided_slice %311 {offsets = [0, 32], sizes = [1, 32], strides = [1, 1]} : vector<1x128xf32> to vector<1x32xf32>
    %322 = arith.negf %321 : vector<1x32xf32>
    %323 = math.exp %322 : vector<1x32xf32>
    %cst_43 = arith.constant 1.000000e+00 : f32
    %324 = vector.broadcast %cst_43 : f32 to vector<1x32xf32>
    %325 = arith.addf %324, %323 : vector<1x32xf32>
    %326 = arith.divf %324, %325 : vector<1x32xf32>
    %327 = vector.extract_strided_slice %311 {offsets = [0, 64], sizes = [1, 32], strides = [1, 1]} : vector<1x128xf32> to vector<1x32xf32>
    %328 = math.tanh %327 : vector<1x32xf32>
    %329 = vector.extract_strided_slice %311 {offsets = [0, 96], sizes = [1, 32], strides = [1, 1]} : vector<1x128xf32> to vector<1x32xf32>
    %330 = arith.negf %329 : vector<1x32xf32>
    %331 = math.exp %330 : vector<1x32xf32>
    %cst_44 = arith.constant 1.000000e+00 : f32
    %332 = vector.broadcast %cst_44 : f32 to vector<1x32xf32>
    %333 = arith.addf %332, %331 : vector<1x32xf32>
    %334 = arith.divf %332, %333 : vector<1x32xf32>
    %335 = arith.mulf %326, %264 : vector<1x32xf32>
    %336 = arith.mulf %320, %328 : vector<1x32xf32>
    %337 = arith.addf %335, %336 : vector<1x32xf32>
    %338 = math.tanh %337 : vector<1x32xf32>
    %339 = arith.mulf %334, %338 : vector<1x32xf32>
    %340 = vector.extract_strided_slice %314 {offsets = [0, 0], sizes = [1, 32], strides = [1, 1]} : vector<1x128xf32> to vector<1x32xf32>
    %341 = arith.negf %340 : vector<1x32xf32>
    %342 = math.exp %341 : vector<1x32xf32>
    %cst_45 = arith.constant 1.000000e+00 : f32
    %343 = vector.broadcast %cst_45 : f32 to vector<1x32xf32>
    %344 = arith.addf %343, %342 : vector<1x32xf32>
    %345 = arith.divf %343, %344 : vector<1x32xf32>
    %346 = vector.extract_strided_slice %314 {offsets = [0, 32], sizes = [1, 32], strides = [1, 1]} : vector<1x128xf32> to vector<1x32xf32>
    %347 = arith.negf %346 : vector<1x32xf32>
    %348 = math.exp %347 : vector<1x32xf32>
    %cst_46 = arith.constant 1.000000e+00 : f32
    %349 = vector.broadcast %cst_46 : f32 to vector<1x32xf32>
    %350 = arith.addf %349, %348 : vector<1x32xf32>
    %351 = arith.divf %349, %350 : vector<1x32xf32>
    %352 = vector.extract_strided_slice %314 {offsets = [0, 64], sizes = [1, 32], strides = [1, 1]} : vector<1x128xf32> to vector<1x32xf32>
    %353 = math.tanh %352 : vector<1x32xf32>
    %354 = vector.extract_strided_slice %314 {offsets = [0, 96], sizes = [1, 32], strides = [1, 1]} : vector<1x128xf32> to vector<1x32xf32>
    %355 = arith.negf %354 : vector<1x32xf32>
    %356 = math.exp %355 : vector<1x32xf32>
    %cst_47 = arith.constant 1.000000e+00 : f32
    %357 = vector.broadcast %cst_47 : f32 to vector<1x32xf32>
    %358 = arith.addf %357, %356 : vector<1x32xf32>
    %359 = arith.divf %357, %358 : vector<1x32xf32>
    %360 = arith.mulf %351, %289 : vector<1x32xf32>
    %361 = arith.mulf %345, %353 : vector<1x32xf32>
    %362 = arith.addf %360, %361 : vector<1x32xf32>
    %363 = math.tanh %362 : vector<1x32xf32>
    %364 = arith.mulf %359, %363 : vector<1x32xf32>
    %c4_i32_48 = arith.constant 4 : i32
    %365 = vector.broadcast %c4_i32_48 : i32 to vector<8x1xi32>
    %366 = arith.cmpi eq, %14, %365 : vector<8x1xi32>
    %367 = vector.shape_cast %366 : vector<8x1xi1> to vector<8x1xi1>
    %368 = vector.broadcast %367 : vector<8x1xi1> to vector<8x32xi1>
    %369 = vector.shape_cast %339 : vector<1x32xf32> to vector<1x32xf32>
    %370 = vector.broadcast %369 : vector<1x32xf32> to vector<8x32xf32>
    %371 = arith.select %368, %370, %298 : vector<8x32xi1>, vector<8x32xf32>
    %c3_i32_49 = arith.constant 3 : i32
    %372 = vector.broadcast %c3_i32_49 : i32 to vector<8x1xi32>
    %373 = arith.cmpi eq, %14, %372 : vector<8x1xi32>
    %374 = vector.shape_cast %373 : vector<8x1xi1> to vector<8x1xi1>
    %375 = vector.broadcast %374 : vector<8x1xi1> to vector<8x32xi1>
    %376 = vector.shape_cast %364 : vector<1x32xf32> to vector<1x32xf32>
    %377 = vector.broadcast %376 : vector<1x32xf32> to vector<8x32xf32>
    %378 = arith.select %375, %377, %305 : vector<8x32xi1>, vector<8x32xf32>
    %379 = tpu.concatenate %339, %364 in 1 : vector<1x32xf32>, vector<1x32xf32> -> vector<1x64xf32>
    %380 = arith.truncf %379 : vector<1x64xf32> to vector<1x64xbf16>
    %cst_50 = arith.constant dense<0.000000e+00> : vector<1x256xf32>
    %381 = tpu.matmul %380, %8, %cst_50 {dimension_numbers = #tpu.dot_dimension_numbers<[1], [0], [0], [1], [0, 0, 1, 1], [], []>} : vector<1x64xbf16>, vector<64x256xbf16>, vector<1x256xf32> -> vector<1x256xf32>
    %382 = vector.extract_strided_slice %7 {offsets = [5, 0], sizes = [1, 128], strides = [1, 1]} : vector<8x256xf32> to vector<1x128xf32>
    %383 = vector.extract_strided_slice %381 {offsets = [0, 0], sizes = [1, 128], strides = [1, 1]} : vector<1x256xf32> to vector<1x128xf32>
    %384 = arith.addf %382, %383 : vector<1x128xf32>
    %385 = vector.extract_strided_slice %7 {offsets = [2, 128], sizes = [1, 128], strides = [1, 1]} : vector<8x256xf32> to vector<1x128xf32>
    %386 = vector.extract_strided_slice %381 {offsets = [0, 128], sizes = [1, 128], strides = [1, 1]} : vector<1x256xf32> to vector<1x128xf32>
    %387 = arith.addf %385, %386 : vector<1x128xf32>
    %388 = vector.extract_strided_slice %384 {offsets = [0, 0], sizes = [1, 32], strides = [1, 1]} : vector<1x128xf32> to vector<1x32xf32>
    %389 = arith.negf %388 : vector<1x32xf32>
    %390 = math.exp %389 : vector<1x32xf32>
    %cst_51 = arith.constant 1.000000e+00 : f32
    %391 = vector.broadcast %cst_51 : f32 to vector<1x32xf32>
    %392 = arith.addf %391, %390 : vector<1x32xf32>
    %393 = arith.divf %391, %392 : vector<1x32xf32>
    %394 = vector.extract_strided_slice %384 {offsets = [0, 32], sizes = [1, 32], strides = [1, 1]} : vector<1x128xf32> to vector<1x32xf32>
    %395 = arith.negf %394 : vector<1x32xf32>
    %396 = math.exp %395 : vector<1x32xf32>
    %cst_52 = arith.constant 1.000000e+00 : f32
    %397 = vector.broadcast %cst_52 : f32 to vector<1x32xf32>
    %398 = arith.addf %397, %396 : vector<1x32xf32>
    %399 = arith.divf %397, %398 : vector<1x32xf32>
    %400 = vector.extract_strided_slice %384 {offsets = [0, 64], sizes = [1, 32], strides = [1, 1]} : vector<1x128xf32> to vector<1x32xf32>
    %401 = math.tanh %400 : vector<1x32xf32>
    %402 = vector.extract_strided_slice %384 {offsets = [0, 96], sizes = [1, 32], strides = [1, 1]} : vector<1x128xf32> to vector<1x32xf32>
    %403 = arith.negf %402 : vector<1x32xf32>
    %404 = math.exp %403 : vector<1x32xf32>
    %cst_53 = arith.constant 1.000000e+00 : f32
    %405 = vector.broadcast %cst_53 : f32 to vector<1x32xf32>
    %406 = arith.addf %405, %404 : vector<1x32xf32>
    %407 = arith.divf %405, %406 : vector<1x32xf32>
    %408 = arith.mulf %399, %337 : vector<1x32xf32>
    %409 = arith.mulf %393, %401 : vector<1x32xf32>
    %410 = arith.addf %408, %409 : vector<1x32xf32>
    %411 = math.tanh %410 : vector<1x32xf32>
    %412 = arith.mulf %407, %411 : vector<1x32xf32>
    %413 = vector.extract_strided_slice %387 {offsets = [0, 0], sizes = [1, 32], strides = [1, 1]} : vector<1x128xf32> to vector<1x32xf32>
    %414 = arith.negf %413 : vector<1x32xf32>
    %415 = math.exp %414 : vector<1x32xf32>
    %cst_54 = arith.constant 1.000000e+00 : f32
    %416 = vector.broadcast %cst_54 : f32 to vector<1x32xf32>
    %417 = arith.addf %416, %415 : vector<1x32xf32>
    %418 = arith.divf %416, %417 : vector<1x32xf32>
    %419 = vector.extract_strided_slice %387 {offsets = [0, 32], sizes = [1, 32], strides = [1, 1]} : vector<1x128xf32> to vector<1x32xf32>
    %420 = arith.negf %419 : vector<1x32xf32>
    %421 = math.exp %420 : vector<1x32xf32>
    %cst_55 = arith.constant 1.000000e+00 : f32
    %422 = vector.broadcast %cst_55 : f32 to vector<1x32xf32>
    %423 = arith.addf %422, %421 : vector<1x32xf32>
    %424 = arith.divf %422, %423 : vector<1x32xf32>
    %425 = vector.extract_strided_slice %387 {offsets = [0, 64], sizes = [1, 32], strides = [1, 1]} : vector<1x128xf32> to vector<1x32xf32>
    %426 = math.tanh %425 : vector<1x32xf32>
    %427 = vector.extract_strided_slice %387 {offsets = [0, 96], sizes = [1, 32], strides = [1, 1]} : vector<1x128xf32> to vector<1x32xf32>
    %428 = arith.negf %427 : vector<1x32xf32>
    %429 = math.exp %428 : vector<1x32xf32>
    %cst_56 = arith.constant 1.000000e+00 : f32
    %430 = vector.broadcast %cst_56 : f32 to vector<1x32xf32>
    %431 = arith.addf %430, %429 : vector<1x32xf32>
    %432 = arith.divf %430, %431 : vector<1x32xf32>
    %433 = arith.mulf %424, %362 : vector<1x32xf32>
    %434 = arith.mulf %418, %426 : vector<1x32xf32>
    %435 = arith.addf %433, %434 : vector<1x32xf32>
    %436 = math.tanh %435 : vector<1x32xf32>
    %437 = arith.mulf %432, %436 : vector<1x32xf32>
    %c5_i32_57 = arith.constant 5 : i32
    %438 = vector.broadcast %c5_i32_57 : i32 to vector<8x1xi32>
    %439 = arith.cmpi eq, %14, %438 : vector<8x1xi32>
    %440 = vector.shape_cast %439 : vector<8x1xi1> to vector<8x1xi1>
    %441 = vector.broadcast %440 : vector<8x1xi1> to vector<8x32xi1>
    %442 = vector.shape_cast %412 : vector<1x32xf32> to vector<1x32xf32>
    %443 = vector.broadcast %442 : vector<1x32xf32> to vector<8x32xf32>
    %444 = arith.select %441, %443, %371 : vector<8x32xi1>, vector<8x32xf32>
    %c2_i32_58 = arith.constant 2 : i32
    %445 = vector.broadcast %c2_i32_58 : i32 to vector<8x1xi32>
    %446 = arith.cmpi eq, %14, %445 : vector<8x1xi32>
    %447 = vector.shape_cast %446 : vector<8x1xi1> to vector<8x1xi1>
    %448 = vector.broadcast %447 : vector<8x1xi1> to vector<8x32xi1>
    %449 = vector.shape_cast %437 : vector<1x32xf32> to vector<1x32xf32>
    %450 = vector.broadcast %449 : vector<1x32xf32> to vector<8x32xf32>
    %451 = arith.select %448, %450, %378 : vector<8x32xi1>, vector<8x32xf32>
    %452 = tpu.concatenate %412, %437 in 1 : vector<1x32xf32>, vector<1x32xf32> -> vector<1x64xf32>
    %453 = arith.truncf %452 : vector<1x64xf32> to vector<1x64xbf16>
    %cst_59 = arith.constant dense<0.000000e+00> : vector<1x256xf32>
    %454 = tpu.matmul %453, %8, %cst_59 {dimension_numbers = #tpu.dot_dimension_numbers<[1], [0], [0], [1], [0, 0, 1, 1], [], []>} : vector<1x64xbf16>, vector<64x256xbf16>, vector<1x256xf32> -> vector<1x256xf32>
    %455 = vector.extract_strided_slice %7 {offsets = [6, 0], sizes = [1, 128], strides = [1, 1]} : vector<8x256xf32> to vector<1x128xf32>
    %456 = vector.extract_strided_slice %454 {offsets = [0, 0], sizes = [1, 128], strides = [1, 1]} : vector<1x256xf32> to vector<1x128xf32>
    %457 = arith.addf %455, %456 : vector<1x128xf32>
    %458 = vector.extract_strided_slice %7 {offsets = [1, 128], sizes = [1, 128], strides = [1, 1]} : vector<8x256xf32> to vector<1x128xf32>
    %459 = vector.extract_strided_slice %454 {offsets = [0, 128], sizes = [1, 128], strides = [1, 1]} : vector<1x256xf32> to vector<1x128xf32>
    %460 = arith.addf %458, %459 : vector<1x128xf32>
    %461 = vector.extract_strided_slice %457 {offsets = [0, 0], sizes = [1, 32], strides = [1, 1]} : vector<1x128xf32> to vector<1x32xf32>
    %462 = arith.negf %461 : vector<1x32xf32>
    %463 = math.exp %462 : vector<1x32xf32>
    %cst_60 = arith.constant 1.000000e+00 : f32
    %464 = vector.broadcast %cst_60 : f32 to vector<1x32xf32>
    %465 = arith.addf %464, %463 : vector<1x32xf32>
    %466 = arith.divf %464, %465 : vector<1x32xf32>
    %467 = vector.extract_strided_slice %457 {offsets = [0, 32], sizes = [1, 32], strides = [1, 1]} : vector<1x128xf32> to vector<1x32xf32>
    %468 = arith.negf %467 : vector<1x32xf32>
    %469 = math.exp %468 : vector<1x32xf32>
    %cst_61 = arith.constant 1.000000e+00 : f32
    %470 = vector.broadcast %cst_61 : f32 to vector<1x32xf32>
    %471 = arith.addf %470, %469 : vector<1x32xf32>
    %472 = arith.divf %470, %471 : vector<1x32xf32>
    %473 = vector.extract_strided_slice %457 {offsets = [0, 64], sizes = [1, 32], strides = [1, 1]} : vector<1x128xf32> to vector<1x32xf32>
    %474 = math.tanh %473 : vector<1x32xf32>
    %475 = vector.extract_strided_slice %457 {offsets = [0, 96], sizes = [1, 32], strides = [1, 1]} : vector<1x128xf32> to vector<1x32xf32>
    %476 = arith.negf %475 : vector<1x32xf32>
    %477 = math.exp %476 : vector<1x32xf32>
    %cst_62 = arith.constant 1.000000e+00 : f32
    %478 = vector.broadcast %cst_62 : f32 to vector<1x32xf32>
    %479 = arith.addf %478, %477 : vector<1x32xf32>
    %480 = arith.divf %478, %479 : vector<1x32xf32>
    %481 = arith.mulf %472, %410 : vector<1x32xf32>
    %482 = arith.mulf %466, %474 : vector<1x32xf32>
    %483 = arith.addf %481, %482 : vector<1x32xf32>
    %484 = math.tanh %483 : vector<1x32xf32>
    %485 = arith.mulf %480, %484 : vector<1x32xf32>
    %486 = vector.extract_strided_slice %460 {offsets = [0, 0], sizes = [1, 32], strides = [1, 1]} : vector<1x128xf32> to vector<1x32xf32>
    %487 = arith.negf %486 : vector<1x32xf32>
    %488 = math.exp %487 : vector<1x32xf32>
    %cst_63 = arith.constant 1.000000e+00 : f32
    %489 = vector.broadcast %cst_63 : f32 to vector<1x32xf32>
    %490 = arith.addf %489, %488 : vector<1x32xf32>
    %491 = arith.divf %489, %490 : vector<1x32xf32>
    %492 = vector.extract_strided_slice %460 {offsets = [0, 32], sizes = [1, 32], strides = [1, 1]} : vector<1x128xf32> to vector<1x32xf32>
    %493 = arith.negf %492 : vector<1x32xf32>
    %494 = math.exp %493 : vector<1x32xf32>
    %cst_64 = arith.constant 1.000000e+00 : f32
    %495 = vector.broadcast %cst_64 : f32 to vector<1x32xf32>
    %496 = arith.addf %495, %494 : vector<1x32xf32>
    %497 = arith.divf %495, %496 : vector<1x32xf32>
    %498 = vector.extract_strided_slice %460 {offsets = [0, 64], sizes = [1, 32], strides = [1, 1]} : vector<1x128xf32> to vector<1x32xf32>
    %499 = math.tanh %498 : vector<1x32xf32>
    %500 = vector.extract_strided_slice %460 {offsets = [0, 96], sizes = [1, 32], strides = [1, 1]} : vector<1x128xf32> to vector<1x32xf32>
    %501 = arith.negf %500 : vector<1x32xf32>
    %502 = math.exp %501 : vector<1x32xf32>
    %cst_65 = arith.constant 1.000000e+00 : f32
    %503 = vector.broadcast %cst_65 : f32 to vector<1x32xf32>
    %504 = arith.addf %503, %502 : vector<1x32xf32>
    %505 = arith.divf %503, %504 : vector<1x32xf32>
    %506 = arith.mulf %497, %435 : vector<1x32xf32>
    %507 = arith.mulf %491, %499 : vector<1x32xf32>
    %508 = arith.addf %506, %507 : vector<1x32xf32>
    %509 = math.tanh %508 : vector<1x32xf32>
    %510 = arith.mulf %505, %509 : vector<1x32xf32>
    %c6_i32_66 = arith.constant 6 : i32
    %511 = vector.broadcast %c6_i32_66 : i32 to vector<8x1xi32>
    %512 = arith.cmpi eq, %14, %511 : vector<8x1xi32>
    %513 = vector.shape_cast %512 : vector<8x1xi1> to vector<8x1xi1>
    %514 = vector.broadcast %513 : vector<8x1xi1> to vector<8x32xi1>
    %515 = vector.shape_cast %485 : vector<1x32xf32> to vector<1x32xf32>
    %516 = vector.broadcast %515 : vector<1x32xf32> to vector<8x32xf32>
    %517 = arith.select %514, %516, %444 : vector<8x32xi1>, vector<8x32xf32>
    %c1_i32_67 = arith.constant 1 : i32
    %518 = vector.broadcast %c1_i32_67 : i32 to vector<8x1xi32>
    %519 = arith.cmpi eq, %14, %518 : vector<8x1xi32>
    %520 = vector.shape_cast %519 : vector<8x1xi1> to vector<8x1xi1>
    %521 = vector.broadcast %520 : vector<8x1xi1> to vector<8x32xi1>
    %522 = vector.shape_cast %510 : vector<1x32xf32> to vector<1x32xf32>
    %523 = vector.broadcast %522 : vector<1x32xf32> to vector<8x32xf32>
    %524 = arith.select %521, %523, %451 : vector<8x32xi1>, vector<8x32xf32>
    %525 = tpu.concatenate %485, %510 in 1 : vector<1x32xf32>, vector<1x32xf32> -> vector<1x64xf32>
    %526 = arith.truncf %525 : vector<1x64xf32> to vector<1x64xbf16>
    %cst_68 = arith.constant dense<0.000000e+00> : vector<1x256xf32>
    %527 = tpu.matmul %526, %8, %cst_68 {dimension_numbers = #tpu.dot_dimension_numbers<[1], [0], [0], [1], [0, 0, 1, 1], [], []>} : vector<1x64xbf16>, vector<64x256xbf16>, vector<1x256xf32> -> vector<1x256xf32>
    %528 = vector.extract_strided_slice %7 {offsets = [7, 0], sizes = [1, 128], strides = [1, 1]} : vector<8x256xf32> to vector<1x128xf32>
    %529 = vector.extract_strided_slice %527 {offsets = [0, 0], sizes = [1, 128], strides = [1, 1]} : vector<1x256xf32> to vector<1x128xf32>
    %530 = arith.addf %528, %529 : vector<1x128xf32>
    %531 = vector.extract_strided_slice %7 {offsets = [0, 128], sizes = [1, 128], strides = [1, 1]} : vector<8x256xf32> to vector<1x128xf32>
    %532 = vector.extract_strided_slice %527 {offsets = [0, 128], sizes = [1, 128], strides = [1, 1]} : vector<1x256xf32> to vector<1x128xf32>
    %533 = arith.addf %531, %532 : vector<1x128xf32>
    %534 = vector.extract_strided_slice %530 {offsets = [0, 0], sizes = [1, 32], strides = [1, 1]} : vector<1x128xf32> to vector<1x32xf32>
    %535 = arith.negf %534 : vector<1x32xf32>
    %536 = math.exp %535 : vector<1x32xf32>
    %cst_69 = arith.constant 1.000000e+00 : f32
    %537 = vector.broadcast %cst_69 : f32 to vector<1x32xf32>
    %538 = arith.addf %537, %536 : vector<1x32xf32>
    %539 = arith.divf %537, %538 : vector<1x32xf32>
    %540 = vector.extract_strided_slice %530 {offsets = [0, 32], sizes = [1, 32], strides = [1, 1]} : vector<1x128xf32> to vector<1x32xf32>
    %541 = arith.negf %540 : vector<1x32xf32>
    %542 = math.exp %541 : vector<1x32xf32>
    %cst_70 = arith.constant 1.000000e+00 : f32
    %543 = vector.broadcast %cst_70 : f32 to vector<1x32xf32>
    %544 = arith.addf %543, %542 : vector<1x32xf32>
    %545 = arith.divf %543, %544 : vector<1x32xf32>
    %546 = vector.extract_strided_slice %530 {offsets = [0, 64], sizes = [1, 32], strides = [1, 1]} : vector<1x128xf32> to vector<1x32xf32>
    %547 = math.tanh %546 : vector<1x32xf32>
    %548 = vector.extract_strided_slice %530 {offsets = [0, 96], sizes = [1, 32], strides = [1, 1]} : vector<1x128xf32> to vector<1x32xf32>
    %549 = arith.negf %548 : vector<1x32xf32>
    %550 = math.exp %549 : vector<1x32xf32>
    %cst_71 = arith.constant 1.000000e+00 : f32
    %551 = vector.broadcast %cst_71 : f32 to vector<1x32xf32>
    %552 = arith.addf %551, %550 : vector<1x32xf32>
    %553 = arith.divf %551, %552 : vector<1x32xf32>
    %554 = arith.mulf %545, %483 : vector<1x32xf32>
    %555 = arith.mulf %539, %547 : vector<1x32xf32>
    %556 = arith.addf %554, %555 : vector<1x32xf32>
    %557 = math.tanh %556 : vector<1x32xf32>
    %558 = arith.mulf %553, %557 : vector<1x32xf32>
    %559 = vector.extract_strided_slice %533 {offsets = [0, 0], sizes = [1, 32], strides = [1, 1]} : vector<1x128xf32> to vector<1x32xf32>
    %560 = arith.negf %559 : vector<1x32xf32>
    %561 = math.exp %560 : vector<1x32xf32>
    %cst_72 = arith.constant 1.000000e+00 : f32
    %562 = vector.broadcast %cst_72 : f32 to vector<1x32xf32>
    %563 = arith.addf %562, %561 : vector<1x32xf32>
    %564 = arith.divf %562, %563 : vector<1x32xf32>
    %565 = vector.extract_strided_slice %533 {offsets = [0, 32], sizes = [1, 32], strides = [1, 1]} : vector<1x128xf32> to vector<1x32xf32>
    %566 = arith.negf %565 : vector<1x32xf32>
    %567 = math.exp %566 : vector<1x32xf32>
    %cst_73 = arith.constant 1.000000e+00 : f32
    %568 = vector.broadcast %cst_73 : f32 to vector<1x32xf32>
    %569 = arith.addf %568, %567 : vector<1x32xf32>
    %570 = arith.divf %568, %569 : vector<1x32xf32>
    %571 = vector.extract_strided_slice %533 {offsets = [0, 64], sizes = [1, 32], strides = [1, 1]} : vector<1x128xf32> to vector<1x32xf32>
    %572 = math.tanh %571 : vector<1x32xf32>
    %573 = vector.extract_strided_slice %533 {offsets = [0, 96], sizes = [1, 32], strides = [1, 1]} : vector<1x128xf32> to vector<1x32xf32>
    %574 = arith.negf %573 : vector<1x32xf32>
    %575 = math.exp %574 : vector<1x32xf32>
    %cst_74 = arith.constant 1.000000e+00 : f32
    %576 = vector.broadcast %cst_74 : f32 to vector<1x32xf32>
    %577 = arith.addf %576, %575 : vector<1x32xf32>
    %578 = arith.divf %576, %577 : vector<1x32xf32>
    %579 = arith.mulf %570, %508 : vector<1x32xf32>
    %580 = arith.mulf %564, %572 : vector<1x32xf32>
    %581 = arith.addf %579, %580 : vector<1x32xf32>
    %582 = math.tanh %581 : vector<1x32xf32>
    %583 = arith.mulf %578, %582 : vector<1x32xf32>
    %c7_i32_75 = arith.constant 7 : i32
    %584 = vector.broadcast %c7_i32_75 : i32 to vector<8x1xi32>
    %585 = arith.cmpi eq, %14, %584 : vector<8x1xi32>
    %586 = vector.shape_cast %585 : vector<8x1xi1> to vector<8x1xi1>
    %587 = vector.broadcast %586 : vector<8x1xi1> to vector<8x32xi1>
    %588 = vector.shape_cast %558 : vector<1x32xf32> to vector<1x32xf32>
    %589 = vector.broadcast %588 : vector<1x32xf32> to vector<8x32xf32>
    %590 = arith.select %587, %589, %517 : vector<8x32xi1>, vector<8x32xf32>
    %c0_i32_76 = arith.constant 0 : i32
    %591 = vector.broadcast %c0_i32_76 : i32 to vector<8x1xi32>
    %592 = arith.cmpi eq, %14, %591 : vector<8x1xi32>
    %593 = vector.shape_cast %592 : vector<8x1xi1> to vector<8x1xi1>
    %594 = vector.broadcast %593 : vector<8x1xi1> to vector<8x32xi1>
    %595 = vector.shape_cast %583 : vector<1x32xf32> to vector<1x32xf32>
    %596 = vector.broadcast %595 : vector<1x32xf32> to vector<8x32xf32>
    %597 = arith.select %594, %596, %524 : vector<8x32xi1>, vector<8x32xf32>
    %598 = tpu.concatenate %590, %597 in 1 : vector<8x32xf32>, vector<8x32xf32> -> vector<8x64xf32>
    %c0_77 = arith.constant 0 : index
    %c0_78 = arith.constant 0 : index
    %c0_79 = arith.constant 0 : index
    %599 = vector.load %arg5[%c0_77, %c0_78, %c0_79] : memref<1x8x64xf32, #tpu.memory_space<vmem>>, vector<1x8x64xf32>
    %600 = vector.shape_cast %599 : vector<1x8x64xf32> to vector<8x64xf32>
    %601 = vector.shape_cast %598 : vector<8x64xf32> to vector<1x8x64xf32>
    tpu.vector_store %arg5[%c0_77, %c0_78, %c0_79], %601 {strides = array<i32>} : memref<1x8x64xf32, #tpu.memory_space<vmem>>, vector<1x8x64xf32>,
    return
  }
  func.func @transform_0(%arg0: i32) -> (i32, i32, i32) {
    %c0_i32 = arith.constant 0 : i32
    %c0_i32_0 = arith.constant 0 : i32
    %c0_i32_1 = arith.constant 0 : i32
    return %arg0, %c0_i32, %c0_i32_0 : i32, i32, i32
  }
  func.func @transform_1(%arg0: i32) -> (i32, i32) {
    %c0_i32 = arith.constant 0 : i32
    %c0_i32_0 = arith.constant 0 : i32
    %c0_i32_1 = arith.constant 0 : i32
    return %c0_i32, %c0_i32_0 : i32, i32
  }
  func.func @transform_2(%arg0: i32) -> (i32, i32) {
    %c0_i32 = arith.constant 0 : i32
    %c0_i32_0 = arith.constant 0 : i32
    %c0_i32_1 = arith.constant 0 : i32
    return %c0_i32, %c0_i32_0 : i32, i32
  }
  func.func @transform_3(%arg0: i32) -> (i32, i32) {
    %c0_i32 = arith.constant 0 : i32
    %c0_i32_0 = arith.constant 0 : i32
    %c0_i32_1 = arith.constant 0 : i32
    return %c0_i32, %c0_i32_0 : i32, i32
  }
  func.func @transform_4(%arg0: i32) -> (i32, i32, i32) {
    %c0_i32 = arith.constant 0 : i32
    %c0_i32_0 = arith.constant 0 : i32
    %c0_i32_1 = arith.constant 0 : i32
    return %arg0, %c0_i32, %c0_i32_0 : i32, i32, i32
  }
}

module attributes {stable_mosaic.version = 11 : i64} {
  func.func @tail_kernel(%arg0: i32, %arg1: memref<1x8x64xf32, #tpu.memory_space<vmem>>, %arg2: memref<64x64xbf16, #tpu.memory_space<vmem>>, %arg3: memref<1x64xf32, #tpu.memory_space<vmem>>, %arg4: memref<64x64xbf16, #tpu.memory_space<vmem>>, %arg5: memref<1x64xf32, #tpu.memory_space<vmem>>, %arg6: memref<64x64xbf16, #tpu.memory_space<vmem>>, %arg7: memref<1x64xf32, #tpu.memory_space<vmem>>, %arg8: memref<64x64xbf16, #tpu.memory_space<vmem>>, %arg9: memref<1x64xf32, #tpu.memory_space<vmem>>, %arg10: memref<64x64xbf16, #tpu.memory_space<vmem>>, %arg11: memref<1x64xf32, #tpu.memory_space<vmem>>, %arg12: memref<64x32xbf16, #tpu.memory_space<vmem>>, %arg13: memref<1x32xf32, #tpu.memory_space<vmem>>, %arg14: memref<32x16xbf16, #tpu.memory_space<vmem>>, %arg15: memref<1x16xf32, #tpu.memory_space<vmem>>, %arg16: memref<16x10xbf16, #tpu.memory_space<vmem>>, %arg17: memref<1x10xf32, #tpu.memory_space<vmem>>, %arg18: memref<1x1x10xf32, #tpu.memory_space<vmem>>) attributes {dimension_semantics = [#tpu.dimension_semantics<parallel>], iteration_bounds = array<i64: 2>, scalar_prefetch = 0 : i64, scratch_operands = 0 : i64, tpu.core_type = #tpu.core_type<tc>, window_params = [{transform_indices = @transform_0, window_bounds = array<i64: 1, 8, 64>}, {pipeline_mode = #tpu.pipeline_mode<synchronous>, transform_indices = @transform_1, window_bounds = array<i64: 64, 64>}, {pipeline_mode = #tpu.pipeline_mode<synchronous>, transform_indices = @transform_2, window_bounds = array<i64: 1, 64>}, {pipeline_mode = #tpu.pipeline_mode<synchronous>, transform_indices = @transform_3, window_bounds = array<i64: 64, 64>}, {pipeline_mode = #tpu.pipeline_mode<synchronous>, transform_indices = @transform_4, window_bounds = array<i64: 1, 64>}, {pipeline_mode = #tpu.pipeline_mode<synchronous>, transform_indices = @transform_5, window_bounds = array<i64: 64, 64>}, {pipeline_mode = #tpu.pipeline_mode<synchronous>, transform_indices = @transform_6, window_bounds = array<i64: 1, 64>}, {pipeline_mode = #tpu.pipeline_mode<synchronous>, transform_indices = @transform_7, window_bounds = array<i64: 64, 64>}, {pipeline_mode = #tpu.pipeline_mode<synchronous>, transform_indices = @transform_8, window_bounds = array<i64: 1, 64>}, {pipeline_mode = #tpu.pipeline_mode<synchronous>, transform_indices = @transform_9, window_bounds = array<i64: 64, 64>}, {pipeline_mode = #tpu.pipeline_mode<synchronous>, transform_indices = @transform_10, window_bounds = array<i64: 1, 64>}, {pipeline_mode = #tpu.pipeline_mode<synchronous>, transform_indices = @transform_11, window_bounds = array<i64: 64, 32>}, {pipeline_mode = #tpu.pipeline_mode<synchronous>, transform_indices = @transform_12, window_bounds = array<i64: 1, 32>}, {pipeline_mode = #tpu.pipeline_mode<synchronous>, transform_indices = @transform_13, window_bounds = array<i64: 32, 16>}, {pipeline_mode = #tpu.pipeline_mode<synchronous>, transform_indices = @transform_14, window_bounds = array<i64: 1, 16>}, {pipeline_mode = #tpu.pipeline_mode<synchronous>, transform_indices = @transform_15, window_bounds = array<i64: 16, 10>}, {pipeline_mode = #tpu.pipeline_mode<synchronous>, transform_indices = @transform_16, window_bounds = array<i64: 1, 10>}, {transform_indices = @transform_17, window_bounds = array<i64: 1, 1, 10>}]} {
    %c0 = arith.constant 0 : index
    %c0_0 = arith.constant 0 : index
    %c0_1 = arith.constant 0 : index
    %0 = vector.load %arg1[%c0, %c0_0, %c0_1] : memref<1x8x64xf32, #tpu.memory_space<vmem>>, vector<1x8x64xf32>
    %1 = vector.shape_cast %0 : vector<1x8x64xf32> to vector<8x64xf32>
    %2 = arith.truncf %1 : vector<8x64xf32> to vector<8x64xbf16>
    %c0_2 = arith.constant 0 : index
    %c0_3 = arith.constant 0 : index
    %3 = vector.load %arg2[%c0_2, %c0_3] : memref<64x64xbf16, #tpu.memory_space<vmem>>, vector<64x64xbf16>
    %cst = arith.constant dense<0.000000e+00> : vector<8x64xf32>
    %4 = tpu.matmul %2, %3, %cst {dimension_numbers = #tpu.dot_dimension_numbers<[1], [0], [0], [1], [0, 0, 1, 1], [], []>} : vector<8x64xbf16>, vector<64x64xbf16>, vector<8x64xf32> -> vector<8x64xf32>
    %c0_4 = arith.constant 0 : index
    %c0_5 = arith.constant 0 : index
    %5 = vector.load %arg3[%c0_4, %c0_5] : memref<1x64xf32, #tpu.memory_space<vmem>>, vector<1x64xf32>
    %6 = vector.broadcast %5 : vector<1x64xf32> to vector<8x64xf32>
    %7 = arith.addf %4, %6 : vector<8x64xf32>
    %8 = arith.addf %1, %7 : vector<8x64xf32>
    %9 = arith.truncf %8 : vector<8x64xf32> to vector<8x64xbf16>
    %c0_6 = arith.constant 0 : index
    %c0_7 = arith.constant 0 : index
    %10 = vector.load %arg4[%c0_6, %c0_7] : memref<64x64xbf16, #tpu.memory_space<vmem>>, vector<64x64xbf16>
    %cst_8 = arith.constant dense<0.000000e+00> : vector<8x64xf32>
    %11 = tpu.matmul %9, %10, %cst_8 {dimension_numbers = #tpu.dot_dimension_numbers<[1], [0], [0], [1], [0, 0, 1, 1], [], []>} : vector<8x64xbf16>, vector<64x64xbf16>, vector<8x64xf32> -> vector<8x64xf32>
    %c0_9 = arith.constant 0 : index
    %c0_10 = arith.constant 0 : index
    %12 = vector.load %arg5[%c0_9, %c0_10] : memref<1x64xf32, #tpu.memory_space<vmem>>, vector<1x64xf32>
    %13 = vector.broadcast %12 : vector<1x64xf32> to vector<8x64xf32>
    %14 = arith.addf %11, %13 : vector<8x64xf32>
    %15 = arith.truncf %8 : vector<8x64xf32> to vector<8x64xbf16>
    %c0_11 = arith.constant 0 : index
    %c0_12 = arith.constant 0 : index
    %16 = vector.load %arg6[%c0_11, %c0_12] : memref<64x64xbf16, #tpu.memory_space<vmem>>, vector<64x64xbf16>
    %cst_13 = arith.constant dense<0.000000e+00> : vector<8x64xf32>
    %17 = tpu.matmul %15, %16, %cst_13 {dimension_numbers = #tpu.dot_dimension_numbers<[1], [0], [0], [1], [0, 0, 1, 1], [], []>} : vector<8x64xbf16>, vector<64x64xbf16>, vector<8x64xf32> -> vector<8x64xf32>
    %c0_14 = arith.constant 0 : index
    %c0_15 = arith.constant 0 : index
    %18 = vector.load %arg7[%c0_14, %c0_15] : memref<1x64xf32, #tpu.memory_space<vmem>>, vector<1x64xf32>
    %19 = vector.broadcast %18 : vector<1x64xf32> to vector<8x64xf32>
    %20 = arith.addf %17, %19 : vector<8x64xf32>
    %21 = arith.truncf %8 : vector<8x64xf32> to vector<8x64xbf16>
    %c0_16 = arith.constant 0 : index
    %c0_17 = arith.constant 0 : index
    %22 = vector.load %arg8[%c0_16, %c0_17] : memref<64x64xbf16, #tpu.memory_space<vmem>>, vector<64x64xbf16>
    %cst_18 = arith.constant dense<0.000000e+00> : vector<8x64xf32>
    %23 = tpu.matmul %21, %22, %cst_18 {dimension_numbers = #tpu.dot_dimension_numbers<[1], [0], [0], [1], [0, 0, 1, 1], [], []>} : vector<8x64xbf16>, vector<64x64xbf16>, vector<8x64xf32> -> vector<8x64xf32>
    %c0_19 = arith.constant 0 : index
    %c0_20 = arith.constant 0 : index
    %24 = vector.load %arg9[%c0_19, %c0_20] : memref<1x64xf32, #tpu.memory_space<vmem>>, vector<1x64xf32>
    %25 = vector.broadcast %24 : vector<1x64xf32> to vector<8x64xf32>
    %26 = arith.addf %23, %25 : vector<8x64xf32>
    %27 = vector.extract_strided_slice %14 {offsets = [0, 0], sizes = [8, 16], strides = [1, 1]} : vector<8x64xf32> to vector<8x16xf32>
    %28 = arith.truncf %27 : vector<8x16xf32> to vector<8x16xbf16>
    %29 = vector.extract_strided_slice %20 {offsets = [0, 0], sizes = [8, 16], strides = [1, 1]} : vector<8x64xf32> to vector<8x16xf32>
    %30 = arith.truncf %29 : vector<8x16xf32> to vector<8x16xbf16>
    "tpu.trace_start"() <{level = 10 : i32, message = "qd,kd->qk"}> : () -> ()
    %cst_21 = arith.constant dense<0.000000e+00> : vector<8x8xf32>
    %31 = tpu.matmul %28, %30, %cst_21 {dimension_numbers = #tpu.dot_dimension_numbers<[1], [1], [0], [0], [0, 0, 1, 0], [], []>} : vector<8x16xbf16>, vector<8x16xbf16>, vector<8x8xf32> -> vector<8x8xf32>
    "tpu.trace_stop"() : () -> ()
    %cst_22 = arith.constant 2.500000e-01 : f32
    %32 = vector.broadcast %cst_22 : f32 to vector<8x8xf32>
    %33 = arith.mulf %31, %32 : vector<8x8xf32>
    %cst_23 = arith.constant dense<0xFF800000> : vector<8xf32>
    %34 = vector.multi_reduction <maximumf>, %33, %cst_23 [1] : vector<8x8xf32> to vector<8xf32>
    %cst_24 = arith.constant 0xFF800000 : f32
    %35 = vector.broadcast %cst_24 : f32 to vector<8xf32>
    %36 = arith.maximumf %35, %34 : vector<8xf32>
    %37 = vector.shape_cast %36 : vector<8xf32> to vector<8x1xf32>
    %38 = vector.broadcast %37 : vector<8x1xf32> to vector<8x8xf32>
    %39 = arith.subf %33, %38 : vector<8x8xf32>
    %40 = math.exp %39 : vector<8x8xf32>
    %cst_25 = arith.constant dense<0.000000e+00> : vector<8xf32>
    %41 = vector.multi_reduction <add>, %40, %cst_25 [1] : vector<8x8xf32> to vector<8xf32>
    %42 = vector.shape_cast %41 : vector<8xf32> to vector<8x1xf32>
    %43 = vector.broadcast %42 : vector<8x1xf32> to vector<8x8xf32>
    %44 = arith.divf %40, %43 : vector<8x8xf32>
    %45 = arith.truncf %44 : vector<8x8xf32> to vector<8x8xbf16>
    %46 = vector.extract_strided_slice %26 {offsets = [0, 0], sizes = [8, 16], strides = [1, 1]} : vector<8x64xf32> to vector<8x16xf32>
    %47 = arith.truncf %46 : vector<8x16xf32> to vector<8x16xbf16>
    %cst_26 = arith.constant dense<0.000000e+00> : vector<8x16xf32>
    %48 = tpu.matmul %45, %47, %cst_26 {dimension_numbers = #tpu.dot_dimension_numbers<[1], [0], [0], [1], [0, 0, 1, 1], [], []>} : vector<8x8xbf16>, vector<8x16xbf16>, vector<8x16xf32> -> vector<8x16xf32>
    %49 = vector.extract_strided_slice %14 {offsets = [0, 16], sizes = [8, 16], strides = [1, 1]} : vector<8x64xf32> to vector<8x16xf32>
    %50 = arith.truncf %49 : vector<8x16xf32> to vector<8x16xbf16>
    %51 = vector.extract_strided_slice %20 {offsets = [0, 16], sizes = [8, 16], strides = [1, 1]} : vector<8x64xf32> to vector<8x16xf32>
    %52 = arith.truncf %51 : vector<8x16xf32> to vector<8x16xbf16>
    "tpu.trace_start"() <{level = 10 : i32, message = "qd,kd->qk"}> : () -> ()
    %cst_27 = arith.constant dense<0.000000e+00> : vector<8x8xf32>
    %53 = tpu.matmul %50, %52, %cst_27 {dimension_numbers = #tpu.dot_dimension_numbers<[1], [1], [0], [0], [0, 0, 1, 0], [], []>} : vector<8x16xbf16>, vector<8x16xbf16>, vector<8x8xf32> -> vector<8x8xf32>
    "tpu.trace_stop"() : () -> ()
    %cst_28 = arith.constant 2.500000e-01 : f32
    %54 = vector.broadcast %cst_28 : f32 to vector<8x8xf32>
    %55 = arith.mulf %53, %54 : vector<8x8xf32>
    %cst_29 = arith.constant dense<0xFF800000> : vector<8xf32>
    %56 = vector.multi_reduction <maximumf>, %55, %cst_29 [1] : vector<8x8xf32> to vector<8xf32>
    %cst_30 = arith.constant 0xFF800000 : f32
    %57 = vector.broadcast %cst_30 : f32 to vector<8xf32>
    %58 = arith.maximumf %57, %56 : vector<8xf32>
    %59 = vector.shape_cast %58 : vector<8xf32> to vector<8x1xf32>
    %60 = vector.broadcast %59 : vector<8x1xf32> to vector<8x8xf32>
    %61 = arith.subf %55, %60 : vector<8x8xf32>
    %62 = math.exp %61 : vector<8x8xf32>
    %cst_31 = arith.constant dense<0.000000e+00> : vector<8xf32>
    %63 = vector.multi_reduction <add>, %62, %cst_31 [1] : vector<8x8xf32> to vector<8xf32>
    %64 = vector.shape_cast %63 : vector<8xf32> to vector<8x1xf32>
    %65 = vector.broadcast %64 : vector<8x1xf32> to vector<8x8xf32>
    %66 = arith.divf %62, %65 : vector<8x8xf32>
    %67 = arith.truncf %66 : vector<8x8xf32> to vector<8x8xbf16>
    %68 = vector.extract_strided_slice %26 {offsets = [0, 16], sizes = [8, 16], strides = [1, 1]} : vector<8x64xf32> to vector<8x16xf32>
    %69 = arith.truncf %68 : vector<8x16xf32> to vector<8x16xbf16>
    %cst_32 = arith.constant dense<0.000000e+00> : vector<8x16xf32>
    %70 = tpu.matmul %67, %69, %cst_32 {dimension_numbers = #tpu.dot_dimension_numbers<[1], [0], [0], [1], [0, 0, 1, 1], [], []>} : vector<8x8xbf16>, vector<8x16xbf16>, vector<8x16xf32> -> vector<8x16xf32>
    %71 = vector.extract_strided_slice %14 {offsets = [0, 32], sizes = [8, 16], strides = [1, 1]} : vector<8x64xf32> to vector<8x16xf32>
    %72 = arith.truncf %71 : vector<8x16xf32> to vector<8x16xbf16>
    %73 = vector.extract_strided_slice %20 {offsets = [0, 32], sizes = [8, 16], strides = [1, 1]} : vector<8x64xf32> to vector<8x16xf32>
    %74 = arith.truncf %73 : vector<8x16xf32> to vector<8x16xbf16>
    "tpu.trace_start"() <{level = 10 : i32, message = "qd,kd->qk"}> : () -> ()
    %cst_33 = arith.constant dense<0.000000e+00> : vector<8x8xf32>
    %75 = tpu.matmul %72, %74, %cst_33 {dimension_numbers = #tpu.dot_dimension_numbers<[1], [1], [0], [0], [0, 0, 1, 0], [], []>} : vector<8x16xbf16>, vector<8x16xbf16>, vector<8x8xf32> -> vector<8x8xf32>
    "tpu.trace_stop"() : () -> ()
    %cst_34 = arith.constant 2.500000e-01 : f32
    %76 = vector.broadcast %cst_34 : f32 to vector<8x8xf32>
    %77 = arith.mulf %75, %76 : vector<8x8xf32>
    %cst_35 = arith.constant dense<0xFF800000> : vector<8xf32>
    %78 = vector.multi_reduction <maximumf>, %77, %cst_35 [1] : vector<8x8xf32> to vector<8xf32>
    %cst_36 = arith.constant 0xFF800000 : f32
    %79 = vector.broadcast %cst_36 : f32 to vector<8xf32>
    %80 = arith.maximumf %79, %78 : vector<8xf32>
    %81 = vector.shape_cast %80 : vector<8xf32> to vector<8x1xf32>
    %82 = vector.broadcast %81 : vector<8x1xf32> to vector<8x8xf32>
    %83 = arith.subf %77, %82 : vector<8x8xf32>
    %84 = math.exp %83 : vector<8x8xf32>
    %cst_37 = arith.constant dense<0.000000e+00> : vector<8xf32>
    %85 = vector.multi_reduction <add>, %84, %cst_37 [1] : vector<8x8xf32> to vector<8xf32>
    %86 = vector.shape_cast %85 : vector<8xf32> to vector<8x1xf32>
    %87 = vector.broadcast %86 : vector<8x1xf32> to vector<8x8xf32>
    %88 = arith.divf %84, %87 : vector<8x8xf32>
    %89 = arith.truncf %88 : vector<8x8xf32> to vector<8x8xbf16>
    %90 = vector.extract_strided_slice %26 {offsets = [0, 32], sizes = [8, 16], strides = [1, 1]} : vector<8x64xf32> to vector<8x16xf32>
    %91 = arith.truncf %90 : vector<8x16xf32> to vector<8x16xbf16>
    %cst_38 = arith.constant dense<0.000000e+00> : vector<8x16xf32>
    %92 = tpu.matmul %89, %91, %cst_38 {dimension_numbers = #tpu.dot_dimension_numbers<[1], [0], [0], [1], [0, 0, 1, 1], [], []>} : vector<8x8xbf16>, vector<8x16xbf16>, vector<8x16xf32> -> vector<8x16xf32>
    %93 = vector.extract_strided_slice %14 {offsets = [0, 48], sizes = [8, 16], strides = [1, 1]} : vector<8x64xf32> to vector<8x16xf32>
    %94 = arith.truncf %93 : vector<8x16xf32> to vector<8x16xbf16>
    %95 = vector.extract_strided_slice %20 {offsets = [0, 48], sizes = [8, 16], strides = [1, 1]} : vector<8x64xf32> to vector<8x16xf32>
    %96 = arith.truncf %95 : vector<8x16xf32> to vector<8x16xbf16>
    "tpu.trace_start"() <{level = 10 : i32, message = "qd,kd->qk"}> : () -> ()
    %cst_39 = arith.constant dense<0.000000e+00> : vector<8x8xf32>
    %97 = tpu.matmul %94, %96, %cst_39 {dimension_numbers = #tpu.dot_dimension_numbers<[1], [1], [0], [0], [0, 0, 1, 0], [], []>} : vector<8x16xbf16>, vector<8x16xbf16>, vector<8x8xf32> -> vector<8x8xf32>
    "tpu.trace_stop"() : () -> ()
    %cst_40 = arith.constant 2.500000e-01 : f32
    %98 = vector.broadcast %cst_40 : f32 to vector<8x8xf32>
    %99 = arith.mulf %97, %98 : vector<8x8xf32>
    %cst_41 = arith.constant dense<0xFF800000> : vector<8xf32>
    %100 = vector.multi_reduction <maximumf>, %99, %cst_41 [1] : vector<8x8xf32> to vector<8xf32>
    %cst_42 = arith.constant 0xFF800000 : f32
    %101 = vector.broadcast %cst_42 : f32 to vector<8xf32>
    %102 = arith.maximumf %101, %100 : vector<8xf32>
    %103 = vector.shape_cast %102 : vector<8xf32> to vector<8x1xf32>
    %104 = vector.broadcast %103 : vector<8x1xf32> to vector<8x8xf32>
    %105 = arith.subf %99, %104 : vector<8x8xf32>
    %106 = math.exp %105 : vector<8x8xf32>
    %cst_43 = arith.constant dense<0.000000e+00> : vector<8xf32>
    %107 = vector.multi_reduction <add>, %106, %cst_43 [1] : vector<8x8xf32> to vector<8xf32>
    %108 = vector.shape_cast %107 : vector<8xf32> to vector<8x1xf32>
    %109 = vector.broadcast %108 : vector<8x1xf32> to vector<8x8xf32>
    %110 = arith.divf %106, %109 : vector<8x8xf32>
    %111 = arith.truncf %110 : vector<8x8xf32> to vector<8x8xbf16>
    %112 = vector.extract_strided_slice %26 {offsets = [0, 48], sizes = [8, 16], strides = [1, 1]} : vector<8x64xf32> to vector<8x16xf32>
    %113 = arith.truncf %112 : vector<8x16xf32> to vector<8x16xbf16>
    %cst_44 = arith.constant dense<0.000000e+00> : vector<8x16xf32>
    %114 = tpu.matmul %111, %113, %cst_44 {dimension_numbers = #tpu.dot_dimension_numbers<[1], [0], [0], [1], [0, 0, 1, 1], [], []>} : vector<8x8xbf16>, vector<8x16xbf16>, vector<8x16xf32> -> vector<8x16xf32>
    %115 = tpu.concatenate %48, %70, %92, %114 in 1 : vector<8x16xf32>, vector<8x16xf32>, vector<8x16xf32>, vector<8x16xf32> -> vector<8x64xf32>
    %116 = arith.truncf %115 : vector<8x64xf32> to vector<8x64xbf16>
    %c0_45 = arith.constant 0 : index
    %c0_46 = arith.constant 0 : index
    %117 = vector.load %arg10[%c0_45, %c0_46] : memref<64x64xbf16, #tpu.memory_space<vmem>>, vector<64x64xbf16>
    %cst_47 = arith.constant dense<0.000000e+00> : vector<8x64xf32>
    %118 = tpu.matmul %116, %117, %cst_47 {dimension_numbers = #tpu.dot_dimension_numbers<[1], [0], [0], [1], [0, 0, 1, 1], [], []>} : vector<8x64xbf16>, vector<64x64xbf16>, vector<8x64xf32> -> vector<8x64xf32>
    %c0_48 = arith.constant 0 : index
    %c0_49 = arith.constant 0 : index
    %119 = vector.load %arg11[%c0_48, %c0_49] : memref<1x64xf32, #tpu.memory_space<vmem>>, vector<1x64xf32>
    %120 = vector.broadcast %119 : vector<1x64xf32> to vector<8x64xf32>
    %121 = arith.addf %118, %120 : vector<8x64xf32>
    %cst_50 = arith.constant dense<0.000000e+00> : vector<64xf32>
    %122 = vector.multi_reduction <add>, %121, %cst_50 [0] : vector<8x64xf32> to vector<64xf32>
    %123 = vector.shape_cast %122 : vector<64xf32> to vector<1x64xf32>
    %cst_51 = arith.constant 8.000000e+00 : f32
    %124 = vector.broadcast %cst_51 : f32 to vector<1x64xf32>
    %125 = arith.divf %123, %124 : vector<1x64xf32>
    %126 = arith.truncf %125 : vector<1x64xf32> to vector<1x64xbf16>
    %c0_52 = arith.constant 0 : index
    %c0_53 = arith.constant 0 : index
    %127 = vector.load %arg12[%c0_52, %c0_53] : memref<64x32xbf16, #tpu.memory_space<vmem>>, vector<64x32xbf16>
    %cst_54 = arith.constant dense<0.000000e+00> : vector<1x32xf32>
    %128 = tpu.matmul %126, %127, %cst_54 {dimension_numbers = #tpu.dot_dimension_numbers<[1], [0], [0], [1], [0, 0, 1, 1], [], []>} : vector<1x64xbf16>, vector<64x32xbf16>, vector<1x32xf32> -> vector<1x32xf32>
    %c0_55 = arith.constant 0 : index
    %c0_56 = arith.constant 0 : index
    %129 = vector.load %arg13[%c0_55, %c0_56] : memref<1x32xf32, #tpu.memory_space<vmem>>, vector<1x32xf32>
    %130 = arith.addf %128, %129 : vector<1x32xf32>
    %cst_57 = arith.constant 0.000000e+00 : f32
    %131 = vector.broadcast %cst_57 : f32 to vector<1x32xf32>
    %132 = arith.maximumf %130, %131 : vector<1x32xf32>
    %133 = arith.truncf %132 : vector<1x32xf32> to vector<1x32xbf16>
    %c0_58 = arith.constant 0 : index
    %c0_59 = arith.constant 0 : index
    %134 = vector.load %arg14[%c0_58, %c0_59] : memref<32x16xbf16, #tpu.memory_space<vmem>>, vector<32x16xbf16>
    %cst_60 = arith.constant dense<0.000000e+00> : vector<1x16xf32>
    %135 = tpu.matmul %133, %134, %cst_60 {dimension_numbers = #tpu.dot_dimension_numbers<[1], [0], [0], [1], [0, 0, 1, 1], [], []>} : vector<1x32xbf16>, vector<32x16xbf16>, vector<1x16xf32> -> vector<1x16xf32>
    %c0_61 = arith.constant 0 : index
    %c0_62 = arith.constant 0 : index
    %136 = vector.load %arg15[%c0_61, %c0_62] : memref<1x16xf32, #tpu.memory_space<vmem>>, vector<1x16xf32>
    %137 = arith.addf %135, %136 : vector<1x16xf32>
    %cst_63 = arith.constant 0.000000e+00 : f32
    %138 = vector.broadcast %cst_63 : f32 to vector<1x16xf32>
    %139 = arith.maximumf %137, %138 : vector<1x16xf32>
    %140 = arith.truncf %139 : vector<1x16xf32> to vector<1x16xbf16>
    %c0_64 = arith.constant 0 : index
    %c0_65 = arith.constant 0 : index
    %141 = vector.load %arg16[%c0_64, %c0_65] : memref<16x10xbf16, #tpu.memory_space<vmem>>, vector<16x10xbf16>
    %cst_66 = arith.constant dense<0.000000e+00> : vector<1x10xf32>
    %142 = tpu.matmul %140, %141, %cst_66 {dimension_numbers = #tpu.dot_dimension_numbers<[1], [0], [0], [1], [0, 0, 1, 1], [], []>} : vector<1x16xbf16>, vector<16x10xbf16>, vector<1x10xf32> -> vector<1x10xf32>
    %c0_67 = arith.constant 0 : index
    %c0_68 = arith.constant 0 : index
    %143 = vector.load %arg17[%c0_67, %c0_68] : memref<1x10xf32, #tpu.memory_space<vmem>>, vector<1x10xf32>
    %144 = arith.addf %142, %143 : vector<1x10xf32>
    %c0_69 = arith.constant 0 : index
    %c0_70 = arith.constant 0 : index
    %c0_71 = arith.constant 0 : index
    %145 = vector.load %arg18[%c0_69, %c0_70, %c0_71] : memref<1x1x10xf32, #tpu.memory_space<vmem>>, vector<1x1x10xf32>
    %146 = vector.shape_cast %145 : vector<1x1x10xf32> to vector<1x10xf32>
    %147 = vector.shape_cast %144 : vector<1x10xf32> to vector<1x1x10xf32>
    tpu.vector_store %arg18[%c0_69, %c0_70, %c0_71], %147 {strides = array<i32>} : memref<1x1x10xf32, #tpu.memory_space<vmem>>, vector<1x1x10xf32>,
    return
  }
  func.func @transform_0(%arg0: i32) -> (i32, i32, i32) {
    %c0_i32 = arith.constant 0 : i32
    %c0_i32_0 = arith.constant 0 : i32
    %c0_i32_1 = arith.constant 0 : i32
    return %arg0, %c0_i32, %c0_i32_0 : i32, i32, i32
  }
  func.func @transform_1(%arg0: i32) -> (i32, i32) {
    %c0_i32 = arith.constant 0 : i32
    %c0_i32_0 = arith.constant 0 : i32
    %c0_i32_1 = arith.constant 0 : i32
    return %c0_i32, %c0_i32_0 : i32, i32
  }
  func.func @transform_2(%arg0: i32) -> (i32, i32) {
    %c0_i32 = arith.constant 0 : i32
    %c0_i32_0 = arith.constant 0 : i32
    %c0_i32_1 = arith.constant 0 : i32
    return %c0_i32, %c0_i32_0 : i32, i32
  }
  func.func @transform_3(%arg0: i32) -> (i32, i32) {
    %c0_i32 = arith.constant 0 : i32
    %c0_i32_0 = arith.constant 0 : i32
    %c0_i32_1 = arith.constant 0 : i32
    return %c0_i32, %c0_i32_0 : i32, i32
  }
  func.func @transform_4(%arg0: i32) -> (i32, i32) {
    %c0_i32 = arith.constant 0 : i32
    %c0_i32_0 = arith.constant 0 : i32
    %c0_i32_1 = arith.constant 0 : i32
    return %c0_i32, %c0_i32_0 : i32, i32
  }
  func.func @transform_5(%arg0: i32) -> (i32, i32) {
    %c0_i32 = arith.constant 0 : i32
    %c0_i32_0 = arith.constant 0 : i32
    %c0_i32_1 = arith.constant 0 : i32
    return %c0_i32, %c0_i32_0 : i32, i32
  }
  func.func @transform_6(%arg0: i32) -> (i32, i32) {
    %c0_i32 = arith.constant 0 : i32
    %c0_i32_0 = arith.constant 0 : i32
    %c0_i32_1 = arith.constant 0 : i32
    return %c0_i32, %c0_i32_0 : i32, i32
  }
  func.func @transform_7(%arg0: i32) -> (i32, i32) {
    %c0_i32 = arith.constant 0 : i32
    %c0_i32_0 = arith.constant 0 : i32
    %c0_i32_1 = arith.constant 0 : i32
    return %c0_i32, %c0_i32_0 : i32, i32
  }
  func.func @transform_8(%arg0: i32) -> (i32, i32) {
    %c0_i32 = arith.constant 0 : i32
    %c0_i32_0 = arith.constant 0 : i32
    %c0_i32_1 = arith.constant 0 : i32
    return %c0_i32, %c0_i32_0 : i32, i32
  }
  func.func @transform_9(%arg0: i32) -> (i32, i32) {
    %c0_i32 = arith.constant 0 : i32
    %c0_i32_0 = arith.constant 0 : i32
    %c0_i32_1 = arith.constant 0 : i32
    return %c0_i32, %c0_i32_0 : i32, i32
  }
  func.func @transform_10(%arg0: i32) -> (i32, i32) {
    %c0_i32 = arith.constant 0 : i32
    %c0_i32_0 = arith.constant 0 : i32
    %c0_i32_1 = arith.constant 0 : i32
    return %c0_i32, %c0_i32_0 : i32, i32
  }
  func.func @transform_11(%arg0: i32) -> (i32, i32) {
    %c0_i32 = arith.constant 0 : i32
    %c0_i32_0 = arith.constant 0 : i32
    %c0_i32_1 = arith.constant 0 : i32
    return %c0_i32, %c0_i32_0 : i32, i32
  }
  func.func @transform_12(%arg0: i32) -> (i32, i32) {
    %c0_i32 = arith.constant 0 : i32
    %c0_i32_0 = arith.constant 0 : i32
    %c0_i32_1 = arith.constant 0 : i32
    return %c0_i32, %c0_i32_0 : i32, i32
  }
  func.func @transform_13(%arg0: i32) -> (i32, i32) {
    %c0_i32 = arith.constant 0 : i32
    %c0_i32_0 = arith.constant 0 : i32
    %c0_i32_1 = arith.constant 0 : i32
    return %c0_i32, %c0_i32_0 : i32, i32
  }
  func.func @transform_14(%arg0: i32) -> (i32, i32) {
    %c0_i32 = arith.constant 0 : i32
    %c0_i32_0 = arith.constant 0 : i32
    %c0_i32_1 = arith.constant 0 : i32
    return %c0_i32, %c0_i32_0 : i32, i32
  }
  func.func @transform_15(%arg0: i32) -> (i32, i32) {
    %c0_i32 = arith.constant 0 : i32
    %c0_i32_0 = arith.constant 0 : i32
    %c0_i32_1 = arith.constant 0 : i32
    return %c0_i32, %c0_i32_0 : i32, i32
  }
  func.func @transform_16(%arg0: i32) -> (i32, i32) {
    %c0_i32 = arith.constant 0 : i32
    %c0_i32_0 = arith.constant 0 : i32
    %c0_i32_1 = arith.constant 0 : i32
    return %c0_i32, %c0_i32_0 : i32, i32
  }
  func.func @transform_17(%arg0: i32) -> (i32, i32, i32) {
    %c0_i32 = arith.constant 0 : i32
    %c0_i32_0 = arith.constant 0 : i32
    %c0_i32_1 = arith.constant 0 : i32
    return %arg0, %c0_i32, %c0_i32_0 : i32, i32, i32
  }
}

</mosaic_0001>

<bundles_post_ra>
// kernel: forward.4
= control target key start
LH: loop header
LB: loop body
LE: loop exit
PB: predicated region body
PF: predicated region fallthrough
CT: control target
= control target key end

     0   :  { %s1699_s24 = smov 0   ;;  %s2021_s0 = inlined_call_operand.vmem [shape: f32[2,32,16], index: 0, kind: input, shape index: {}]   ;;  %s2022_s1 = inlined_call_operand.vmem [shape: bf16[80,64], index: 1, kind: input, shape index: {}]   ;;  %s2023_s2 = inlined_call_operand.vmem [shape: f32[1,64], index: 2, kind: input, shape index: {}]   ;;  %s2024_s3 = inlined_call_operand.vmem [shape: bf16[192,128], index: 3, kind: input, shape index: {}]   ;;  %s2025_s4 = inlined_call_operand.vmem [shape: f32[1,128], index: 4, kind: input, shape index: {}]   ;;  %s2026_s5 = inlined_call_operand.vmem [shape: bf16[384,32], index: 5, kind: input, shape index: {}]   ;;  %s2027_s6 = inlined_call_operand.vmem [shape: f32[1,32], index: 6, kind: input, shape index: {}]   ;;  %s2028_s7 = inlined_call_operand.vmem [shape: f32[2,8,32], index: 7, kind: output, shape index: {}]  }
   0x1 LB: > { %s1410_s25 = sadd.s32 4294967295, %s1649_s24   ;;  %p1414_p0 = scmp.ge.s32.totalorder %s1649_s24, 1  ;;  %s1649_s24 = sphi %s1699_s24, %s17_s24  }
   0x2   : > { %p237_p1 = scmp.lt.s32.totalorder %s1649_s24, 3 }
   0x4   : > { %p238_p2 = pnand %p1414_p0, %p237_p1 }
   0x5   : > { %p268_p3 = scmp.lt.s32.totalorder (!%p238_p2), %s1410_s25, 1  ;;  %s1652_s15 = smov (!%p238_p2), 32  }
   0x6   : > { %241 = sbr.rel (%p238_p2) target bundleno = 980 (0x3d4), region = 48  ;;  %s1653_s18 = smov (!%p238_p2), 16  }
   0x7   : > { %s1654_s19 = smov (!%p238_p2), 48   ;;  %s1655_s20 = smov (!%p238_p2), 64  }
   0xb   : > { %vm282_vm0 = vcmask 130048   ;;  %v1651_v0 = vmov 0.0   ;;  %vm287_vm1 = vcmask 125952   ;;  %v1601_v1 = vld [vmem:[%s2022_s1 + $0x20] sm:$0xff]   ;;  %s2030_s25 = smov (!%p268_p3, %s1410_s25), 1  ;;  %v1602_v6 = vld [vmem:[%s2022_s1 + $0x18] sm:$0xff]  }
   0xc   : > { %283 = vst.msk [vmem:[#allocation2] sm:$0xff] %vm282_vm0, %v1651_v0  ;;  %284 = vst.msk [vmem:[#allocation2 + $0x8] sm:$0xff] %vm282_vm0, %v1651_v0  ;;  %1506 = vmatprep.subr.bf16.mxu0 %v1601_v1  ;;  %s1467_s28 = sshll.u32 %s2030_s25, 5  ;;  %vm325_vm2 = vcmask 1045504   ;;  %v1603_v7 = vld [vmem:[%s2022_s1 + $0x10] sm:$0xff]   ;;  %vm303_vm3 = vcmask 1046528  }
   0xd   : > { %285 = vst.msk [vmem:[#allocation2 + $0x10] sm:$0xff] %vm282_vm0, %v1651_v0  ;;  %286 = vst.msk [vmem:[#allocation2 + $0x18] sm:$0xff] %vm282_vm0, %v1651_v0  ;;  %1507 = vmatpush3.bf16.msra.mxu0 %v1601_v1  ;;  %s272_s8 = scalar_lea.vmem %s2021_s0, %s1467_s28  ;;  %vm347_vm4 = vcmask 1044480   ;;  %vm369_vm5 = vcmask 1043456   ;;  %v1604_v25 = vld [vmem:[%s2022_s1 + $0x8] sm:$0xff]   ;;  %v1605_v38 = vld [vmem:[%s2022_s1] sm:$0xff]  }
   0xe   : > { %1042 = vst [vmem:[#allocation4] sm:$0xff] %v1651_v0  ;;  %1043 = vst [vmem:[#allocation4 + $0x8] sm:$0x3] %v1651_v0  ;;  %v278_v2 = vld [vmem:[%s272_s8] sm:$0xff]  ;;  %v279_v3 = vld [vmem:[%s272_s8 + $0x8] sm:$0xff]  ;;  %1508 = vmatprep.subr.bf16.mxu0 %v1602_v6  ;;  %vm405_vm6 = vcmask 523264  }
   0xf   : > { %288 = vst.msk [vmem:[#allocation2 + $0x20] sm:$0xf] %vm287_vm1, %v1651_v0  ;;  %v280_v4 = vld [vmem:[%s272_s8 + $0x10] sm:$0xff]  ;;  %v281_v5 = vld [vmem:[%s272_s8 + $0x18] sm:$0xff]  ;;  %vm395_vm7 = vcmask 261120   ;;  %vm400_vm8 = vcmask 392192  }
  0x10   : > { %289 = vst.msk [vmem:[#allocation2 + $0x2] sm:$0xff] %vm282_vm0, %v278_v2  ;;  %290 = vst.msk [vmem:[#allocation2 + $0xa] sm:$0xff] %vm282_vm0, %v279_v3  ;;  %vm459_vm9 = vcmask 654336   ;;  %vm607_vm10 = vcmask 517120   ;;  %vm739_vm11 = vcmask 1041409   ;;  %vm741_vm12 = vcmask 1042434  }
  0x11   : > { %291 = vst.msk [vmem:[#allocation2 + $0x12] sm:$0xff] %vm282_vm0, %v280_v4  ;;  %292 = vst.msk [vmem:[#allocation2 + $0x1a] sm:$0xff] %vm282_vm0, %v281_v5  ;;  %1509 = vmatpush3.bf16.msra.mxu0 %v1602_v6  ;;  %vm743_vm13 = vcmask 1043459   ;;  %vm745_vm14 = vcmask 1044484   ;;  %vm747_vm15 = vcmask 1045509   ;;  %vm751_vm1 = vcmask 1047559  }
  0x12   : > { %1510 = vmatprep.subr.bf16.mxu0 %v1603_v7  ;;  %720 = vst.msk [vmem:[#allocation3] sm:$0xff] %vm405_vm6, %v1651_v0  ;;  %721 = vst.msk [vmem:[#allocation3 + $0x8] sm:$0xff] %vm405_vm6, %v1651_v0 }
  0x13   : > { %722 = vst.msk [vmem:[#allocation3 + $0x10] sm:$0x3] %vm607_vm10, %v1651_v0 }
  0x15   : > { %1511 = vmatpush3.bf16.msra.mxu0 %v1603_v7 }
  0x16   : > { %1512 = vmatprep.subr.bf16.mxu0 %v1604_v25 }
  0x17   : > { %v1737_v8 = vld [vmem:[#allocation2] sm:$0xff]  ;;  %v1739_v9 = vld [vmem:[#allocation2 + $0x8] sm:$0xff] }
  0x18   : > { %v1741_v10 = vld [vmem:[#allocation2 + $0x10] sm:$0xff]  ;;  %v326_v11 = vrot.slane %v1737_v8, 2  ;;  %v327_v12 = vrot.slane %v1739_v9, 2  ;;  %v304_v14 = vrot.slane %v1737_v8, 1  ;;  %v1747_v15 = vld [vmem:[#allocation2 + $0x18] sm:$0xff]  ;;  %v305_v16 = vrot.slane %v1739_v9, 1 }
  0x19   : > { %v329_v13 = vrot.slane %v1741_v10, 2  ;;  %v307_v17 = vrot.slane %v1741_v10, 1  ;;  %v297_v18 = vld [vmem:[#allocation2 + $0x20] sm:$0xf]  ;;  %v331_v19 = vrot.slane %v1747_v15, 2  ;;  %v309_v20 = vrot.slane %v1747_v15, 1  ;;  %1513 = vmatpush3.bf16.msra.mxu0 %v1604_v25 }
  0x1a   : > { %v328_v21 = vsel %vm325_vm2, %v326_v11, %v327_v12  ;;  %v333_v23 = vrot.slane %v297_v18, 2  ;;  %v311_v24 = vrot.slane %v297_v18, 1  ;;  %v306_v27 = vsel %vm303_vm3, %v304_v14, %v305_v16  ;;  %1514 = vmatprep.subr.bf16.mxu0 %v1605_v38 }
  0x1b   : > { %v330_v22 = vsel %vm325_vm2, %v327_v12, %v329_v13  ;;  %v308_v28 = vsel %vm303_vm3, %v305_v16, %v307_v17  ;;  %v332_v29 = vsel %vm325_vm2, %v329_v13, %v331_v19  ;;  %v310_v32 = vsel %vm303_vm3, %v307_v17, %v309_v20 }
  0x1c   : > { %v1566_v26 = vpack.i.bf16 %v330_v22, %v328_v21  ;;  %v1556_v30 = vpack.i.bf16 %v308_v28, %v306_v27  ;;  %v334_v31 = vsel %vm325_vm2, %v331_v19, %v333_v23  ;;  %v312_v33 = vsel %vm303_vm3, %v309_v20, %v311_v24 }
  0x1d   : > { %v1571_v34 = vpack.i.bf16 %v334_v31, %v332_v29  ;;  %v1561_v35 = vpack.i.bf16 %v312_v33, %v310_v32  ;;  %v351_v36 = vrot.slane %v1741_v10, 3  ;;  %v353_v37 = vrot.slane %v1747_v15, 3  ;;  %1515 = vmatpush3.bf16.msra.mxu0 %v1605_v38  ;;  %v1606_v38 = vld [vmem:[%s2024_s3 + $0x38] sm:$0xff]  }
  0x1e   : > { %1567 = vrot.lane.b32.xlu1 %v1566_v26, %s1652_s15  ;;  %1557 = vrot.lane.b32.xlu0 %v1556_v30, %s1653_s18  ;;  %v355_v39 = vrot.slane %v297_v18, 3  ;;  %v348_v40 = vrot.slane %v1737_v8, 3  ;;  %v349_v41 = vrot.slane %v1739_v9, 3  ;;  %v373_v42 = vrot.slane %v1741_v10, 4 }
  0x1f   : > { %v354_v43 = vsel %vm347_vm4, %v351_v36, %v353_v37  ;;  %v375_v44 = vrot.slane %v1747_v15, 4  ;;  %v377_v45 = vrot.slane %v297_v18, 4  ;;  %v370_v46 = vrot.slane %v1737_v8, 4 }
  0x20   : > { %v356_v47 = vsel %vm347_vm4, %v353_v37, %v355_v39  ;;  %v350_v48 = vsel %vm347_vm4, %v348_v40, %v349_v41  ;;  %v352_v49 = vsel %vm347_vm4, %v349_v41, %v351_v36  ;;  %v371_v50 = vrot.slane %v1739_v9, 4  ;;  %v1607_v40 = vld [vmem:[%s2024_s3 + $0x30] sm:$0xff]   ;;  %v1608_v41 = vld [vmem:[%s2024_s3 + $0x28] sm:$0xff]  }
  0x21   : > { %v1581_v51 = vpack.i.bf16 %v356_v47, %v354_v43  ;;  %v1576_v52 = vpack.i.bf16 %v352_v49, %v350_v48  ;;  %v376_v53 = vsel %vm369_vm5, %v373_v42, %v375_v44  ;;  %v378_v54 = vsel %vm369_vm5, %v375_v44, %v377_v45  ;;  %v1610_v43 = vld [vmem:[%s2024_s3 + $0x18] sm:$0xff]   ;;  %v1611_v44 = vld [vmem:[%s2024_s3 + $0x10] sm:$0xff]   ;;  %v1612_v45 = vld [vmem:[%s2024_s3 + $0x8] sm:$0xff]  }
  0x22   : > { %1572 = vrot.lane.b32.xlu1 %v1571_v34, %s1652_s15  ;;  %1562 = vrot.lane.b32.xlu0 %v1561_v35, %s1653_s18  ;;  %v372_v55 = vsel %vm369_vm5, %v370_v46, %v371_v50  ;;  %v374_v56 = vsel %vm369_vm5, %v371_v50, %v373_v42  ;;  %v1591_v57 = vpack.i.bf16 %v378_v54, %v376_v53  ;;  %v1656_v39 = vmov 0   ;;  %v1609_v42 = vld [vmem:[%s2024_s3 + $0x20] sm:$0xff]   ;;  %v1614_v47 = vld [vmem:[%s2024_s3 + $0x58] sm:$0xff]   ;;  %s1417_s15 = sshll.u32 %s2030_s25, 3 }
  0x23   : > { %v1586_v58 = vpack.i.bf16 %v374_v56, %v372_v55  ;;  %898 = vmatprep.subr.bf16.mxu1 %v1656_v39  ;;  %v1613_v46 = vld [vmem:[%s2024_s3] sm:$0xff]   ;;  %v1615_v48 = vld [vmem:[%s2024_s3 + $0x50] sm:$0xff]   ;;  %v1616_v49 = vld [vmem:[%s2024_s3 + $0x48] sm:$0xff]   ;;  %v1657_v50 = vmov 1983009808   ;;  %vm1658_vm4 = vmmov 0   ;;  %s276_s18 = scalar_lea.vmem %s2028_s7, %s1417_s15 }
  0x24   : > { %899 = vmatpush1.bf16.msra.mxu1 %v1606_v38  ;;  %v1847_v55 = vld [vmem:[%s2023_s2] ss:$0 sm:$0xff]  ;;  %vm985_vm5 = vcmask 1041408  }
  0x25   : > { %900 = vmatprep.subr.bf16.mxu1 %v1656_v39 }
  0x26   : > { %1582 = vrot.lane.b32.xlu1 %v1581_v51, %s1654_s19  ;;  %1577 = vrot.lane.b32.xlu0 %v1576_v52, %s1654_s19  ;;  %v525_v51 = vunpack.c.l.s4 %v1657_v50  ;;  %v527_v52 = vlaneseq }
  0x28   : > { %901 = vmatpush1.bf16.msra.mxu1 %v1607_v40  ;;  %v526_v53 = vunpack.c.0.s8 %v525_v51  ;;  %v528_v54 = vshrl.u32 %v527_v52, 7 }
  0x29   : > { %902 = vmatprep.subr.bf16.mxu1 %v1656_v39 }
  0x2a   : > { %1592 = vrot.lane.b32.xlu1 %v1591_v57, %s1655_s20  ;;  %1587 = vrot.lane.b32.xlu0 %v1586_v58, %s1655_s20  ;;  %v1850_v58 = vsub.s32 %v526_v53, %v528_v54 }
  0x2c   : > { %903 = vmatpush1.bf16.msra.mxu1 %v1608_v41 }
  0x2d   : > { %904 = vmatprep.subr.bf16.mxu1 %v1656_v39 }
  0x30   : > { %905 = vmatpush1.bf16.msra.mxu1 %v1609_v42 }
  0x31   : > { %906 = vmatprep.subr.bf16.mxu1 %v1656_v39 }
  0x34   : > { %907 = vmatpush1.bf16.msra.mxu1 %v1610_v43 }
  0x35   : > { %908 = vmatprep.subr.bf16.mxu1 %v1656_v39 }
  0x38   : > { %909 = vmatpush1.bf16.msra.mxu1 %v1611_v44 }
  0x39   : > { %910 = vmatprep.subr.bf16.mxu1 %v1656_v39 }
  0x3c   : > { %911 = vmatpush1.bf16.msra.mxu1 %v1612_v45 }
  0x3d   : > { %912 = vmatprep.subr.bf16.mxu1 %v1656_v39 }
  0x40   : > { %913 = vmatpush1.bf16.msra.mxu1 %v1613_v46 }
  0x41   : > { %922 = vmatprep.subr.bf16.mxu1 %v1656_v39 }
  0x44   : > { %923 = vmatpush2.bf16.msra.mxu1 %v1614_v47 }
  0x45   : > { %924 = vmatprep.subr.bf16.mxu1 %v1656_v39 }
  0x48   : > { %925 = vmatpush2.bf16.msra.mxu1 %v1615_v48 }
  0x49   : > { %926 = vmatprep.subr.bf16.mxu1 %v1656_v39 }
  0x4c   : > { %927 = vmatpush2.bf16.msra.mxu1 %v1616_v49 }
  0x4d   : > { %928 = vmatprep.subr.bf16.mxu1 %v1656_v39 }
  0x90   : > { %v1568_v59 = vpop.permute.xlu1 %1567  ;;  %v1558_v60 = vpop.permute.xlu0 %1557 }
  0x91   : > { %v1560_v62 = vunpack.i.h.bf16 %v1558_v60  ;;  %v1559_v63 = vunpack.i.l.bf16 %v1558_v60  ;;  %v1570_v4 = vunpack.i.h.bf16 %v1568_v59  ;;  %v1569_v5 = vunpack.i.l.bf16 %v1568_v59 }
  0x93   : > { %v392_v7 = vsel %vm282_vm0, %v1739_v9, %v1560_v62  ;;  %v391_v11 = vsel %vm282_vm0, %v1737_v8, %v1559_v63 }
  0x94   : > { %v1573_v61 = vpop.permute.xlu1 %1572  ;;  %v1563_v1 = vpop.permute.xlu0 %1562  ;;  %v396_v9 = vsel %vm395_vm7, %v391_v11, %v1569_v5  ;;  %v397_v23 = vsel %vm395_vm7, %v392_v7, %v1570_v4 }
  0x95   : > { %v1565_v2 = vunpack.i.h.bf16 %v1563_v1  ;;  %v1564_v3 = vunpack.i.l.bf16 %v1563_v1  ;;  %v1575_v12 = vunpack.i.h.bf16 %v1573_v61  ;;  %v1574_v13 = vunpack.i.l.bf16 %v1573_v61 }
  0x97   : > { %v394_v16 = vsel %vm282_vm0, %v1747_v15, %v1565_v2  ;;  %v393_v17 = vsel %vm282_vm0, %v1741_v10, %v1564_v3  ;;  %vm749_vm0 = vcmask 1046534  }
  0x98   : > { %v1583_v6 = vpop.permute.xlu1 %1582  ;;  %v1578_v14 = vpop.permute.xlu0 %1577  ;;  %v398_v8 = vsel %vm395_vm7, %v393_v17, %v1574_v13  ;;  %v399_v24 = vsel %vm395_vm7, %v394_v16, %v1575_v12 }
  0x99   : > { %v1585_v18 = vunpack.i.h.bf16 %v1583_v6  ;;  %v1584_v19 = vunpack.i.l.bf16 %v1583_v6  ;;  %v1580_v20 = vunpack.i.h.bf16 %v1578_v14  ;;  %v1579_v21 = vunpack.i.l.bf16 %v1578_v14 }
  0x9b   : > { %v403_v27 = vsel %vm400_vm8, %v398_v8, %v1584_v19  ;;  %v404_v10 = vsel %vm400_vm8, %v399_v24, %v1585_v18  ;;  %v401_v32 = vsel %vm400_vm8, %v396_v9, %v1579_v21  ;;  %v402_v33 = vsel %vm400_vm8, %v397_v23, %v1580_v20 }
  0x9c   : > { %v1593_v22 = vpop.permute.xlu1 %1592  ;;  %v1588_v15 = vpop.permute.xlu0 %1587 }
  0x9d   : > { %v1595_v25 = vunpack.i.h.bf16 %v1593_v22  ;;  %v1594_v26 = vunpack.i.l.bf16 %v1593_v22  ;;  %v1590_v28 = vunpack.i.h.bf16 %v1588_v15  ;;  %v1589_v29 = vunpack.i.l.bf16 %v1588_v15 }
  0x9f   : > { %v408_v30 = vsel %vm405_vm6, %v403_v27, %v1594_v26  ;;  %v409_v31 = vsel %vm405_vm6, %v404_v10, %v1595_v25  ;;  %v406_v35 = vsel %vm405_vm6, %v401_v32, %v1589_v29  ;;  %v407_v36 = vsel %vm405_vm6, %v402_v33, %v1590_v28 }
  0xa0   : > { %v411_v34 = vpack.c.bf16 %v409_v31, %v408_v30  ;;  %v410_v37 = vpack.c.bf16 %v407_v36, %v406_v35 }
  0xa2   : > { %1516 = vmatprep.mubr.msk.bf16.mxu0 %vm459_vm9, %v410_v37 }
  0xa3   : > { %1517 = vmatmul.mubr.msk.bf16.vlgmr.msra.gmra.mxu0 %vm459_vm9, %v411_v34 }
 0x163   : > { %v1518_v56 = vpop.f32.mrf.mxu0 }
 0x164   : > { %v509_v57 = vadd.f32 %v1518_v56, %v1847_v55 }
 0x165   : > { %v500_v59 = vpop.f32.mrf.mxu0 }
 0x166   : > { %v517_v60 = vmax.f32 %v509_v57, 0.0  ;;  %v501_v61 = vadd.f32 %v1847_v55, %v500_v59 }
 0x167   : > { %v1519_v62 = vpop.f32.mrf.mxu0 }
 0x168   : > { %v557_v63 = vcombine.high %v517_v60, %v517_v60  ;;  %v564_v1 = vrot.slane %v517_v60, %v1850_v58  ;;  %v515_v2 = vmax.f32 %v501_v61, 0.0  ;;  %v512_v3 = vadd.f32 %v1519_v62, %v1847_v55 }
 0x169   : > { %v503_v56 = vpop.f32.mrf.mxu0 }
 0x16a   : > { %v571_v4 = vrot.slane %v557_v63, %v1850_v58  ;;  %v572_v5 = vcombine.high %v564_v1, %v564_v1  ;;  %v664_v6 = vsel %vm607_vm10, %v564_v1, -inf  ;;  %v523_v7 = vcombine.high %v515_v2, %v515_v2 }
 0x16b   : > { %v665_v11 = vrot.slane %v664_v6, 4  ;;  %v530_v12 = vrot.slane %v515_v2, %v1850_v58  ;;  %v518_v13 = vmax.f32 %v512_v3, 0.0 }
 0x16c   : > { %v573_v14 = vcombine.high %v571_v4, %v571_v4  ;;  %v671_v16 = vsel %vm607_vm10, %v572_v5, -inf  ;;  %v678_v17 = vsel %vm607_vm10, %v571_v4, -inf  ;;  %v537_v18 = vrot.slane %v523_v7, %v1850_v58 }
 0x16d   : > { %v666_v19 = vmax.f32 %v664_v6, %v665_v11  ;;  %v672_v20 = vrot.slane %v671_v16, 4  ;;  %v679_v21 = vrot.slane %v678_v17, 4  ;;  %v538_v22 = vcombine.high %v530_v12, %v530_v12 }
 0x16e   : > { %v685_v9 = vsel %vm607_vm10, %v573_v14, -inf  ;;  %v539_v23 = vcombine.high %v537_v18, %v537_v18  ;;  %v608_v8 = vsel %vm607_vm10, %v530_v12, -inf  ;;  %v622_v24 = vsel %vm607_vm10, %v537_v18, -inf }
 0x16f   : > { %v667_v25 = vrot.slane %v666_v19, 2  ;;  %v673_v26 = vmax.f32 %v671_v16, %v672_v20  ;;  %v680_v15 = vmax.f32 %v678_v17, %v679_v21  ;;  %v686_v27 = vrot.slane %v685_v9, 4 }
 0x170   : > { %v609_v10 = vrot.slane %v608_v8, 4  ;;  %v615_v28 = vsel %vm607_vm10, %v538_v22, -inf  ;;  %v623_v29 = vrot.slane %v622_v24, 4  ;;  %v629_v30 = vsel %vm607_vm10, %v539_v23, -inf }
 0x171   : > { %v668_v31 = vmax.f32 %v666_v19, %v667_v25  ;;  %v674_v32 = vrot.slane %v673_v26, 2  ;;  %v681_v33 = vrot.slane %v680_v15, 2  ;;  %v687_v34 = vmax.f32 %v685_v9, %v686_v27 }
 0x172   : > { %v610_v35 = vmax.f32 %v608_v8, %v609_v10  ;;  %v616_v36 = vrot.slane %v615_v28, 4  ;;  %v624_v37 = vmax.f32 %v622_v24, %v623_v29  ;;  %v630_v38 = vrot.slane %v629_v30, 4 }
 0x173   : > { %v669_v39 = vrot.slane %v668_v31, 1  ;;  %v675_v40 = vmax.f32 %v673_v26, %v674_v32  ;;  %v682_v41 = vmax.f32 %v680_v15, %v681_v33  ;;  %v688_v42 = vrot.slane %v687_v34, 2 }
 0x174   : > { %v611_v43 = vrot.slane %v610_v35, 2  ;;  %v617_v44 = vmax.f32 %v615_v28, %v616_v36  ;;  %v625_v45 = vrot.slane %v624_v37, 2  ;;  %v631_v46 = vmax.f32 %v629_v30, %v630_v38 }
 0x175   : > { %v676_v47 = vrot.slane %v675_v40, 1  ;;  %v683_v48 = vrot.slane %v682_v41, 1  ;;  %v689_v49 = vmax.f32 %v687_v34, %v688_v42  ;;  %v574_v54 = vcombine.high %v518_v13, %v518_v13 }
 0x176   : > { %v612_v50 = vmax.f32 %v610_v35, %v611_v43  ;;  %v618_v51 = vrot.slane %v617_v44, 2  ;;  %v626_v53 = vmax.f32 %v624_v37, %v625_v45  ;;  %v670_v57 = vmax.f32 %v668_v31, %v669_v39 }
 0x177   : > { %v677_v52 = vmax.f32 %v675_v40, %v676_v47  ;;  %v690_v59 = vrot.slane %v689_v49, 1  ;;  %v632_v61 = vrot.slane %v631_v46, 2  ;;  %v684_v62 = vmax.f32 %v682_v41, %v683_v48 }
 0x178   : > { %v619_v60 = vmax.f32 %v617_v44, %v618_v51  ;;  %v581_v63 = vrot.slane %v518_v13, %v1850_v58  ;;  %v588_v1 = vrot.slane %v574_v54, %v1850_v58  ;;  %v613_v3 = vrot.slane %v612_v50, 1 }
 0x179   : > { %v753_v2 = vsel %vm739_vm11, %v677_v52, %v670_v57  ;;  %v504_v5 = vadd.f32 %v1847_v55, %v503_v56  ;;  %v627_v6 = vrot.slane %v626_v53, 1  ;;  %v691_v14 = vmax.f32 %v689_v49, %v690_v59 }
 0x17a   : > { %v620_v4 = vrot.slane %v619_v60, 1  ;;  %v589_v7 = vcombine.high %v581_v63, %v581_v63  ;;  %v590_v11 = vcombine.high %v588_v1, %v588_v1  ;;  %v692_v12 = vsel %vm607_vm10, %v581_v63, -inf }
 0x17b   : > { %v633_v16 = vmax.f32 %v631_v46, %v632_v61  ;;  %v693_v17 = vrot.slane %v692_v12, 4  ;;  %v706_v18 = vsel %vm607_vm10, %v588_v1, -inf  ;;  %v754_v13 = vsel %vm741_vm12, %v684_v62, %v753_v2 }
 0x17c   : > { %v699_v19 = vsel %vm607_vm10, %v589_v7, -inf  ;;  %v707_v20 = vrot.slane %v706_v18, 4  ;;  %v713_v21 = vsel %vm607_vm10, %v590_v11, -inf  ;;  %v621_v22 = vmax.f32 %v619_v60, %v620_v4 }
 0x17d   : > { %v694_v55 = vmax.f32 %v692_v12, %v693_v17  ;;  %v700_v9 = vrot.slane %v699_v19, 4  ;;  %v714_v23 = vrot.slane %v713_v21, 4  ;;  %v614_v8 = vmax.f32 %v612_v50, %v613_v3 }
 0x17e   : > { %v628_v24 = vmax.f32 %v626_v53, %v627_v6  ;;  %v708_v25 = vmax.f32 %v706_v18, %v707_v20  ;;  %v516_v26 = vmax.f32 %v504_v5, 0.0  ;;  %v634_v15 = vrot.slane %v633_v16, 1 }
 0x17f   : > { %v695_v27 = vrot.slane %v694_v55, 2  ;;  %v701_v10 = vmax.f32 %v699_v19, %v700_v9  ;;  %v715_v28 = vmax.f32 %v713_v21, %v714_v23  ;;  %v755_v30 = vsel %vm743_vm13, %v691_v14, %v754_v13 }
 0x180   : > { %v709_v29 = vrot.slane %v708_v25, 2  ;;  %v540_v31 = vcombine.high %v516_v26, %v516_v26  ;;  %v547_v32 = vrot.slane %v516_v26, %v1850_v58  ;;  %v740_v33 = vsel %vm739_vm11, %v621_v22, %v614_v8 }
 0x181   : > { %v696_v34 = vmax.f32 %v694_v55, %v695_v27  ;;  %v702_v35 = vrot.slane %v701_v10, 2  ;;  %v716_v36 = vrot.slane %v715_v28, 2  ;;  %v635_v63 = vmax.f32 %v633_v16, %v634_v15 }
 0x182   : > { %v710_v37 = vmax.f32 %v708_v25, %v709_v29  ;;  %v554_v38 = vrot.slane %v540_v31, %v1850_v58  ;;  %v555_v39 = vcombine.high %v547_v32, %v547_v32  ;;  %v636_v40 = vsel %vm607_vm10, %v547_v32, -inf }
 0x183   : > { %v697_v41 = vrot.slane %v696_v34, 1  ;;  %v703_v42 = vmax.f32 %v701_v10, %v702_v35  ;;  %v717_v43 = vmax.f32 %v715_v28, %v716_v36  ;;  %v637_v44 = vrot.slane %v636_v40, 4  ;;  %v1617_v28 = vld [vmem:[%s2024_s3 + $0x40] sm:$0xff]  }
 0x184   : > { %v711_v45 = vrot.slane %v710_v37, 1  ;;  %v556_v46 = vcombine.high %v554_v38, %v554_v38  ;;  %v643_v47 = vsel %vm607_vm10, %v555_v39, -inf  ;;  %v650_v48 = vsel %vm607_vm10, %v554_v38, -inf  ;;  %929 = vmatpush2.bf16.msra.mxu1 %v1617_v28 }
 0x185   : > { %v698_v49 = vmax.f32 %v696_v34, %v697_v41  ;;  %v704_v50 = vrot.slane %v703_v42, 1  ;;  %v718_v51 = vrot.slane %v717_v43, 1  ;;  %v638_v52 = vmax.f32 %v636_v40, %v637_v44  ;;  %1520 = vmatprep.subr.bf16.mxu1 %v1651_v0 }
 0x186   : > { %v712_v53 = vmax.f32 %v710_v37, %v711_v45  ;;  %v644_v54 = vrot.slane %v643_v47, 4  ;;  %v651_v56 = vrot.slane %v650_v48, 4  ;;  %v657_v57 = vsel %vm607_vm10, %v556_v46, -inf }
 0x187   : > { %v705_v59 = vmax.f32 %v703_v42, %v704_v50  ;;  %v719_v60 = vmax.f32 %v717_v43, %v718_v51  ;;  %v756_v61 = vsel %vm745_vm14, %v698_v49, %v755_v30  ;;  %v639_v62 = vrot.slane %v638_v52, 2  ;;  %v1618_v50 = vld [vmem:[%s2026_s5 + $0x78] sm:$0xff]  }
 0x188   : > { %v645_v1 = vmax.f32 %v643_v47, %v644_v54  ;;  %v652_v2 = vmax.f32 %v650_v48, %v651_v56  ;;  %v658_v3 = vrot.slane %v657_v57, 4  ;;  %v742_v4 = vsel %vm741_vm12, %v628_v24, %v740_v33  ;;  %v1619_v51 = vld [vmem:[%s2026_s5 + $0xb8] sm:$0xff]   ;;  %1475 = vmatprep.subr.bf16.mxu0 %v1618_v50  ;;  %v1622_v54 = vld [vmem:[%s2026_s5 + $0xb0] sm:$0xff]  }
 0x189   : > { %v757_v5 = vsel %vm747_vm15, %v705_v59, %v756_v61  ;;  %v640_v6 = vmax.f32 %v638_v52, %v639_v62  ;;  %v744_v20 = vsel %vm743_vm13, %v635_v63, %v742_v4  ;;  %v1620_v52 = vld [vmem:[%s2026_s5 + $0x38] sm:$0xff]   ;;  %v1623_v56 = vld [vmem:[%s2026_s5 + $0x30] sm:$0xff]   ;;  %v1625_v59 = vld [vmem:[%s2026_s5 + $0xa8] sm:$0xff]  }
 0x18a   : > { %v758_v7 = vsel %vm749_vm0, %v712_v53, %v757_v5  ;;  %v646_v11 = vrot.slane %v645_v1, 2  ;;  %v653_v12 = vrot.slane %v652_v2, 2  ;;  %v659_v14 = vmax.f32 %v657_v57, %v658_v3  ;;  %1476 = vmatpush3.bf16.msra.mxu0 %v1620_v52  ;;  %v1621_v53 = vld [vmem:[%s2026_s5 + $0x70] sm:$0xff]   ;;  %v1624_v57 = vld [vmem:[%s2026_s5 + $0x68] sm:$0xff]   ;;  %v1627_v61 = vld [vmem:[%s2026_s5 + $0x60] sm:$0xff]  }
 0x18b   : > { %v759_v17 = vsel %vm751_vm1, %v719_v60, %v758_v7  ;;  %v641_v18 = vrot.slane %v640_v6, 1  ;;  %1477 = vmatprep.subr.bf16.mxu0 %v1621_v53  ;;  %v1626_v60 = vld [vmem:[%s2026_s5 + $0x28] sm:$0xff]   ;;  %v1628_v62 = vld [vmem:[%s2026_s5 + $0xa0] sm:$0xff]   ;;  %v1632_v3 = vld [vmem:[%s2026_s5 + $0x18] sm:$0xff]  }
 0x18c   : > { %763 = vst.msk [vmem:[#allocation3 + $0x9] sm:$0xff] %vm405_vm6, %v759_v17  ;;  %v647_v13 = vmax.f32 %v645_v1, %v646_v11  ;;  %v654_v16 = vmax.f32 %v652_v2, %v653_v12  ;;  %v660_v19 = vrot.slane %v659_v14, 2  ;;  %v1629_v63 = vld [vmem:[%s2026_s5 + $0x20] sm:$0xff]   ;;  %v1630_v1 = vld [vmem:[%s2026_s5 + $0x58] sm:$0xff]   ;;  %v1633_v4 = vld [vmem:[%s2026_s5 + $0x50] sm:$0xff]  }
 0x18d   : > { %v642_v21 = vmax.f32 %v640_v6, %v641_v18  ;;  %v1631_v2 = vld [vmem:[%s2026_s5 + $0x98] sm:$0xff]   ;;  %v1634_v5 = vld [vmem:[%s2026_s5 + $0x90] sm:$0xff]   ;;  %v1636_v7 = vld [vmem:[%s2026_s5 + $0x48] sm:$0xff]  }
 0x18e   : > { %v648_v22 = vrot.slane %v647_v13, 1  ;;  %v655_v55 = vrot.slane %v654_v16, 1  ;;  %v661_v9 = vmax.f32 %v659_v14, %v660_v19  ;;  %1478 = vmatpush3.bf16.msra.mxu0 %v1623_v56  ;;  %v1635_v6 = vld [vmem:[%s2026_s5 + $0x10] sm:$0xff]   ;;  %v1637_v11 = vld [vmem:[%s2026_s5 + $0x88] sm:$0xff]   ;;  %v1639_v14 = vld [vmem:[%s2026_s5 + $0x40] sm:$0xff]  }
 0x18f   : > { %v746_v23 = vsel %vm745_vm14, %v642_v21, %v744_v20  ;;  %1479 = vmatprep.subr.bf16.mxu0 %v1624_v57  ;;  %v1638_v12 = vld [vmem:[%s2026_s5 + $0x8] sm:$0xff]   ;;  %v1640_v17 = vld [vmem:[%s2026_s5 + $0x80] sm:$0xff]  }
 0x190   : > { %v649_v8 = vmax.f32 %v647_v13, %v648_v22  ;;  %v656_v24 = vmax.f32 %v654_v16, %v655_v55  ;;  %v662_v25 = vrot.slane %v661_v9, 1  ;;  %v1642_v18 = vld [vmem:[#allocation4] sm:$0xff] }
 0x191   : > { %v1426_v13 = vld [vmem:[%s2025_s4] ss:$0 sm:$0xff] }
 0x192   : > { %v663_v26 = vmax.f32 %v661_v9, %v662_v25  ;;  %v748_v15 = vsel %vm747_vm15, %v649_v8, %v746_v23  ;;  %1480 = vmatpush3.bf16.msra.mxu0 %v1626_v60 }
 0x193   : > { %v750_v27 = vsel %vm749_vm0, %v656_v24, %v748_v15  ;;  %v766_v29 = vld [vmem:[#allocation3 + $0x10] sm:$0x3]  ;;  %1481 = vmatprep.subr.bf16.mxu0 %v1627_v61 }
 0x194   : > { %v752_v10 = vsel %vm751_vm1, %v663_v26, %v750_v27  ;;  %v773_v32 = vrot.slane %v766_v29, 1  ;;  %v784_v33 = vrot.slane %v766_v29, 2 }
 0x195   : > { %762 = vst.msk [vmem:[#allocation3 + $0x1] sm:$0xff] %vm405_vm6, %v752_v10 }
 0x196   : > { %1482 = vmatpush3.bf16.msra.mxu0 %v1629_v63 }
 0x197   : > { %1483 = vmatprep.subr.bf16.mxu0 %v1630_v1 }
 0x19a   : > { %1484 = vmatpush3.bf16.msra.mxu0 %v1632_v3 }
 0x19b   : > { %1485 = vmatprep.subr.bf16.mxu0 %v1633_v4 }
 0x19c   : > { %v764_v30 = vld [vmem:[#allocation3] sm:$0xff]  ;;  %v765_v31 = vld [vmem:[#allocation3 + $0x8] sm:$0xff] }
 0x19d   : > { %v781_v34 = vrot.slane %v764_v30, 2  ;;  %v782_v35 = vrot.slane %v765_v31, 2  ;;  %v770_v36 = vrot.slane %v764_v30, 1  ;;  %v771_v37 = vrot.slane %v765_v31, 1 }
 0x19e   : > { %1486 = vmatpush3.bf16.msra.mxu0 %v1635_v6 }
 0x19f   : > { %v783_v38 = vsel %vm325_vm2, %v781_v34, %v782_v35  ;;  %v785_v39 = vsel %vm325_vm2, %v782_v35, %v784_v33  ;;  %v772_v40 = vsel %vm303_vm3, %v770_v36, %v771_v37  ;;  %v774_v41 = vsel %vm303_vm3, %v771_v37, %v773_v32  ;;  %1487 = vmatprep.subr.bf16.mxu0 %v1636_v7 }
 0x1a0   : > { %v791_v42 = vpack.c.bf16 %v785_v39, %v783_v38  ;;  %v1596_v43 = vpack.i.bf16 %v774_v41, %v772_v40 }
 0x1a2   : > { %1439 = vmatprep.mubr.msk.bf16.mxu1 %vm405_vm6, %v791_v42  ;;  %1597 = vrot.lane.b32.xlu0 %v1596_v43, %s1655_s20 }
 0x1a3   : > { %1488 = vmatpush3.bf16.msra.mxu0 %v1638_v12 }
 0x1a4   : > { %1489 = vmatprep.subr.bf16.mxu0 %v1639_v14 }
 0x214   : > { %v1598_v44 = vpop.permute.xlu0 %1597 }
 0x215   : > { %v1600_v45 = vunpack.i.h.bf16 %v1598_v44  ;;  %v1599_v46 = vunpack.i.l.bf16 %v1598_v44 }
 0x217   : > { %v788_v47 = vsel %vm405_vm6, %v764_v30, %v1599_v46  ;;  %v789_v48 = vsel %vm405_vm6, %v765_v31, %v1600_v45 }
 0x218   : > { %v790_v49 = vpack.c.bf16 %v789_v48, %v788_v47 }
 0x21a   : > { %931 = vmatmul.mubr.bf16.vlgmr.msra.gmra.mxu1 %v790_v49 }
 0x21b   : > { %1521 = vmatpush3.bf16.msra.mxu1 %v1619_v51  ;;  %1536 = vmatprep.mubr.msk.bf16.mxu1 %vm1658_vm4, %v1651_v0 }
 0x21c   : > { %1522 = vmatprep.subr.bf16.mxu1 %v1651_v0 }
 0x21f   : > { %1523 = vmatpush3.bf16.msra.mxu1 %v1622_v54 }
 0x220   : > { %1524 = vmatprep.subr.bf16.mxu1 %v1651_v0 }
 0x223   : > { %1525 = vmatpush3.bf16.msra.mxu1 %v1625_v59 }
 0x224   : > { %1526 = vmatprep.subr.bf16.mxu1 %v1651_v0 }
 0x227   : > { %1527 = vmatpush3.bf16.msra.mxu1 %v1628_v62 }
 0x228   : > { %1528 = vmatprep.subr.bf16.mxu1 %v1651_v0 }
 0x22b   : > { %1529 = vmatpush3.bf16.msra.mxu1 %v1631_v2 }
 0x22c   : > { %1530 = vmatprep.subr.bf16.mxu1 %v1651_v0 }
 0x22f   : > { %1531 = vmatpush3.bf16.msra.mxu1 %v1634_v5 }
 0x230   : > { %1532 = vmatprep.subr.bf16.mxu1 %v1651_v0  ;;  %v1641_v0 = vld [vmem:[%s2026_s5] sm:$0xff]  }
 0x231   : > { %1490 = vmatpush3.bf16.msra.mxu0 %v1641_v0 }
 0x233   : > { %1533 = vmatpush3.bf16.msra.mxu1 %v1637_v11 }
 0x234   : > { %1534 = vmatprep.subr.bf16.mxu1 %v1642_v18 }
 0x237   : > { %1535 = vmatpush3.bf16.msra.mxu1 %v1640_v17 }
 0x2da   : > { %v932_v16 = vpop.f32.mrf.mxu1 }
 0x2db   : > { %v933_v19 = vadd.f32 %v1426_v13, %v932_v16 }
 0x2dc   : > { %v934_v20 = vpop.f32.mrf.mxu1 }
 0x2dd   : > { %v939_v21 = vmax.f32 %v933_v19, 0.0 }
 0x2de   : > { %v935_v22 = vpop.f32.mrf.mxu1 }
 0x2df   : > { %v943_v55 = vcombine.high %v939_v21, %v939_v21  ;;  %v950_v9 = vrot.slane %v939_v21, %v1850_v58  ;;  %v936_v23 = vadd.f32 %v1426_v13, %v935_v22 }
 0x2e0   : > { %v937_v8 = vpop.f32.mrf.mxu1 }
 0x2e1   : > { %v957_v24 = vrot.slane %v943_v55, %v1850_v58  ;;  %v958_v25 = vcombine.high %v950_v9, %v950_v9  ;;  %v986_v26 = vsel %vm985_vm5, %v950_v9, -inf  ;;  %v940_v15 = vmax.f32 %v936_v23, 0.0 }
 0x2e2   : > { %v987_v27 = vrot.slane %v986_v26, 4 }
 0x2e3   : > { %v959_v10 = vcombine.high %v957_v24, %v957_v24  ;;  %v993_v28 = vsel %vm985_vm5, %v958_v25, -inf  ;;  %v1000_v29 = vsel %vm985_vm5, %v957_v24, -inf  ;;  %v960_v30 = vcombine.high %v940_v15, %v940_v15 }
 0x2e4   : > { %v988_v31 = vmax.f32 %v986_v26, %v987_v27  ;;  %v994_v32 = vrot.slane %v993_v28, 4  ;;  %v1001_v33 = vrot.slane %v1000_v29, 4  ;;  %v967_v34 = vrot.slane %v940_v15, %v1850_v58 }
 0x2e5   : > { %v1007_v35 = vsel %vm985_vm5, %v959_v10, -inf  ;;  %v974_v36 = vrot.slane %v960_v30, %v1850_v58 }
 0x2e6   : > { %v989_v37 = vrot.slane %v988_v31, 2  ;;  %v995_v38 = vmax.f32 %v993_v28, %v994_v32  ;;  %v1002_v39 = vmax.f32 %v1000_v29, %v1001_v33  ;;  %v1008_v40 = vrot.slane %v1007_v35, 4 }
 0x2e7   : > { %v975_v41 = vcombine.high %v967_v34, %v967_v34  ;;  %v976_v42 = vcombine.high %v974_v36, %v974_v36  ;;  %v1014_v43 = vsel %vm985_vm5, %v967_v34, -inf  ;;  %v1028_v44 = vsel %vm985_vm5, %v974_v36, -inf }
 0x2e8   : > { %v990_v45 = vmax.f32 %v988_v31, %v989_v37  ;;  %v996_v46 = vrot.slane %v995_v38, 2  ;;  %v1003_v47 = vrot.slane %v1002_v39, 2  ;;  %v1009_v48 = vmax.f32 %v1007_v35, %v1008_v40 }
 0x2e9   : > { %v1015_v49 = vrot.slane %v1014_v43, 4  ;;  %v1021_v50 = vsel %vm985_vm5, %v975_v41, -inf  ;;  %v1029_v51 = vrot.slane %v1028_v44, 4  ;;  %v1035_v58 = vsel %vm985_vm5, %v976_v42, -inf }
 0x2ea   : > { %v991_v52 = vrot.slane %v990_v45, 1  ;;  %v997_v53 = vmax.f32 %v995_v38, %v996_v46  ;;  %v1004_v54 = vmax.f32 %v1002_v39, %v1003_v47  ;;  %v1010_v56 = vrot.slane %v1009_v48, 2 }
 0x2eb   : > { %v1016_v57 = vmax.f32 %v1014_v43, %v1015_v49  ;;  %v1022_v59 = vrot.slane %v1021_v50, 4  ;;  %v1030_v60 = vmax.f32 %v1028_v44, %v1029_v51  ;;  %v1036_v61 = vrot.slane %v1035_v58, 4  ;;  %v1440_v44 = vld [vmem:[%s2027_s6] ss:$0 sm:$0xff] }
 0x2ec   : > { %v998_v62 = vrot.slane %v997_v53, 1  ;;  %v1005_v63 = vrot.slane %v1004_v54, 1  ;;  %v1011_v1 = vmax.f32 %v1009_v48, %v1010_v56  ;;  %v992_v6 = vmax.f32 %v990_v45, %v991_v52 }
 0x2ed   : > { %v1017_v2 = vrot.slane %v1016_v57, 2  ;;  %v1023_v3 = vmax.f32 %v1021_v50, %v1022_v59  ;;  %v1031_v4 = vrot.slane %v1030_v60, 2  ;;  %v1037_v5 = vmax.f32 %v1035_v58, %v1036_v61 }
 0x2ee   : > { %v999_v7 = vmax.f32 %v997_v53, %v998_v62  ;;  %v1006_v11 = vmax.f32 %v1004_v54, %v1005_v63  ;;  %v1012_v12 = vrot.slane %v1011_v1, 1 }
 0x2ef   : > { %v1018_v14 = vmax.f32 %v1016_v57, %v1017_v2  ;;  %v1024_v17 = vrot.slane %v1023_v3, 2  ;;  %v1032_v18 = vmax.f32 %v1030_v60, %v1031_v4  ;;  %v1038_v0 = vrot.slane %v1037_v5, 2 }
 0x2f0   : > { %v1013_v13 = vmax.f32 %v1011_v1, %v1012_v12  ;;  %v1052_v16 = vsel %vm739_vm11, %v999_v7, %v992_v6 }
 0x2f1   : > { %v1053_v19 = vsel %vm741_vm12, %v1006_v11, %v1052_v16  ;;  %v1019_v20 = vrot.slane %v1018_v14, 1  ;;  %v1025_v21 = vmax.f32 %v1023_v3, %v1024_v17  ;;  %v1033_v22 = vrot.slane %v1032_v18, 1 }
 0x2f2   : > { %v1039_v55 = vmax.f32 %v1037_v5, %v1038_v0  ;;  %v1054_v9 = vsel %vm743_vm13, %v1013_v13, %v1053_v19 }
 0x2f3   : > { %v1020_v23 = vmax.f32 %v1018_v14, %v1019_v20  ;;  %v1026_v8 = vrot.slane %v1025_v21, 1  ;;  %v1034_v24 = vmax.f32 %v1032_v18, %v1033_v22 }
 0x2f4   : > { %v1040_v25 = vrot.slane %v1039_v55, 1 }
 0x2f5   : > { %v1027_v26 = vmax.f32 %v1025_v21, %v1026_v8  ;;  %v1055_v15 = vsel %vm745_vm14, %v1020_v23, %v1054_v9 }
 0x2f6   : > { %v1041_v27 = vmax.f32 %v1039_v55, %v1040_v25 }
 0x2f7   : > { %v1056_v10 = vsel %vm747_vm15, %v1027_v26, %v1055_v15 }
 0x2f8   : > { %v1057_v28 = vsel %vm749_vm0, %v1034_v24, %v1056_v10 }
 0x2f9   : > { %v1058_v29 = vsel %vm751_vm1, %v1041_v27, %v1057_v28 }
 0x2fa   : > { %1060 = vst [vmem:[#allocation4 + $0x1] sm:$0xff] %v1058_v29 }
 0x301   : > { %v1061_v30 = vld [vmem:[#allocation4] sm:$0xff]  ;;  %v1062_v31 = vld [vmem:[#allocation4 + $0x8] sm:$0x3] }
 0x302   : > { %v1065_v32 = vrot.slane %v1061_v30, 1  ;;  %v1066_v33 = vrot.slane %v1062_v31, 1  ;;  %v1070_v34 = vrot.slane %v1062_v31, 2  ;;  %v1069_v35 = vrot.slane %v1061_v30, 2 }
 0x303   : > { %v1073_v40 = vpack.c.bf16 %v1061_v30, %v1061_v30 }
 0x304   : > { %v1067_v36 = vsel %vm303_vm3, %v1065_v32, %v1066_v33  ;;  %v1071_v37 = vsel %vm325_vm2, %v1069_v35, %v1070_v34 }
 0x305   : > { %v1074_v38 = vpack.c.bf16 %v1067_v36, %v1067_v36  ;;  %v1075_v39 = vpack.c.bf16 %v1071_v37, %v1071_v37 }
 0x307   : > { %1307 = vmatprep.mubr.bf16.mxu0 %v1074_v38  ;;  %1537 = vmatmul.mubr.bf16.vlgmr.msra.gmra.mxu1 %v1075_v39 }
 0x308   : > { %1308 = vmatmul.mubr.bf16.vlgmr.msra.gmra.mxu0 %v1073_v40 }
 0x3c7   : > { %v1349_v41 = vpop.f32.mrf.mxu1 }
 0x3c8   : > { %v1491_v42 = vpop.f32.mrf.mxu0 }
 0x3c9   : > { %v1538_v43 = vpop.f32.mrf.mxu1 }
 0x3ca   : > { %v1492_v45 = vpop.f32.mrf.mxu0 }
 0x3cb   : > { %v1493_v46 = vadd.f32 %v1492_v45, %v1491_v42  ;;  %v1352_v47 = vpop.f32.mrf.mxu1 }
 0x3cc   : > { %v1494_v48 = vpop.f32.mrf.mxu0 }
 0x3cd   : > { %v1310_v49 = vadd.f32 %v1493_v46, %v1440_v44  ;;  %v1539_v50 = vpop.f32.mrf.mxu1 }
 0x3ce   : > { %v1495_v51 = vpop.f32.mrf.mxu0 }
 0x3cf   : > { %v1350_v58 = vadd.f32 %v1349_v41, %v1310_v49 }
 0x3d1   : > { %v1355_v52 = vmax.f32 %v1350_v58, 0.0 }
 0x3d3   : > { %1356 = vst.msk [vmem:[%s276_s18] sm:$0xff] %vm395_vm7, %v1355_v52 }
 0x3d4 PF: > { %s17_s24 = sadd.s32 1, %s1649_s24  }
 0x3d5   : > { %p14_p4 = scmp.ge.s32.totalorder %s17_s24, 4  }
 0x3d7   :  { %16 = sbr.rel (!%p14_p4) target bundleno = 1 (0x1), region = 78 }

// kernel: forward.5
= control target key start
LH: loop header
LB: loop body
LE: loop exit
PB: predicated region body
PF: predicated region fallthrough
CT: control target
= control target key end

     0   :  { %s1663_s15 = smov 0   ;;  %s2078_s0 = inlined_call_operand.vmem [shape: f32[2,8,32], index: 0, kind: input, shape index: {}]   ;;  %s2079_s1 = inlined_call_operand.vmem [shape: bf16[32,256], index: 1, kind: input, shape index: {}]   ;;  %s2080_s2 = inlined_call_operand.vmem [shape: f32[1,256], index: 2, kind: input, shape index: {}]   ;;  %s2081_s3 = inlined_call_operand.vmem [shape: bf16[64,256], index: 3, kind: input, shape index: {}]   ;;  %s2082_s4 = inlined_call_operand.vmem [shape: f32[2,8,64], index: 4, kind: output, shape index: {}]  }
   0x1 LB: > { %s1425_s16 = sadd.s32 4294967295, %s1633_s15   ;;  %p1429_p0 = scmp.ge.s32.totalorder %s1633_s15, 1  ;;  %s1633_s15 = sphi %s1663_s15, %s14_s15  }
   0x2   : > { %p161_p1 = scmp.lt.s32.totalorder %s1633_s15, 3 }
   0x4   : > { %p162_p2 = pnand %p1429_p0, %p161_p1 }
   0x5   : > { %p185_p3 = scmp.lt.s32.totalorder (!%p162_p2), %s1425_s16, 1  ;;  %s1636_s23 = smov (!%p162_p2), 64  }
   0x6   : > { %165 = sbr.rel (%p162_p2) target bundleno = 5630 (0x15fe), region = 36  ;;  %s1637_s24 = smov (!%p162_p2), 32  }
   0xb   : > { %v1674_v0 = vld [vmem:[%s2081_s3 + $0x34] ss:$8 sps:$4 sm:$0xff]   ;;  %v1679_v1 = vld [vmem:[%s2081_s3 + $0x30] ss:$8 sps:$4 sm:$0xff]   ;;  %v1635_v2 = vmov 0   ;;  %s2084_s16 = smov (!%p185_p3, %s1425_s16), 1  ;;  %v202_v15 = vlaneseq }
   0xc   : > { %268 = vmatprep.mubr.bf16.mxu0 %v1635_v2  ;;  %363 = vmatprep.mubr.bf16.mxu1 %v1635_v2  ;;  %v1484_v3 = vld [vmem:[%s2079_s1 + $0x14] ss:$8 sps:$4 sm:$0xff]   ;;  %v1486_v4 = vld [vmem:[%s2079_s1 + $0x10] ss:$8 sps:$4 sm:$0xff]   ;;  %v1696_v5 = vld [vmem:[%s2081_s3 + $0x24] ss:$8 sps:$4 sm:$0xff]  }
   0xd   : > { %339 = vmatprep.subr.bf16.mxu1 %v1674_v0  ;;  %v1701_v6 = vld [vmem:[%s2081_s3 + $0x20] ss:$8 sps:$4 sm:$0xff]   ;;  %248 = vmatprep.subr.bf16.mxu0 %v1484_v3  ;;  %v1490_v7 = vld [vmem:[%s2079_s1 + $0x4] ss:$8 sps:$4 sm:$0xff]   ;;  %s1430_s5 = sshll.u32 %s2084_s16, 3  ;;  %vm232_vm0 = vcmask 261120  }
   0xe   : > { %340 = vmatpush1.bf16.msra.mxu1 %v1679_v1  ;;  %249 = vmatpush1.bf16.msra.mxu0 %v1486_v4  ;;  %v1492_v8 = vld [vmem:[%s2079_s1] ss:$8 sps:$4 sm:$0xff]   ;;  %s188_s10 = scalar_lea.vmem %s2078_s0, %s1430_s5  ;;  %v1719_v9 = vld [vmem:[%s2081_s3 + $0x14] ss:$8 sps:$4 sm:$0xff]   ;;  %v1725_v11 = vld [vmem:[%s2081_s3 + $0x10] ss:$8 sps:$4 sm:$0xff]   ;;  %s192_s27 = scalar_lea.vmem %s2082_s4, %s1430_s5 }
   0xf   : > { %341 = vmatprep.subr.bf16.mxu1 %v1696_v5  ;;  %250 = vmatprep.subr.bf16.mxu0 %v1490_v7  ;;  %v194_v10 = vld [vmem:[%s188_s10] sm:$0xff]  ;;  %v1763_v16 = vshrl.u32 %v202_v15, 7  ;;  %vm327_vm1 = vcmask 523264  }
  0x10   : > { %v195_v12 = vpack.c.bf16 %v194_v10, %v194_v10  ;;  %v1731_v13 = vld [vmem:[%s2081_s3 + $0x4] ss:$8 sps:$4 sm:$0xff]   ;;  %v1738_v14 = vld [vmem:[%s2081_s3] ss:$8 sps:$4 sm:$0xff]  }
  0x11   : > { %v1766_v18 = vsub.s32 0, %v1763_v16  ;;  %v1769_v19 = vsub.s32 1, %v1763_v16  ;;  %v200_v20 = vld [vmem:[%s2080_s2] sm:$0x3]  ;;  %vm425_vm2 = vcmp.eq.s32.totalorder %v1763_v16, 0  ;;  %vm558_vm3 = vcmp.eq.s32.totalorder %v1763_v16, 1 }
  0x12   : > { %342 = vmatpush1.bf16.msra.mxu1 %v1701_v6  ;;  %251 = vmatpush1.bf16.msra.mxu0 %v1492_v8  ;;  %vm433_vm4 = vcmp.eq.s32.totalorder %v1763_v16, 7  ;;  %vm566_vm5 = vcmp.eq.s32.totalorder %v1763_v16, 6  ;;  %vm694_vm6 = vcmp.eq.s32.totalorder %v1763_v16, 2  ;;  %vm702_vm7 = vcmp.eq.s32.totalorder %v1763_v16, 5 }
  0x13   : > { %343 = vmatprep.subr.bf16.mxu1 %v1719_v9  ;;  %463 = vmatprep.subr.bf16.mxu0 %v1674_v0  ;;  %v205_v23 = vrot.slane %v200_v20, %v1766_v18  ;;  %v209_v24 = vrot.slane %v200_v20, %v1769_v19  ;;  %vm829_vm8 = vcmp.eq.s32.totalorder %v1763_v16, 3  ;;  %vm837_vm9 = vcmp.eq.s32.totalorder %v1763_v16, 4 }
  0x15   : > { %1436 = vmatmul.mubr.msk.bf16.vlgmr.msra.gmra.mxu0 %vm232_vm0, %v195_v12 }
  0x16   : > { %344 = vmatpush1.bf16.msra.mxu1 %v1725_v11  ;;  %464 = vmatpush1.bf16.msra.mxu0 %v1679_v1 }
  0x17   : > { %345 = vmatprep.subr.bf16.mxu1 %v1731_v13  ;;  %487 = vmatprep.mubr.bf16.mxu0 %v1635_v2 }
  0x18   : > { %465 = vmatprep.subr.bf16.mxu0 %v1696_v5 }
  0x1a   : > { %346 = vmatpush1.bf16.msra.mxu1 %v1738_v14  ;;  %466 = vmatpush1.bf16.msra.mxu0 %v1701_v6 }
  0x1b   : > { %599 = vmatprep.subr.bf16.mxu1 %v1674_v0  ;;  %467 = vmatprep.subr.bf16.mxu0 %v1719_v9 }
  0x1d   : > { %364 = vmatmul.mubr.bf16.vlgmr.msra.gmra.mxu1 %v1635_v2 }
  0x1e   : > { %600 = vmatpush1.bf16.msra.mxu1 %v1679_v1  ;;  %623 = vmatprep.mubr.bf16.mxu1 %v1635_v2 }
  0x1f   : > { %601 = vmatprep.subr.bf16.mxu1 %v1696_v5  ;;  %468 = vmatpush1.bf16.msra.mxu0 %v1725_v11 }
  0x20   : > { %469 = vmatprep.subr.bf16.mxu0 %v1731_v13 }
  0x22   : > { %602 = vmatpush1.bf16.msra.mxu1 %v1701_v6 }
  0x23   : > { %603 = vmatprep.subr.bf16.mxu1 %v1719_v9  ;;  %470 = vmatpush1.bf16.msra.mxu0 %v1738_v14 }
  0x24   : > { %734 = vmatprep.subr.bf16.mxu0 %v1674_v0 }
  0x26   : > { %604 = vmatpush1.bf16.msra.mxu1 %v1725_v11 }
  0x27   : > { %605 = vmatprep.subr.bf16.mxu1 %v1731_v13 }
  0x2a   : > { %606 = vmatpush1.bf16.msra.mxu1 %v1738_v14 }
  0x2b   : > { %871 = vmatprep.subr.bf16.mxu1 %v1674_v0 }
  0xd5   : > { %v270_v17 = vpop.f32.mrf.mxu0 }
  0xd6   : > { %v1776_v28 = vadd.f32 %v270_v17, %v205_v23 }
  0xd7   : > { %v272_v21 = vpop.f32.mrf.mxu0 }
  0xd8   : > { %v1778_v29 = vadd.f32 %v272_v21, %v209_v24 }
  0xd9   : > { %v274_v22 = vpop.f32.mrf.mxu0 }
  0xdb   : > { %v275_v25 = vpop.f32.mrf.mxu0 }
  0xdd   : > { %v365_v26 = vpop.f32.mrf.mxu1 }
  0xde   : > { %v372_v34 = vadd.f32 %v365_v26, %v1776_v28 }
  0xdf   : > { %v367_v27 = vpop.f32.mrf.mxu1 }
  0xe0   : > { %v374_v30 = vrot.slane %v367_v27, 1  ;;  %v1445_v38 = vmul.f32 -1.442695, %v372_v34 }
  0xe1   : > { %v369_v31 = vpop.f32.mrf.mxu1 }
  0xe2   : > { %v376_v32 = vadd.f32 %v374_v30, %v1778_v29 }
  0xe3   : > { %v370_v33 = vpop.f32.mrf.mxu1 }
  0xe4   : > { %1499 = vtanh.f32 %v376_v32  ;;  %v1446_v37 = vmul.f32 -1.442695, %v376_v32 }
  0xe5   : > { %1501 = vtanh.f32 %v372_v34 }
  0xe6   : > { %1503 = vpow2.f32 %v1446_v37 }
  0xe7   : > { %1505 = vpow2.f32 %v1445_v38 }
  0xf1   : > { %v1500_v35 = vpop.eup %1499 }
  0xf2   : > { %410 = vrot.lane.b32.xlu0 %v1500_v35, %s1636_s23  ;;  %v1502_v36 = vpop.eup %1501 }
  0xf3   : > { %v1504_v39 = vpop.eup %1503 }
  0xf4   : > { %v404_v40 = vadd.f32 1.0, %v1504_v39  ;;  %v1506_v41 = vpop.eup %1505 }
  0xf5   : > { %v380_v42 = vadd.f32 1.0, %v1506_v41 }
  0xf6   : > { %386 = vrot.lane.b32.xlu0 %v1502_v36, %s1636_s23  ;;  %1507 = vrcp.f32 %v404_v40 }
  0xf7   : > { %1509 = vrcp.f32 %v380_v42 }
 0x103   : > { %v1508_v43 = vpop.eup %1507 }
 0x104   : > { %v1510_v46 = vpop.eup %1509  ;;  %v408_v49 = vmul.f32 0.0, %v1508_v43 }
 0x105   : > { %v384_v52 = vmul.f32 0.0, %v1510_v46 }
 0x164   : > { %v411_v44 = vpop.permute.xlu0 %410 }
 0x165   : > { %v413_v45 = vmul.f32 %v1508_v43, %v411_v44 }
 0x167   : > { %415 = vrot.lane.b32.xlu1 %v413_v45, %s1637_s24 }
 0x168   : > { %v387_v47 = vpop.permute.xlu0 %386 }
 0x169   : > { %v389_v48 = vmul.f32 %v1510_v46, %v387_v47 }
 0x16b   : > { %391 = vrot.lane.b32.xlu1 %v389_v48, %s1637_s24  ;;  %v438_v48 = vsub.s32 7, %v1763_v16 }
 0x1d9   : > { %v416_v50 = vpop.permute.xlu1 %415 }
 0x1da   : > { %v1786_v51 = vadd.f32 %v416_v50, %v408_v49 }
 0x1dc   : > { %1511 = vtanh.f32 %v1786_v51  ;;  %v539_v40 = vrot.slane %v1786_v51, 1 }
 0x1dd   : > { %v392_v53 = vpop.permute.xlu1 %391 }
 0x1de   : > { %v394_v54 = vadd.f32 %v392_v53, %v384_v52  ;;  %v571_v52 = vsub.s32 6, %v1763_v16 }
 0x1e0   : > { %1513 = vtanh.f32 %v394_v54  ;;  %v512_v38 = vrot.slane %v394_v54, 7 }
 0x1e9   : > { %v1512_v55 = vpop.eup %1511 }
 0x1ea   : > { %421 = vrot.lane.b32.xlu0 %v1512_v55, %s1636_s23 }
 0x1ed   : > { %v1514_v56 = vpop.eup %1513 }
 0x1ee   : > { %397 = vrot.lane.b32.xlu1 %v1514_v56, %s1636_s23 }
 0x25c   : > { %v422_v57 = vpop.permute.xlu0 %421 }
 0x25d   : > { %v1791_v58 = vmul.f32 %v1508_v43, %v422_v57 }
 0x25f   : > { %v446_v59 = vrot.slane %v1791_v58, 7  ;;  %v439_v53 = vrot.slane %v1791_v58, %v438_v48 }
 0x260   : > { %v398_v60 = vpop.permute.xlu1 %397 }
 0x261   : > { %v1794_v61 = vmul.f32 %v1510_v46, %v398_v60  ;;  %447 = vrot.lane.b32.xlu1 %v446_v59, %s1636_s23 }
 0x263   : > { %442 = vrot.lane.b32.xlu0 %v1794_v61, %s1637_s24  ;;  %v431_v49 = vrot.slane %v1794_v61, %v1766_v18  ;;  %v440_v61 = vsel %vm433_vm4, %v439_v53, 0.0 }
 0x265   : > { %v432_v56 = vsel %vm425_vm2, %v431_v49, 0.0 }
 0x2d3   : > { %v448_v62 = vpop.permute.xlu1 %447 }
 0x2d5   : > { %v443_v63 = vpop.permute.xlu0 %442 }
 0x2d6   : > { %v450_v3 = vsel %vm232_vm0, %v443_v63, %v448_v62 }
 0x2d7   : > { %v451_v4 = vpack.c.bf16 %v450_v3, %v450_v3 }
 0x2d9   : > { %1447 = vmatmul.mubr.msk.bf16.vlgmr.msra.gmra.mxu0 %vm327_vm1, %v451_v4 }
 0x2da   : > { %735 = vmatpush1.bf16.msra.mxu0 %v1679_v1  ;;  %758 = vmatprep.mubr.bf16.mxu0 %v1635_v2 }
 0x2db   : > { %736 = vmatprep.subr.bf16.mxu0 %v1696_v5 }
 0x2de   : > { %737 = vmatpush1.bf16.msra.mxu0 %v1701_v6 }
 0x2df   : > { %738 = vmatprep.subr.bf16.mxu0 %v1719_v9 }
 0x2e2   : > { %739 = vmatpush1.bf16.msra.mxu0 %v1725_v11 }
 0x2e3   : > { %740 = vmatprep.subr.bf16.mxu0 %v1731_v13 }
 0x2e6   : > { %741 = vmatpush1.bf16.msra.mxu0 %v1738_v14 }
 0x2e7   : > { %1000 = vmatprep.subr.bf16.mxu0 %v1674_v0 }
 0x399   : > { %v489_v7 = vpop.f32.mrf.mxu0 }
 0x39a   : > { %v497_v8 = vrot.slane %v489_v7, 7 }
 0x39b   : > { %v491_v10 = vpop.f32.mrf.mxu0 }
 0x39c   : > { %v499_v12 = vadd.f32 %v497_v8, %v1776_v28  ;;  %v501_v15 = vrot.slane %v491_v10, 2 }
 0x39d   : > { %v493_v17 = vpop.f32.mrf.mxu0 }
 0x39e   : > { %1515 = vtanh.f32 %v499_v12  ;;  %v503_v20 = vadd.f32 %v501_v15, %v1778_v29  ;;  %v1448_v24 = vmul.f32 -1.442695, %v499_v12 }
 0x39f   : > { %v494_v21 = vpop.f32.mrf.mxu0 }
 0x3a0   : > { %1517 = vtanh.f32 %v503_v20  ;;  %v1449_v25 = vmul.f32 -1.442695, %v503_v20 }
 0x3a1   : > { %1519 = vpow2.f32 %v1448_v24 }
 0x3a2   : > { %1521 = vpow2.f32 %v1449_v25 }
 0x3ab   : > { %v1516_v22 = vpop.eup %1515 }
 0x3ac   : > { %516 = vrot.lane.b32.xlu1 %v1516_v22, %s1636_s23 }
 0x3ad   : > { %v1518_v23 = vpop.eup %1517 }
 0x3ae   : > { %543 = vrot.lane.b32.xlu0 %v1518_v23, %s1636_s23  ;;  %v1520_v26 = vpop.eup %1519 }
 0x3af   : > { %v1522_v27 = vpop.eup %1521  ;;  %v507_v30 = vadd.f32 1.0, %v1520_v26 }
 0x3b0   : > { %v534_v31 = vadd.f32 1.0, %v1522_v27 }
 0x3b1   : > { %1523 = vrcp.f32 %v507_v30 }
 0x3b2   : > { %1525 = vrcp.f32 %v534_v31 }
 0x3be   : > { %v1524_v32 = vpop.eup %1523 }
 0x3bf   : > { %v1526_v35 = vpop.eup %1525  ;;  %v514_v39 = vmul.f32 %v1524_v32, %v512_v38 }
 0x3c0   : > { %v541_v43 = vmul.f32 %v1526_v35, %v539_v40 }
 0x41e   : > { %v517_v33 = vpop.permute.xlu1 %516 }
 0x41f   : > { %v519_v34 = vmul.f32 %v1524_v32, %v517_v33 }
 0x420   : > { %v544_v36 = vpop.permute.xlu0 %543 }
 0x421   : > { %521 = vrot.lane.b32.xlu1 %v519_v34, %s1637_s24  ;;  %v546_v37 = vmul.f32 %v1526_v35, %v544_v36 }
 0x423   : > { %548 = vrot.lane.b32.xlu0 %v546_v37, %s1637_s24 }
 0x493   : > { %v522_v41 = vpop.permute.xlu1 %521 }
 0x494   : > { %v1817_v42 = vadd.f32 %v522_v41, %v514_v39 }
 0x495   : > { %v549_v44 = vpop.permute.xlu0 %548 }
 0x496   : > { %1527 = vtanh.f32 %v1817_v42  ;;  %v1820_v45 = vadd.f32 %v549_v44, %v541_v43  ;;  %v648_v40 = vrot.slane %v1817_v42, 7  ;;  %v699_v42 = vsub.s32 2, %v1763_v16 }
 0x498   : > { %1529 = vtanh.f32 %v1820_v45  ;;  %v675_v43 = vrot.slane %v1820_v45, 1 }
 0x4a3   : > { %v1528_v46 = vpop.eup %1527 }
 0x4a4   : > { %527 = vrot.lane.b32.xlu1 %v1528_v46, %s1636_s23 }
 0x4a5   : > { %v1530_v47 = vpop.eup %1529 }
 0x4a6   : > { %554 = vrot.lane.b32.xlu0 %v1530_v47, %s1636_s23 }
 0x516   : > { %v528_v50 = vpop.permute.xlu1 %527 }
 0x517   : > { %v530_v51 = vmul.f32 %v1524_v32, %v528_v50 }
 0x518   : > { %v555_v55 = vpop.permute.xlu0 %554 }
 0x519   : > { %v564_v54 = vrot.slane %v530_v51, %v1769_v19  ;;  %575 = vrot.lane.b32.xlu0 %v530_v51, %s1637_s24  ;;  %v557_v57 = vmul.f32 %v1526_v35, %v555_v55  ;;  %v707_v55 = vsub.s32 5, %v1763_v16 }
 0x51b   : > { %v1841_v59 = vsel %vm558_vm3, %v564_v54, %v432_v56  ;;  %v572_v58 = vrot.slane %v557_v57, %v571_v52  ;;  %v579_v60 = vrot.slane %v557_v57, 5 }
 0x51d   : > { %580 = vrot.lane.b32.xlu1 %v579_v60, %s1636_s23  ;;  %v1851_v62 = vsel %vm566_vm5, %v572_v58, %v440_v61 }
 0x58b   : > { %v576_v63 = vpop.permute.xlu0 %575 }
 0x58f   : > { %v581_v3 = vpop.permute.xlu1 %580 }
 0x590   : > { %v583_v4 = vsel %vm232_vm0, %v576_v63, %v581_v3 }
 0x591   : > { %v584_v7 = vpack.c.bf16 %v583_v4, %v583_v4 }
 0x593   : > { %v586_v8 = vshrl.u32 %v584_v7, 16 }
 0x595   : > { %1450 = vmatmul.mubr.msk.bf16.vlgmr.msra.gmra.mxu1 %vm327_vm1, %v586_v8 }
 0x596   : > { %872 = vmatpush1.bf16.msra.mxu1 %v1679_v1  ;;  %895 = vmatprep.mubr.bf16.mxu1 %v1635_v2 }
 0x597   : > { %873 = vmatprep.subr.bf16.mxu1 %v1696_v5 }
 0x59a   : > { %874 = vmatpush1.bf16.msra.mxu1 %v1701_v6 }
 0x59b   : > { %875 = vmatprep.subr.bf16.mxu1 %v1719_v9 }
 0x59e   : > { %876 = vmatpush1.bf16.msra.mxu1 %v1725_v11 }
 0x59f   : > { %877 = vmatprep.subr.bf16.mxu1 %v1731_v13 }
 0x5a2   : > { %878 = vmatpush1.bf16.msra.mxu1 %v1738_v14 }
 0x5a3   : > { %1131 = vmatprep.subr.bf16.mxu1 %v1674_v0 }
 0x655   : > { %v625_v10 = vpop.f32.mrf.mxu1 }
 0x656   : > { %v633_v12 = vrot.slane %v625_v10, 6 }
 0x657   : > { %v627_v15 = vpop.f32.mrf.mxu1 }
 0x658   : > { %v635_v17 = vadd.f32 %v633_v12, %v1776_v28  ;;  %v637_v20 = vrot.slane %v627_v15, 3 }
 0x659   : > { %v629_v21 = vpop.f32.mrf.mxu1 }
 0x65a   : > { %1531 = vtanh.f32 %v635_v17  ;;  %v639_v22 = vadd.f32 %v637_v20, %v1778_v29  ;;  %v1451_v26 = vmul.f32 -1.442695, %v635_v17 }
 0x65b   : > { %v630_v23 = vpop.f32.mrf.mxu1 }
 0x65c   : > { %1533 = vtanh.f32 %v639_v22  ;;  %v1452_v27 = vmul.f32 -1.442695, %v639_v22 }
 0x65d   : > { %1535 = vpow2.f32 %v1451_v26 }
 0x65e   : > { %1537 = vpow2.f32 %v1452_v27 }
 0x667   : > { %v1532_v24 = vpop.eup %1531 }
 0x668   : > { %652 = vrot.lane.b32.xlu1 %v1532_v24, %s1636_s23 }
 0x669   : > { %v1534_v25 = vpop.eup %1533 }
 0x66a   : > { %679 = vrot.lane.b32.xlu0 %v1534_v25, %s1636_s23  ;;  %v1536_v30 = vpop.eup %1535 }
 0x66b   : > { %v1538_v31 = vpop.eup %1537  ;;  %v643_v32 = vadd.f32 1.0, %v1536_v30 }
 0x66c   : > { %v670_v33 = vadd.f32 1.0, %v1538_v31 }
 0x66d   : > { %1539 = vrcp.f32 %v643_v32 }
 0x66e   : > { %1541 = vrcp.f32 %v670_v33 }
 0x67a   : > { %v1540_v34 = vpop.eup %1539 }
 0x67b   : > { %v1542_v37 = vpop.eup %1541  ;;  %v650_v41 = vmul.f32 %v1540_v34, %v648_v40 }
 0x67c   : > { %v677_v47 = vmul.f32 %v1542_v37, %v675_v43 }
 0x6da   : > { %v653_v35 = vpop.permute.xlu1 %652 }
 0x6db   : > { %v655_v36 = vmul.f32 %v1540_v34, %v653_v35 }
 0x6dc   : > { %v680_v38 = vpop.permute.xlu0 %679 }
 0x6dd   : > { %657 = vrot.lane.b32.xlu1 %v655_v36, %s1637_s24  ;;  %v682_v39 = vmul.f32 %v1542_v37, %v680_v38 }
 0x6df   : > { %684 = vrot.lane.b32.xlu0 %v682_v39, %s1637_s24 }
 0x74f   : > { %v658_v44 = vpop.permute.xlu1 %657 }
 0x750   : > { %v1872_v46 = vadd.f32 %v658_v44, %v650_v41 }
 0x751   : > { %v685_v49 = vpop.permute.xlu0 %684 }
 0x752   : > { %1543 = vtanh.f32 %v1872_v46  ;;  %v1875_v50 = vadd.f32 %v685_v49, %v677_v47  ;;  %v783_v39 = vrot.slane %v1872_v46, 7  ;;  %v834_v46 = vsub.s32 3, %v1763_v16 }
 0x754   : > { %1545 = vtanh.f32 %v1875_v50  ;;  %v810_v41 = vrot.slane %v1875_v50, 1 }
 0x75f   : > { %v1544_v51 = vpop.eup %1543 }
 0x760   : > { %663 = vrot.lane.b32.xlu1 %v1544_v51, %s1636_s23 }
 0x761   : > { %v1546_v53 = vpop.eup %1545 }
 0x762   : > { %690 = vrot.lane.b32.xlu0 %v1546_v53, %s1636_s23 }
 0x7d2   : > { %v664_v45 = vpop.permute.xlu1 %663 }
 0x7d3   : > { %v666_v54 = vmul.f32 %v1540_v34, %v664_v45 }
 0x7d4   : > { %v691_v57 = vpop.permute.xlu0 %690 }
 0x7d5   : > { %v700_v56 = vrot.slane %v666_v54, %v699_v42  ;;  %711 = vrot.lane.b32.xlu0 %v666_v54, %s1637_s24  ;;  %v693_v58 = vmul.f32 %v1542_v37, %v691_v57 }
 0x7d7   : > { %v1889_v60 = vsel %vm694_vm6, %v700_v56, %v1841_v59  ;;  %v708_v61 = vrot.slane %v693_v58, %v707_v55  ;;  %v715_v63 = vrot.slane %v693_v58, 3  ;;  %v842_v56 = vsub.s32 4, %v1763_v16 }
 0x7d9   : > { %716 = vrot.lane.b32.xlu1 %v715_v63, %s1636_s23  ;;  %v1898_v3 = vsel %vm702_vm7, %v708_v61, %v1851_v62 }
 0x847   : > { %v712_v4 = vpop.permute.xlu0 %711 }
 0x84b   : > { %v717_v7 = vpop.permute.xlu1 %716 }
 0x84c   : > { %v719_v8 = vsel %vm232_vm0, %v712_v4, %v717_v7 }
 0x84d   : > { %v720_v10 = vpack.c.bf16 %v719_v8, %v719_v8 }
 0x84f   : > { %v722_v59 = vrot.slane %v720_v10, 1 }
 0x851   : > { %1453 = vmatmul.mubr.msk.bf16.vlgmr.msra.gmra.mxu0 %vm327_vm1, %v722_v59 }
 0x852   : > { %1001 = vmatpush1.bf16.msra.mxu0 %v1679_v1  ;;  %1024 = vmatprep.mubr.bf16.mxu0 %v1635_v2 }
 0x853   : > { %1002 = vmatprep.subr.bf16.mxu0 %v1696_v5 }
 0x856   : > { %1003 = vmatpush1.bf16.msra.mxu0 %v1701_v6 }
 0x857   : > { %1004 = vmatprep.subr.bf16.mxu0 %v1719_v9 }
 0x85a   : > { %1005 = vmatpush1.bf16.msra.mxu0 %v1725_v11 }
 0x85b   : > { %1006 = vmatprep.subr.bf16.mxu0 %v1731_v13 }
 0x85e   : > { %1007 = vmatpush1.bf16.msra.mxu0 %v1738_v14 }
 0x85f   : > { %1260 = vmatprep.subr.bf16.mxu0 %v1674_v0 }
 0x911   : > { %v760_v62 = vpop.f32.mrf.mxu0 }
 0x912   : > { %v768_v12 = vrot.slane %v760_v62, 5 }
 0x913   : > { %v762_v15 = vpop.f32.mrf.mxu0 }
 0x914   : > { %v770_v17 = vadd.f32 %v768_v12, %v1776_v28  ;;  %v772_v20 = vrot.slane %v762_v15, 4 }
 0x915   : > { %v764_v21 = vpop.f32.mrf.mxu0 }
 0x916   : > { %1547 = vtanh.f32 %v770_v17  ;;  %v774_v22 = vadd.f32 %v772_v20, %v1778_v29  ;;  %v1454_v26 = vmul.f32 -1.442695, %v770_v17 }
 0x917   : > { %v765_v23 = vpop.f32.mrf.mxu0 }
 0x918   : > { %1549 = vtanh.f32 %v774_v22  ;;  %v1455_v0 = vmul.f32 -1.442695, %v774_v22 }
 0x919   : > { %1551 = vpow2.f32 %v1454_v26 }
 0x91a   : > { %1553 = vpow2.f32 %v1455_v0 }
 0x923   : > { %v1548_v24 = vpop.eup %1547 }
 0x924   : > { %787 = vrot.lane.b32.xlu1 %v1548_v24, %s1636_s23 }
 0x925   : > { %v1550_v25 = vpop.eup %1549 }
 0x926   : > { %814 = vrot.lane.b32.xlu0 %v1550_v25, %s1636_s23  ;;  %v1552_v27 = vpop.eup %1551 }
 0x927   : > { %v1554_v30 = vpop.eup %1553  ;;  %v778_v31 = vadd.f32 1.0, %v1552_v27 }
 0x928   : > { %v805_v32 = vadd.f32 1.0, %v1554_v30 }
 0x929   : > { %1555 = vrcp.f32 %v778_v31 }
 0x92a   : > { %1557 = vrcp.f32 %v805_v32 }
 0x936   : > { %v1556_v33 = vpop.eup %1555 }
 0x937   : > { %v1558_v36 = vpop.eup %1557  ;;  %v785_v40 = vmul.f32 %v1556_v33, %v783_v39 }
 0x938   : > { %v812_v47 = vmul.f32 %v1558_v36, %v810_v41 }
 0x996   : > { %v788_v34 = vpop.permute.xlu1 %787 }
 0x997   : > { %v790_v35 = vmul.f32 %v1556_v33, %v788_v34 }
 0x998   : > { %v815_v37 = vpop.permute.xlu0 %814 }
 0x999   : > { %792 = vrot.lane.b32.xlu1 %v790_v35, %s1637_s24  ;;  %v817_v38 = vmul.f32 %v1558_v36, %v815_v37 }
 0x99b   : > { %819 = vrot.lane.b32.xlu0 %v817_v38, %s1637_s24 }
 0xa0b   : > { %v793_v43 = vpop.permute.xlu1 %792 }
 0xa0c   : > { %v1919_v44 = vadd.f32 %v793_v43, %v785_v40 }
 0xa0d   : > { %v820_v49 = vpop.permute.xlu0 %819 }
 0xa0e   : > { %1559 = vtanh.f32 %v1919_v44  ;;  %v1922_v51 = vadd.f32 %v820_v49, %v812_v47  ;;  %v920_v41 = vrot.slane %v1919_v44, 7 }
 0xa10   : > { %1561 = vtanh.f32 %v1922_v51  ;;  %v947_v47 = vrot.slane %v1922_v51, 1 }
 0xa1b   : > { %v1560_v53 = vpop.eup %1559 }
 0xa1c   : > { %798 = vrot.lane.b32.xlu1 %v1560_v53, %s1636_s23 }
 0xa1d   : > { %v1562_v45 = vpop.eup %1561 }
 0xa1e   : > { %825 = vrot.lane.b32.xlu0 %v1562_v45, %s1636_s23 }
 0xa8e   : > { %v799_v50 = vpop.permute.xlu1 %798 }
 0xa8f   : > { %v801_v54 = vmul.f32 %v1556_v33, %v799_v50 }
 0xa90   : > { %v826_v58 = vpop.permute.xlu0 %825 }
 0xa91   : > { %v835_v57 = vrot.slane %v801_v54, %v834_v46  ;;  %846 = vrot.lane.b32.xlu0 %v801_v54, %s1637_s24  ;;  %v828_v61 = vmul.f32 %v1558_v36, %v826_v58 }
 0xa93   : > { %v1936_v63 = vsel %vm829_vm8, %v835_v57, %v1889_v60  ;;  %v843_v4 = vrot.slane %v828_v61, %v842_v56  ;;  %v850_v7 = vrot.slane %v828_v61, 1 }
 0xa95   : > { %851 = vrot.lane.b32.xlu1 %v850_v7, %s1636_s23  ;;  %v1945_v8 = vsel %vm837_vm9, %v843_v4, %v1898_v3 }
 0xb03   : > { %v847_v10 = vpop.permute.xlu0 %846 }
 0xb07   : > { %v852_v59 = vpop.permute.xlu1 %851 }
 0xb08   : > { %v854_v62 = vsel %vm232_vm0, %v847_v10, %v852_v59 }
 0xb09   : > { %v855_v12 = vpack.c.bf16 %v854_v62, %v854_v62 }
 0xb0b   : > { %v857_v60 = vshrl.u32 %v855_v12, 16 }
 0xb0d   : > { %v859_v15 = vrot.slane %v857_v60, 1 }
 0xb0f   : > { %1456 = vmatmul.mubr.msk.bf16.vlgmr.msra.gmra.mxu1 %vm327_vm1, %v859_v15 }
 0xb10   : > { %1132 = vmatpush1.bf16.msra.mxu1 %v1679_v1  ;;  %1155 = vmatprep.mubr.bf16.mxu1 %v1635_v2 }
 0xb11   : > { %1133 = vmatprep.subr.bf16.mxu1 %v1696_v5 }
 0xb14   : > { %1134 = vmatpush1.bf16.msra.mxu1 %v1701_v6 }
 0xb15   : > { %1135 = vmatprep.subr.bf16.mxu1 %v1719_v9 }
 0xb18   : > { %1136 = vmatpush1.bf16.msra.mxu1 %v1725_v11 }
 0xb19   : > { %1137 = vmatprep.subr.bf16.mxu1 %v1731_v13 }
 0xb1c   : > { %1138 = vmatpush1.bf16.msra.mxu1 %v1738_v14 }
 0xbcf   : > { %v897_v3 = vpop.f32.mrf.mxu1 }
 0xbd0   : > { %v905_v17 = vrot.slane %v897_v3, 4 }
 0xbd1   : > { %v899_v20 = vpop.f32.mrf.mxu1 }
 0xbd2   : > { %v907_v21 = vadd.f32 %v905_v17, %v1776_v28  ;;  %v909_v22 = vrot.slane %v899_v20, 5 }
 0xbd3   : > { %v901_v23 = vpop.f32.mrf.mxu1 }
 0xbd4   : > { %1563 = vtanh.f32 %v907_v21  ;;  %v911_v24 = vadd.f32 %v909_v22, %v1778_v29  ;;  %v1457_v27 = vmul.f32 -1.442695, %v907_v21 }
 0xbd5   : > { %v902_v25 = vpop.f32.mrf.mxu1 }
 0xbd6   : > { %1565 = vtanh.f32 %v911_v24  ;;  %v1458_v30 = vmul.f32 -1.442695, %v911_v24 }
 0xbd7   : > { %1567 = vpow2.f32 %v1457_v27 }
 0xbd8   : > { %1569 = vpow2.f32 %v1458_v30 }
 0xbe1   : > { %v1564_v26 = vpop.eup %1563 }
 0xbe2   : > { %924 = vrot.lane.b32.xlu1 %v1564_v26, %s1636_s23 }
 0xbe3   : > { %v1566_v0 = vpop.eup %1565 }
 0xbe4   : > { %951 = vrot.lane.b32.xlu0 %v1566_v0, %s1636_s23  ;;  %v1568_v31 = vpop.eup %1567 }
 0xbe5   : > { %v1570_v32 = vpop.eup %1569  ;;  %v915_v33 = vadd.f32 1.0, %v1568_v31 }
 0xbe6   : > { %v942_v34 = vadd.f32 1.0, %v1570_v32 }
 0xbe7   : > { %1571 = vrcp.f32 %v915_v33 }
 0xbe8   : > { %1573 = vrcp.f32 %v942_v34 }
 0xbf4   : > { %v1572_v35 = vpop.eup %1571 }
 0xbf5   : > { %v1574_v38 = vpop.eup %1573  ;;  %v922_v43 = vmul.f32 %v1572_v35, %v920_v41 }
 0xbf6   : > { %v949_v45 = vmul.f32 %v1574_v38, %v947_v47 }
 0xc54   : > { %v925_v36 = vpop.permute.xlu1 %924 }
 0xc55   : > { %v927_v37 = vmul.f32 %v1572_v35, %v925_v36 }
 0xc56   : > { %v952_v39 = vpop.permute.xlu0 %951 }
 0xc57   : > { %929 = vrot.lane.b32.xlu1 %v927_v37, %s1637_s24  ;;  %v954_v40 = vmul.f32 %v1574_v38, %v952_v39 }
 0xc59   : > { %956 = vrot.lane.b32.xlu0 %v954_v40, %s1637_s24 }
 0xcc9   : > { %v930_v49 = vpop.permute.xlu1 %929 }
 0xcca   : > { %v1965_v53 = vadd.f32 %v930_v49, %v922_v43 }
 0xccb   : > { %v957_v50 = vpop.permute.xlu0 %956 }
 0xccc   : > { %1575 = vtanh.f32 %v1965_v53  ;;  %v1968_v54 = vadd.f32 %v957_v50, %v949_v45  ;;  %v1049_v32 = vrot.slane %v1965_v53, 7 }
 0xcce   : > { %1577 = vtanh.f32 %v1968_v54  ;;  %v1076_v34 = vrot.slane %v1968_v54, 1 }
 0xcd9   : > { %v1576_v57 = vpop.eup %1575 }
 0xcda   : > { %935 = vrot.lane.b32.xlu1 %v1576_v57, %s1636_s23 }
 0xcdb   : > { %v1578_v58 = vpop.eup %1577 }
 0xcdc   : > { %962 = vrot.lane.b32.xlu0 %v1578_v58, %s1636_s23 }
 0xd4c   : > { %v936_v44 = vpop.permute.xlu1 %935 }
 0xd4d   : > { %v938_v61 = vmul.f32 %v1572_v35, %v936_v44 }
 0xd4e   : > { %v963_v4 = vpop.permute.xlu0 %962 }
 0xd4f   : > { %v969_v51 = vrot.slane %v938_v61, %v842_v56  ;;  %977 = vrot.lane.b32.xlu0 %v938_v61, %s1637_s24  ;;  %v965_v7 = vmul.f32 %v1574_v38, %v963_v4 }
 0xd51   : > { %v1979_v10 = vsel %vm837_vm9, %v969_v51, %v1936_v63  ;;  %v974_v59 = vrot.slane %v965_v7, %v834_v46  ;;  %v981_v62 = vrot.slane %v965_v7, 7 }
 0xd53   : > { %982 = vrot.lane.b32.xlu1 %v981_v62, %s1636_s23  ;;  %v1987_v12 = vsel %vm829_vm8, %v974_v59, %v1945_v8 }
 0xdc1   : > { %v978_v56 = vpop.permute.xlu0 %977 }
 0xdc5   : > { %v983_v60 = vpop.permute.xlu1 %982 }
 0xdc6   : > { %v985_v15 = vsel %vm232_vm0, %v978_v56, %v983_v60 }
 0xdc7   : > { %v986_v3 = vpack.c.bf16 %v985_v15, %v985_v15 }
 0xdc9   : > { %v988_v17 = vrot.slane %v986_v3, 2 }
 0xdcb   : > { %1459 = vmatmul.mubr.msk.bf16.vlgmr.msra.gmra.mxu0 %vm327_vm1, %v988_v17 }
 0xdcc   : > { %1261 = vmatpush1.bf16.msra.mxu0 %v1679_v1  ;;  %1284 = vmatprep.mubr.bf16.mxu0 %v1635_v2 }
 0xdcd   : > { %1262 = vmatprep.subr.bf16.mxu0 %v1696_v5 }
 0xdd0   : > { %1263 = vmatpush1.bf16.msra.mxu0 %v1701_v6 }
 0xdd1   : > { %1264 = vmatprep.subr.bf16.mxu0 %v1719_v9 }
 0xdd4   : > { %1265 = vmatpush1.bf16.msra.mxu0 %v1725_v11 }
 0xdd5   : > { %1266 = vmatprep.subr.bf16.mxu0 %v1731_v13 }
 0xdd8   : > { %1267 = vmatpush1.bf16.msra.mxu0 %v1738_v14 }
 0xe8b   : > { %v1026_v46 = vpop.f32.mrf.mxu0 }
 0xe8c   : > { %v1034_v63 = vrot.slane %v1026_v46, 3 }
 0xe8d   : > { %v1028_v8 = vpop.f32.mrf.mxu0 }
 0xe8e   : > { %v1036_v20 = vadd.f32 %v1034_v63, %v1776_v28  ;;  %v1038_v1 = vrot.slane %v1028_v8, 6 }
 0xe8f   : > { %v1030_v21 = vpop.f32.mrf.mxu0 }
 0xe90   : > { %1579 = vtanh.f32 %v1036_v20  ;;  %v1040_v2 = vadd.f32 %v1038_v1, %v1778_v29  ;;  %v1460_v11 = vmul.f32 -1.442695, %v1036_v20 }
 0xe91   : > { %v1031_v5 = vpop.f32.mrf.mxu0 }
 0xe92   : > { %1581 = vtanh.f32 %v1040_v2  ;;  %v1461_v13 = vmul.f32 -1.442695, %v1040_v2 }
 0xe93   : > { %1583 = vpow2.f32 %v1460_v11 }
 0xe94   : > { %1585 = vpow2.f32 %v1461_v13 }
 0xe9d   : > { %v1580_v6 = vpop.eup %1579 }
 0xe9e   : > { %1053 = vrot.lane.b32.xlu1 %v1580_v6, %s1636_s23 }
 0xe9f   : > { %v1582_v9 = vpop.eup %1581 }
 0xea0   : > { %1080 = vrot.lane.b32.xlu0 %v1582_v9, %s1636_s23  ;;  %v1584_v14 = vpop.eup %1583 }
 0xea1   : > { %v1586_v22 = vpop.eup %1585  ;;  %v1044_v23 = vadd.f32 1.0, %v1584_v14 }
 0xea2   : > { %v1071_v24 = vadd.f32 1.0, %v1586_v22 }
 0xea3   : > { %1587 = vrcp.f32 %v1044_v23 }
 0xea4   : > { %1589 = vrcp.f32 %v1071_v24 }
 0xeb0   : > { %v1588_v25 = vpop.eup %1587 }
 0xeb1   : > { %v1590_v27 = vpop.eup %1589  ;;  %v1051_v33 = vmul.f32 %v1588_v25, %v1049_v32 }
 0xeb2   : > { %v1078_v37 = vmul.f32 %v1590_v27, %v1076_v34 }
 0xf10   : > { %v1054_v26 = vpop.permute.xlu1 %1053 }
 0xf11   : > { %v1056_v0 = vmul.f32 %v1588_v25, %v1054_v26 }
 0xf12   : > { %v1081_v30 = vpop.permute.xlu0 %1080 }
 0xf13   : > { %1058 = vrot.lane.b32.xlu1 %v1056_v0, %s1637_s24  ;;  %v1083_v31 = vmul.f32 %v1590_v27, %v1081_v30 }
 0xf15   : > { %1085 = vrot.lane.b32.xlu0 %v1083_v31, %s1637_s24 }
 0xf85   : > { %v1059_v35 = vpop.permute.xlu1 %1058 }
 0xf86   : > { %v1061_v36 = vadd.f32 %v1059_v35, %v1051_v33 }
 0xf87   : > { %v1086_v38 = vpop.permute.xlu0 %1085 }
 0xf88   : > { %1591 = vtanh.f32 %v1061_v36  ;;  %v1088_v39 = vadd.f32 %v1086_v38, %v1078_v37  ;;  %v1180_v14 = vrot.slane %v1061_v36, 7 }
 0xf8a   : > { %1593 = vtanh.f32 %v1088_v39  ;;  %v1207_v23 = vrot.slane %v1088_v39, 1 }
 0xf95   : > { %v1592_v40 = vpop.eup %1591 }
 0xf96   : > { %1064 = vrot.lane.b32.xlu1 %v1592_v40, %s1636_s23 }
 0xf97   : > { %v1594_v41 = vpop.eup %1593 }
 0xf98   : > { %1091 = vrot.lane.b32.xlu0 %v1594_v41, %s1636_s23 }
0x1008   : > { %v1065_v43 = vpop.permute.xlu1 %1064 }
0x1009   : > { %v1067_v47 = vmul.f32 %v1588_v25, %v1065_v43 }
0x100a   : > { %v1092_v53 = vpop.permute.xlu0 %1091 }
0x100b   : > { %v1098_v49 = vrot.slane %v1067_v47, %v707_v55  ;;  %1106 = vrot.lane.b32.xlu0 %v1067_v47, %s1637_s24  ;;  %v1094_v45 = vmul.f32 %v1590_v27, %v1092_v53 }
0x100d   : > { %v2015_v50 = vsel %vm702_vm7, %v1098_v49, %v1979_v10  ;;  %v1103_v54 = vrot.slane %v1094_v45, %v699_v42  ;;  %v1110_v57 = vrot.slane %v1094_v45, 5 }
0x100f   : > { %1111 = vrot.lane.b32.xlu1 %v1110_v57, %s1636_s23  ;;  %v2023_v58 = vsel %vm694_vm6, %v1103_v54, %v1987_v12 }
0x107d   : > { %v1107_v55 = vpop.permute.xlu0 %1106 }
0x1081   : > { %v1112_v44 = vpop.permute.xlu1 %1111 }
0x1082   : > { %v1114_v61 = vsel %vm232_vm0, %v1107_v55, %v1112_v44 }
0x1083   : > { %v1115_v51 = vpack.c.bf16 %v1114_v61, %v1114_v61 }
0x1085   : > { %v1117_v4 = vshrl.u32 %v1115_v51, 16 }
0x1087   : > { %v1119_v7 = vrot.slane %v1117_v4, 2 }
0x1089   : > { %1462 = vmatmul.mubr.msk.bf16.vlgmr.msra.gmra.mxu1 %vm327_vm1, %v1119_v7 }
0x1149   : > { %v1157_v10 = vpop.f32.mrf.mxu1 }
0x114a   : > { %v1165_v59 = vrot.slane %v1157_v10, 2 }
0x114b   : > { %v1159_v42 = vpop.f32.mrf.mxu1 }
0x114c   : > { %v1167_v62 = vadd.f32 %v1165_v59, %v1776_v28  ;;  %v1169_v56 = vrot.slane %v1159_v42, 7 }
0x114d   : > { %v1161_v60 = vpop.f32.mrf.mxu1 }
0x114e   : > { %1595 = vtanh.f32 %v1167_v62  ;;  %v1171_v12 = vadd.f32 %v1169_v56, %v1778_v29  ;;  %v1463_v46 = vmul.f32 -1.442695, %v1167_v62 }
0x114f   : > { %v1162_v15 = vpop.f32.mrf.mxu1 }
0x1150   : > { %1597 = vtanh.f32 %v1171_v12  ;;  %v1464_v63 = vmul.f32 -1.442695, %v1171_v12 }
0x1151   : > { %1599 = vpow2.f32 %v1463_v46 }
0x1152   : > { %1601 = vpow2.f32 %v1464_v63 }
0x115b   : > { %v1596_v3 = vpop.eup %1595 }
0x115c   : > { %1184 = vrot.lane.b32.xlu1 %v1596_v3, %s1636_s23 }
0x115d   : > { %v1598_v17 = vpop.eup %1597 }
0x115e   : > { %1211 = vrot.lane.b32.xlu0 %v1598_v17, %s1636_s23  ;;  %v1600_v8 = vpop.eup %1599 }
0x115f   : > { %v1602_v20 = vpop.eup %1601  ;;  %v1175_v1 = vadd.f32 1.0, %v1600_v8 }
0x1160   : > { %v1202_v21 = vadd.f32 1.0, %v1602_v20 }
0x1161   : > { %1603 = vrcp.f32 %v1175_v1 }
0x1162   : > { %1605 = vrcp.f32 %v1202_v21 }
0x116e   : > { %v1604_v2 = vpop.eup %1603 }
0x116f   : > { %v1606_v9 = vpop.eup %1605  ;;  %v1182_v22 = vmul.f32 %v1604_v2, %v1180_v14 }
0x1170   : > { %v1209_v26 = vmul.f32 %v1606_v9, %v1207_v23 }
0x11ce   : > { %v1185_v5 = vpop.permute.xlu1 %1184 }
0x11cf   : > { %v1187_v6 = vmul.f32 %v1604_v2, %v1185_v5 }
0x11d0   : > { %v1212_v11 = vpop.permute.xlu0 %1211 }
0x11d1   : > { %1189 = vrot.lane.b32.xlu1 %v1187_v6, %s1637_s24  ;;  %v1214_v13 = vmul.f32 %v1606_v9, %v1212_v11 }
0x11d3   : > { %1216 = vrot.lane.b32.xlu0 %v1214_v13, %s1637_s24 }
0x1243   : > { %v1190_v24 = vpop.permute.xlu1 %1189 }
0x1244   : > { %v1192_v25 = vadd.f32 %v1190_v24, %v1182_v22 }
0x1245   : > { %v1217_v0 = vpop.permute.xlu0 %1216 }
0x1246   : > { %1607 = vtanh.f32 %v1192_v25  ;;  %v1219_v27 = vadd.f32 %v1217_v0, %v1209_v26  ;;  %v1306_v12 = vrot.slane %v1192_v25, 7 }
0x1248   : > { %1609 = vtanh.f32 %v1219_v27  ;;  %v1333_v15 = vrot.slane %v1219_v27, 1 }
0x1253   : > { %v1608_v30 = vpop.eup %1607 }
0x1254   : > { %1195 = vrot.lane.b32.xlu1 %v1608_v30, %s1636_s23 }
0x1255   : > { %v1610_v31 = vpop.eup %1609 }
0x1256   : > { %1222 = vrot.lane.b32.xlu0 %v1610_v31, %s1636_s23 }
0x12c6   : > { %v1196_v32 = vpop.permute.xlu1 %1195 }
0x12c7   : > { %v1198_v33 = vmul.f32 %v1604_v2, %v1196_v32 }
0x12c8   : > { %v1223_v35 = vpop.permute.xlu0 %1222 }
0x12c9   : > { %v1229_v34 = vrot.slane %v1198_v33, %v571_v52  ;;  %1237 = vrot.lane.b32.xlu0 %v1198_v33, %s1637_s24  ;;  %v1225_v36 = vmul.f32 %v1606_v9, %v1223_v35 }
0x12cb   : > { %v2041_v37 = vsel %vm566_vm5, %v1229_v34, %v2015_v50  ;;  %v1234_v38 = vrot.slane %v1225_v36, %v1769_v19  ;;  %v1241_v39 = vrot.slane %v1225_v36, 3 }
0x12cd   : > { %1242 = vrot.lane.b32.xlu1 %v1241_v39, %s1636_s23  ;;  %v1235_v40 = vsel %vm558_vm3, %v1234_v38, %v2023_v58 }
0x133b   : > { %v1238_v41 = vpop.permute.xlu0 %1237 }
0x133f   : > { %v1243_v52 = vpop.permute.xlu1 %1242 }
0x1340   : > { %v1245_v43 = vsel %vm232_vm0, %v1238_v41, %v1243_v52 }
0x1341   : > { %v1246_v47 = vpack.c.bf16 %v1245_v43, %v1245_v43 }
0x1343   : > { %v1248_v49 = vrot.slane %v1246_v47, 3 }
0x1345   : > { %1465 = vmatmul.mubr.msk.bf16.vlgmr.msra.gmra.mxu0 %vm327_vm1, %v1248_v49 }
0x1405   : > { %v1286_v53 = vpop.f32.mrf.mxu0 }
0x1406   : > { %v1294_v45 = vrot.slane %v1286_v53, 1 }
0x1407   : > { %v1288_v50 = vpop.f32.mrf.mxu0 }
0x1408   : > { %v1296_v19 = vadd.f32 %v1294_v45, %v1776_v28  ;;  %v1297_v54 = vadd.f32 %v1288_v50, %v1778_v29 }
0x1409   : > { %v1290_v57 = vpop.f32.mrf.mxu0 }
0x140a   : > { %1611 = vtanh.f32 %v1296_v19  ;;  %v1466_v61 = vmul.f32 -1.442695, %v1296_v19  ;;  %v1467_v51 = vmul.f32 -1.442695, %v1297_v54 }
0x140b   : > { %1613 = vtanh.f32 %v1297_v54  ;;  %v1291_v55 = vpop.f32.mrf.mxu0 }
0x140c   : > { %1615 = vpow2.f32 %v1466_v61 }
0x140d   : > { %1617 = vpow2.f32 %v1467_v51 }
0x1417   : > { %v1612_v58 = vpop.eup %1611 }
0x1418   : > { %v1614_v44 = vpop.eup %1613  ;;  %1310 = vrot.lane.b32.xlu0 %v1612_v58, %s1636_s23 }
0x1419   : > { %1337 = vrot.lane.b32.xlu1 %v1614_v44, %s1636_s23  ;;  %v1616_v4 = vpop.eup %1615 }
0x141a   : > { %v1618_v7 = vpop.eup %1617  ;;  %v1301_v10 = vadd.f32 1.0, %v1616_v4 }
0x141b   : > { %v1328_v28 = vadd.f32 1.0, %v1618_v7 }
0x141c   : > { %1619 = vrcp.f32 %v1301_v10 }
0x141d   : > { %1621 = vrcp.f32 %v1328_v28 }
0x1429   : > { %v1620_v29 = vpop.eup %1619 }
0x142a   : > { %v1622_v42 = vpop.eup %1621  ;;  %v1308_v3 = vmul.f32 %v1620_v29, %v1306_v12 }
0x142b   : > { %v1335_v46 = vmul.f32 %v1622_v42, %v1333_v15 }
0x148a   : > { %v1311_v59 = vpop.permute.xlu0 %1310 }
0x148b   : > { %v1313_v62 = vmul.f32 %v1620_v29, %v1311_v59  ;;  %v1338_v56 = vpop.permute.xlu1 %1337 }
0x148c   : > { %v1340_v60 = vmul.f32 %v1622_v42, %v1338_v56 }
0x148d   : > { %1315 = vrot.lane.b32.xlu0 %v1313_v62, %s1637_s24 }
0x148e   : > { %1342 = vrot.lane.b32.xlu1 %v1340_v60, %s1637_s24 }
0x14ff   : > { %v1316_v17 = vpop.permute.xlu0 %1315 }
0x1500   : > { %v1318_v63 = vadd.f32 %v1316_v17, %v1308_v3  ;;  %v1343_v8 = vpop.permute.xlu1 %1342 }
0x1501   : > { %v1345_v20 = vadd.f32 %v1343_v8, %v1335_v46 }
0x1502   : > { %1623 = vtanh.f32 %v1318_v63 }
0x1503   : > { %1625 = vtanh.f32 %v1345_v20 }
0x150f   : > { %v1624_v1 = vpop.eup %1623 }
0x1510   : > { %v1626_v21 = vpop.eup %1625  ;;  %1321 = vrot.lane.b32.xlu0 %v1624_v1, %s1636_s23 }
0x1511   : > { %1348 = vrot.lane.b32.xlu1 %v1626_v21, %s1636_s23 }
0x1582   : > { %v1322_v2 = vpop.permute.xlu0 %1321 }
0x1583   : > { %v1324_v5 = vmul.f32 %v1620_v29, %v1322_v2  ;;  %v1349_v6 = vpop.permute.xlu1 %1348 }
0x1584   : > { %v1351_v9 = vmul.f32 %v1622_v42, %v1349_v6 }
0x1585   : > { %v1355_v11 = vrot.slane %v1324_v5, %v438_v48 }
0x1586   : > { %v1360_v13 = vrot.slane %v1351_v9, %v1766_v18 }
0x1587   : > { %v1356_v14 = vsel %vm433_vm4, %v1355_v11, %v2041_v37 }
0x1588   : > { %1363 = vrot.lane.b32.xlu0 %v1356_v14, %s1637_s24  ;;  %v1361_v22 = vsel %vm425_vm2, %v1360_v13, %v1235_v40 }
0x1589   : > { %1367 = vrot.lane.b32.xlu1 %v1361_v22, %s1636_s23 }
0x15fa   : > { %v1364_v23 = vpop.permute.xlu0 %1363 }
0x15fb   : > { %v1368_v48 = vpop.permute.xlu1 %1367 }
0x15fc   : > { %v1370_v18 = vsel %vm232_vm0, %v1364_v23, %v1368_v48 }
0x15fd   : > { %1371 = vst.msk [vmem:[%s192_s27] sm:$0xff] %vm327_vm1, %v1370_v18 }
0x15fe PF: > { %s14_s15 = sadd.s32 1, %s1633_s15  }
0x15ff   : > { %p11_p4 = scmp.ge.s32.totalorder %s14_s15, 4  }
0x1601   :  { %13 = sbr.rel (!%p11_p4) target bundleno = 1 (0x1), region = 66 }

// kernel: forward.6
= control target key start
LH: loop header
LB: loop body
LE: loop exit
PB: predicated region body
PF: predicated region fallthrough
CT: control target
= control target key end

     0   :  { %s1697_s15 = smov 0   ;;  %s2124_s0 = inlined_call_operand.vmem [shape: f32[2,8,64], index: 0, kind: input, shape index: {}]   ;;  %s2125_s1 = inlined_call_operand.vmem [shape: bf16[64,256], index: 1, kind: input, shape index: {}]   ;;  %s2126_s2 = inlined_call_operand.vmem [shape: f32[1,256], index: 2, kind: input, shape index: {}]   ;;  %s2127_s3 = inlined_call_operand.vmem [shape: bf16[64,256], index: 3, kind: input, shape index: {}]   ;;  %s2128_s4 = inlined_call_operand.vmem [shape: f32[2,8,64], index: 4, kind: output, shape index: {}]  }
   0x1 LB: > { %s1449_s16 = sadd.s32 4294967295, %s1667_s15   ;;  %p1453_p0 = scmp.ge.s32.totalorder %s1667_s15, 1  ;;  %s1667_s15 = sphi %s1697_s15, %s14_s15  }
   0x2   : > { %p161_p1 = scmp.lt.s32.totalorder %s1667_s15, 3 }
   0x4   : > { %p162_p2 = pnand %p1453_p0, %p161_p1 }
   0x5   : > { %p185_p3 = scmp.lt.s32.totalorder (!%p162_p2), %s1449_s16, 1  ;;  %s1670_s5 = smov (!%p162_p2), 64  }
   0x6   : > { %165 = sbr.rel (%p162_p2) target bundleno = 5630 (0x15fe), region = 36  ;;  %s1671_s6 = smov (!%p162_p2), 32  }
   0xb   : > { %v1509_v0 = vld [vmem:[%s2125_s1 + $0x34] ss:$8 sps:$4 sm:$0xff]   ;;  %v1669_v2 = vmov 0   ;;  %v1513_v3 = vld [vmem:[%s2125_s1 + $0x30] ss:$8 sps:$4 sm:$0xff]   ;;  %s2130_s16 = smov (!%p185_p3, %s1449_s16), 1  ;;  %v206_v19 = vlaneseq }
   0xc   : > { %v1711_v1 = vld [vmem:[%s2127_s3 + $0x34] ss:$8 sps:$4 sm:$0xff]   ;;  %292 = vmatprep.mubr.bf16.mxu0 %v1669_v2  ;;  %386 = vmatprep.mubr.bf16.mxu1 %v1669_v2  ;;  %v1721_v4 = vld [vmem:[%s2127_s3 + $0x30] ss:$8 sps:$4 sm:$0xff]   ;;  %v1515_v5 = vld [vmem:[%s2125_s1 + $0x24] ss:$8 sps:$4 sm:$0xff]  }
   0xd   : > { %268 = vmatprep.subr.bf16.mxu0 %v1509_v0  ;;  %362 = vmatprep.subr.bf16.mxu1 %v1711_v1  ;;  %v1733_v6 = vld [vmem:[%s2127_s3 + $0x24] ss:$8 sps:$4 sm:$0xff]   ;;  %v1519_v7 = vld [vmem:[%s2125_s1 + $0x20] ss:$8 sps:$4 sm:$0xff]   ;;  %v1521_v9 = vld [vmem:[%s2125_s1 + $0x14] ss:$8 sps:$4 sm:$0xff]  }
   0xe   : > { %269 = vmatpush1.bf16.msra.mxu0 %v1513_v3  ;;  %363 = vmatpush1.bf16.msra.mxu1 %v1721_v4  ;;  %v1741_v8 = vld [vmem:[%s2127_s3 + $0x20] ss:$8 sps:$4 sm:$0xff]   ;;  %s1454_s9 = sshll.u32 %s2130_s16, 3  ;;  %v1751_v10 = vld [vmem:[%s2127_s3 + $0x14] ss:$8 sps:$4 sm:$0xff]   ;;  %vm256_vm0 = vcmask 523264  }
   0xf   : > { %270 = vmatprep.subr.bf16.mxu0 %v1515_v5  ;;  %364 = vmatprep.subr.bf16.mxu1 %v1733_v6  ;;  %v1525_v11 = vld [vmem:[%s2125_s1 + $0x10] ss:$8 sps:$4 sm:$0xff]   ;;  %v1527_v13 = vld [vmem:[%s2125_s1 + $0x4] ss:$8 sps:$4 sm:$0xff]   ;;  %s188_s24 = scalar_lea.vmem %s2124_s0, %s1454_s9  ;;  %v1531_v15 = vld [vmem:[%s2125_s1] ss:$8 sps:$4 sm:$0xff]   ;;  %s192_s10 = scalar_lea.vmem %s2128_s4, %s1454_s9 }
  0x10   : > { %v1759_v12 = vld [vmem:[%s2127_s3 + $0x10] ss:$8 sps:$4 sm:$0xff]   ;;  %v1769_v14 = vld [vmem:[%s2127_s3 + $0x4] ss:$8 sps:$4 sm:$0xff]   ;;  %v1783_v16 = vld [vmem:[%s2127_s3] ss:$8 sps:$4 sm:$0xff]  }
  0x11   : > { %v194_v17 = vld [vmem:[%s188_s24] sm:$0xff]  ;;  %v1809_v20 = vshrl.u32 %v206_v19, 7  ;;  %vm473_vm1 = vcmask 261120  }
  0x12   : > { %271 = vmatpush1.bf16.msra.mxu0 %v1519_v7  ;;  %365 = vmatpush1.bf16.msra.mxu1 %v1741_v8  ;;  %v195_v18 = vpack.c.bf16 %v194_v17, %v194_v17  ;;  %v204_v23 = vld [vmem:[%s2126_s2] sm:$0x3] }
  0x13   : > { %272 = vmatprep.subr.bf16.mxu0 %v1521_v9  ;;  %366 = vmatprep.subr.bf16.mxu1 %v1751_v10  ;;  %v1812_v21 = vsub.s32 1, %v1809_v20  ;;  %v1815_v22 = vsub.s32 0, %v1809_v20  ;;  %vm448_vm2 = vcmp.eq.s32.totalorder %v1809_v20, 0  ;;  %vm582_vm3 = vcmp.eq.s32.totalorder %v1809_v20, 1 }
  0x14   : > { %vm456_vm4 = vcmp.eq.s32.totalorder %v1809_v20, 7  ;;  %vm590_vm5 = vcmp.eq.s32.totalorder %v1809_v20, 6  ;;  %vm718_vm6 = vcmp.eq.s32.totalorder %v1809_v20, 2  ;;  %vm726_vm7 = vcmp.eq.s32.totalorder %v1809_v20, 5 }
  0x15   : > { %v213_v24 = vrot.slane %v204_v23, %v1812_v21  ;;  %v209_v25 = vrot.slane %v204_v23, %v1815_v22  ;;  %vm853_vm8 = vcmp.eq.s32.totalorder %v1809_v20, 3  ;;  %vm861_vm9 = vcmp.eq.s32.totalorder %v1809_v20, 4 }
  0x16   : > { %273 = vmatpush1.bf16.msra.mxu0 %v1525_v11  ;;  %367 = vmatpush1.bf16.msra.mxu1 %v1759_v12 }
  0x17   : > { %274 = vmatprep.subr.bf16.mxu0 %v1527_v13  ;;  %368 = vmatprep.subr.bf16.mxu1 %v1769_v14 }
  0x1a   : > { %275 = vmatpush1.bf16.msra.mxu0 %v1531_v15  ;;  %369 = vmatpush1.bf16.msra.mxu1 %v1783_v16 }
  0x1b   : > { %487 = vmatprep.subr.bf16.mxu0 %v1711_v1  ;;  %623 = vmatprep.subr.bf16.mxu1 %v1711_v1 }
  0x1d   : > { %1464 = vmatmul.mubr.msk.bf16.vlgmr.msra.gmra.mxu0 %vm256_vm0, %v195_v18  ;;  %387 = vmatmul.mubr.bf16.vlgmr.msra.gmra.mxu1 %v1669_v2 }
  0x1e   : > { %488 = vmatpush1.bf16.msra.mxu0 %v1721_v4  ;;  %511 = vmatprep.mubr.bf16.mxu0 %v1669_v2 }
  0x1f   : > { %489 = vmatprep.subr.bf16.mxu0 %v1733_v6  ;;  %624 = vmatpush1.bf16.msra.mxu1 %v1721_v4 }
  0x20   : > { %625 = vmatprep.subr.bf16.mxu1 %v1733_v6  ;;  %647 = vmatprep.mubr.bf16.mxu1 %v1669_v2 }
  0x22   : > { %490 = vmatpush1.bf16.msra.mxu0 %v1741_v8 }
  0x23   : > { %491 = vmatprep.subr.bf16.mxu0 %v1751_v10  ;;  %626 = vmatpush1.bf16.msra.mxu1 %v1741_v8 }
  0x24   : > { %627 = vmatprep.subr.bf16.mxu1 %v1751_v10 }
  0x26   : > { %492 = vmatpush1.bf16.msra.mxu0 %v1759_v12 }
  0x27   : > { %493 = vmatprep.subr.bf16.mxu0 %v1769_v14  ;;  %628 = vmatpush1.bf16.msra.mxu1 %v1759_v12 }
  0x28   : > { %629 = vmatprep.subr.bf16.mxu1 %v1769_v14 }
  0x2a   : > { %494 = vmatpush1.bf16.msra.mxu0 %v1783_v16 }
  0x2b   : > { %630 = vmatpush1.bf16.msra.mxu1 %v1783_v16  ;;  %758 = vmatprep.subr.bf16.mxu0 %v1711_v1 }
  0x2c   : > { %895 = vmatprep.subr.bf16.mxu1 %v1711_v1 }
  0xdd   : > { %v294_v26 = vpop.f32.mrf.mxu0  ;;  %v388_v27 = vpop.f32.mrf.mxu1 }
  0xde   : > { %v1824_v32 = vadd.f32 %v294_v26, %v209_v25 }
  0xdf   : > { %v296_v28 = vpop.f32.mrf.mxu0  ;;  %v390_v29 = vpop.f32.mrf.mxu1 }
  0xe0   : > { %v1822_v30 = vadd.f32 %v296_v28, %v213_v24  ;;  %v397_v31 = vrot.slane %v390_v29, 1  ;;  %v395_v38 = vadd.f32 %v388_v27, %v1824_v32 }
  0xe1   : > { %v298_v33 = vpop.f32.mrf.mxu0  ;;  %v392_v34 = vpop.f32.mrf.mxu1 }
  0xe2   : > { %v399_v35 = vadd.f32 %v397_v31, %v1822_v30  ;;  %v1473_v42 = vmul.f32 -1.442695, %v395_v38 }
  0xe3   : > { %v299_v36 = vpop.f32.mrf.mxu0  ;;  %v393_v37 = vpop.f32.mrf.mxu1 }
  0xe4   : > { %1533 = vtanh.f32 %v399_v35  ;;  %v1474_v41 = vmul.f32 -1.442695, %v399_v35 }
  0xe5   : > { %1535 = vtanh.f32 %v395_v38 }
  0xe6   : > { %1537 = vpow2.f32 %v1474_v41 }
  0xe7   : > { %1539 = vpow2.f32 %v1473_v42 }
  0xf1   : > { %v1534_v39 = vpop.eup %1533 }
  0xf2   : > { %433 = vrot.lane.b32.xlu0 %v1534_v39, %s1670_s5  ;;  %v1536_v40 = vpop.eup %1535 }
  0xf3   : > { %v1538_v43 = vpop.eup %1537 }
  0xf4   : > { %v427_v44 = vadd.f32 1.0, %v1538_v43  ;;  %v1540_v45 = vpop.eup %1539 }
  0xf5   : > { %v403_v46 = vadd.f32 1.0, %v1540_v45 }
  0xf6   : > { %409 = vrot.lane.b32.xlu0 %v1536_v40, %s1670_s5  ;;  %1541 = vrcp.f32 %v427_v44 }
  0xf7   : > { %1543 = vrcp.f32 %v403_v46 }
 0x103   : > { %v1542_v47 = vpop.eup %1541 }
 0x104   : > { %v1544_v50 = vpop.eup %1543  ;;  %v431_v53 = vmul.f32 0.0, %v1542_v47 }
 0x105   : > { %v407_v56 = vmul.f32 0.0, %v1544_v50 }
 0x164   : > { %v434_v48 = vpop.permute.xlu0 %433 }
 0x165   : > { %v436_v49 = vmul.f32 %v1542_v47, %v434_v48 }
 0x167   : > { %438 = vrot.lane.b32.xlu1 %v436_v49, %s1671_s6 }
 0x168   : > { %v410_v51 = vpop.permute.xlu0 %409 }
 0x169   : > { %v412_v52 = vmul.f32 %v1544_v50, %v410_v51 }
 0x16b   : > { %414 = vrot.lane.b32.xlu1 %v412_v52, %s1671_s6  ;;  %v461_v52 = vsub.s32 7, %v1809_v20 }
 0x1d9   : > { %v439_v54 = vpop.permute.xlu1 %438 }
 0x1da   : > { %v1832_v55 = vadd.f32 %v439_v54, %v431_v53 }
 0x1dc   : > { %1545 = vtanh.f32 %v1832_v55  ;;  %v563_v44 = vrot.slane %v1832_v55, 1 }
 0x1dd   : > { %v415_v57 = vpop.permute.xlu1 %414 }
 0x1de   : > { %v417_v58 = vadd.f32 %v415_v57, %v407_v56  ;;  %v595_v56 = vsub.s32 6, %v1809_v20 }
 0x1e0   : > { %1547 = vtanh.f32 %v417_v58  ;;  %v536_v42 = vrot.slane %v417_v58, 7 }
 0x1e9   : > { %v1546_v59 = vpop.eup %1545 }
 0x1ea   : > { %444 = vrot.lane.b32.xlu0 %v1546_v59, %s1670_s5 }
 0x1ed   : > { %v1548_v60 = vpop.eup %1547 }
 0x1ee   : > { %420 = vrot.lane.b32.xlu1 %v1548_v60, %s1670_s5 }
 0x25c   : > { %v445_v61 = vpop.permute.xlu0 %444 }
 0x25d   : > { %v1837_v62 = vmul.f32 %v1542_v47, %v445_v61 }
 0x25f   : > { %v469_v63 = vrot.slane %v1837_v62, 7  ;;  %v462_v57 = vrot.slane %v1837_v62, %v461_v52 }
 0x260   : > { %v421_v0 = vpop.permute.xlu1 %420 }
 0x261   : > { %v1840_v3 = vmul.f32 %v1544_v50, %v421_v0  ;;  %470 = vrot.lane.b32.xlu1 %v469_v63, %s1670_s5 }
 0x263   : > { %465 = vrot.lane.b32.xlu0 %v1840_v3, %s1671_s6  ;;  %v454_v53 = vrot.slane %v1840_v3, %v1815_v22  ;;  %v463_v3 = vsel %vm456_vm4, %v462_v57, 0.0 }
 0x265   : > { %v455_v60 = vsel %vm448_vm2, %v454_v53, 0.0 }
 0x2d3   : > { %v471_v5 = vpop.permute.xlu1 %470 }
 0x2d5   : > { %v466_v7 = vpop.permute.xlu0 %465 }
 0x2d6   : > { %v474_v9 = vsel %vm473_vm1, %v466_v7, %v471_v5 }
 0x2d7   : > { %v475_v11 = vpack.c.bf16 %v474_v9, %v474_v9 }
 0x2d9   : > { %1475 = vmatmul.mubr.msk.bf16.vlgmr.msra.gmra.mxu0 %vm256_vm0, %v475_v11 }
 0x2da   : > { %759 = vmatpush1.bf16.msra.mxu0 %v1721_v4  ;;  %782 = vmatprep.mubr.bf16.mxu0 %v1669_v2 }
 0x2db   : > { %760 = vmatprep.subr.bf16.mxu0 %v1733_v6 }
 0x2de   : > { %761 = vmatpush1.bf16.msra.mxu0 %v1741_v8 }
 0x2df   : > { %762 = vmatprep.subr.bf16.mxu0 %v1751_v10 }
 0x2e2   : > { %763 = vmatpush1.bf16.msra.mxu0 %v1759_v12 }
 0x2e3   : > { %764 = vmatprep.subr.bf16.mxu0 %v1769_v14 }
 0x2e6   : > { %765 = vmatpush1.bf16.msra.mxu0 %v1783_v16 }
 0x2e7   : > { %1024 = vmatprep.subr.bf16.mxu0 %v1711_v1 }
 0x399   : > { %v513_v13 = vpop.f32.mrf.mxu0 }
 0x39a   : > { %v521_v15 = vrot.slane %v513_v13, 7 }
 0x39b   : > { %v515_v17 = vpop.f32.mrf.mxu0 }
 0x39c   : > { %v523_v18 = vadd.f32 %v521_v15, %v1824_v32  ;;  %v525_v19 = vrot.slane %v515_v17, 2 }
 0x39d   : > { %v517_v23 = vpop.f32.mrf.mxu0 }
 0x39e   : > { %1549 = vtanh.f32 %v523_v18  ;;  %v527_v24 = vadd.f32 %v525_v19, %v1822_v30  ;;  %v1476_v28 = vmul.f32 -1.442695, %v523_v18 }
 0x39f   : > { %v518_v25 = vpop.f32.mrf.mxu0 }
 0x3a0   : > { %1551 = vtanh.f32 %v527_v24  ;;  %v1477_v29 = vmul.f32 -1.442695, %v527_v24 }
 0x3a1   : > { %1553 = vpow2.f32 %v1476_v28 }
 0x3a2   : > { %1555 = vpow2.f32 %v1477_v29 }
 0x3ab   : > { %v1550_v26 = vpop.eup %1549 }
 0x3ac   : > { %540 = vrot.lane.b32.xlu1 %v1550_v26, %s1670_s5 }
 0x3ad   : > { %v1552_v27 = vpop.eup %1551 }
 0x3ae   : > { %567 = vrot.lane.b32.xlu0 %v1552_v27, %s1670_s5  ;;  %v1554_v31 = vpop.eup %1553 }
 0x3af   : > { %v1556_v33 = vpop.eup %1555  ;;  %v531_v34 = vadd.f32 1.0, %v1554_v31 }
 0x3b0   : > { %v558_v35 = vadd.f32 1.0, %v1556_v33 }
 0x3b1   : > { %1557 = vrcp.f32 %v531_v34 }
 0x3b2   : > { %1559 = vrcp.f32 %v558_v35 }
 0x3be   : > { %v1558_v36 = vpop.eup %1557 }
 0x3bf   : > { %v1560_v39 = vpop.eup %1559  ;;  %v538_v43 = vmul.f32 %v1558_v36, %v536_v42 }
 0x3c0   : > { %v565_v47 = vmul.f32 %v1560_v39, %v563_v44 }
 0x41e   : > { %v541_v37 = vpop.permute.xlu1 %540 }
 0x41f   : > { %v543_v38 = vmul.f32 %v1558_v36, %v541_v37 }
 0x420   : > { %v568_v40 = vpop.permute.xlu0 %567 }
 0x421   : > { %545 = vrot.lane.b32.xlu1 %v543_v38, %s1671_s6  ;;  %v570_v41 = vmul.f32 %v1560_v39, %v568_v40 }
 0x423   : > { %572 = vrot.lane.b32.xlu0 %v570_v41, %s1671_s6 }
 0x493   : > { %v546_v45 = vpop.permute.xlu1 %545 }
 0x494   : > { %v1863_v46 = vadd.f32 %v546_v45, %v538_v43 }
 0x495   : > { %v573_v48 = vpop.permute.xlu0 %572 }
 0x496   : > { %1561 = vtanh.f32 %v1863_v46  ;;  %v1866_v49 = vadd.f32 %v573_v48, %v565_v47  ;;  %v672_v44 = vrot.slane %v1863_v46, 7  ;;  %v723_v46 = vsub.s32 2, %v1809_v20 }
 0x498   : > { %1563 = vtanh.f32 %v1866_v49  ;;  %v699_v47 = vrot.slane %v1866_v49, 1 }
 0x4a3   : > { %v1562_v50 = vpop.eup %1561 }
 0x4a4   : > { %551 = vrot.lane.b32.xlu1 %v1562_v50, %s1670_s5 }
 0x4a5   : > { %v1564_v51 = vpop.eup %1563 }
 0x4a6   : > { %578 = vrot.lane.b32.xlu0 %v1564_v51, %s1670_s5 }
 0x516   : > { %v552_v54 = vpop.permute.xlu1 %551 }
 0x517   : > { %v554_v55 = vmul.f32 %v1558_v36, %v552_v54 }
 0x518   : > { %v579_v59 = vpop.permute.xlu0 %578 }
 0x519   : > { %v588_v58 = vrot.slane %v554_v55, %v1812_v21  ;;  %599 = vrot.lane.b32.xlu0 %v554_v55, %s1671_s6  ;;  %v581_v61 = vmul.f32 %v1560_v39, %v579_v59  ;;  %v731_v59 = vsub.s32 5, %v1809_v20 }
 0x51b   : > { %v1887_v63 = vsel %vm582_vm3, %v588_v58, %v455_v60  ;;  %v596_v62 = vrot.slane %v581_v61, %v595_v56  ;;  %v603_v0 = vrot.slane %v581_v61, 5 }
 0x51d   : > { %604 = vrot.lane.b32.xlu1 %v603_v0, %s1670_s5  ;;  %v1897_v5 = vsel %vm590_vm5, %v596_v62, %v463_v3 }
 0x58b   : > { %v600_v7 = vpop.permute.xlu0 %599 }
 0x58f   : > { %v605_v9 = vpop.permute.xlu1 %604 }
 0x590   : > { %v607_v11 = vsel %vm473_vm1, %v600_v7, %v605_v9 }
 0x591   : > { %v608_v13 = vpack.c.bf16 %v607_v11, %v607_v11 }
 0x593   : > { %v610_v15 = vshrl.u32 %v608_v13, 16 }
 0x595   : > { %1478 = vmatmul.mubr.msk.bf16.vlgmr.msra.gmra.mxu1 %vm256_vm0, %v610_v15 }
 0x596   : > { %896 = vmatpush1.bf16.msra.mxu1 %v1721_v4  ;;  %919 = vmatprep.mubr.bf16.mxu1 %v1669_v2 }
 0x597   : > { %897 = vmatprep.subr.bf16.mxu1 %v1733_v6 }
 0x59a   : > { %898 = vmatpush1.bf16.msra.mxu1 %v1741_v8 }
 0x59b   : > { %899 = vmatprep.subr.bf16.mxu1 %v1751_v10 }
 0x59e   : > { %900 = vmatpush1.bf16.msra.mxu1 %v1759_v12 }
 0x59f   : > { %901 = vmatprep.subr.bf16.mxu1 %v1769_v14 }
 0x5a2   : > { %902 = vmatpush1.bf16.msra.mxu1 %v1783_v16 }
 0x5a3   : > { %1155 = vmatprep.subr.bf16.mxu1 %v1711_v1 }
 0x655   : > { %v649_v17 = vpop.f32.mrf.mxu1 }
 0x656   : > { %v657_v18 = vrot.slane %v649_v17, 6 }
 0x657   : > { %v651_v19 = vpop.f32.mrf.mxu1 }
 0x658   : > { %v659_v23 = vadd.f32 %v657_v18, %v1824_v32  ;;  %v661_v24 = vrot.slane %v651_v19, 3 }
 0x659   : > { %v653_v25 = vpop.f32.mrf.mxu1 }
 0x65a   : > { %1565 = vtanh.f32 %v659_v23  ;;  %v663_v26 = vadd.f32 %v661_v24, %v1822_v30  ;;  %v1479_v31 = vmul.f32 -1.442695, %v659_v23 }
 0x65b   : > { %v654_v27 = vpop.f32.mrf.mxu1 }
 0x65c   : > { %1567 = vtanh.f32 %v663_v26  ;;  %v1480_v33 = vmul.f32 -1.442695, %v663_v26 }
 0x65d   : > { %1569 = vpow2.f32 %v1479_v31 }
 0x65e   : > { %1571 = vpow2.f32 %v1480_v33 }
 0x667   : > { %v1566_v28 = vpop.eup %1565 }
 0x668   : > { %676 = vrot.lane.b32.xlu1 %v1566_v28, %s1670_s5 }
 0x669   : > { %v1568_v29 = vpop.eup %1567 }
 0x66a   : > { %703 = vrot.lane.b32.xlu0 %v1568_v29, %s1670_s5  ;;  %v1570_v34 = vpop.eup %1569 }
 0x66b   : > { %v1572_v35 = vpop.eup %1571  ;;  %v667_v36 = vadd.f32 1.0, %v1570_v34 }
 0x66c   : > { %v694_v37 = vadd.f32 1.0, %v1572_v35 }
 0x66d   : > { %1573 = vrcp.f32 %v667_v36 }
 0x66e   : > { %1575 = vrcp.f32 %v694_v37 }
 0x67a   : > { %v1574_v38 = vpop.eup %1573 }
 0x67b   : > { %v1576_v41 = vpop.eup %1575  ;;  %v674_v45 = vmul.f32 %v1574_v38, %v672_v44 }
 0x67c   : > { %v701_v51 = vmul.f32 %v1576_v41, %v699_v47 }
 0x6da   : > { %v677_v39 = vpop.permute.xlu1 %676 }
 0x6db   : > { %v679_v40 = vmul.f32 %v1574_v38, %v677_v39 }
 0x6dc   : > { %v704_v42 = vpop.permute.xlu0 %703 }
 0x6dd   : > { %681 = vrot.lane.b32.xlu1 %v679_v40, %s1671_s6  ;;  %v706_v43 = vmul.f32 %v1576_v41, %v704_v42 }
 0x6df   : > { %708 = vrot.lane.b32.xlu0 %v706_v43, %s1671_s6 }
 0x74f   : > { %v682_v48 = vpop.permute.xlu1 %681 }
 0x750   : > { %v1918_v50 = vadd.f32 %v682_v48, %v674_v45 }
 0x751   : > { %v709_v53 = vpop.permute.xlu0 %708 }
 0x752   : > { %1577 = vtanh.f32 %v1918_v50  ;;  %v1921_v54 = vadd.f32 %v709_v53, %v701_v51  ;;  %v807_v43 = vrot.slane %v1918_v50, 7  ;;  %v858_v50 = vsub.s32 3, %v1809_v20 }
 0x754   : > { %1579 = vtanh.f32 %v1921_v54  ;;  %v834_v45 = vrot.slane %v1921_v54, 1 }
 0x75f   : > { %v1578_v55 = vpop.eup %1577 }
 0x760   : > { %687 = vrot.lane.b32.xlu1 %v1578_v55, %s1670_s5 }
 0x761   : > { %v1580_v57 = vpop.eup %1579 }
 0x762   : > { %714 = vrot.lane.b32.xlu0 %v1580_v57, %s1670_s5 }
 0x7d2   : > { %v688_v49 = vpop.permute.xlu1 %687 }
 0x7d3   : > { %v690_v58 = vmul.f32 %v1574_v38, %v688_v49 }
 0x7d4   : > { %v715_v61 = vpop.permute.xlu0 %714 }
 0x7d5   : > { %v724_v60 = vrot.slane %v690_v58, %v723_v46  ;;  %735 = vrot.lane.b32.xlu0 %v690_v58, %s1671_s6  ;;  %v717_v62 = vmul.f32 %v1576_v41, %v715_v61 }
 0x7d7   : > { %v1935_v0 = vsel %vm718_vm6, %v724_v60, %v1887_v63  ;;  %v732_v3 = vrot.slane %v717_v62, %v731_v59  ;;  %v739_v7 = vrot.slane %v717_v62, 3  ;;  %v866_v60 = vsub.s32 4, %v1809_v20 }
 0x7d9   : > { %740 = vrot.lane.b32.xlu1 %v739_v7, %s1670_s5  ;;  %v1944_v9 = vsel %vm726_vm7, %v732_v3, %v1897_v5 }
 0x847   : > { %v736_v11 = vpop.permute.xlu0 %735 }
 0x84b   : > { %v741_v13 = vpop.permute.xlu1 %740 }
 0x84c   : > { %v743_v15 = vsel %vm473_vm1, %v736_v11, %v741_v13 }
 0x84d   : > { %v744_v17 = vpack.c.bf16 %v743_v15, %v743_v15 }
 0x84f   : > { %v746_v63 = vrot.slane %v744_v17, 1 }
 0x851   : > { %1481 = vmatmul.mubr.msk.bf16.vlgmr.msra.gmra.mxu0 %vm256_vm0, %v746_v63 }
 0x852   : > { %1025 = vmatpush1.bf16.msra.mxu0 %v1721_v4  ;;  %1048 = vmatprep.mubr.bf16.mxu0 %v1669_v2 }
 0x853   : > { %1026 = vmatprep.subr.bf16.mxu0 %v1733_v6 }
 0x856   : > { %1027 = vmatpush1.bf16.msra.mxu0 %v1741_v8 }
 0x857   : > { %1028 = vmatprep.subr.bf16.mxu0 %v1751_v10 }
 0x85a   : > { %1029 = vmatpush1.bf16.msra.mxu0 %v1759_v12 }
 0x85b   : > { %1030 = vmatprep.subr.bf16.mxu0 %v1769_v14 }
 0x85e   : > { %1031 = vmatpush1.bf16.msra.mxu0 %v1783_v16 }
 0x85f   : > { %1284 = vmatprep.subr.bf16.mxu0 %v1711_v1 }
 0x911   : > { %v784_v5 = vpop.f32.mrf.mxu0 }
 0x912   : > { %v792_v18 = vrot.slane %v784_v5, 5 }
 0x913   : > { %v786_v19 = vpop.f32.mrf.mxu0 }
 0x914   : > { %v794_v23 = vadd.f32 %v792_v18, %v1824_v32  ;;  %v796_v24 = vrot.slane %v786_v19, 4 }
 0x915   : > { %v788_v25 = vpop.f32.mrf.mxu0 }
 0x916   : > { %1581 = vtanh.f32 %v794_v23  ;;  %v798_v26 = vadd.f32 %v796_v24, %v1822_v30  ;;  %v1482_v31 = vmul.f32 -1.442695, %v794_v23 }
 0x917   : > { %v789_v27 = vpop.f32.mrf.mxu0 }
 0x918   : > { %1583 = vtanh.f32 %v798_v26  ;;  %v1483_v1 = vmul.f32 -1.442695, %v798_v26 }
 0x919   : > { %1585 = vpow2.f32 %v1482_v31 }
 0x91a   : > { %1587 = vpow2.f32 %v1483_v1 }
 0x923   : > { %v1582_v28 = vpop.eup %1581 }
 0x924   : > { %811 = vrot.lane.b32.xlu1 %v1582_v28, %s1670_s5 }
 0x925   : > { %v1584_v29 = vpop.eup %1583 }
 0x926   : > { %838 = vrot.lane.b32.xlu0 %v1584_v29, %s1670_s5  ;;  %v1586_v33 = vpop.eup %1585 }
 0x927   : > { %v1588_v34 = vpop.eup %1587  ;;  %v802_v35 = vadd.f32 1.0, %v1586_v33 }
 0x928   : > { %v829_v36 = vadd.f32 1.0, %v1588_v34 }
 0x929   : > { %1589 = vrcp.f32 %v802_v35 }
 0x92a   : > { %1591 = vrcp.f32 %v829_v36 }
 0x936   : > { %v1590_v37 = vpop.eup %1589 }
 0x937   : > { %v1592_v40 = vpop.eup %1591  ;;  %v809_v44 = vmul.f32 %v1590_v37, %v807_v43 }
 0x938   : > { %v836_v51 = vmul.f32 %v1592_v40, %v834_v45 }
 0x996   : > { %v812_v38 = vpop.permute.xlu1 %811 }
 0x997   : > { %v814_v39 = vmul.f32 %v1590_v37, %v812_v38 }
 0x998   : > { %v839_v41 = vpop.permute.xlu0 %838 }
 0x999   : > { %816 = vrot.lane.b32.xlu1 %v814_v39, %s1671_s6  ;;  %v841_v42 = vmul.f32 %v1592_v40, %v839_v41 }
 0x99b   : > { %843 = vrot.lane.b32.xlu0 %v841_v42, %s1671_s6 }
 0xa0b   : > { %v817_v47 = vpop.permute.xlu1 %816 }
 0xa0c   : > { %v1965_v48 = vadd.f32 %v817_v47, %v809_v44 }
 0xa0d   : > { %v844_v53 = vpop.permute.xlu0 %843 }
 0xa0e   : > { %1593 = vtanh.f32 %v1965_v48  ;;  %v1968_v55 = vadd.f32 %v844_v53, %v836_v51  ;;  %v944_v45 = vrot.slane %v1965_v48, 7 }
 0xa10   : > { %1595 = vtanh.f32 %v1968_v55  ;;  %v971_v51 = vrot.slane %v1968_v55, 1 }
 0xa1b   : > { %v1594_v57 = vpop.eup %1593 }
 0xa1c   : > { %822 = vrot.lane.b32.xlu1 %v1594_v57, %s1670_s5 }
 0xa1d   : > { %v1596_v49 = vpop.eup %1595 }
 0xa1e   : > { %849 = vrot.lane.b32.xlu0 %v1596_v49, %s1670_s5 }
 0xa8e   : > { %v823_v54 = vpop.permute.xlu1 %822 }
 0xa8f   : > { %v825_v58 = vmul.f32 %v1590_v37, %v823_v54 }
 0xa90   : > { %v850_v62 = vpop.permute.xlu0 %849 }
 0xa91   : > { %v859_v61 = vrot.slane %v825_v58, %v858_v50  ;;  %870 = vrot.lane.b32.xlu0 %v825_v58, %s1671_s6  ;;  %v852_v3 = vmul.f32 %v1592_v40, %v850_v62 }
 0xa93   : > { %v1982_v7 = vsel %vm853_vm8, %v859_v61, %v1935_v0  ;;  %v867_v11 = vrot.slane %v852_v3, %v866_v60  ;;  %v874_v13 = vrot.slane %v852_v3, 1 }
 0xa95   : > { %875 = vrot.lane.b32.xlu1 %v874_v13, %s1670_s5  ;;  %v1991_v15 = vsel %vm861_vm9, %v867_v11, %v1944_v9 }
 0xb03   : > { %v871_v17 = vpop.permute.xlu0 %870 }
 0xb07   : > { %v876_v63 = vpop.permute.xlu1 %875 }
 0xb08   : > { %v878_v5 = vsel %vm473_vm1, %v871_v17, %v876_v63 }
 0xb09   : > { %v879_v18 = vpack.c.bf16 %v878_v5, %v878_v5 }
 0xb0b   : > { %v881_v0 = vshrl.u32 %v879_v18, 16 }
 0xb0d   : > { %v883_v19 = vrot.slane %v881_v0, 1 }
 0xb0f   : > { %1484 = vmatmul.mubr.msk.bf16.vlgmr.msra.gmra.mxu1 %vm256_vm0, %v883_v19 }
 0xb10   : > { %1156 = vmatpush1.bf16.msra.mxu1 %v1721_v4  ;;  %1179 = vmatprep.mubr.bf16.mxu1 %v1669_v2 }
 0xb11   : > { %1157 = vmatprep.subr.bf16.mxu1 %v1733_v6 }
 0xb14   : > { %1158 = vmatpush1.bf16.msra.mxu1 %v1741_v8 }
 0xb15   : > { %1159 = vmatprep.subr.bf16.mxu1 %v1751_v10 }
 0xb18   : > { %1160 = vmatpush1.bf16.msra.mxu1 %v1759_v12 }
 0xb19   : > { %1161 = vmatprep.subr.bf16.mxu1 %v1769_v14 }
 0xb1c   : > { %1162 = vmatpush1.bf16.msra.mxu1 %v1783_v16 }
 0xbcf   : > { %v921_v9 = vpop.f32.mrf.mxu1 }
 0xbd0   : > { %v929_v23 = vrot.slane %v921_v9, 4 }
 0xbd1   : > { %v923_v24 = vpop.f32.mrf.mxu1 }
 0xbd2   : > { %v931_v25 = vadd.f32 %v929_v23, %v1824_v32  ;;  %v933_v26 = vrot.slane %v923_v24, 5 }
 0xbd3   : > { %v925_v27 = vpop.f32.mrf.mxu1 }
 0xbd4   : > { %1597 = vtanh.f32 %v931_v25  ;;  %v935_v28 = vadd.f32 %v933_v26, %v1822_v30  ;;  %v1485_v33 = vmul.f32 -1.442695, %v931_v25 }
 0xbd5   : > { %v926_v29 = vpop.f32.mrf.mxu1 }
 0xbd6   : > { %1599 = vtanh.f32 %v935_v28  ;;  %v1486_v34 = vmul.f32 -1.442695, %v935_v28 }
 0xbd7   : > { %1601 = vpow2.f32 %v1485_v33 }
 0xbd8   : > { %1603 = vpow2.f32 %v1486_v34 }
 0xbe1   : > { %v1598_v31 = vpop.eup %1597 }
 0xbe2   : > { %948 = vrot.lane.b32.xlu1 %v1598_v31, %s1670_s5 }
 0xbe3   : > { %v1600_v1 = vpop.eup %1599 }
 0xbe4   : > { %975 = vrot.lane.b32.xlu0 %v1600_v1, %s1670_s5  ;;  %v1602_v35 = vpop.eup %1601 }
 0xbe5   : > { %v1604_v36 = vpop.eup %1603  ;;  %v939_v37 = vadd.f32 1.0, %v1602_v35 }
 0xbe6   : > { %v966_v38 = vadd.f32 1.0, %v1604_v36 }
 0xbe7   : > { %1605 = vrcp.f32 %v939_v37 }
 0xbe8   : > { %1607 = vrcp.f32 %v966_v38 }
 0xbf4   : > { %v1606_v39 = vpop.eup %1605 }
 0xbf5   : > { %v1608_v42 = vpop.eup %1607  ;;  %v946_v47 = vmul.f32 %v1606_v39, %v944_v45 }
 0xbf6   : > { %v973_v49 = vmul.f32 %v1608_v42, %v971_v51 }
 0xc54   : > { %v949_v40 = vpop.permute.xlu1 %948 }
 0xc55   : > { %v951_v41 = vmul.f32 %v1606_v39, %v949_v40 }
 0xc56   : > { %v976_v43 = vpop.permute.xlu0 %975 }
 0xc57   : > { %953 = vrot.lane.b32.xlu1 %v951_v41, %s1671_s6  ;;  %v978_v44 = vmul.f32 %v1608_v42, %v976_v43 }
 0xc59   : > { %980 = vrot.lane.b32.xlu0 %v978_v44, %s1671_s6 }
 0xcc9   : > { %v954_v53 = vpop.permute.xlu1 %953 }
 0xcca   : > { %v2011_v57 = vadd.f32 %v954_v53, %v946_v47 }
 0xccb   : > { %v981_v54 = vpop.permute.xlu0 %980 }
 0xccc   : > { %1609 = vtanh.f32 %v2011_v57  ;;  %v2014_v58 = vadd.f32 %v981_v54, %v973_v49  ;;  %v1073_v36 = vrot.slane %v2011_v57, 7 }
 0xcce   : > { %1611 = vtanh.f32 %v2014_v58  ;;  %v1100_v38 = vrot.slane %v2014_v58, 1 }
 0xcd9   : > { %v1610_v61 = vpop.eup %1609 }
 0xcda   : > { %959 = vrot.lane.b32.xlu1 %v1610_v61, %s1670_s5 }
 0xcdb   : > { %v1612_v62 = vpop.eup %1611 }
 0xcdc   : > { %986 = vrot.lane.b32.xlu0 %v1612_v62, %s1670_s5 }
 0xd4c   : > { %v960_v48 = vpop.permute.xlu1 %959 }
 0xd4d   : > { %v962_v3 = vmul.f32 %v1606_v39, %v960_v48 }
 0xd4e   : > { %v987_v11 = vpop.permute.xlu0 %986 }
 0xd4f   : > { %v993_v55 = vrot.slane %v962_v3, %v866_v60  ;;  %1001 = vrot.lane.b32.xlu0 %v962_v3, %s1671_s6  ;;  %v989_v13 = vmul.f32 %v1608_v42, %v987_v11 }
 0xd51   : > { %v2025_v17 = vsel %vm861_vm9, %v993_v55, %v1982_v7  ;;  %v998_v63 = vrot.slane %v989_v13, %v858_v50  ;;  %v1005_v5 = vrot.slane %v989_v13, 7 }
 0xd53   : > { %1006 = vrot.lane.b32.xlu1 %v1005_v5, %s1670_s5  ;;  %v2033_v18 = vsel %vm853_vm8, %v998_v63, %v1991_v15 }
 0xdc1   : > { %v1002_v60 = vpop.permute.xlu0 %1001 }
 0xdc5   : > { %v1007_v0 = vpop.permute.xlu1 %1006 }
 0xdc6   : > { %v1009_v19 = vsel %vm473_vm1, %v1002_v60, %v1007_v0 }
 0xdc7   : > { %v1010_v9 = vpack.c.bf16 %v1009_v19, %v1009_v19 }
 0xdc9   : > { %v1012_v23 = vrot.slane %v1010_v9, 2 }
 0xdcb   : > { %1487 = vmatmul.mubr.msk.bf16.vlgmr.msra.gmra.mxu0 %vm256_vm0, %v1012_v23 }
 0xdcc   : > { %1285 = vmatpush1.bf16.msra.mxu0 %v1721_v4  ;;  %1308 = vmatprep.mubr.bf16.mxu0 %v1669_v2 }
 0xdcd   : > { %1286 = vmatprep.subr.bf16.mxu0 %v1733_v6 }
 0xdd0   : > { %1287 = vmatpush1.bf16.msra.mxu0 %v1741_v8 }
 0xdd1   : > { %1288 = vmatprep.subr.bf16.mxu0 %v1751_v10 }
 0xdd4   : > { %1289 = vmatpush1.bf16.msra.mxu0 %v1759_v12 }
 0xdd5   : > { %1290 = vmatprep.subr.bf16.mxu0 %v1769_v14 }
 0xdd8   : > { %1291 = vmatpush1.bf16.msra.mxu0 %v1783_v16 }
 0xe8b   : > { %v1050_v50 = vpop.f32.mrf.mxu0 }
 0xe8c   : > { %v1058_v7 = vrot.slane %v1050_v50, 3 }
 0xe8d   : > { %v1052_v15 = vpop.f32.mrf.mxu0 }
 0xe8e   : > { %v1060_v24 = vadd.f32 %v1058_v7, %v1824_v32  ;;  %v1062_v4 = vrot.slane %v1052_v15, 6 }
 0xe8f   : > { %v1054_v25 = vpop.f32.mrf.mxu0 }
 0xe90   : > { %1613 = vtanh.f32 %v1060_v24  ;;  %v1064_v2 = vadd.f32 %v1062_v4, %v1822_v30  ;;  %v1488_v12 = vmul.f32 -1.442695, %v1060_v24 }
 0xe91   : > { %v1055_v6 = vpop.f32.mrf.mxu0 }
 0xe92   : > { %1615 = vtanh.f32 %v1064_v2  ;;  %v1489_v14 = vmul.f32 -1.442695, %v1064_v2 }
 0xe93   : > { %1617 = vpow2.f32 %v1488_v12 }
 0xe94   : > { %1619 = vpow2.f32 %v1489_v14 }
 0xe9d   : > { %v1614_v8 = vpop.eup %1613 }
 0xe9e   : > { %1077 = vrot.lane.b32.xlu1 %v1614_v8, %s1670_s5 }
 0xe9f   : > { %v1616_v10 = vpop.eup %1615 }
 0xea0   : > { %1104 = vrot.lane.b32.xlu0 %v1616_v10, %s1670_s5  ;;  %v1618_v16 = vpop.eup %1617 }
 0xea1   : > { %v1620_v26 = vpop.eup %1619  ;;  %v1068_v27 = vadd.f32 1.0, %v1618_v16 }
 0xea2   : > { %v1095_v28 = vadd.f32 1.0, %v1620_v26 }
 0xea3   : > { %1621 = vrcp.f32 %v1068_v27 }
 0xea4   : > { %1623 = vrcp.f32 %v1095_v28 }
 0xeb0   : > { %v1622_v29 = vpop.eup %1621 }
 0xeb1   : > { %v1624_v33 = vpop.eup %1623  ;;  %v1075_v37 = vmul.f32 %v1622_v29, %v1073_v36 }
 0xeb2   : > { %v1102_v41 = vmul.f32 %v1624_v33, %v1100_v38 }
 0xf10   : > { %v1078_v31 = vpop.permute.xlu1 %1077 }
 0xf11   : > { %v1080_v1 = vmul.f32 %v1622_v29, %v1078_v31 }
 0xf12   : > { %v1105_v34 = vpop.permute.xlu0 %1104 }
 0xf13   : > { %1082 = vrot.lane.b32.xlu1 %v1080_v1, %s1671_s6  ;;  %v1107_v35 = vmul.f32 %v1624_v33, %v1105_v34 }
 0xf15   : > { %1109 = vrot.lane.b32.xlu0 %v1107_v35, %s1671_s6 }
 0xf85   : > { %v1083_v39 = vpop.permute.xlu1 %1082 }
 0xf86   : > { %v1085_v40 = vadd.f32 %v1083_v39, %v1075_v37 }
 0xf87   : > { %v1110_v42 = vpop.permute.xlu0 %1109 }
 0xf88   : > { %1625 = vtanh.f32 %v1085_v40  ;;  %v1112_v43 = vadd.f32 %v1110_v42, %v1102_v41  ;;  %v1204_v16 = vrot.slane %v1085_v40, 7 }
 0xf8a   : > { %1627 = vtanh.f32 %v1112_v43  ;;  %v1231_v27 = vrot.slane %v1112_v43, 1 }
 0xf95   : > { %v1626_v44 = vpop.eup %1625 }
 0xf96   : > { %1088 = vrot.lane.b32.xlu1 %v1626_v44, %s1670_s5 }
 0xf97   : > { %v1628_v45 = vpop.eup %1627 }
 0xf98   : > { %1115 = vrot.lane.b32.xlu0 %v1628_v45, %s1670_s5 }
0x1008   : > { %v1089_v47 = vpop.permute.xlu1 %1088 }
0x1009   : > { %v1091_v51 = vmul.f32 %v1622_v29, %v1089_v47 }
0x100a   : > { %v1116_v57 = vpop.permute.xlu0 %1115 }
0x100b   : > { %v1122_v53 = vrot.slane %v1091_v51, %v731_v59  ;;  %1130 = vrot.lane.b32.xlu0 %v1091_v51, %s1671_s6  ;;  %v1118_v49 = vmul.f32 %v1624_v33, %v1116_v57 }
0x100d   : > { %v2061_v54 = vsel %vm726_vm7, %v1122_v53, %v2025_v17  ;;  %v1127_v58 = vrot.slane %v1118_v49, %v723_v46  ;;  %v1134_v61 = vrot.slane %v1118_v49, 5 }
0x100f   : > { %1135 = vrot.lane.b32.xlu1 %v1134_v61, %s1670_s5  ;;  %v2069_v62 = vsel %vm718_vm6, %v1127_v58, %v2033_v18 }
0x107d   : > { %v1131_v59 = vpop.permute.xlu0 %1130 }
0x1081   : > { %v1136_v48 = vpop.permute.xlu1 %1135 }
0x1082   : > { %v1138_v3 = vsel %vm473_vm1, %v1131_v59, %v1136_v48 }
0x1083   : > { %v1139_v55 = vpack.c.bf16 %v1138_v3, %v1138_v3 }
0x1085   : > { %v1141_v11 = vshrl.u32 %v1139_v55, 16 }
0x1087   : > { %v1143_v13 = vrot.slane %v1141_v11, 2 }
0x1089   : > { %1490 = vmatmul.mubr.msk.bf16.vlgmr.msra.gmra.mxu1 %vm256_vm0, %v1143_v13 }
0x1149   : > { %v1181_v17 = vpop.f32.mrf.mxu1 }
0x114a   : > { %v1189_v63 = vrot.slane %v1181_v17, 2 }
0x114b   : > { %v1183_v46 = vpop.f32.mrf.mxu1 }
0x114c   : > { %v1191_v5 = vadd.f32 %v1189_v63, %v1824_v32  ;;  %v1193_v60 = vrot.slane %v1183_v46, 7 }
0x114d   : > { %v1185_v0 = vpop.f32.mrf.mxu1 }
0x114e   : > { %1629 = vtanh.f32 %v1191_v5  ;;  %v1195_v18 = vadd.f32 %v1193_v60, %v1822_v30  ;;  %v1491_v50 = vmul.f32 -1.442695, %v1191_v5 }
0x114f   : > { %v1186_v19 = vpop.f32.mrf.mxu1 }
0x1150   : > { %1631 = vtanh.f32 %v1195_v18  ;;  %v1492_v7 = vmul.f32 -1.442695, %v1195_v18 }
0x1151   : > { %1633 = vpow2.f32 %v1491_v50 }
0x1152   : > { %1635 = vpow2.f32 %v1492_v7 }
0x115b   : > { %v1630_v9 = vpop.eup %1629 }
0x115c   : > { %1208 = vrot.lane.b32.xlu1 %v1630_v9, %s1670_s5 }
0x115d   : > { %v1632_v23 = vpop.eup %1631 }
0x115e   : > { %1235 = vrot.lane.b32.xlu0 %v1632_v23, %s1670_s5  ;;  %v1634_v15 = vpop.eup %1633 }
0x115f   : > { %v1636_v24 = vpop.eup %1635  ;;  %v1199_v4 = vadd.f32 1.0, %v1634_v15 }
0x1160   : > { %v1226_v25 = vadd.f32 1.0, %v1636_v24 }
0x1161   : > { %1637 = vrcp.f32 %v1199_v4 }
0x1162   : > { %1639 = vrcp.f32 %v1226_v25 }
0x116e   : > { %v1638_v2 = vpop.eup %1637 }
0x116f   : > { %v1640_v10 = vpop.eup %1639  ;;  %v1206_v26 = vmul.f32 %v1638_v2, %v1204_v16 }
0x1170   : > { %v1233_v31 = vmul.f32 %v1640_v10, %v1231_v27 }
0x11ce   : > { %v1209_v6 = vpop.permute.xlu1 %1208 }
0x11cf   : > { %v1211_v8 = vmul.f32 %v1638_v2, %v1209_v6 }
0x11d0   : > { %v1236_v12 = vpop.permute.xlu0 %1235 }
0x11d1   : > { %1213 = vrot.lane.b32.xlu1 %v1211_v8, %s1671_s6  ;;  %v1238_v14 = vmul.f32 %v1640_v10, %v1236_v12 }
0x11d3   : > { %1240 = vrot.lane.b32.xlu0 %v1238_v14, %s1671_s6 }
0x1243   : > { %v1214_v28 = vpop.permute.xlu1 %1213 }
0x1244   : > { %v1216_v29 = vadd.f32 %v1214_v28, %v1206_v26 }
0x1245   : > { %v1241_v1 = vpop.permute.xlu0 %1240 }
0x1246   : > { %1641 = vtanh.f32 %v1216_v29  ;;  %v1243_v33 = vadd.f32 %v1241_v1, %v1233_v31  ;;  %v1330_v18 = vrot.slane %v1216_v29, 7 }
0x1248   : > { %1643 = vtanh.f32 %v1243_v33  ;;  %v1357_v19 = vrot.slane %v1243_v33, 1 }
0x1253   : > { %v1642_v34 = vpop.eup %1641 }
0x1254   : > { %1219 = vrot.lane.b32.xlu1 %v1642_v34, %s1670_s5 }
0x1255   : > { %v1644_v35 = vpop.eup %1643 }
0x1256   : > { %1246 = vrot.lane.b32.xlu0 %v1644_v35, %s1670_s5 }
0x12c6   : > { %v1220_v36 = vpop.permute.xlu1 %1219 }
0x12c7   : > { %v1222_v37 = vmul.f32 %v1638_v2, %v1220_v36 }
0x12c8   : > { %v1247_v39 = vpop.permute.xlu0 %1246 }
0x12c9   : > { %v1253_v38 = vrot.slane %v1222_v37, %v595_v56  ;;  %1261 = vrot.lane.b32.xlu0 %v1222_v37, %s1671_s6  ;;  %v1249_v40 = vmul.f32 %v1640_v10, %v1247_v39 }
0x12cb   : > { %v2087_v41 = vsel %vm590_vm5, %v1253_v38, %v2061_v54  ;;  %v1258_v42 = vrot.slane %v1249_v40, %v1812_v21  ;;  %v1265_v43 = vrot.slane %v1249_v40, 3 }
0x12cd   : > { %1266 = vrot.lane.b32.xlu1 %v1265_v43, %s1670_s5  ;;  %v1259_v44 = vsel %vm582_vm3, %v1258_v42, %v2069_v62 }
0x133b   : > { %v1262_v45 = vpop.permute.xlu0 %1261 }
0x133f   : > { %v1267_v56 = vpop.permute.xlu1 %1266 }
0x1340   : > { %v1269_v47 = vsel %vm473_vm1, %v1262_v45, %v1267_v56 }
0x1341   : > { %v1270_v51 = vpack.c.bf16 %v1269_v47, %v1269_v47 }
0x1343   : > { %v1272_v53 = vrot.slane %v1270_v51, 3 }
0x1345   : > { %1493 = vmatmul.mubr.msk.bf16.vlgmr.msra.gmra.mxu0 %vm256_vm0, %v1272_v53 }
0x1405   : > { %v1310_v57 = vpop.f32.mrf.mxu0 }
0x1406   : > { %v1318_v49 = vrot.slane %v1310_v57, 1 }
0x1407   : > { %v1312_v54 = vpop.f32.mrf.mxu0 }
0x1408   : > { %v1320_v21 = vadd.f32 %v1318_v49, %v1824_v32  ;;  %v1321_v58 = vadd.f32 %v1312_v54, %v1822_v30 }
0x1409   : > { %v1314_v61 = vpop.f32.mrf.mxu0 }
0x140a   : > { %1645 = vtanh.f32 %v1320_v21  ;;  %v1494_v3 = vmul.f32 -1.442695, %v1320_v21  ;;  %v1495_v55 = vmul.f32 -1.442695, %v1321_v58 }
0x140b   : > { %1647 = vtanh.f32 %v1321_v58  ;;  %v1315_v59 = vpop.f32.mrf.mxu0 }
0x140c   : > { %1649 = vpow2.f32 %v1494_v3 }
0x140d   : > { %1651 = vpow2.f32 %v1495_v55 }
0x1417   : > { %v1646_v62 = vpop.eup %1645 }
0x1418   : > { %v1648_v48 = vpop.eup %1647  ;;  %1334 = vrot.lane.b32.xlu0 %v1646_v62, %s1670_s5 }
0x1419   : > { %1361 = vrot.lane.b32.xlu1 %v1648_v48, %s1670_s5  ;;  %v1650_v11 = vpop.eup %1649 }
0x141a   : > { %v1652_v13 = vpop.eup %1651  ;;  %v1325_v17 = vadd.f32 1.0, %v1650_v11 }
0x141b   : > { %v1352_v32 = vadd.f32 1.0, %v1652_v13 }
0x141c   : > { %1653 = vrcp.f32 %v1325_v17 }
0x141d   : > { %1655 = vrcp.f32 %v1352_v32 }
0x1429   : > { %v1654_v30 = vpop.eup %1653 }
0x142a   : > { %v1656_v46 = vpop.eup %1655  ;;  %v1332_v9 = vmul.f32 %v1654_v30, %v1330_v18 }
0x142b   : > { %v1359_v50 = vmul.f32 %v1656_v46, %v1357_v19 }
0x148a   : > { %v1335_v63 = vpop.permute.xlu0 %1334 }
0x148b   : > { %v1337_v5 = vmul.f32 %v1654_v30, %v1335_v63  ;;  %v1362_v60 = vpop.permute.xlu1 %1361 }
0x148c   : > { %v1364_v0 = vmul.f32 %v1656_v46, %v1362_v60 }
0x148d   : > { %1339 = vrot.lane.b32.xlu0 %v1337_v5, %s1671_s6 }
0x148e   : > { %1366 = vrot.lane.b32.xlu1 %v1364_v0, %s1671_s6 }
0x14ff   : > { %v1340_v23 = vpop.permute.xlu0 %1339 }
0x1500   : > { %v1342_v7 = vadd.f32 %v1340_v23, %v1332_v9  ;;  %v1367_v15 = vpop.permute.xlu1 %1366 }
0x1501   : > { %v1369_v24 = vadd.f32 %v1367_v15, %v1359_v50 }
0x1502   : > { %1657 = vtanh.f32 %v1342_v7 }
0x1503   : > { %1659 = vtanh.f32 %v1369_v24 }
0x150f   : > { %v1658_v4 = vpop.eup %1657 }
0x1510   : > { %v1660_v25 = vpop.eup %1659  ;;  %1345 = vrot.lane.b32.xlu0 %v1658_v4, %s1670_s5 }
0x1511   : > { %1372 = vrot.lane.b32.xlu1 %v1660_v25, %s1670_s5 }
0x1582   : > { %v1346_v2 = vpop.permute.xlu0 %1345 }
0x1583   : > { %v1348_v6 = vmul.f32 %v1654_v30, %v1346_v2  ;;  %v1373_v8 = vpop.permute.xlu1 %1372 }
0x1584   : > { %v1375_v10 = vmul.f32 %v1656_v46, %v1373_v8 }
0x1585   : > { %v1379_v12 = vrot.slane %v1348_v6, %v461_v52 }
0x1586   : > { %v1384_v14 = vrot.slane %v1375_v10, %v1815_v22 }
0x1587   : > { %v1380_v16 = vsel %vm456_vm4, %v1379_v12, %v2087_v41 }
0x1588   : > { %1387 = vrot.lane.b32.xlu0 %v1380_v16, %s1671_s6  ;;  %v1385_v26 = vsel %vm448_vm2, %v1384_v14, %v1259_v44 }
0x1589   : > { %1391 = vrot.lane.b32.xlu1 %v1385_v26, %s1670_s5 }
0x15fa   : > { %v1388_v27 = vpop.permute.xlu0 %1387 }
0x15fb   : > { %v1392_v52 = vpop.permute.xlu1 %1391 }
0x15fc   : > { %v1394_v22 = vsel %vm473_vm1, %v1388_v27, %v1392_v52 }
0x15fd   : > { %1395 = vst.msk [vmem:[%s192_s10] sm:$0xff] %vm256_vm0, %v1394_v22 }
0x15fe PF: > { %s14_s15 = sadd.s32 1, %s1667_s15  }
0x15ff   : > { %p11_p4 = scmp.ge.s32.totalorder %s14_s15, 4  }
0x1601   :  { %13 = sbr.rel (!%p11_p4) target bundleno = 1 (0x1), region = 66 }

// kernel: forward.7
= control target key start
LH: loop header
LB: loop body
LE: loop exit
PB: predicated region body
PF: predicated region fallthrough
CT: control target
= control target key end

     0   :  { %s2503_s0 = inlined_call_operand.vmem [shape: f32[2,8,64], index: 0, kind: input, shape index: {}]   ;;  %s2504_s1 = inlined_call_operand.vmem [shape: bf16[64,64], index: 1, kind: input, shape index: {}]   ;;  %s2505_s2 = inlined_call_operand.vmem [shape: f32[1,64], index: 2, kind: input, shape index: {}]   ;;  %s2506_s3 = inlined_call_operand.vmem [shape: bf16[64,64], index: 3, kind: input, shape index: {}]   ;;  %s2507_s4 = inlined_call_operand.vmem [shape: f32[1,64], index: 4, kind: input, shape index: {}]   ;;  %s2508_s5 = inlined_call_operand.vmem [shape: bf16[64,64], index: 5, kind: input, shape index: {}]   ;;  %s2509_s6 = inlined_call_operand.vmem [shape: f32[1,64], index: 6, kind: input, shape index: {}]   ;;  %s2510_s7 = inlined_call_operand.vmem [shape: bf16[64,64], index: 7, kind: input, shape index: {}]   ;;  %s2511_s8 = inlined_call_operand.vmem [shape: f32[1,64], index: 8, kind: input, shape index: {}]   ;;  %s2512_s9 = inlined_call_operand.vmem [shape: bf16[64,64], index: 9, kind: input, shape index: {}]   ;;  %s2513_s10 = inlined_call_operand.vmem [shape: f32[1,64], index: 10, kind: input, shape index: {}]   ;;  %s2514_s11 = inlined_call_operand.vmem [shape: bf16[64,32], index: 11, kind: input, shape index: {}]   ;;  %s2515_s12 = inlined_call_operand.vmem [shape: f32[1,32], index: 12, kind: input, shape index: {}]   ;;  %s2516_s13 = inlined_call_operand.vmem [shape: bf16[32,16], index: 13, kind: input, shape index: {}]   ;;  %s2517_s14 = inlined_call_operand.vmem [shape: f32[1,16], index: 14, kind: input, shape index: {}]   ;;  %s2518_s15 = inlined_call_operand.vmem [shape: bf16[16,10], index: 15, kind: input, shape index: {}]   ;;  %s2519_s16 = inlined_call_operand.vmem [shape: f32[1,10], index: 16, kind: input, shape index: {}]   ;;  %s2520_s17 = inlined_call_operand.hbm [shape: f32[2,1,10], index: 17, kind: output, shape index: {}]  }
   0x1   :  { %2529 = sst [smem:[#allocation11_spill]] %s2503_s0 }
   0x2   :  { %2530 = sst [smem:[#allocation12_spill]] %s2504_s1 }
   0x3   :  { %2531 = sst [smem:[#allocation13_spill]] %s2520_s17 }
   0x4   :  { %22 = vsyncpa [#allocation3], 0 }
   0x5   :  { %24 = vsyncpa [#allocation3 + $0x1], 0  ;;  %s2182_s24 = smov 0   ;;  %s2184_s25 = smov 0  }
   0x6   :  { %s2186_s26 = smov 0   ;;  %s2188_s27 = smov 0  }
   0x7 LB: > { %2532 = sst [smem:[#allocation5_spill]] %s2069_s24  ;;  %s2203_s28 = sadd.s32 4294967295, %s2081_s27   ;;  %s2081_s27 = sphi %s2188_s27, %s2546_s27   ;;  %s2077_s26 = sphi %s2186_s26, %s2548_s26   ;;  %s2073_s25 = sphi %s2184_s25, %s2550_s25   ;;  %s2069_s24 = sphi %s2182_s24, %s2549_s24  }
   0x8   : > { %2533 = sst [smem:[#allocation6_spill]] %s2077_s26  ;;  %s1690_s29 = sadd.s32 4294967294, %s2081_s27  }
   0x9   : > { %2534 = sst [smem:[#allocation7_spill]] %s2081_s27  ;;  %s2207_s0 = sadd.s32 1, %s2081_s27  }
   0xa   : > { %2535 = sst [smem:[#allocation8_spill]] %s2207_s0  ;;  %s399_s30 = sadd.s32 1, %s2077_s26 }
   0xb   : > { %s396_s18 = ssub.s32 %s2081_s27, %s2207_s0  ;;  %p409_p0 = scmp.ne.s32.totalorder %s2077_s26, %s2073_s25 }
   0xc   : > { %p397_p1 = scmp.eq.s32.totalorder %s396_s18, 0  ;;  %p410_p2 = scmp.eq.s32.totalorder %s2203_s28, 1 }
   0xd   : > { %p415_p3 = scmp.ne.s32.totalorder %s2073_s25, %s2069_s24  ;;  %p416_p4 = scmp.eq.s32.totalorder %s1690_s29, 1 }
   0xe   : > { %s2218_s19 = scalar_select %p397_p1, %s2077_s26, %s399_s30  }
   0xf   : > { %p2220_p5 = por %p410_p2, %p409_p0  ;;  %p2224_p6 = por %p416_p4, %p415_p3 }
  0x10   : > { %2536 = sst [smem:[#allocation9_spill]] %s2218_s19  ;;  %p1693_p7 = scmp.ge.s32.totalorder %s2081_s27, 1 }
  0x11   : > { %s2538_s20 = scalar_select %p2224_p6, 1, 0 }
  0x12   : > { %p489_p8 = scmp.lt.s32.totalorder %s2081_s27, 3 }
  0x13   : > { %2539 = sst [smem:[#allocation10_spill]] %s2538_s20 }
  0x14   : > { %p490_p9 = pnand %p1693_p7, %p489_p8 }
  0x15   : > { %s2540_s23 = sld [smem:[#allocation12_spill]] (!%p490_p9)  ;;  %p539_p10 = scmp.lt.s32.totalorder (!%p490_p9), %s2203_s28, 1 }
  0x16   : > { %493 = sbr.rel (%p490_p9) target bundleno = 2218 (0x8aa), region = 88  ;;  %s2541_s27 = sld [smem:[#allocation11_spill]] (!%p490_p9) }
  0x17   : > { %s2085_s24 = smov (!%p490_p9), 96   ;;  %s2088_s19 = smov (!%p490_p9), 16  }
  0x18   : > { %s2090_s0 = smov (!%p490_p9), 48   ;;  %s2542_s21 = sld [smem:[#allocation13_spill]] (!%p490_p9) }
  0x1b   : > { %v1978_v0 = vld [vmem:[%s2540_s23 + $0x18] sm:$0xff]   ;;  %v2083_v1 = vmov 0.0   ;;  %v1979_v2 = vld [vmem:[%s2540_s23 + $0x10] sm:$0xff]   ;;  %vm2084_vm0 = vmmov 0   ;;  %s540_s18 = scalar_select %p539_p10, %s2203_s28, 1  ;;  %v1980_v4 = vld [vmem:[%s2540_s23 + $0x8] sm:$0xff]  }
  0x1c   : > { %1797 = vmatprep.subr.bf16.mxu0 %v2083_v1  ;;  %1809 = vmatprep.subr.bf16.mxu1 %v2083_v1  ;;  %v1982_v3 = vld [vmem:[%s2506_s3 + $0x18] sm:$0xff]   ;;  %v1984_v5 = vld [vmem:[%s2506_s3 + $0x10] sm:$0xff]   ;;  %v1981_v6 = vld [vmem:[%s2540_s23] sm:$0xff]   ;;  %vm585_vm1 = vcmask 523264   ;;  %vm873_vm2 = vcmask 130048   ;;  %vm938_vm3 = vcmask 1043456  }
  0x1d   : > { %1798 = vmatpush3.bf16.msra.mxu0 %v1978_v0  ;;  %1805 = vmatprep.mubr.msk.bf16.mxu0 %vm2084_vm0, %v2083_v1  ;;  %s1694_s29 = sshll.u32 %s540_s18, 3  ;;  %v1986_v8 = vld [vmem:[%s2506_s3 + $0x8] sm:$0xff]   ;;  %v1983_v9 = vld [vmem:[%s2508_s5 + $0x18] sm:$0xff]   ;;  %v1985_v11 = vld [vmem:[%s2508_s5 + $0x10] sm:$0xff]   ;;  %vm921_vm4 = vcmask 64512   ;;  %vm1331_vm5 = vcmask 261120  }
  0x1e   : > { %1799 = vmatprep.subr.bf16.mxu0 %v2083_v1  ;;  %1817 = vmatprep.mubr.msk.bf16.mxu1 %vm2084_vm0, %v2083_v1  ;;  %s542_s17 = scalar_lea.vmem %s2541_s27, %s1694_s29  ;;  %v1987_v12 = vld [vmem:[%s2508_s5 + $0x8] sm:$0xff]   ;;  %v1988_v13 = vld [vmem:[%s2506_s3] sm:$0xff]   ;;  %v1990_v21 = vld [vmem:[%s2510_s7 + $0x18] sm:$0xff]   ;;  %s2086_s27 = smov 112   ;;  %vm1333_vm6 = vcmask 392192   ;;  %vm1620_vm7 = vcmask 73728  }
  0x1f   : > { %1810 = vmatpush3.bf16.msra.mxu1 %v1982_v3  ;;  %v544_v7 = vld [vmem:[%s542_s17] sm:$0xff]  ;;  %v1991_v24 = vld [vmem:[%s2510_s7 + $0x10] sm:$0xff]   ;;  %v1992_v25 = vld [vmem:[%s2510_s7 + $0x8] sm:$0xff]   ;;  %s2087_s17 = smov 80  }
  0x20   : > { %1811 = vmatprep.subr.bf16.mxu1 %v2083_v1  ;;  %v545_v10 = vpack.c.bf16 %v544_v7, %v544_v7  ;;  %v1989_v14 = vld [vmem:[%s2508_s5] sm:$0xff]  }
  0x21   : > { %1800 = vmatpush3.bf16.msra.mxu0 %v1979_v2  ;;  %v1695_v15 = vld [vmem:[%s2505_s2] ss:$0 sm:$0xff] }
  0x22   : > { %1801 = vmatprep.subr.bf16.mxu0 %v2083_v1  ;;  %v1993_v26 = vld [vmem:[%s2510_s7] sm:$0xff]  }
  0x23   : > { %1812 = vmatpush3.bf16.msra.mxu1 %v1984_v5  ;;  %v1707_v27 = vld [vmem:[%s2509_s6] ss:$0 sm:$0xff] }
  0x24   : > { %1813 = vmatprep.subr.bf16.mxu1 %v2083_v1  ;;  %v1701_v28 = vld [vmem:[%s2507_s4] ss:$0 sm:$0xff] }
  0x25   : > { %1802 = vmatpush3.bf16.msra.mxu0 %v1980_v4  ;;  %v1713_v42 = vld [vmem:[%s2511_s8] ss:$0 sm:$0xff] }
  0x26   : > { %1803 = vmatprep.subr.bf16.mxu0 %v2083_v1 }
  0x27   : > { %1814 = vmatpush3.bf16.msra.mxu1 %v1986_v8 }
  0x28   : > { %1815 = vmatprep.subr.bf16.mxu1 %v2083_v1 }
  0x29   : > { %1804 = vmatpush3.bf16.msra.mxu0 %v1981_v6 }
  0x2a   : > { %1821 = vmatprep.subr.bf16.mxu0 %v2083_v1 }
  0x2b   : > { %1816 = vmatpush3.bf16.msra.mxu1 %v1988_v13 }
  0x2c   : > { %1806 = vmatmul.mubr.msk.bf16.vlgmr.msra.gmra.mxu0 %vm585_vm1, %v545_v10  ;;  %1833 = vmatprep.subr.bf16.mxu1 %v2083_v1 }
  0x2d   : > { %1822 = vmatpush3.bf16.msra.mxu0 %v1983_v9  ;;  %1829 = vmatprep.mubr.msk.bf16.mxu0 %vm2084_vm0, %v2083_v1 }
  0x2e   : > { %1823 = vmatprep.subr.bf16.mxu0 %v2083_v1 }
  0x31   : > { %1824 = vmatpush3.bf16.msra.mxu0 %v1985_v11 }
  0x32   : > { %1825 = vmatprep.subr.bf16.mxu0 %v2083_v1 }
  0x35   : > { %1826 = vmatpush3.bf16.msra.mxu0 %v1987_v12 }
  0x36   : > { %1827 = vmatprep.subr.bf16.mxu0 %v2083_v1 }
  0x39   : > { %1828 = vmatpush3.bf16.msra.mxu0 %v1989_v14 }
  0x3a   : > { %1845 = vmatprep.subr.bf16.mxu0 %v2083_v1 }
  0xec   : > { %v623_v16 = vpop.f32.mrf.mxu0 }
  0xed   : > { %v624_v17 = vadd.f32 %v1695_v15, %v623_v16 }
  0xee   : > { %v1807_v18 = vpop.f32.mrf.mxu0 }
  0xef   : > { %v629_v19 = vadd.f32 %v624_v17, %v544_v7 }
  0xf0   : > { %v626_v20 = vpop.f32.mrf.mxu0 }
  0xf1   : > { %v630_v22 = vpack.c.bf16 %v629_v19, %v629_v19 }
  0xf2   : > { %v1808_v23 = vpop.f32.mrf.mxu0 }
  0xf3   : > { %1818 = vmatmul.mubr.msk.bf16.vlgmr.msra.gmra.mxu1 %vm585_vm1, %v630_v22  ;;  %1830 = vmatmul.mubr.msk.bf16.vlgmr.msra.gmra.mxu0 %vm585_vm1, %v630_v22 }
  0xf4   : > { %1834 = vmatpush3.bf16.msra.mxu1 %v1990_v21  ;;  %1841 = vmatprep.mubr.msk.bf16.mxu1 %vm2084_vm0, %v2083_v1 }
  0xf5   : > { %1835 = vmatprep.subr.bf16.mxu1 %v2083_v1  ;;  %1847 = vmatprep.mubr.msk.bf16.mxu0 %vm2084_vm0, %v2083_v1 }
  0xf8   : > { %1836 = vmatpush3.bf16.msra.mxu1 %v1991_v24 }
  0xf9   : > { %1837 = vmatprep.subr.bf16.mxu1 %v2083_v1 }
  0xfc   : > { %1838 = vmatpush3.bf16.msra.mxu1 %v1992_v25 }
  0xfd   : > { %1839 = vmatprep.subr.bf16.mxu1 %v2083_v1 }
 0x100   : > { %1840 = vmatpush3.bf16.msra.mxu1 %v1993_v26 }
 0x101   : > { %1851 = vmatprep.subr.bf16.mxu1 %v2083_v1 }
 0x103   : > { %1842 = vmatmul.mubr.msk.bf16.vlgmr.msra.gmra.mxu1 %vm585_vm1, %v630_v22 }
 0x104   : > { %1853 = vmatprep.mubr.msk.bf16.mxu1 %vm2084_vm0, %v2083_v1 }
 0x1b3   : > { %v707_v29 = vpop.f32.mrf.mxu1  ;;  %v786_v30 = vpop.f32.mrf.mxu0 }
 0x1b4   : > { %v787_v31 = vadd.f32 %v1707_v27, %v786_v30  ;;  %v708_v34 = vadd.f32 %v1701_v28, %v707_v29 }
 0x1b5   : > { %v1819_v32 = vpop.f32.mrf.mxu1  ;;  %v1831_v33 = vpop.f32.mrf.mxu0 }
 0x1b6   : > { %v872_v35 = vpack.c.bf16 %v787_v31, %v787_v31  ;;  %v871_v41 = vpack.c.bf16 %v708_v34, %v708_v34 }
 0x1b7   : > { %v710_v36 = vpop.f32.mrf.mxu1  ;;  %v789_v37 = vpop.f32.mrf.mxu0 }
 0x1b8   : > { %1098 = vrot.lane.b32.xlu1 %v872_v35, %s2085_s24  ;;  %986 = vrot.lane.b32.xlu0 %v872_v35, %s2086_s27  ;;  %v878_v38 = vsel %vm873_vm2, %v872_v35, 0 }
 0x1b9   : > { %v1820_v39 = vpop.f32.mrf.mxu1  ;;  %v1832_v40 = vpop.f32.mrf.mxu0  ;;  %1846 = vmatpush3.bf16.xpose.msra.mxu0 %v878_v38 }
 0x1ba   : > { %1857 = vmatprep.subr.bf16.mxu0 %v2083_v1 }
 0x1bc   : > { %1096 = vrot.lane.b32.xlu1 %v871_v41, %s2085_s24  ;;  %983 = vrot.lane.b32.xlu0 %v871_v41, %s2086_s27 }
 0x1c0   : > { %1207 = vrot.lane.b32.xlu1 %v871_v41, %s2087_s17  ;;  %1209 = vrot.lane.b32.xlu0 %v872_v35, %s2087_s17 }
 0x1c1   : > { %1848 = vmatmul.mubr.msk.bf16.vlgmr.msra.gmra.mxu0 %vm873_vm2, %v871_v41 }
 0x1c2   : > { %1859 = vmatprep.mubr.msk.bf16.mxu0 %vm2084_vm0, %v2083_v1 }
 0x1c3   : > { %v865_v43 = vpop.f32.mrf.mxu1 }
 0x1c4   : > { %v866_v44 = vadd.f32 %v1713_v42, %v865_v43 }
 0x1c5   : > { %v1843_v45 = vpop.f32.mrf.mxu1 }
 0x1c6   : > { %v2340_v46 = vpack.c.bf16 %v866_v44, %v866_v44 }
 0x1c7   : > { %v868_v47 = vpop.f32.mrf.mxu1 }
 0x1c8   : > { %v940_v48 = vsel %vm938_vm3, %v2340_v46, 0 }
 0x1c9   : > { %v1844_v49 = vpop.f32.mrf.mxu1  ;;  %1852 = vmatpush3.bf16.msra.mxu1 %v940_v48 }
 0x1ca   : > { %1863 = vmatprep.subr.bf16.mxu1 %v2083_v1 }
 0x22a   : > { %v987_v50 = vpop.permute.xlu0 %986  ;;  %v1099_v52 = vpop.permute.xlu1 %1098 }
 0x22b   : > { %v992_v51 = vsel %vm873_vm2, %v987_v50, 0  ;;  %v1104_v54 = vsel %vm873_vm2, %v1099_v52, 0 }
 0x22c   : > { %1858 = vmatpush3.bf16.xpose.msra.mxu0 %v992_v51 }
 0x22d   : > { %1869 = vmatprep.subr.bf16.mxu0 %v2083_v1 }
 0x22e   : > { %v984_v53 = vpop.permute.xlu0 %983  ;;  %v1097_v56 = vpop.permute.xlu1 %1096 }
 0x232   : > { %v1210_v55 = vpop.permute.xlu0 %1209  ;;  %v1208_v58 = vpop.permute.xlu1 %1207 }
 0x233   : > { %1860 = vmatmul.mubr.msk.bf16.vlgmr.msra.gmra.mxu0 %vm873_vm2, %v984_v53  ;;  %v1215_v57 = vsel %vm873_vm2, %v1210_v55, 0 }
 0x234   : > { %1870 = vmatpush3.bf16.xpose.msra.mxu0 %v1104_v54  ;;  %1871 = vmatprep.mubr.msk.bf16.mxu0 %vm2084_vm0, %v2083_v1 }
 0x235   : > { %1881 = vmatprep.subr.bf16.mxu0 %v2083_v1 }
 0x23b   : > { %1872 = vmatmul.mubr.msk.bf16.vlgmr.msra.gmra.mxu0 %vm873_vm2, %v1097_v56 }
 0x23c   : > { %1882 = vmatpush3.bf16.xpose.msra.mxu0 %v1215_v57  ;;  %1883 = vmatprep.mubr.msk.bf16.mxu0 %vm2084_vm0, %v2083_v1 }
 0x23d   : > { %1893 = vmatprep.subr.bf16.mxu0 %v2083_v1 }
 0x243   : > { %1884 = vmatmul.mubr.msk.bf16.vlgmr.msra.gmra.mxu0 %vm873_vm2, %v1208_v58 }
 0x244   : > { %1901 = vmatprep.mubr.msk.bf16.mxu0 %vm2084_vm0, %v2083_v1 }
 0x281   : > { %v914_v59 = vpop.f32.mrf.mxu0 }
 0x282   : > { %v920_v60 = vmul.f32 0.25, %v914_v59 }
 0x283   : > { %v1849_v61 = vpop.f32.mrf.mxu0 }
 0x284   : > { %v922_v62 = vsel %vm921_vm4, %v920_v60, -inf }
 0x285   : > { %923 = vmax.xlane.f32.xlu0 %v922_v62  ;;  %v917_v63 = vpop.f32.mrf.mxu0 }
 0x287   : > { %v1850_v0 = vpop.f32.mrf.mxu0 }
 0x2f3   : > { %v1028_v2 = vpop.f32.mrf.mxu0 }
 0x2f4   : > { %v1034_v3 = vmul.f32 0.25, %v1028_v2 }
 0x2f5   : > { %v1861_v4 = vpop.f32.mrf.mxu0 }
 0x2f6   : > { %v1035_v5 = vsel %vm921_vm4, %v1034_v3, -inf  ;;  %v1995_v4 = vld [vmem:[%s2512_s9 + $0x10] sm:$0xff]  }
 0x2f7   : > { %1036 = vmax.xlane.f32.xlu1 %v1035_v5  ;;  %v1031_v6 = vpop.f32.mrf.mxu0  ;;  %v1996_v5 = vld [vmem:[%s2512_s9 + $0x8] sm:$0xff]  }
 0x2f9   : > { %v1862_v7 = vpop.f32.mrf.mxu0 }
 0x2fb   : > { %v1140_v8 = vpop.f32.mrf.mxu0 }
 0x2fc   : > { %v1146_v9 = vmul.f32 0.25, %v1140_v8 }
 0x2fd   : > { %v1873_v10 = vpop.f32.mrf.mxu0 }
 0x2fe   : > { %v1147_v11 = vsel %vm921_vm4, %v1146_v9, -inf }
 0x2ff   : > { %1148 = vmax.xlane.f32.xlu0 %v1147_v11  ;;  %v1143_v12 = vpop.f32.mrf.mxu0 }
 0x301   : > { %v1874_v13 = vpop.f32.mrf.mxu0 }
 0x303   : > { %v1251_v14 = vpop.f32.mrf.mxu0 }
 0x304   : > { %v1257_v15 = vmul.f32 0.25, %v1251_v14 }
 0x305   : > { %v1885_v16 = vpop.f32.mrf.mxu0 }
 0x306   : > { %v1258_v17 = vsel %vm921_vm4, %v1257_v15, -inf }
 0x307   : > { %1259 = vmax.xlane.f32.xlu0 %v1258_v17  ;;  %v1254_v18 = vpop.f32.mrf.mxu0 }
 0x309   : > { %v1886_v19 = vpop.f32.mrf.mxu0 }
 0x30e   : > { %v924_v20 = vpop.xlane.xlu0 %923 }
 0x30f   : > { %v925_v21 = vsub.f32 %v920_v60, %v924_v20 }
 0x311   : > { %v926_v22 = vmul.f32 1.442695, %v925_v21 }
 0x313   : > { %2005 = vpow2.f32 %v926_v22 }
 0x320   : > { %v2006_v23 = vpop.eup %2005 }
 0x321   : > { %v928_v24 = vsel %vm921_vm4, %v2006_v23, 0.0 }
 0x322   : > { %929 = vadd.xlane.f32.xlu1 %v928_v24 }
 0x333   : > { %1048 = vrot.lane.b32.xlu1 %v2340_v46, %s2086_s27 }
 0x380   : > { %v1037_v25 = vpop.xlane.xlu1 %1036 }
 0x381   : > { %v1038_v26 = vsub.f32 %v1034_v3, %v1037_v25  ;;  %v1994_v3 = vld [vmem:[%s2512_s9 + $0x18] sm:$0xff]  }
 0x382   : > { %1894 = vmatpush3.bf16.msra.mxu0 %v1994_v3 }
 0x383   : > { %v1039_v27 = vmul.f32 1.442695, %v1038_v26  ;;  %1895 = vmatprep.subr.bf16.mxu0 %v2083_v1  ;;  %v1998_v26 = vld [vmem:[%s2514_s11 + $0x18] sm:$0xff]  }
 0x385   : > { %2007 = vpow2.f32 %v1039_v27  ;;  %v1999_v27 = vld [vmem:[%s2514_s11 + $0x10] sm:$0xff]  }
 0x386   : > { %1896 = vmatpush3.bf16.msra.mxu0 %v1995_v4 }
 0x387   : > { %1897 = vmatprep.subr.bf16.mxu0 %v2083_v1 }
 0x388   : > { %v1149_v28 = vpop.xlane.xlu0 %1148 }
 0x389   : > { %v1150_v29 = vsub.f32 %v1146_v9, %v1149_v28  ;;  %v1997_v9 = vld [vmem:[%s2512_s9] sm:$0xff]   ;;  %v2000_v28 = vld [vmem:[%s2514_s11 + $0x8] sm:$0xff]  }
 0x38a   : > { %1898 = vmatpush3.bf16.msra.mxu0 %v1996_v5 }
 0x38b   : > { %v1151_v30 = vmul.f32 1.442695, %v1150_v29  ;;  %1899 = vmatprep.subr.bf16.mxu0 %v2083_v1  ;;  %v2001_v29 = vld [vmem:[%s2514_s11] sm:$0xff]  }
 0x38d   : > { %2009 = vpow2.f32 %v1151_v30  ;;  %v1727_v30 = vld [vmem:[%s2513_s10] ss:$0 sm:$0xff] }
 0x38e   : > { %1900 = vmatpush3.bf16.msra.mxu0 %v1997_v9 }
 0x38f   : > { %1917 = vmatprep.subr.bf16.mxu0 %v2083_v1 }
 0x390   : > { %v1260_v31 = vpop.xlane.xlu0 %1259 }
 0x391   : > { %v1261_v32 = vsub.f32 %v1257_v15, %v1260_v31 }
 0x392   : > { %v2008_v33 = vpop.eup %2007 }
 0x393   : > { %v1262_v34 = vmul.f32 1.442695, %v1261_v32  ;;  %v1041_v35 = vsel %vm921_vm4, %v2008_v33, 0.0 }
 0x394   : > { %1042 = vadd.xlane.f32.xlu0 %v1041_v35 }
 0x395   : > { %2011 = vpow2.f32 %v1262_v34 }
 0x39a   : > { %v2010_v36 = vpop.eup %2009 }
 0x39b   : > { %v1153_v37 = vsel %vm921_vm4, %v2010_v36, 0.0 }
 0x39c   : > { %1154 = vadd.xlane.f32.xlu1 %v1153_v37 }
 0x3a2   : > { %v2012_v38 = vpop.eup %2011 }
 0x3a3   : > { %v1264_v39 = vsel %vm921_vm4, %v2012_v38, 0.0 }
 0x3a4   : > { %1265 = vadd.xlane.f32.xlu0 %v1264_v39 }
 0x3ab   : > { %v930_v40 = vpop.xlane.xlu1 %929 }
 0x3ac   : > { %2013 = vrcp.f32 %v930_v40 }
 0x3ad   : > { %1270 = vrot.lane.b32.xlu1 %v2340_v46, %s2087_s17  ;;  %s2089_s17 = smov 32  }
 0x3af   : > { %v1049_v43 = vpop.permute.xlu1 %1048 }
 0x3b0   : > { %v1054_v45 = vsel %vm938_vm3, %v1049_v43, 0 }
 0x3b9   : > { %v2014_v41 = vpop.eup %2013 }
 0x3ba   : > { %1159 = vrot.lane.b32.xlu0 %v2340_v46, %s2085_s24  ;;  %v932_v42 = vmul.f32 %v2014_v41, %v2006_v23  ;;  %s537_s24 = sand.u32 1, %s2073_s25  }
 0x3bb   : > { %s538_s20 = scalar_lea.vmem [#allocation2], %s537_s24  ;;  %s1623_s26 = scalar_lea.sflag [#allocation3], %s537_s24 }
 0x3bc   : > { %v933_v44 = vpack.c.bf16 %v932_v42, %v932_v42  ;;  %s1635_s18 = sshll.u32 %s538_s20, 4  ;;  %s2464_s18 = int_to_ptr.vmem [resolvable:$true] %s1635_s18 }
 0x3be   : > { %1854 = vmatmul.mubr.msk.bf16.vlgmr.msra.gmra.mxu1 %vm921_vm4, %v933_v44 }
 0x3bf   : > { %1864 = vmatpush3.bf16.msra.mxu1 %v1054_v45  ;;  %1865 = vmatprep.mubr.msk.bf16.mxu1 %vm2084_vm0, %v2083_v1  ;;  %v2002_v45 = vld [vmem:[%s2516_s13 + $0x8] sm:$0xff]  }
 0x3c0   : > { %1875 = vmatprep.subr.bf16.mxu1 %v2083_v1 }
 0x41d   : > { %v1043_v47 = vpop.xlane.xlu0 %1042 }
 0x41e   : > { %2015 = vrcp.f32 %v1043_v47  ;;  %v2003_v47 = vld [vmem:[%s2516_s13] sm:$0xff]  }
 0x425   : > { %v1155_v48 = vpop.xlane.xlu1 %1154 }
 0x426   : > { %2017 = vrcp.f32 %v1155_v48  ;;  %v1436_v48 = vld [vmem:[%s2515_s12] sm:$0x1] }
 0x429   : > { %v1271_v56 = vpop.permute.xlu1 %1270 }
 0x42a   : > { %v1276_v58 = vsel %vm938_vm3, %v1271_v56, 0 }
 0x42b   : > { %v2016_v49 = vpop.eup %2015 }
 0x42c   : > { %v1045_v50 = vmul.f32 %v2016_v49, %v2008_v33 }
 0x42d   : > { %v1266_v46 = vpop.xlane.xlu0 %1265 }
 0x42e   : > { %2019 = vrcp.f32 %v1266_v46  ;;  %v1046_v51 = vpack.c.bf16 %v1045_v50, %v1045_v50 }
 0x430   : > { %1866 = vmatmul.mubr.msk.bf16.vlgmr.msra.gmra.mxu1 %vm921_vm4, %v1046_v51 }
 0x431   : > { %v1160_v52 = vpop.permute.xlu0 %1159  ;;  %1877 = vmatprep.mubr.msk.bf16.mxu1 %vm2084_vm0, %v2083_v1 }
 0x432   : > { %v1165_v53 = vsel %vm938_vm3, %v1160_v52, 0 }
 0x433   : > { %v2018_v54 = vpop.eup %2017  ;;  %1876 = vmatpush3.bf16.msra.mxu1 %v1165_v53 }
 0x434   : > { %1887 = vmatprep.subr.bf16.mxu1 %v2083_v1  ;;  %v1157_v55 = vmul.f32 %v2018_v54, %v2010_v36 }
 0x436   : > { %v1158_v57 = vpack.c.bf16 %v1157_v55, %v1157_v55  ;;  %v1510_v55 = vld [vmem:[%s2517_s14] sm:$0x1] }
 0x438   : > { %1878 = vmatmul.mubr.msk.bf16.vlgmr.msra.gmra.mxu1 %vm921_vm4, %v1158_v57 }
 0x439   : > { %1888 = vmatpush3.bf16.msra.mxu1 %v1276_v58  ;;  %1889 = vmatprep.mubr.msk.bf16.mxu1 %vm2084_vm0, %v2083_v1 }
 0x43a   : > { %1905 = vmatprep.subr.bf16.mxu1 %v2083_v1 }
 0x43b   : > { %v2020_v59 = vpop.eup %2019 }
 0x43c   : > { %v1268_v60 = vmul.f32 %v2020_v59, %v2012_v38 }
 0x43e   : > { %v1269_v61 = vpack.c.bf16 %v1268_v60, %v1268_v60 }
 0x440   : > { %1890 = vmatmul.mubr.msk.bf16.vlgmr.msra.gmra.mxu1 %vm921_vm4, %v1269_v61 }
 0x441   : > { %1913 = vmatprep.mubr.msk.bf16.mxu1 %vm2084_vm0, %v2083_v1  ;;  %1906 = vmatpush3.bf16.msra.mxu1 %v1998_v26 }
 0x442   : > { %1907 = vmatprep.subr.bf16.mxu1 %v2083_v1 }
 0x445   : > { %1908 = vmatpush3.bf16.msra.mxu1 %v1999_v27 }
 0x446   : > { %1909 = vmatprep.subr.bf16.mxu1 %v2083_v1 }
 0x449   : > { %1910 = vmatpush3.bf16.msra.mxu1 %v2000_v28 }
 0x44a   : > { %1911 = vmatprep.subr.bf16.mxu1 %v2083_v1 }
 0x44d   : > { %1912 = vmatpush3.bf16.msra.mxu1 %v2001_v29 }
 0x44e   : > { %1925 = vmatprep.subr.bf16.mxu1 %v2083_v1 }
 0x47e   : > { %v976_v62 = vpop.f32.mrf.mxu1 }
 0x480   : > { %v1855_v63 = vpop.f32.mrf.mxu1 }
 0x481   : > { %v1570_v63 = vld [vmem:[%s2519_s16] sm:$0x1] }
 0x482   : > { %v979_v0 = vpop.f32.mrf.mxu1 }
 0x484   : > { %v1856_v2 = vpop.f32.mrf.mxu1 }
 0x4f0   : > { %v1090_v6 = vpop.f32.mrf.mxu1 }
 0x4f1   : > { %1319 = vrot.lane.b32.xlu1 %v1090_v6, %s2088_s19  ;;  %s2091_s19 = smov [#allocation2]  }
 0x4f2   : > { %v1867_v7 = vpop.f32.mrf.mxu1  ;;  %s2025_s27 = sshll.u32 %s2091_s19, 4  ;;  %s2026_s27 = int_to_ptr.vmem [resolvable:$false] %s2025_s27 }
 0x4f3   : > { %p2028_p0 = scmp.lt.s32.totalorder %s2464_s18, %s2026_s27 }
 0x4f4   : > { %v1093_v8 = vpop.f32.mrf.mxu1 }
 0x4f6   : > { %v1868_v10 = vpop.f32.mrf.mxu1 }
 0x4f8   : > { %v1201_v11 = vpop.f32.mrf.mxu1 }
 0x4f9   : > { %1323 = vrot.lane.b32.xlu0 %v1201_v11, %s2089_s17  ;;  %s2027_s17 = scalar_lea.vmem %s2026_s27, 32 }
 0x4fa   : > { %v1879_v12 = vpop.f32.mrf.mxu1 }
 0x4fc   : > { %v1204_v13 = vpop.f32.mrf.mxu1 }
 0x4fe   : > { %v1880_v14 = vpop.f32.mrf.mxu1 }
 0x500   : > { %v1312_v15 = vpop.f32.mrf.mxu1 }
 0x501   : > { %1327 = vrot.lane.b32.xlu1 %v1312_v15, %s2090_s0  ;;  %s1743_s0 = sshll.u32 %s2203_s28, 4  ;;  %s2021_s28 = scalar_lea.vmem %s2464_s18, 16 }
 0x502   : > { %v1891_v16 = vpop.f32.mrf.mxu1  ;;  %s2462_s22 = scalar_lea.hbm %s2542_s21, %s1743_s0  ;;  %p2022_p11 = scmp.ne.s32.totalorder %s2464_s18, %s2021_s28 }
 0x503   : > { %p2029_p1 = scmp.lt.s32.totalorder %s2027_s17, %s2021_s28 }
 0x504   : > { %v1315_v17 = vpop.f32.mrf.mxu1  ;;  %p2023_p12 = pnand %p2022_p11, %p2220_p5 }
 0x505   : > { %p2030_p2 = por %p2029_p1, %p2028_p0 }
 0x506   : > { %v1892_v18 = vpop.f32.mrf.mxu1  ;;  %p2024_p13 = pneg %p2023_p12 }
 0x508   : > { %p2031_p3 = pnand %p2030_p2, %p2024_p13 }
 0x563   : > { %v1320_v19 = vpop.permute.xlu1 %1319 }
 0x564   : > { %v1330_v21 = vsel %vm873_vm2, %v976_v62, %v1320_v19 }
 0x56b   : > { %v1324_v20 = vpop.permute.xlu0 %1323 }
 0x56c   : > { %v1332_v22 = vsel %vm1331_vm5, %v1330_v21, %v1324_v20 }
 0x573   : > { %v1328_v23 = vpop.permute.xlu1 %1327 }
 0x574   : > { %v1334_v24 = vsel %vm1333_vm6, %v1332_v22, %v1328_v23 }
 0x575   : > { %v1335_v25 = vpack.c.bf16 %v1334_v24, %v1334_v24 }
 0x577   : > { %1902 = vmatmul.mubr.msk.bf16.vlgmr.msra.gmra.mxu0 %vm585_vm1, %v1335_v25 }
 0x578   : > { %1921 = vmatprep.mubr.msk.bf16.mxu0 %vm2084_vm0, %v2083_v1  ;;  %1918 = vmatpush3.bf16.msra.mxu0 %v2002_v45 }
 0x579   : > { %1919 = vmatprep.subr.bf16.mxu0 %v2083_v1 }
 0x57c   : > { %1920 = vmatpush3.bf16.msra.mxu0 %v2003_v47 }
 0x637   : > { %v1412_v31 = vpop.f32.mrf.mxu0 }
 0x638   : > { %v1413_v32 = vadd.f32 %v1727_v30, %v1412_v31 }
 0x639   : > { %v1903_v33 = vpop.f32.mrf.mxu0 }
 0x63a   : > { %v1418_v34 = vsel %vm585_vm1, %v1413_v32, 0.0 }
 0x63b   : > { %v1419_v35 = vrot.slane %v1418_v34, 4  ;;  %v1415_v36 = vpop.f32.mrf.mxu0 }
 0x63d   : > { %v1420_v37 = vadd.f32 %v1419_v35, %v1418_v34  ;;  %v1904_v38 = vpop.f32.mrf.mxu0 }
 0x63f   : > { %v1421_v39 = vrot.slane %v1420_v37, 2 }
 0x641   : > { %v1422_v40 = vadd.f32 %v1421_v39, %v1420_v37 }
 0x643   : > { %v1423_v41 = vrot.slane %v1422_v40, 1 }
 0x645   : > { %v1424_v42 = vadd.f32 %v1423_v41, %v1422_v40 }
 0x647   : > { %v1426_v43 = vmul.f32 0.125, %v1424_v42 }
 0x649   : > { %v1427_v44 = vpack.c.bf16 %v1426_v43, %v1426_v43 }
 0x64b   : > { %1914 = vmatmul.mubr.msk.bf16.vlgmr.msra.gmra.mxu1 %vm585_vm1, %v1427_v44 }
 0x64c   : > { %1927 = vmatprep.mubr.msk.bf16.mxu1 %vm2084_vm0, %v2083_v1  ;;  %v2004_v1 = vld [vmem:[%s2518_s15] sm:$0xff]  }
 0x64d   : > { %1926 = vmatpush3.bf16.msra.mxu1 %v2004_v1 }
 0x70b   : > { %v1498_v49 = vpop.f32.mrf.mxu1 }
 0x70c   : > { %v1499_v50 = vadd.f32 %v1498_v49, %v1436_v48 }
 0x70d   : > { %v1915_v46 = vpop.f32.mrf.mxu1 }
 0x70e   : > { %v1504_v51 = vmax.f32 %v1499_v50, 0.0 }
 0x70f   : > { %v1501_v52 = vpop.f32.mrf.mxu1 }
 0x710   : > { %v1505_v53 = vpack.c.bf16 %v1504_v51, %v1504_v51 }
 0x711   : > { %v1916_v54 = vpop.f32.mrf.mxu1 }
 0x712   : > { %1922 = vmatmul.mubr.msk.bf16.vlgmr.msra.gmra.mxu0 %vm1331_vm5, %v1505_v53 }
 0x7d2   : > { %v1560_v56 = vpop.f32.mrf.mxu0 }
 0x7d3   : > { %v1561_v57 = vadd.f32 %v1560_v56, %v1510_v55 }
 0x7d4   : > { %v1923_v58 = vpop.f32.mrf.mxu0 }
 0x7d5   : > { %v1566_v59 = vmax.f32 %v1561_v57, 0.0 }
 0x7d6   : > { %v1563_v60 = vpop.f32.mrf.mxu0 }
 0x7d7   : > { %v1567_v61 = vpack.c.bf16 %v1566_v59, %v1566_v59 }
 0x7d8   : > { %v1924_v62 = vpop.f32.mrf.mxu0 }
 0x7d9   : > { %1928 = vmatmul.mubr.msk.bf16.vlgmr.msra.gmra.mxu1 %vm873_vm2, %v1567_v61 }
 0x899   : > { %v1614_v0 = vpop.f32.mrf.mxu1 }
 0x89a   : > { %v1615_v2 = vadd.f32 %v1614_v0, %v1570_v63 }
 0x89b   : > { %v1929_v3 = vpop.f32.mrf.mxu1 }
 0x89c   : > { %1621 = vst.msk [vmem:[%s538_s20] sm:$0x1] %vm1620_vm7, %v1615_v2 }
 0x89d   : > { %v1617_v4 = vpop.f32.mrf.mxu1 }
 0x89e   : > { %2034 = shalt.err (!%p2031_p3)
}
 0x89f   : > { %s2035_s0 = scalar_lea.hbm %s2462_s22, 16  ;;  %s2039_s29 = scalar_lea.hbm %s2542_s21, 32 }
 0x8a0   : > { %p2036_p4 = scmp.ne.s32.totalorder %s2462_s22, %s2035_s0  ;;  %p2040_p9 = scmp.lt.s32.totalorder %s2462_s22, %s2542_s21 }
 0x8a1   : > { %p2041_p10 = scmp.lt.s32.totalorder %s2039_s29, %s2035_s0 }
 0x8a2   : > { %p2037_p7 = pnand %p2036_p4, %p2220_p5 }
 0x8a3   : > { %p2042_p11 = por %p2041_p10, %p2040_p9 }
 0x8a4   : > { %p2038_p8 = pneg %p2037_p7 }
 0x8a6   : > { %p2043_p12 = pnand %p2042_p11, %p2038_p8 }
 0x8a8   : > { %2046 = shalt.err (!%p2043_p12)
}
 0x8a9   : > { %1931 = dma.vmem_to_hbm [thread:$0]  (%p2220_p5), %s2464_s18, 16, %s2462_s22, %s1623_s26   ;;  %v1930_v5 = vpop.f32.mrf.mxu1 }
 0x8aa PF: > { %s2543_s28 = sld [smem:[#allocation7_spill]] }
 0x8ab   : > { %s2544_s27 = sld [smem:[#allocation5_spill]] }
 0x8b0   : > { %p1937_p13 = scmp.ge.s32.totalorder %s2543_s28, 2 }
 0x8b1   : > { %s1647_s24 = sand.u32 1, %s2544_s27  }
 0x8b2   : > { %p1934_p0 = pnand %p1937_p13, %p2224_p6  ;;  %s1648_s20 = scalar_lea.sflag [#allocation3], %s1647_s24 }
 0x8b4   : > { %p1935_p1 = pneg %p1934_p0 }
 0x8b6   : > { %2064 = dma.done.wait (%p1935_p1), %s1648_s20, 16  }
 0x8b7   : > { %2066 = vsyncadd (%p1935_p1), %s1648_s20, 4294967280  ;;  %s2546_s27 = sld [smem:[#allocation8_spill]]  ;;  %s2549_s24 = smov %s2073_s25 }
 0x8b8   : > { %s2547_s0 = sld [smem:[#allocation6_spill]] }
 0x8b9   : > { %s2548_s26 = sld [smem:[#allocation9_spill]] }
 0x8bd   : > { %p27_p2 = scmp.ge.s32.totalorder %s2546_s27, 4  }
 0x8be   : > { %s2550_s25 = smov %s2547_s0 }
 0x8bf   :  { %29 = sbr.rel (!%p27_p2) target bundleno = 7 (0x7), region = 123 }
 0x8c4   :  { %1652 = vsyncpa [#allocation3], 1 }
 0x8c5   :  { %1654 = vsyncpa [#allocation3 + $0x1], 1 }

</bundles_post_ra>
